<compile_context>
chip_gen: v7x
topology: tpu7x:2x2x1
jax: 0.10.0
libtpu: 0.0.40
codegen_flags: <defaults>
</compile_context>

<pallas_src>
import functools
import math
from itertools import combinations

import jax
import jax.numpy as jnp
from jax.experimental import pallas as pl
from jax.experimental.pallas import tpu as pltpu


_VMEM_LIMIT = 48 * 1024 * 1024   # explicit scoped-VMEM cap (safe on v5e/v6e/v7x)
_ROW_TILE_CAP = 256              # row tile for the fused linear kernels
_SEQ_TILE_CAP = 32               # seq tile for the fused input projection


def _pick_tile(n, cap):
    """Largest divisor of n that is <= cap and a multiple of 8 (else n)."""
    if n <= cap:
        return n
    for t in range(cap, 0, -1):
        if n % t == 0 and t % 8 == 0:
            return t
    return n


def _gelu(x):
    return jax.nn.gelu(x, approximate=True)


# --------------------------------------------------------------------------
# Kernel A: fused input projection:  (x @ W + b) * sqrt(d_model) + PE + sleep
# --------------------------------------------------------------------------
def _input_proj_kernel(x_ref, w_ref, b_ref, pe_ref, wsf_ref, o_ref, *, scale):
    ts, bsz, d = o_ref.shape
    y = jnp.dot(x_ref[...], w_ref[...], preferred_element_type=jnp.float32)
    y = (y + b_ref[...]) * scale                      # Linear output scaled
    y = y.reshape(ts, bsz, d)
    y = y + pe_ref[...][:, None, :] + wsf_ref[...][:, :, None]
    o_ref[...] = y.astype(o_ref.dtype)


def input_projection(x, w, b, pe, wsf, scale):
    """x: (S,B,F) -> (S,B,D) = (x@w + b)*scale + pe[:,None,:] + wsf[:,:,None]."""
    S, B, F = x.shape
    D = w.shape[1]
    ts = _pick_tile(S, _SEQ_TILE_CAP)
    x_flat = x.reshape(S * B, F)                      # s-major rows (free reshape)
    kernel = functools.partial(_input_proj_kernel, scale=scale)
    return pl.pallas_call(
        kernel,
        out_shape=jax.ShapeDtypeStruct((S, B, D), x.dtype),
        grid=(S // ts,),
        in_specs=[
            pl.BlockSpec((ts * B, F), lambda i: (i, 0)),   # x rows of this seq tile
            pl.BlockSpec((F, D), lambda i: (0, 0)),        # weight: resident
            pl.BlockSpec((1, D), lambda i: (0, 0)),        # bias:   resident
            pl.BlockSpec((ts, D), lambda i: (i, 0)),       # positional encoding
            pl.BlockSpec((ts, B), lambda i: (i, 0)),       # weighted sleep feature
        ],
        out_specs=pl.BlockSpec((ts, B, D), lambda i: (i, 0, 0)),
        compiler_params=pltpu.CompilerParams(
            dimension_semantics=("parallel",),
            vmem_limit_bytes=_VMEM_LIMIT),
    )(x_flat, w, b.reshape(1, D), pe, wsf)


# --------------------------------------------------------------------------
# Generic fused linear:  y = [res +] post_act(pre_act(x) @ W + b) [*scale + shift]
# (residual + eval-mode BatchNorm are fused as a per-channel epilogue)
# --------------------------------------------------------------------------
def _make_linear_kernel(*, has_res, has_affine, post_act, pre_act):
    def kernel(*refs):
        it = iter(refs)
        x_ref, w_ref, b_ref = next(it), next(it), next(it)
        res_ref = next(it) if has_res else None
        sc_ref = next(it) if has_affine else None
        sh_ref = next(it) if has_affine else None
        o_ref = next(it)

        x = x_ref[...]
        if pre_act is not None:
            x = pre_act(x)
        y = jnp.dot(x, w_ref[...], preferred_element_type=jnp.float32)
        y = y + b_ref[...]
        if post_act is not None:
            y = post_act(y)
        if res_ref is not None:
            y = res_ref[...] + y
        if sc_ref is not None:
            y = y * sc_ref[...] + sh_ref[...]
        o_ref[...] = y.astype(o_ref.dtype)
    return kernel


def fused_linear(x, w, b, *, residual=None, affine=None,
                 activation=None, pre_activation=None):
    N, Din = x.shape
    Dout = w.shape[1]
    tn = _pick_tile(N, _ROW_TILE_CAP)

    in_specs = [
        pl.BlockSpec((tn, Din), lambda i: (i, 0)),
        pl.BlockSpec((Din, Dout), lambda i: (0, 0)),       # weight: resident
        pl.BlockSpec((1, Dout), lambda i: (0, 0)),         # bias:   resident
    ]
    args = [x, w, b.reshape(1, Dout)]
    if residual is not None:
        in_specs.append(pl.BlockSpec((tn, Dout), lambda i: (i, 0)))
        args.append(residual)
    if affine is not None:
        sc, sh = affine
        in_specs.append(pl.BlockSpec((1, Dout), lambda i: (0, 0)))
        in_specs.append(pl.BlockSpec((1, Dout), lambda i: (0, 0)))
        args.append(sc.reshape(1, Dout))
        args.append(sh.reshape(1, Dout))

    kernel = _make_linear_kernel(
        has_res=residual is not None, has_affine=affine is not None,
        post_act=activation, pre_act=pre_activation)
    return pl.pallas_call(
        kernel,
        out_shape=jax.ShapeDtypeStruct((N, Dout), x.dtype),
        grid=(N // tn,),
        in_specs=in_specs,
        out_specs=pl.BlockSpec((tn, Dout), lambda i: (i, 0)),
        compiler_params=pltpu.CompilerParams(
            dimension_semantics=("parallel",),
            vmem_limit_bytes=_VMEM_LIMIT),
    )(*args)


# --------------------------------------------------------------------------
# Kernel B: softmax attention per (batch, head) with key-padding bias
# --------------------------------------------------------------------------
def _attn_kernel(q_ref, k_ref, v_ref, bias_ref, o_ref, *, scale):
    q = q_ref[...]                                     # (S, dh)
    k = k_ref[...]
    v = v_ref[...]
    s = jnp.einsum("qd,kd->qk", q, k,
                   preferred_element_type=jnp.float32) * scale
    s = s + bias_ref[...]                              # (1, S) broadcast over rows
    m = jnp.max(s, axis=-1, keepdims=True)
    p = jnp.exp(s - m)
    denom = jnp.sum(p, axis=-1, keepdims=True)
    ctx = jnp.dot(p, v, preferred_element_type=jnp.float32)
    o_ref[...] = (ctx / denom).astype(o_ref.dtype)


def mha_attention(q, k, v, kpm_bias):
    """q/k/v: (B,H,S,dh); kpm_bias: (B,1,S) additive key-padding bias."""
    B, H, S, dh = q.shape
    kernel = functools.partial(_attn_kernel, scale=1.0 / math.sqrt(dh))
    qkv_spec = pl.BlockSpec((None, None, S, dh), lambda b, h: (b, h, 0, 0))
    return pl.pallas_call(
        kernel,
        out_shape=jax.ShapeDtypeStruct((B, H, S, dh), q.dtype),
        grid=(B, H),
        in_specs=[qkv_spec, qkv_spec, qkv_spec,
                  pl.BlockSpec((None, 1, S), lambda b, h: (b, 0, 0))],
        out_specs=pl.BlockSpec((None, None, S, dh), lambda b, h: (b, h, 0, 0)),
        compiler_params=pltpu.CompilerParams(
            dimension_semantics=("parallel", "parallel"),
            vmem_limit_bytes=_VMEM_LIMIT),
    )(q, k, v, kpm_bias)


# --------------------------------------------------------------------------
# Plain-JAX glue (tiny preprocessing, faithful to the torch code)
# --------------------------------------------------------------------------
def _calculate_sleep_distances(Xf):
    """Xf: (B,S,F) -> (S,B,F*(F-1)//2 + 1)."""
    F = Xf.shape[-1]
    pair = jnp.stack(
        [(Xf[:, :, f1] - Xf[:, :, f2]) ** 2 for f1, f2 in combinations(range(F), 2)],
        axis=-1)
    total = jnp.sum(pair, axis=-1, keepdims=True)
    d = jnp.sqrt(jnp.concatenate([pair, total], axis=-1))
    return jnp.transpose(d, (1, 0, 2))


def _min_max_scale(t):
    mask = t != 0
    mins = jnp.min(jnp.where(mask, t, jnp.inf), axis=0, keepdims=True)
    maxs = jnp.max(jnp.where(mask, t, -jnp.inf), axis=0, keepdims=True)
    scaled = (t - mins) / (maxs - mins)
    return jnp.where(t == 0, 0.0, scaled)


def _sleep_features(X, inp_t):
    sleep_time = inp_t[:, :, 3]                        # literal column 3, as in torch
    dist = _min_max_scale(_calculate_sleep_distances(X[:, :, :-1]))
    return jnp.concatenate([sleep_time[:, :, None], dist], axis=-1)   # (S,B,5)


def fixed_positional_encoding(max_len, d_model):
    position = jnp.arange(max_len, dtype=jnp.float32)[:, None]
    div_term = jnp.exp(jnp.arange(0, d_model, 2, dtype=jnp.float32)
                       * (-math.log(10000.0) / d_model))
    ang = position * div_term
    return jnp.stack([jnp.sin(ang), jnp.cos(ang)], axis=-1).reshape(max_len, d_model)


# --------------------------------------------------------------------------
# Encoder layer and full forward (Pallas path)
# --------------------------------------------------------------------------
def encoder_layer(lp, h_sbd, kpm_bias, n_heads, eps=1e-5):
    S, B, D = h_sbd.shape
    dh = D // n_heads
    x2 = h_sbd.reshape(S * B, D)

    qkv = fused_linear(x2, lp["w_qkv"], lp["b_qkv"])                 # (S*B, 3D)
    qkv = qkv.reshape(S, B, 3, n_heads, dh)
    q = jnp.transpose(qkv[:, :, 0], (1, 2, 0, 3))                    # (B,H,S,dh)
    k = jnp.transpose(qkv[:, :, 1], (1, 2, 0, 3))
    v = jnp.transpose(qkv[:, :, 2], (1, 2, 0, 3))

    ctx = mha_attention(q, k, v, kpm_bias)                           # (B,H,S,dh)
    ctx = jnp.transpose(ctx, (2, 0, 1, 3)).reshape(S * B, D)

    bn1_scale = lp["bn1_g"] / jnp.sqrt(lp["bn1_rv"] + eps)
    bn1_shift = lp["bn1_b"] - lp["bn1_rm"] * bn1_scale
    y = fused_linear(ctx, lp["w_o"], lp["b_o"], residual=x2,
                     affine=(bn1_scale, bn1_shift))                  # BN1(res + proj)

    ffh = fused_linear(y, lp["w_ff1"], lp["b_ff1"], activation=_gelu)
    bn2_scale = lp["bn2_g"] / jnp.sqrt(lp["bn2_rv"] + eps)
    bn2_shift = lp["bn2_b"] - lp["bn2_rm"] * bn2_scale
    y2 = fused_linear(ffh, lp["w_ff2"], lp["b_ff2"], residual=y,
                      affine=(bn2_scale, bn2_shift))                 # BN2(res + FFN)
    return y2.reshape(S, B, D)


def ts_transformer_forward(params, X, padding_masks, *, n_heads):
    """X: (B, S, feat_dim+1); padding_masks: (B, S) bool (True = keep)."""
    B, S, _ = X.shape
    D = params["w_in"].shape[1]
    if S > params["pe"].shape[0]:
        raise ValueError("seq_len exceeds max_len of the positional encoding")

    inp_t = jnp.transpose(X, (1, 0, 2))                # (S,B,feat_dim+1)
    inp = inp_t[:, :, :-1]                             # (S,B,feat_dim)
    sleep_feat = _sleep_features(X, inp_t)             # (S,B,5)
    wsf = jnp.einsum("f,sbf->sb", params["sleep"][0], sleep_feat)

    h = input_projection(inp, params["w_in"], params["b_in"],
                         params["pe"][:S], wsf, math.sqrt(D))        # (S,B,D)

    kpm_bias = jnp.where(padding_masks, 0.0, -1e9).astype(jnp.float32)[:, None, :]

    for lp in params["layers"]:
        h = encoder_layer(lp, h, kpm_bias, n_heads)

    out = fused_linear(h.reshape(S * B, D), params["w_out"], params["b_out"],
                       pre_activation=_gelu)                          # act -> Linear
    return jnp.transpose(out.reshape(S, B, -1), (1, 0, 2))            # (B,S,feat_dim)


# --------------------------------------------------------------------------
# Pure-JAX reference (independent of the Pallas kernels)
# --------------------------------------------------------------------------
_HI = jax.lax.Precision.HIGHEST


def reference_forward(params, X, padding_masks, *, n_heads, eps=1e-5):
    B, S, _ = X.shape
    D = params["w_in"].shape[1]
    dh = D // n_heads

    inp_t = jnp.transpose(X, (1, 0, 2))
    inp = inp_t[:, :, :-1]
    sleep_feat = _sleep_features(X, inp_t)
    wsf = jnp.einsum("f,sbf->sb", params["sleep"][0], sleep_feat)

    h = (jnp.dot(inp, params["w_in"], precision=_HI) + params["b_in"]) * math.sqrt(D)
    h = h + params["pe"][:S][:, None, :] + wsf[:, :, None]

    bias = jnp.where(padding_masks, 0.0, -1e9).astype(jnp.float32)

    for lp in params["layers"]:
        x2 = h.reshape(S * B, D)
        qkv = jnp.dot(x2, lp["w_qkv"], precision=_HI) + lp["b_qkv"]
        qkv = qkv.reshape(S, B, 3, n_heads, dh)
        q = jnp.transpose(qkv[:, :, 0], (1, 2, 0, 3))
        k = jnp.transpose(qkv[:, :, 1], (1, 2, 0, 3))
        v = jnp.transpose(qkv[:, :, 2], (1, 2, 0, 3))
        s = jnp.einsum("bhqd,bhkd->bhqk", q, k, precision=_HI) / math.sqrt(dh)
        s = s + bias[:, None, None, :]
        m = jnp.max(s, axis=-1, keepdims=True)
        p = jnp.exp(s - m)
        attn = p / jnp.sum(p, axis=-1, keepdims=True)
        ctx = jnp.einsum("bhqk,bhkd->bhqd", attn, v, precision=_HI)
        ctx = jnp.transpose(ctx, (2, 0, 1, 3)).reshape(S * B, D)
        y = x2 + jnp.dot(ctx, lp["w_o"], precision=_HI) + lp["b_o"]
        y = (y - lp["bn1_rm"]) / jnp.sqrt(lp["bn1_rv"] + eps) * lp["bn1_g"] + lp["bn1_b"]
        ffh = _gelu(jnp.dot(y, lp["w_ff1"], precision=_HI) + lp["b_ff1"])
        y2 = y + jnp.dot(ffh, lp["w_ff2"], precision=_HI) + lp["b_ff2"]
        y2 = (y2 - lp["bn2_rm"]) / jnp.sqrt(lp["bn2_rv"] + eps) * lp["bn2_g"] + lp["bn2_b"]
        h = y2.reshape(S, B, D)

    out = jnp.dot(_gelu(h.reshape(S * B, D)), params["w_out"], precision=_HI) + params["b_out"]
    return jnp.transpose(out.reshape(S, B, -1), (1, 0, 2))


# --------------------------------------------------------------------------
# Parameter init + demo
# --------------------------------------------------------------------------
def init_params(key, feat_dim, d_model, n_heads, num_layers, dim_ff, max_len):
    ks = iter(jax.random.split(key, 8 + 16 * num_layers))

    def dense(din, dout, scale=None):
        s = (1.0 / math.sqrt(din)) if scale is None else scale
        return jax.random.normal(next(ks), (din, dout), jnp.float32) * s

    def vec(dim, scale=0.05):
        return jax.random.normal(next(ks), (dim,), jnp.float32) * scale

    def pos(dim):
        return jax.random.uniform(next(ks), (dim,), jnp.float32, 0.8, 1.2)

    params = {
        "w_in": dense(feat_dim, d_model,
                      scale=1.0 / (math.sqrt(feat_dim) * math.sqrt(d_model))),
        "b_in": vec(d_model),
        "pe": fixed_positional_encoding(max_len, d_model),
        "sleep": jax.random.uniform(next(ks), (1, 5), jnp.float32, -0.02, 0.02),
        "w_out": dense(d_model, feat_dim),
        "b_out": vec(feat_dim),
        "layers": [],
    }
    for _ in range(num_layers):
        params["layers"].append({
            "w_qkv": dense(d_model, 3 * d_model), "b_qkv": vec(3 * d_model, 0.02),
            "w_o": dense(d_model, d_model), "b_o": vec(d_model, 0.02),
            "bn1_g": pos(d_model), "bn1_b": vec(d_model),
            "bn1_rm": vec(d_model), "bn1_rv": pos(d_model),
            "w_ff1": dense(d_model, dim_ff), "b_ff1": vec(dim_ff, 0.02),
            "w_ff2": dense(dim_ff, d_model), "b_ff2": vec(d_model, 0.02),
            "bn2_g": pos(d_model), "bn2_b": vec(d_model),
            "bn2_rm": vec(d_model), "bn2_rv": pos(d_model),
        })
    return params


if __name__ == "__main__":
    key = jax.random.PRNGKey(0)
    k_par, k_x = jax.random.split(key)

    # TSTransformerEncoder(feat_dim=3, max_len=128, d_model=128, n_heads=4,
    # num_layers=2, dim_feedforward=256); X carries feat_dim+1 columns, the
    # last one being the sleep-time feature consumed by SleepEncoding.
    feat_dim, d_model, n_heads = 3, 128, 4
    num_layers, dim_ff, max_len = 2, 256, 128
    batch, seq_len = 8, 64

    params = init_params(k_par, feat_dim, d_model, n_heads, num_layers, dim_ff, max_len)
    X = jax.random.normal(k_x, (batch, seq_len, feat_dim + 1), jnp.float32)
    lengths = jnp.array([64, 48, 56, 64, 40, 64, 52, 60], dtype=jnp.int32)
    padding_masks = jnp.arange(seq_len, dtype=jnp.int32)[None, :] < lengths[:, None]

    fwd = jax.jit(functools.partial(ts_transformer_forward, n_heads=n_heads))
    out = jax.block_until_ready(fwd(params, X, padding_masks))

    ref = reference_forward(params, X, padding_masks, n_heads=n_heads)

    assert out.shape == (batch, seq_len, feat_dim)
    assert bool(jnp.all(jnp.isfinite(out)))
    assert jnp.allclose(out, ref, atol=2e-2, rtol=2e-2), (
        "mismatch vs reference: max abs err = %e"
        % float(jnp.max(jnp.abs(out - ref))))

    print("KERNEL_OK")
</pallas_src>

<mosaic_0001>
module attributes {stable_mosaic.version = 11 : i64} {
  func.func @_input_proj_kernel(%arg0: i32, %arg1: memref<256x3xf32, #tpu.memory_space<vmem>>, %arg2: memref<3x128xf32, #tpu.memory_space<vmem>>, %arg3: memref<1x128xf32, #tpu.memory_space<vmem>>, %arg4: memref<32x128xf32, #tpu.memory_space<vmem>>, %arg5: memref<32x8xf32, #tpu.memory_space<vmem>>, %arg6: memref<32x8x128xf32, #tpu.memory_space<vmem>>) attributes {dimension_semantics = [#tpu.dimension_semantics<parallel>], iteration_bounds = array<i64: 2>, scalar_prefetch = 0 : i64, scratch_operands = 0 : i64, tpu.core_type = #tpu.core_type<tc>, window_params = [{transform_indices = @transform_0, window_bounds = array<i64: 256, 3>}, {pipeline_mode = #tpu.pipeline_mode<synchronous>, transform_indices = @transform_1, window_bounds = array<i64: 3, 128>}, {pipeline_mode = #tpu.pipeline_mode<synchronous>, transform_indices = @transform_2, window_bounds = array<i64: 1, 128>}, {transform_indices = @transform_3, window_bounds = array<i64: 32, 128>}, {transform_indices = @transform_4, window_bounds = array<i64: 32, 8>}, {transform_indices = @transform_5, window_bounds = array<i64: 32, 8, 128>}]} {
    %c0 = arith.constant 0 : index
    %c0_0 = arith.constant 0 : index
    %0 = vector.load %arg1[%c0, %c0_0] : memref<256x3xf32, #tpu.memory_space<vmem>>, vector<256x3xf32>
    %c0_1 = arith.constant 0 : index
    %c0_2 = arith.constant 0 : index
    %1 = vector.load %arg2[%c0_1, %c0_2] : memref<3x128xf32, #tpu.memory_space<vmem>>, vector<3x128xf32>
    %cst = arith.constant dense<0.000000e+00> : vector<256x128xf32>
    %2 = tpu.matmul %0, %1, %cst {dimension_numbers = #tpu.dot_dimension_numbers<[1], [0], [0], [1], [0, 0, 1, 1], [], []>} : vector<256x3xf32>, vector<3x128xf32>, vector<256x128xf32> -> vector<256x128xf32>
    %c0_3 = arith.constant 0 : index
    %c0_4 = arith.constant 0 : index
    %3 = vector.load %arg3[%c0_3, %c0_4] : memref<1x128xf32, #tpu.memory_space<vmem>>, vector<1x128xf32>
    %4 = vector.broadcast %3 : vector<1x128xf32> to vector<256x128xf32>
    %5 = arith.addf %2, %4 : vector<256x128xf32>
    %cst_5 = arith.constant 11.3137083 : f32
    %6 = vector.broadcast %cst_5 : f32 to vector<256x128xf32>
    %7 = arith.mulf %5, %6 : vector<256x128xf32>
    %8 = vector.shape_cast %7 : vector<256x128xf32> to vector<32x8x128xf32>
    %c0_6 = arith.constant 0 : index
    %c0_7 = arith.constant 0 : index
    %9 = vector.load %arg4[%c0_6, %c0_7] : memref<32x128xf32, #tpu.memory_space<vmem>>, vector<32x128xf32>
    %10 = vector.shape_cast %9 : vector<32x128xf32> to vector<32x1x128xf32>
    %11 = vector.broadcast %10 : vector<32x1x128xf32> to vector<32x8x128xf32>
    %12 = arith.addf %8, %11 : vector<32x8x128xf32>
    %c0_8 = arith.constant 0 : index
    %c0_9 = arith.constant 0 : index
    %13 = vector.load %arg5[%c0_8, %c0_9] : memref<32x8xf32, #tpu.memory_space<vmem>>, vector<32x8xf32>
    %14 = vector.shape_cast %13 : vector<32x8xf32> to vector<32x8x1xf32>
    %15 = vector.broadcast %14 : vector<32x8x1xf32> to vector<32x8x128xf32>
    %16 = arith.addf %12, %15 : vector<32x8x128xf32>
    %c0_10 = arith.constant 0 : index
    %c0_11 = arith.constant 0 : index
    %c0_12 = arith.constant 0 : index
    %17 = vector.load %arg6[%c0_10, %c0_11, %c0_12] : memref<32x8x128xf32, #tpu.memory_space<vmem>>, vector<32x8x128xf32>
    tpu.vector_store %arg6[%c0_10, %c0_11, %c0_12], %16 {strides = array<i32>} : memref<32x8x128xf32, #tpu.memory_space<vmem>>, vector<32x8x128xf32>,
    return
  }
  func.func @transform_0(%arg0: i32) -> (i32, i32) {
    %c0_i32 = arith.constant 0 : i32
    %c0_i32_0 = arith.constant 0 : i32
    return %arg0, %c0_i32 : i32, i32
  }
  func.func @transform_1(%arg0: i32) -> (i32, i32) {
    %c0_i32 = arith.constant 0 : i32
    %c0_i32_0 = arith.constant 0 : i32
    %c0_i32_1 = arith.constant 0 : i32
    return %c0_i32, %c0_i32_0 : i32, i32
  }
  func.func @transform_2(%arg0: i32) -> (i32, i32) {
    %c0_i32 = arith.constant 0 : i32
    %c0_i32_0 = arith.constant 0 : i32
    %c0_i32_1 = arith.constant 0 : i32
    return %c0_i32, %c0_i32_0 : i32, i32
  }
  func.func @transform_3(%arg0: i32) -> (i32, i32) {
    %c0_i32 = arith.constant 0 : i32
    %c0_i32_0 = arith.constant 0 : i32
    return %arg0, %c0_i32 : i32, i32
  }
  func.func @transform_4(%arg0: i32) -> (i32, i32) {
    %c0_i32 = arith.constant 0 : i32
    %c0_i32_0 = arith.constant 0 : i32
    return %arg0, %c0_i32 : i32, i32
  }
  func.func @transform_5(%arg0: i32) -> (i32, i32, i32) {
    %c0_i32 = arith.constant 0 : i32
    %c0_i32_0 = arith.constant 0 : i32
    %c0_i32_1 = arith.constant 0 : i32
    return %arg0, %c0_i32, %c0_i32_0 : i32, i32, i32
  }
}

module attributes {stable_mosaic.version = 11 : i64} {
  func.func @kernel(%arg0: i32, %arg1: memref<256x128xf32, #tpu.memory_space<vmem>>, %arg2: memref<128x384xf32, #tpu.memory_space<vmem>>, %arg3: memref<1x384xf32, #tpu.memory_space<vmem>>, %arg4: memref<256x384xf32, #tpu.memory_space<vmem>>) attributes {dimension_semantics = [#tpu.dimension_semantics<parallel>], iteration_bounds = array<i64: 2>, scalar_prefetch = 0 : i64, scratch_operands = 0 : i64, tpu.core_type = #tpu.core_type<tc>, window_params = [{transform_indices = @transform_0, window_bounds = array<i64: 256, 128>}, {pipeline_mode = #tpu.pipeline_mode<synchronous>, transform_indices = @transform_1, window_bounds = array<i64: 128, 384>}, {pipeline_mode = #tpu.pipeline_mode<synchronous>, transform_indices = @transform_2, window_bounds = array<i64: 1, 384>}, {transform_indices = @transform_3, window_bounds = array<i64: 256, 384>}]} {
    %c0 = arith.constant 0 : index
    %c0_0 = arith.constant 0 : index
    %0 = vector.load %arg1[%c0, %c0_0] : memref<256x128xf32, #tpu.memory_space<vmem>>, vector<256x128xf32>
    %c0_1 = arith.constant 0 : index
    %c0_2 = arith.constant 0 : index
    %1 = vector.load %arg2[%c0_1, %c0_2] : memref<128x384xf32, #tpu.memory_space<vmem>>, vector<128x384xf32>
    %cst = arith.constant dense<0.000000e+00> : vector<256x384xf32>
    %2 = tpu.matmul %0, %1, %cst {dimension_numbers = #tpu.dot_dimension_numbers<[1], [0], [0], [1], [0, 0, 1, 1], [], []>} : vector<256x128xf32>, vector<128x384xf32>, vector<256x384xf32> -> vector<256x384xf32>
    %c0_3 = arith.constant 0 : index
    %c0_4 = arith.constant 0 : index
    %3 = vector.load %arg3[%c0_3, %c0_4] : memref<1x384xf32, #tpu.memory_space<vmem>>, vector<1x384xf32>
    %4 = vector.broadcast %3 : vector<1x384xf32> to vector<256x384xf32>
    %5 = arith.addf %2, %4 : vector<256x384xf32>
    %c0_5 = arith.constant 0 : index
    %c0_6 = arith.constant 0 : index
    %6 = vector.load %arg4[%c0_5, %c0_6] : memref<256x384xf32, #tpu.memory_space<vmem>>, vector<256x384xf32>
    tpu.vector_store %arg4[%c0_5, %c0_6], %5 {strides = array<i32>} : memref<256x384xf32, #tpu.memory_space<vmem>>, vector<256x384xf32>,
    return
  }
  func.func @transform_0(%arg0: i32) -> (i32, i32) {
    %c0_i32 = arith.constant 0 : i32
    %c0_i32_0 = arith.constant 0 : i32
    return %arg0, %c0_i32 : i32, i32
  }
  func.func @transform_1(%arg0: i32) -> (i32, i32) {
    %c0_i32 = arith.constant 0 : i32
    %c0_i32_0 = arith.constant 0 : i32
    %c0_i32_1 = arith.constant 0 : i32
    return %c0_i32, %c0_i32_0 : i32, i32
  }
  func.func @transform_2(%arg0: i32) -> (i32, i32) {
    %c0_i32 = arith.constant 0 : i32
    %c0_i32_0 = arith.constant 0 : i32
    %c0_i32_1 = arith.constant 0 : i32
    return %c0_i32, %c0_i32_0 : i32, i32
  }
  func.func @transform_3(%arg0: i32) -> (i32, i32) {
    %c0_i32 = arith.constant 0 : i32
    %c0_i32_0 = arith.constant 0 : i32
    return %arg0, %c0_i32 : i32, i32
  }
}

module attributes {stable_mosaic.version = 11 : i64} {
  func.func @_attn_kernel(%arg0: i32, %arg1: i32, %arg2: memref<1x1x64x32xf32, #tpu.memory_space<vmem>>, %arg3: memref<1x1x64x32xf32, #tpu.memory_space<vmem>>, %arg4: memref<1x1x64x32xf32, #tpu.memory_space<vmem>>, %arg5: memref<1x1x64xf32, #tpu.memory_space<vmem>>, %arg6: memref<1x1x64x32xf32, #tpu.memory_space<vmem>>) attributes {dimension_semantics = [#tpu.dimension_semantics<parallel>, #tpu.dimension_semantics<parallel>], iteration_bounds = array<i64: 8, 4>, scalar_prefetch = 0 : i64, scratch_operands = 0 : i64, tpu.core_type = #tpu.core_type<tc>, window_params = [{transform_indices = @transform_0, window_bounds = array<i64: 1, 1, 64, 32>}, {transform_indices = @transform_1, window_bounds = array<i64: 1, 1, 64, 32>}, {transform_indices = @transform_2, window_bounds = array<i64: 1, 1, 64, 32>}, {transform_indices = @transform_3, window_bounds = array<i64: 1, 1, 64>}, {transform_indices = @transform_4, window_bounds = array<i64: 1, 1, 64, 32>}]} {
    %c0 = arith.constant 0 : index
    %c0_0 = arith.constant 0 : index
    %c0_1 = arith.constant 0 : index
    %c0_2 = arith.constant 0 : index
    %0 = vector.load %arg2[%c0, %c0_0, %c0_1, %c0_2] : memref<1x1x64x32xf32, #tpu.memory_space<vmem>>, vector<1x1x64x32xf32>
    %1 = vector.shape_cast %0 : vector<1x1x64x32xf32> to vector<64x32xf32>
    %c0_3 = arith.constant 0 : index
    %c0_4 = arith.constant 0 : index
    %c0_5 = arith.constant 0 : index
    %c0_6 = arith.constant 0 : index
    %2 = vector.load %arg3[%c0_3, %c0_4, %c0_5, %c0_6] : memref<1x1x64x32xf32, #tpu.memory_space<vmem>>, vector<1x1x64x32xf32>
    %3 = vector.shape_cast %2 : vector<1x1x64x32xf32> to vector<64x32xf32>
    %c0_7 = arith.constant 0 : index
    %c0_8 = arith.constant 0 : index
    %c0_9 = arith.constant 0 : index
    %c0_10 = arith.constant 0 : index
    %4 = vector.load %arg4[%c0_7, %c0_8, %c0_9, %c0_10] : memref<1x1x64x32xf32, #tpu.memory_space<vmem>>, vector<1x1x64x32xf32>
    %5 = vector.shape_cast %4 : vector<1x1x64x32xf32> to vector<64x32xf32>
    "tpu.trace_start"() <{level = 10 : i32, message = "qd,kd->qk"}> : () -> ()
    %cst = arith.constant dense<0.000000e+00> : vector<64x64xf32>
    %6 = tpu.matmul %1, %3, %cst {dimension_numbers = #tpu.dot_dimension_numbers<[1], [1], [0], [0], [0, 0, 1, 0], [], []>} : vector<64x32xf32>, vector<64x32xf32>, vector<64x64xf32> -> vector<64x64xf32>
    "tpu.trace_stop"() : () -> ()
    %cst_11 = arith.constant 0.176776692 : f32
    %7 = vector.broadcast %cst_11 : f32 to vector<64x64xf32>
    %8 = arith.mulf %6, %7 : vector<64x64xf32>
    %c0_12 = arith.constant 0 : index
    %c0_13 = arith.constant 0 : index
    %c0_14 = arith.constant 0 : index
    %9 = vector.load %arg5[%c0_12, %c0_13, %c0_14] : memref<1x1x64xf32, #tpu.memory_space<vmem>>, vector<1x1x64xf32>
    %10 = vector.shape_cast %9 : vector<1x1x64xf32> to vector<1x64xf32>
    %11 = vector.broadcast %10 : vector<1x64xf32> to vector<64x64xf32>
    %12 = arith.addf %8, %11 : vector<64x64xf32>
    %cst_15 = arith.constant dense<0xFF800000> : vector<64xf32>
    %13 = vector.multi_reduction <maximumf>, %12, %cst_15 [1] : vector<64x64xf32> to vector<64xf32>
    %14 = vector.shape_cast %13 : vector<64xf32> to vector<64x1xf32>
    %15 = vector.broadcast %14 : vector<64x1xf32> to vector<64x64xf32>
    %16 = arith.subf %12, %15 : vector<64x64xf32>
    %17 = math.exp %16 : vector<64x64xf32>
    %cst_16 = arith.constant dense<0.000000e+00> : vector<64xf32>
    %18 = vector.multi_reduction <add>, %17, %cst_16 [1] : vector<64x64xf32> to vector<64xf32>
    %19 = vector.shape_cast %18 : vector<64xf32> to vector<64x1xf32>
    %cst_17 = arith.constant dense<0.000000e+00> : vector<64x32xf32>
    %20 = tpu.matmul %17, %5, %cst_17 {dimension_numbers = #tpu.dot_dimension_numbers<[1], [0], [0], [1], [0, 0, 1, 1], [], []>} : vector<64x64xf32>, vector<64x32xf32>, vector<64x32xf32> -> vector<64x32xf32>
    %21 = vector.broadcast %19 : vector<64x1xf32> to vector<64x32xf32>
    %22 = arith.divf %20, %21 : vector<64x32xf32>
    %c0_18 = arith.constant 0 : index
    %c0_19 = arith.constant 0 : index
    %c0_20 = arith.constant 0 : index
    %c0_21 = arith.constant 0 : index
    %23 = vector.load %arg6[%c0_18, %c0_19, %c0_20, %c0_21] : memref<1x1x64x32xf32, #tpu.memory_space<vmem>>, vector<1x1x64x32xf32>
    %24 = vector.shape_cast %23 : vector<1x1x64x32xf32> to vector<64x32xf32>
    %25 = vector.shape_cast %22 : vector<64x32xf32> to vector<1x1x64x32xf32>
    tpu.vector_store %arg6[%c0_18, %c0_19, %c0_20, %c0_21], %25 {strides = array<i32>} : memref<1x1x64x32xf32, #tpu.memory_space<vmem>>, vector<1x1x64x32xf32>,
    return
  }
  func.func @transform_0(%arg0: i32, %arg1: i32) -> (i32, i32, i32, i32) {
    %c0_i32 = arith.constant 0 : i32
    %c0_i32_0 = arith.constant 0 : i32
    %c0_i32_1 = arith.constant 0 : i32
    return %arg0, %arg1, %c0_i32, %c0_i32_0 : i32, i32, i32, i32
  }
  func.func @transform_1(%arg0: i32, %arg1: i32) -> (i32, i32, i32, i32) {
    %c0_i32 = arith.constant 0 : i32
    %c0_i32_0 = arith.constant 0 : i32
    %c0_i32_1 = arith.constant 0 : i32
    return %arg0, %arg1, %c0_i32, %c0_i32_0 : i32, i32, i32, i32
  }
  func.func @transform_2(%arg0: i32, %arg1: i32) -> (i32, i32, i32, i32) {
    %c0_i32 = arith.constant 0 : i32
    %c0_i32_0 = arith.constant 0 : i32
    %c0_i32_1 = arith.constant 0 : i32
    return %arg0, %arg1, %c0_i32, %c0_i32_0 : i32, i32, i32, i32
  }
  func.func @transform_3(%arg0: i32, %arg1: i32) -> (i32, i32, i32) {
    %c0_i32 = arith.constant 0 : i32
    %c0_i32_0 = arith.constant 0 : i32
    %c0_i32_1 = arith.constant 0 : i32
    return %arg0, %c0_i32, %c0_i32_0 : i32, i32, i32
  }
  func.func @transform_4(%arg0: i32, %arg1: i32) -> (i32, i32, i32, i32) {
    %c0_i32 = arith.constant 0 : i32
    %c0_i32_0 = arith.constant 0 : i32
    %c0_i32_1 = arith.constant 0 : i32
    return %arg0, %arg1, %c0_i32, %c0_i32_0 : i32, i32, i32, i32
  }
}

module attributes {stable_mosaic.version = 11 : i64} {
  func.func @kernel(%arg0: i32, %arg1: memref<256x128xf32, #tpu.memory_space<vmem>>, %arg2: memref<128x128xf32, #tpu.memory_space<vmem>>, %arg3: memref<1x128xf32, #tpu.memory_space<vmem>>, %arg4: memref<256x128xf32, #tpu.memory_space<vmem>>, %arg5: memref<1x128xf32, #tpu.memory_space<vmem>>, %arg6: memref<1x128xf32, #tpu.memory_space<vmem>>, %arg7: memref<256x128xf32, #tpu.memory_space<vmem>>) attributes {dimension_semantics = [#tpu.dimension_semantics<parallel>], iteration_bounds = array<i64: 2>, scalar_prefetch = 0 : i64, scratch_operands = 0 : i64, tpu.core_type = #tpu.core_type<tc>, window_params = [{transform_indices = @transform_0, window_bounds = array<i64: 256, 128>}, {pipeline_mode = #tpu.pipeline_mode<synchronous>, transform_indices = @transform_1, window_bounds = array<i64: 128, 128>}, {pipeline_mode = #tpu.pipeline_mode<synchronous>, transform_indices = @transform_2, window_bounds = array<i64: 1, 128>}, {transform_indices = @transform_3, window_bounds = array<i64: 256, 128>}, {pipeline_mode = #tpu.pipeline_mode<synchronous>, transform_indices = @transform_4, window_bounds = array<i64: 1, 128>}, {pipeline_mode = #tpu.pipeline_mode<synchronous>, transform_indices = @transform_5, window_bounds = array<i64: 1, 128>}, {transform_indices = @transform_6, window_bounds = array<i64: 256, 128>}]} {
    %c0 = arith.constant 0 : index
    %c0_0 = arith.constant 0 : index
    %0 = vector.load %arg1[%c0, %c0_0] : memref<256x128xf32, #tpu.memory_space<vmem>>, vector<256x128xf32>
    %c0_1 = arith.constant 0 : index
    %c0_2 = arith.constant 0 : index
    %1 = vector.load %arg2[%c0_1, %c0_2] : memref<128x128xf32, #tpu.memory_space<vmem>>, vector<128x128xf32>
    %cst = arith.constant dense<0.000000e+00> : vector<256x128xf32>
    %2 = tpu.matmul %0, %1, %cst {dimension_numbers = #tpu.dot_dimension_numbers<[1], [0], [0], [1], [0, 0, 1, 1], [], []>} : vector<256x128xf32>, vector<128x128xf32>, vector<256x128xf32> -> vector<256x128xf32>
    %c0_3 = arith.constant 0 : index
    %c0_4 = arith.constant 0 : index
    %3 = vector.load %arg3[%c0_3, %c0_4] : memref<1x128xf32, #tpu.memory_space<vmem>>, vector<1x128xf32>
    %4 = vector.broadcast %3 : vector<1x128xf32> to vector<256x128xf32>
    %5 = arith.addf %2, %4 : vector<256x128xf32>
    %c0_5 = arith.constant 0 : index
    %c0_6 = arith.constant 0 : index
    %6 = vector.load %arg4[%c0_5, %c0_6] : memref<256x128xf32, #tpu.memory_space<vmem>>, vector<256x128xf32>
    %7 = arith.addf %6, %5 : vector<256x128xf32>
    %c0_7 = arith.constant 0 : index
    %c0_8 = arith.constant 0 : index
    %8 = vector.load %arg5[%c0_7, %c0_8] : memref<1x128xf32, #tpu.memory_space<vmem>>, vector<1x128xf32>
    %9 = vector.broadcast %8 : vector<1x128xf32> to vector<256x128xf32>
    %10 = arith.mulf %7, %9 : vector<256x128xf32>
    %c0_9 = arith.constant 0 : index
    %c0_10 = arith.constant 0 : index
    %11 = vector.load %arg6[%c0_9, %c0_10] : memref<1x128xf32, #tpu.memory_space<vmem>>, vector<1x128xf32>
    %12 = vector.broadcast %11 : vector<1x128xf32> to vector<256x128xf32>
    %13 = arith.addf %10, %12 : vector<256x128xf32>
    %c0_11 = arith.constant 0 : index
    %c0_12 = arith.constant 0 : index
    %14 = vector.load %arg7[%c0_11, %c0_12] : memref<256x128xf32, #tpu.memory_space<vmem>>, vector<256x128xf32>
    tpu.vector_store %arg7[%c0_11, %c0_12], %13 {strides = array<i32>} : memref<256x128xf32, #tpu.memory_space<vmem>>, vector<256x128xf32>,
    return
  }
  func.func @transform_0(%arg0: i32) -> (i32, i32) {
    %c0_i32 = arith.constant 0 : i32
    %c0_i32_0 = arith.constant 0 : i32
    return %arg0, %c0_i32 : i32, i32
  }
  func.func @transform_1(%arg0: i32) -> (i32, i32) {
    %c0_i32 = arith.constant 0 : i32
    %c0_i32_0 = arith.constant 0 : i32
    %c0_i32_1 = arith.constant 0 : i32
    return %c0_i32, %c0_i32_0 : i32, i32
  }
  func.func @transform_2(%arg0: i32) -> (i32, i32) {
    %c0_i32 = arith.constant 0 : i32
    %c0_i32_0 = arith.constant 0 : i32
    %c0_i32_1 = arith.constant 0 : i32
    return %c0_i32, %c0_i32_0 : i32, i32
  }
  func.func @transform_3(%arg0: i32) -> (i32, i32) {
    %c0_i32 = arith.constant 0 : i32
    %c0_i32_0 = arith.constant 0 : i32
    return %arg0, %c0_i32 : i32, i32
  }
  func.func @transform_4(%arg0: i32) -> (i32, i32) {
    %c0_i32 = arith.constant 0 : i32
    %c0_i32_0 = arith.constant 0 : i32
    %c0_i32_1 = arith.constant 0 : i32
    return %c0_i32, %c0_i32_0 : i32, i32
  }
  func.func @transform_5(%arg0: i32) -> (i32, i32) {
    %c0_i32 = arith.constant 0 : i32
    %c0_i32_0 = arith.constant 0 : i32
    %c0_i32_1 = arith.constant 0 : i32
    return %c0_i32, %c0_i32_0 : i32, i32
  }
  func.func @transform_6(%arg0: i32) -> (i32, i32) {
    %c0_i32 = arith.constant 0 : i32
    %c0_i32_0 = arith.constant 0 : i32
    return %arg0, %c0_i32 : i32, i32
  }
}

module attributes {stable_mosaic.version = 11 : i64} {
  func.func @kernel(%arg0: i32, %arg1: memref<256x128xf32, #tpu.memory_space<vmem>>, %arg2: memref<128x256xf32, #tpu.memory_space<vmem>>, %arg3: memref<1x256xf32, #tpu.memory_space<vmem>>, %arg4: memref<256x256xf32, #tpu.memory_space<vmem>>) attributes {dimension_semantics = [#tpu.dimension_semantics<parallel>], iteration_bounds = array<i64: 2>, scalar_prefetch = 0 : i64, scratch_operands = 0 : i64, tpu.core_type = #tpu.core_type<tc>, window_params = [{transform_indices = @transform_0, window_bounds = array<i64: 256, 128>}, {pipeline_mode = #tpu.pipeline_mode<synchronous>, transform_indices = @transform_1, window_bounds = array<i64: 128, 256>}, {pipeline_mode = #tpu.pipeline_mode<synchronous>, transform_indices = @transform_2, window_bounds = array<i64: 1, 256>}, {transform_indices = @transform_3, window_bounds = array<i64: 256, 256>}]} {
    %c0 = arith.constant 0 : index
    %c0_0 = arith.constant 0 : index
    %0 = vector.load %arg1[%c0, %c0_0] : memref<256x128xf32, #tpu.memory_space<vmem>>, vector<256x128xf32>
    %c0_1 = arith.constant 0 : index
    %c0_2 = arith.constant 0 : index
    %1 = vector.load %arg2[%c0_1, %c0_2] : memref<128x256xf32, #tpu.memory_space<vmem>>, vector<128x256xf32>
    %cst = arith.constant dense<0.000000e+00> : vector<256x256xf32>
    %2 = tpu.matmul %0, %1, %cst {dimension_numbers = #tpu.dot_dimension_numbers<[1], [0], [0], [1], [0, 0, 1, 1], [], []>} : vector<256x128xf32>, vector<128x256xf32>, vector<256x256xf32> -> vector<256x256xf32>
    %c0_3 = arith.constant 0 : index
    %c0_4 = arith.constant 0 : index
    %3 = vector.load %arg3[%c0_3, %c0_4] : memref<1x256xf32, #tpu.memory_space<vmem>>, vector<1x256xf32>
    %4 = vector.broadcast %3 : vector<1x256xf32> to vector<256x256xf32>
    %5 = arith.addf %2, %4 : vector<256x256xf32>
    %6 = arith.mulf %5, %5 : vector<256x256xf32>
    %7 = arith.mulf %5, %6 : vector<256x256xf32>
    %cst_5 = arith.constant 4.471500e-02 : f32
    %8 = vector.broadcast %cst_5 : f32 to vector<256x256xf32>
    %9 = arith.mulf %8, %7 : vector<256x256xf32>
    %10 = arith.addf %5, %9 : vector<256x256xf32>
    %cst_6 = arith.constant 0.797884583 : f32
    %11 = vector.broadcast %cst_6 : f32 to vector<256x256xf32>
    %12 = arith.mulf %11, %10 : vector<256x256xf32>
    %13 = math.tanh %12 : vector<256x256xf32>
    %cst_7 = arith.constant 1.000000e+00 : f32
    %14 = vector.broadcast %cst_7 : f32 to vector<256x256xf32>
    %15 = arith.addf %14, %13 : vector<256x256xf32>
    %cst_8 = arith.constant 5.000000e-01 : f32
    %16 = vector.broadcast %cst_8 : f32 to vector<256x256xf32>
    %17 = arith.mulf %16, %15 : vector<256x256xf32>
    %18 = arith.mulf %5, %17 : vector<256x256xf32>
    %c0_9 = arith.constant 0 : index
    %c0_10 = arith.constant 0 : index
    %19 = vector.load %arg4[%c0_9, %c0_10] : memref<256x256xf32, #tpu.memory_space<vmem>>, vector<256x256xf32>
    tpu.vector_store %arg4[%c0_9, %c0_10], %18 {strides = array<i32>} : memref<256x256xf32, #tpu.memory_space<vmem>>, vector<256x256xf32>,
    return
  }
  func.func @transform_0(%arg0: i32) -> (i32, i32) {
    %c0_i32 = arith.constant 0 : i32
    %c0_i32_0 = arith.constant 0 : i32
    return %arg0, %c0_i32 : i32, i32
  }
  func.func @transform_1(%arg0: i32) -> (i32, i32) {
    %c0_i32 = arith.constant 0 : i32
    %c0_i32_0 = arith.constant 0 : i32
    %c0_i32_1 = arith.constant 0 : i32
    return %c0_i32, %c0_i32_0 : i32, i32
  }
  func.func @transform_2(%arg0: i32) -> (i32, i32) {
    %c0_i32 = arith.constant 0 : i32
    %c0_i32_0 = arith.constant 0 : i32
    %c0_i32_1 = arith.constant 0 : i32
    return %c0_i32, %c0_i32_0 : i32, i32
  }
  func.func @transform_3(%arg0: i32) -> (i32, i32) {
    %c0_i32 = arith.constant 0 : i32
    %c0_i32_0 = arith.constant 0 : i32
    return %arg0, %c0_i32 : i32, i32
  }
}

module attributes {stable_mosaic.version = 11 : i64} {
  func.func @kernel(%arg0: i32, %arg1: memref<256x256xf32, #tpu.memory_space<vmem>>, %arg2: memref<256x128xf32, #tpu.memory_space<vmem>>, %arg3: memref<1x128xf32, #tpu.memory_space<vmem>>, %arg4: memref<256x128xf32, #tpu.memory_space<vmem>>, %arg5: memref<1x128xf32, #tpu.memory_space<vmem>>, %arg6: memref<1x128xf32, #tpu.memory_space<vmem>>, %arg7: memref<256x128xf32, #tpu.memory_space<vmem>>) attributes {dimension_semantics = [#tpu.dimension_semantics<parallel>], iteration_bounds = array<i64: 2>, scalar_prefetch = 0 : i64, scratch_operands = 0 : i64, tpu.core_type = #tpu.core_type<tc>, window_params = [{transform_indices = @transform_0, window_bounds = array<i64: 256, 256>}, {pipeline_mode = #tpu.pipeline_mode<synchronous>, transform_indices = @transform_1, window_bounds = array<i64: 256, 128>}, {pipeline_mode = #tpu.pipeline_mode<synchronous>, transform_indices = @transform_2, window_bounds = array<i64: 1, 128>}, {transform_indices = @transform_3, window_bounds = array<i64: 256, 128>}, {pipeline_mode = #tpu.pipeline_mode<synchronous>, transform_indices = @transform_4, window_bounds = array<i64: 1, 128>}, {pipeline_mode = #tpu.pipeline_mode<synchronous>, transform_indices = @transform_5, window_bounds = array<i64: 1, 128>}, {transform_indices = @transform_6, window_bounds = array<i64: 256, 128>}]} {
    %c0 = arith.constant 0 : index
    %c0_0 = arith.constant 0 : index
    %0 = vector.load %arg1[%c0, %c0_0] : memref<256x256xf32, #tpu.memory_space<vmem>>, vector<256x256xf32>
    %c0_1 = arith.constant 0 : index
    %c0_2 = arith.constant 0 : index
    %1 = vector.load %arg2[%c0_1, %c0_2] : memref<256x128xf32, #tpu.memory_space<vmem>>, vector<256x128xf32>
    %cst = arith.constant dense<0.000000e+00> : vector<256x128xf32>
    %2 = tpu.matmul %0, %1, %cst {dimension_numbers = #tpu.dot_dimension_numbers<[1], [0], [0], [1], [0, 0, 1, 1], [], []>} : vector<256x256xf32>, vector<256x128xf32>, vector<256x128xf32> -> vector<256x128xf32>
    %c0_3 = arith.constant 0 : index
    %c0_4 = arith.constant 0 : index
    %3 = vector.load %arg3[%c0_3, %c0_4] : memref<1x128xf32, #tpu.memory_space<vmem>>, vector<1x128xf32>
    %4 = vector.broadcast %3 : vector<1x128xf32> to vector<256x128xf32>
    %5 = arith.addf %2, %4 : vector<256x128xf32>
    %c0_5 = arith.constant 0 : index
    %c0_6 = arith.constant 0 : index
    %6 = vector.load %arg4[%c0_5, %c0_6] : memref<256x128xf32, #tpu.memory_space<vmem>>, vector<256x128xf32>
    %7 = arith.addf %6, %5 : vector<256x128xf32>
    %c0_7 = arith.constant 0 : index
    %c0_8 = arith.constant 0 : index
    %8 = vector.load %arg5[%c0_7, %c0_8] : memref<1x128xf32, #tpu.memory_space<vmem>>, vector<1x128xf32>
    %9 = vector.broadcast %8 : vector<1x128xf32> to vector<256x128xf32>
    %10 = arith.mulf %7, %9 : vector<256x128xf32>
    %c0_9 = arith.constant 0 : index
    %c0_10 = arith.constant 0 : index
    %11 = vector.load %arg6[%c0_9, %c0_10] : memref<1x128xf32, #tpu.memory_space<vmem>>, vector<1x128xf32>
    %12 = vector.broadcast %11 : vector<1x128xf32> to vector<256x128xf32>
    %13 = arith.addf %10, %12 : vector<256x128xf32>
    %c0_11 = arith.constant 0 : index
    %c0_12 = arith.constant 0 : index
    %14 = vector.load %arg7[%c0_11, %c0_12] : memref<256x128xf32, #tpu.memory_space<vmem>>, vector<256x128xf32>
    tpu.vector_store %arg7[%c0_11, %c0_12], %13 {strides = array<i32>} : memref<256x128xf32, #tpu.memory_space<vmem>>, vector<256x128xf32>,
    return
  }
  func.func @transform_0(%arg0: i32) -> (i32, i32) {
    %c0_i32 = arith.constant 0 : i32
    %c0_i32_0 = arith.constant 0 : i32
    return %arg0, %c0_i32 : i32, i32
  }
  func.func @transform_1(%arg0: i32) -> (i32, i32) {
    %c0_i32 = arith.constant 0 : i32
    %c0_i32_0 = arith.constant 0 : i32
    %c0_i32_1 = arith.constant 0 : i32
    return %c0_i32, %c0_i32_0 : i32, i32
  }
  func.func @transform_2(%arg0: i32) -> (i32, i32) {
    %c0_i32 = arith.constant 0 : i32
    %c0_i32_0 = arith.constant 0 : i32
    %c0_i32_1 = arith.constant 0 : i32
    return %c0_i32, %c0_i32_0 : i32, i32
  }
  func.func @transform_3(%arg0: i32) -> (i32, i32) {
    %c0_i32 = arith.constant 0 : i32
    %c0_i32_0 = arith.constant 0 : i32
    return %arg0, %c0_i32 : i32, i32
  }
  func.func @transform_4(%arg0: i32) -> (i32, i32) {
    %c0_i32 = arith.constant 0 : i32
    %c0_i32_0 = arith.constant 0 : i32
    %c0_i32_1 = arith.constant 0 : i32
    return %c0_i32, %c0_i32_0 : i32, i32
  }
  func.func @transform_5(%arg0: i32) -> (i32, i32) {
    %c0_i32 = arith.constant 0 : i32
    %c0_i32_0 = arith.constant 0 : i32
    %c0_i32_1 = arith.constant 0 : i32
    return %c0_i32, %c0_i32_0 : i32, i32
  }
  func.func @transform_6(%arg0: i32) -> (i32, i32) {
    %c0_i32 = arith.constant 0 : i32
    %c0_i32_0 = arith.constant 0 : i32
    return %arg0, %c0_i32 : i32, i32
  }
}

module attributes {stable_mosaic.version = 11 : i64} {
  func.func @kernel(%arg0: i32, %arg1: memref<256x128xf32, #tpu.memory_space<vmem>>, %arg2: memref<128x384xf32, #tpu.memory_space<vmem>>, %arg3: memref<1x384xf32, #tpu.memory_space<vmem>>, %arg4: memref<256x384xf32, #tpu.memory_space<vmem>>) attributes {dimension_semantics = [#tpu.dimension_semantics<parallel>], iteration_bounds = array<i64: 2>, scalar_prefetch = 0 : i64, scratch_operands = 0 : i64, tpu.core_type = #tpu.core_type<tc>, window_params = [{transform_indices = @transform_0, window_bounds = array<i64: 256, 128>}, {pipeline_mode = #tpu.pipeline_mode<synchronous>, transform_indices = @transform_1, window_bounds = array<i64: 128, 384>}, {pipeline_mode = #tpu.pipeline_mode<synchronous>, transform_indices = @transform_2, window_bounds = array<i64: 1, 384>}, {transform_indices = @transform_3, window_bounds = array<i64: 256, 384>}]} {
    %c0 = arith.constant 0 : index
    %c0_0 = arith.constant 0 : index
    %0 = vector.load %arg1[%c0, %c0_0] : memref<256x128xf32, #tpu.memory_space<vmem>>, vector<256x128xf32>
    %c0_1 = arith.constant 0 : index
    %c0_2 = arith.constant 0 : index
    %1 = vector.load %arg2[%c0_1, %c0_2] : memref<128x384xf32, #tpu.memory_space<vmem>>, vector<128x384xf32>
    %cst = arith.constant dense<0.000000e+00> : vector<256x384xf32>
    %2 = tpu.matmul %0, %1, %cst {dimension_numbers = #tpu.dot_dimension_numbers<[1], [0], [0], [1], [0, 0, 1, 1], [], []>} : vector<256x128xf32>, vector<128x384xf32>, vector<256x384xf32> -> vector<256x384xf32>
    %c0_3 = arith.constant 0 : index
    %c0_4 = arith.constant 0 : index
    %3 = vector.load %arg3[%c0_3, %c0_4] : memref<1x384xf32, #tpu.memory_space<vmem>>, vector<1x384xf32>
    %4 = vector.broadcast %3 : vector<1x384xf32> to vector<256x384xf32>
    %5 = arith.addf %2, %4 : vector<256x384xf32>
    %c0_5 = arith.constant 0 : index
    %c0_6 = arith.constant 0 : index
    %6 = vector.load %arg4[%c0_5, %c0_6] : memref<256x384xf32, #tpu.memory_space<vmem>>, vector<256x384xf32>
    tpu.vector_store %arg4[%c0_5, %c0_6], %5 {strides = array<i32>} : memref<256x384xf32, #tpu.memory_space<vmem>>, vector<256x384xf32>,
    return
  }
  func.func @transform_0(%arg0: i32) -> (i32, i32) {
    %c0_i32 = arith.constant 0 : i32
    %c0_i32_0 = arith.constant 0 : i32
    return %arg0, %c0_i32 : i32, i32
  }
  func.func @transform_1(%arg0: i32) -> (i32, i32) {
    %c0_i32 = arith.constant 0 : i32
    %c0_i32_0 = arith.constant 0 : i32
    %c0_i32_1 = arith.constant 0 : i32
    return %c0_i32, %c0_i32_0 : i32, i32
  }
  func.func @transform_2(%arg0: i32) -> (i32, i32) {
    %c0_i32 = arith.constant 0 : i32
    %c0_i32_0 = arith.constant 0 : i32
    %c0_i32_1 = arith.constant 0 : i32
    return %c0_i32, %c0_i32_0 : i32, i32
  }
  func.func @transform_3(%arg0: i32) -> (i32, i32) {
    %c0_i32 = arith.constant 0 : i32
    %c0_i32_0 = arith.constant 0 : i32
    return %arg0, %c0_i32 : i32, i32
  }
}

module attributes {stable_mosaic.version = 11 : i64} {
  func.func @kernel(%arg0: i32, %arg1: memref<256x128xf32, #tpu.memory_space<vmem>>, %arg2: memref<128x3xf32, #tpu.memory_space<vmem>>, %arg3: memref<1x3xf32, #tpu.memory_space<vmem>>, %arg4: memref<256x3xf32, #tpu.memory_space<vmem>>) attributes {dimension_semantics = [#tpu.dimension_semantics<parallel>], iteration_bounds = array<i64: 2>, scalar_prefetch = 0 : i64, scratch_operands = 0 : i64, tpu.core_type = #tpu.core_type<tc>, window_params = [{transform_indices = @transform_0, window_bounds = array<i64: 256, 128>}, {pipeline_mode = #tpu.pipeline_mode<synchronous>, transform_indices = @transform_1, window_bounds = array<i64: 128, 3>}, {pipeline_mode = #tpu.pipeline_mode<synchronous>, transform_indices = @transform_2, window_bounds = array<i64: 1, 3>}, {transform_indices = @transform_3, window_bounds = array<i64: 256, 3>}]} {
    %c0 = arith.constant 0 : index
    %c0_0 = arith.constant 0 : index
    %0 = vector.load %arg1[%c0, %c0_0] : memref<256x128xf32, #tpu.memory_space<vmem>>, vector<256x128xf32>
    %1 = arith.mulf %0, %0 : vector<256x128xf32>
    %2 = arith.mulf %0, %1 : vector<256x128xf32>
    %cst = arith.constant 4.471500e-02 : f32
    %3 = vector.broadcast %cst : f32 to vector<256x128xf32>
    %4 = arith.mulf %3, %2 : vector<256x128xf32>
    %5 = arith.addf %0, %4 : vector<256x128xf32>
    %cst_1 = arith.constant 0.797884583 : f32
    %6 = vector.broadcast %cst_1 : f32 to vector<256x128xf32>
    %7 = arith.mulf %6, %5 : vector<256x128xf32>
    %8 = math.tanh %7 : vector<256x128xf32>
    %cst_2 = arith.constant 1.000000e+00 : f32
    %9 = vector.broadcast %cst_2 : f32 to vector<256x128xf32>
    %10 = arith.addf %9, %8 : vector<256x128xf32>
    %cst_3 = arith.constant 5.000000e-01 : f32
    %11 = vector.broadcast %cst_3 : f32 to vector<256x128xf32>
    %12 = arith.mulf %11, %10 : vector<256x128xf32>
    %13 = arith.mulf %0, %12 : vector<256x128xf32>
    %c0_4 = arith.constant 0 : index
    %c0_5 = arith.constant 0 : index
    %14 = vector.load %arg2[%c0_4, %c0_5] : memref<128x3xf32, #tpu.memory_space<vmem>>, vector<128x3xf32>
    %cst_6 = arith.constant dense<0.000000e+00> : vector<256x3xf32>
    %15 = tpu.matmul %13, %14, %cst_6 {dimension_numbers = #tpu.dot_dimension_numbers<[1], [0], [0], [1], [0, 0, 1, 1], [], []>} : vector<256x128xf32>, vector<128x3xf32>, vector<256x3xf32> -> vector<256x3xf32>
    %c0_7 = arith.constant 0 : index
    %c0_8 = arith.constant 0 : index
    %16 = vector.load %arg3[%c0_7, %c0_8] : memref<1x3xf32, #tpu.memory_space<vmem>>, vector<1x3xf32>
    %17 = vector.broadcast %16 : vector<1x3xf32> to vector<256x3xf32>
    %18 = arith.addf %15, %17 : vector<256x3xf32>
    %c0_9 = arith.constant 0 : index
    %c0_10 = arith.constant 0 : index
    %19 = vector.load %arg4[%c0_9, %c0_10] : memref<256x3xf32, #tpu.memory_space<vmem>>, vector<256x3xf32>
    tpu.vector_store %arg4[%c0_9, %c0_10], %18 {strides = array<i32>} : memref<256x3xf32, #tpu.memory_space<vmem>>, vector<256x3xf32>,
    return
  }
  func.func @transform_0(%arg0: i32) -> (i32, i32) {
    %c0_i32 = arith.constant 0 : i32
    %c0_i32_0 = arith.constant 0 : i32
    return %arg0, %c0_i32 : i32, i32
  }
  func.func @transform_1(%arg0: i32) -> (i32, i32) {
    %c0_i32 = arith.constant 0 : i32
    %c0_i32_0 = arith.constant 0 : i32
    %c0_i32_1 = arith.constant 0 : i32
    return %c0_i32, %c0_i32_0 : i32, i32
  }
  func.func @transform_2(%arg0: i32) -> (i32, i32) {
    %c0_i32 = arith.constant 0 : i32
    %c0_i32_0 = arith.constant 0 : i32
    %c0_i32_1 = arith.constant 0 : i32
    return %c0_i32, %c0_i32_0 : i32, i32
  }
  func.func @transform_3(%arg0: i32) -> (i32, i32) {
    %c0_i32 = arith.constant 0 : i32
    %c0_i32_0 = arith.constant 0 : i32
    return %arg0, %c0_i32 : i32, i32
  }
}

</mosaic_0001>

<bundles_post_ra>
// kernel: sub.7
= control target key start
LH: loop header
LB: loop body
LE: loop exit
PB: predicated region body
PF: predicated region fallthrough
CT: control target
= control target key end

     0   :  { %s34_s0 = inlined_call_operand.vmem [shape: f32[8,4], index: 0, kind: input, shape index: {}]   ;;  %s35_s1 = inlined_call_operand.vmem [shape: f32[8,4], index: 1, kind: input, shape index: {}]   ;;  %s36_s2 = inlined_call_operand.vmem [shape: f32[8,4], index: 2, kind: output, shape index: {}]  }
   0x1   :  { %v3_v0 = vld [vmem:[%s34_s0] sm:$0xf] }
   0x2   :  { %v4_v1 = vld [vmem:[%s35_s1] sm:$0xf] }
   0x3   :  { %v7_v2 = vsub.f32 %v3_v0, %v4_v1 }
   0x5   :  { %9 = vst [vmem:[%s36_s2] sm:$0xf] %v7_v2 }

// kernel: ts_transformer_forward.12
= control target key start
LH: loop header
LB: loop body
LE: loop exit
PB: predicated region body
PF: predicated region fallthrough
CT: control target
= control target key end

     0   :  { %10 = vsyncpa [#allocation3], 0  ;;  %s2362_s0 = inlined_call_operand.vmem [shape: f32[512,3], index: 0, kind: input, shape index: {}]   ;;  %s2363_s1 = inlined_call_operand.hbm [shape: f32[3,128], index: 1, kind: input, shape index: {}]   ;;  %s2364_s2 = inlined_call_operand.hbm [shape: f32[1,128], index: 2, kind: input, shape index: {}]   ;;  %s2365_s3 = inlined_call_operand.vmem [shape: f32[64,128], index: 3, kind: input, shape index: {}]   ;;  %s2366_s4 = inlined_call_operand.vmem [shape: f32[64,8], index: 4, kind: input, shape index: {}]   ;;  %s2367_s5 = inlined_call_operand.vmem [shape: f32[64,8,128], index: 5, kind: output, shape index: {}]  }
   0x1   :  { %11 = vsyncpa [#allocation5], 0  ;;  %s1763_s18 = smov 0  }
   0x2 LB: > { %s1769_s19 = sadd.s32 4294967295, %s1728_s18   ;;  %p1488_p0 = scmp.ge.s32.totalorder %s1728_s18, 1  ;;  %s1728_s18 = sphi %s1763_s18, %s17_s18  }
   0x3   : > { %p168_p1 = scmp.lt.s32.totalorder %s1728_s18, 3  ;;  %p2368_p2 = scmp.eq.s32.totalorder %s1769_s19, 0 }
   0x4   : > { %s1730_s21 = smov [#allocation2]   ;;  %s1731_s23 = smov [#allocation4]  }
   0x5   : > { %p1774_p3 = pnand %p1488_p0, %p168_p1  ;;  %s181_s22 = sshll.u32 %s1730_s21, 4  ;;  %s182_s22 = int_to_ptr.vmem [resolvable:$true] %s181_s22 }
   0x6   : > { %s192_s24 = sshll.u32 %s1731_s23, 4  ;;  %s1658_s28 = scalar_lea.hbm %s2363_s1, 64  ;;  %s1786_s24 = int_to_ptr.vmem [resolvable:$true] %s192_s24 }
   0x7   : > { %s2372_s20 = scalar_select %p1774_p3, 1, 0 }
   0x8   : > { %p1632_p4 = pneg %p1774_p3  ;;  %p1659_p6 = scmp.ne.s32.totalorder %s2363_s1, %s1658_s28 }
   0x9   : > { %p1665_p10 = scmp.lt.u32.totalorder %s1658_s28, %s2363_s1 }
   0xa   : > { %p1782_p5 = pnand %p2368_p2, %p1632_p4 }
   0xc   : > { %p1660_p7 = pneg %p1782_p5 }
   0xe   : > { %p1661_p8 = pnand %p1660_p7, %p1659_p6 }
  0x10   : > { %p1662_p9 = pneg %p1661_p8 }
  0x12   : > { %p1667_p11 = pnand %p1665_p10, %p1662_p9 }
  0x14   : > { %1670 = shalt.err (!%p1667_p11)
}
  0x15   : > { %s1671_s8 = scalar_lea.vmem %s182_s22, 64  ;;  %p1679_p1 = scmp.lt.s32.totalorder %s182_s22, %s182_s22 }
  0x16   : > { %p1672_p12 = scmp.ne.s32.totalorder %s182_s22, %s1671_s8  ;;  %p1680_p4 = scmp.lt.s32.totalorder %s1671_s8, %s1671_s8 }
  0x18   : > { %p1674_p13 = pnand %p1672_p12, %p1660_p7  ;;  %p1681_p2 = por %p1680_p4, %p1679_p1 }
  0x1a   : > { %p1675_p0 = pneg %p1674_p13 }
  0x1c   : > { %p1682_p3 = pnand %p1681_p2, %p1675_p0 }
  0x1e   : > { %1685 = shalt.err (!%p1682_p3)
}
  0x1f   : > { %1635 = dma.hbm_to_vmem [thread:$0]  (!%p1782_p5), %s2363_s1, 64, %s182_s22, [#allocation3]  }
  0x20   : > { %s1686_s13 = scalar_lea.hbm %s2364_s2, 16 }
  0x21   : > { %p1687_p6 = scmp.ne.s32.totalorder %s2364_s2, %s1686_s13  ;;  %p1693_p3 = scmp.lt.u32.totalorder %s1686_s13, %s2364_s2 }
  0x23   : > { %p1689_p8 = pnand %p1687_p6, %p1660_p7 }
  0x25   : > { %p1690_p2 = pneg %p1689_p8 }
  0x27   : > { %p1695_p9 = pnand %p1693_p3, %p1690_p2 }
  0x29   : > { %1698 = shalt.err (!%p1695_p9)
}
  0x2a   : > { %s1699_s21 = scalar_lea.vmem %s1786_s24, 16  ;;  %s1706_s22 = scalar_lea.vmem %s1786_s24, 32 }
  0x2b   : > { %p1700_p10 = scmp.ne.s32.totalorder %s1786_s24, %s1699_s21  ;;  %p1707_p13 = scmp.lt.s32.totalorder %s1786_s24, %s1786_s24 }
  0x2c   : > { %p1708_p0 = scmp.lt.s32.totalorder %s1706_s22, %s1699_s21 }
  0x2d   : > { %p1702_p11 = pnand %p1700_p10, %p1660_p7 }
  0x2e   : > { %p1709_p1 = por %p1708_p0, %p1707_p13 }
  0x2f   : > { %p1703_p12 = pneg %p1702_p11 }
  0x31   : > { %p1710_p4 = pnand %p1709_p1, %p1703_p12 }
  0x33   : > { %1713 = shalt.err (!%p1710_p4)
}
  0x34   : > { %1638 = dma.hbm_to_vmem [thread:$0]  (!%p1782_p5), %s2364_s2, 16, %s1786_s24, [#allocation5]  }
  0x35   : > { %p2374_p6 = scmp.ne.s32.totalorder %s2372_s20, 0 }
  0x37   : > { %232 = sbr.rel (%p2374_p6) target bundleno = 330 (0x14a), region = 40 }
  0x3e   : > { %p2375_p7 = scmp.eq.s32.totalorder %s1769_s19, 0 }
  0x40   : > { %1719 = dma.done.wait (%p2375_p7), [#allocation3], 64   ;;  %p2376_p8 = pmov %p2375_p7 }
  0x41   : > { %p2377_p2 = pmov %p2375_p7 }
  0x42   : > { %1721 = vsyncadd (%p2376_p8), [#allocation3], 4294967232 }
  0x43   : > { %1723 = dma.done.wait (%p2377_p2), [#allocation5], 16   ;;  %p2378_p3 = pmov %p2377_p2 }
  0x44   : > { %s1495_s25 = sshll.u32 %s1769_s19, 5  ;;  %s1497_s24 = sshll.u32 %s1769_s19, 2  ;;  %vm435_vm0 = vcmask 1042432   ;;  %v330_v0 = vld [vmem:[#allocation2] sm:$0x7]  ;;  %vm338_vm1 = vcmask 23552   ;;  %v708_v3 = vlaneseq }
  0x45   : > { %1725 = vsyncadd (%p2378_p3), [#allocation5], 4294967280  ;;  %p275_p9 = scmp.lt.s32.totalorder %s1495_s25, 63  ;;  %p281_p5 = scmp.lt.s32.totalorder %s1497_s24, 7  ;;  %1572 = vmatprep.subr.msk.mxu0 %vm435_vm0, %v330_v0  ;;  %1622 = vmatprep.subr.msk.mxu1 %vm435_vm0, %v330_v0 }
  0x46   : > { %1573 = vmatpush3.msk.msra.mxu0 %vm435_vm0, %v330_v0  ;;  %1623 = vmatpush3.msk.msra.mxu1 %vm435_vm0, %v330_v0  ;;  %v1870_v8 = vshrl.u32 %v708_v3, 7 }
  0x47   : > { %s2418_s25 = smov (!%p275_p9, %s1495_s25), 63  ;;  %s2420_s24 = smov (!%p281_p5, %s1497_s24), 7 }
  0x48   : > { %s1496_s20 = sshll.u32 %s2418_s25, 3  ;;  %s1498_s19 = sshll.u32 %s2420_s24, 3  ;;  %v1889_v13 = vsub.s32 0, %v1870_v8  ;;  %v1892_v14 = vsub.s32 2, %v1870_v8  ;;  %v1901_v19 = vsub.s32 3, %v1870_v8  ;;  %v1904_v20 = vsub.s32 1, %v1870_v8 }
  0x49   : > { %s1856_s29 = scalar_lea.vmem %s2362_s0, %s1496_s20  ;;  %s1886_s7 = scalar_lea.vmem %s2366_s4, %s1498_s19  ;;  %v1920_v30 = vsub.s32 5, %v1870_v8  ;;  %v1923_v31 = vsub.s32 4, %v1870_v8  ;;  %v1936_v38 = vsub.s32 7, %v1870_v8  ;;  %v1939_v39 = vsub.s32 6, %v1870_v8 }
  0x4a   : > { %v298_v1 = vld [vmem:[%s1856_s29] sm:$0xff]  ;;  %v299_v4 = vld [vmem:[%s1856_s29 + $0x8] sm:$0xff]  ;;  %v300_v6 = vld [vmem:[%s1856_s29 + $0x10] sm:$0xff]  ;;  %s284_s10 = scalar_lea.vmem %s2365_s3, %s1498_s19  ;;  %s2211_s13 = scalar_lea.vmem %s2367_s5, %s1496_s20 }
  0x4b   : > { %v314_v2 = vld [vmem:[%s1856_s29 + $0x80] sm:$0xff]  ;;  %v315_v5 = vld [vmem:[%s1856_s29 + $0x88] sm:$0xff]  ;;  %v316_v7 = vld [vmem:[%s1856_s29 + $0x90] sm:$0xff]  ;;  %1574 = vmatprep.mubr.msk.f32.mxu0 %vm338_vm1, %v298_v1 }
  0x4c   : > { %1598 = vmatprep.mubr.msk.f32.mxu1 %vm338_vm1, %v314_v2  ;;  %1575 = vmatmul.mubr.msk.f32.vlgmr.msra.gmra.mrb[0].mxu0 %vm338_vm1, %v299_v4  ;;  %v301_v9 = vld [vmem:[%s1856_s29 + $0x18] sm:$0xff]  ;;  %v302_v11 = vld [vmem:[%s1856_s29 + $0x20] sm:$0xff]  ;;  %v303_v15 = vld [vmem:[%s1856_s29 + $0x28] sm:$0xff] }
  0x4d   : > { %1599 = vmatmul.mubr.msk.f32.vlgmr.msra.gmra.mrb[0].mxu1 %vm338_vm1, %v315_v5  ;;  %1577 = vmatprep.mubr.msk.f32.mxu0 %vm338_vm1, %v300_v6  ;;  %v317_v10 = vld [vmem:[%s1856_s29 + $0x98] sm:$0xff]  ;;  %v318_v12 = vld [vmem:[%s1856_s29 + $0xa0] sm:$0xff]  ;;  %v319_v16 = vld [vmem:[%s1856_s29 + $0xa8] sm:$0xff] }
  0x4e   : > { %1601 = vmatprep.mubr.msk.f32.mxu1 %vm338_vm1, %v316_v7  ;;  %v304_v17 = vld [vmem:[%s1856_s29 + $0x30] sm:$0xff]  ;;  %v1092_v21 = vld [vmem:[%s1886_s7] sm:$0xff]  ;;  %v305_v24 = vld [vmem:[%s1856_s29 + $0x38] sm:$0xff] }
  0x4f   : > { %v320_v18 = vld [vmem:[%s1856_s29 + $0xb0] sm:$0xff]  ;;  %v1113_v22 = vrot.slane %v1092_v21, %v1892_v14  ;;  %v1099_v23 = vrot.slane %v1092_v21, %v1889_v13  ;;  %v321_v25 = vld [vmem:[%s1856_s29 + $0xb8] sm:$0xff]  ;;  %v306_v26 = vld [vmem:[%s1856_s29 + $0x40] sm:$0xff]  ;;  %v1120_v28 = vrot.slane %v1092_v21, %v1901_v19  ;;  %v1106_v29 = vrot.slane %v1092_v21, %v1904_v20 }
  0x50   : > { %1578 = vmatmul.mubr.msk.f32.gmra.mrb[2].mxu0 %vm338_vm1, %v301_v9  ;;  %v322_v27 = vld [vmem:[%s1856_s29 + $0xc0] sm:$0xff]  ;;  %v307_v32 = vld [vmem:[%s1856_s29 + $0x48] sm:$0xff]  ;;  %v308_v34 = vld [vmem:[%s1856_s29 + $0x50] sm:$0xff]  ;;  %v1134_v36 = vrot.slane %v1092_v21, %v1920_v30  ;;  %v1127_v37 = vrot.slane %v1092_v21, %v1923_v31  ;;  %v1148_v44 = vrot.slane %v1092_v21, %v1936_v38  ;;  %v1141_v45 = vrot.slane %v1092_v21, %v1939_v39 }
  0x51   : > { %1602 = vmatmul.mubr.msk.f32.gmra.mrb[2].mxu1 %vm338_vm1, %v317_v10  ;;  %1580 = vmatprep.mubr.msk.f32.mxu0 %vm338_vm1, %v302_v11  ;;  %v323_v33 = vld [vmem:[%s1856_s29 + $0xc8] sm:$0xff]  ;;  %v324_v35 = vld [vmem:[%s1856_s29 + $0xd0] sm:$0xff]  ;;  %v309_v40 = vld [vmem:[%s1856_s29 + $0x58] sm:$0xff] }
  0x52   : > { %1604 = vmatprep.mubr.msk.f32.mxu1 %vm338_vm1, %v318_v12  ;;  %1115 = vbcast.lane.b32.xlu1 %v1113_v22, 256  ;;  %v325_v41 = vld [vmem:[%s1856_s29 + $0xd8] sm:$0xff]  ;;  %v310_v42 = vld [vmem:[%s1856_s29 + $0x60] sm:$0xff]  ;;  %v1093_v46 = vld [vmem:[%s1886_s7 + $0x8] sm:$0xff] }
  0x53   : > { %1101 = vbcast.lane.b32.xlu0 %v1099_v23, 256  ;;  %v326_v43 = vld [vmem:[%s1856_s29 + $0xe0] sm:$0xff]  ;;  %v311_v47 = vld [vmem:[%s1856_s29 + $0x68] sm:$0xff]  ;;  %v312_v49 = vld [vmem:[%s1856_s29 + $0x70] sm:$0xff]  ;;  %v1162_v51 = vrot.slane %v1093_v46, %v1904_v20  ;;  %v1155_v52 = vrot.slane %v1093_v46, %v1889_v13  ;;  %v1176_v55 = vrot.slane %v1093_v46, %v1901_v19  ;;  %v1169_v56 = vrot.slane %v1093_v46, %v1892_v14 }
  0x54   : > { %1581 = vmatmul.mubr.msk.f32.gmra.mrb[4].mxu0 %vm338_vm1, %v303_v15  ;;  %v327_v48 = vld [vmem:[%s1856_s29 + $0xe8] sm:$0xff]  ;;  %v328_v50 = vld [vmem:[%s1856_s29 + $0xf0] sm:$0xff]  ;;  %v313_v53 = vld [vmem:[%s1856_s29 + $0x78] sm:$0xff]  ;;  %v1190_v57 = vrot.slane %v1093_v46, %v1920_v30  ;;  %v1183_v58 = vrot.slane %v1093_v46, %v1923_v31  ;;  %v1204_v59 = vrot.slane %v1093_v46, %v1936_v38  ;;  %v1197_v60 = vrot.slane %v1093_v46, %v1939_v39 }
  0x55   : > { %1605 = vmatmul.mubr.msk.f32.gmra.mrb[4].mxu1 %vm338_vm1, %v319_v16  ;;  %1583 = vmatprep.mubr.msk.f32.mxu0 %vm338_vm1, %v304_v17  ;;  %v329_v54 = vld [vmem:[%s1856_s29 + $0xf8] sm:$0xff]  ;;  %v1094_v61 = vld [vmem:[%s1886_s7 + $0x10] sm:$0xff] }
  0x56   : > { %1607 = vmatprep.mubr.msk.f32.mxu1 %vm338_vm1, %v320_v18  ;;  %1122 = vbcast.lane.b32.xlu1 %v1120_v28, 256  ;;  %v1218_v62 = vrot.slane %v1094_v61, %v1904_v20  ;;  %v1211_v63 = vrot.slane %v1094_v61, %v1889_v13  ;;  %v1232_v0 = vrot.slane %v1094_v61, %v1901_v19  ;;  %v1095_v6 = vld [vmem:[%s1886_s7 + $0x18] sm:$0xff]  ;;  %v1732_v18 = vmov 1966171168   ;;  %v698_v22 = vld [vmem:[%s284_s10 + $0x10] sm:$0xff] }
  0x57   : > { %1108 = vbcast.lane.b32.xlu0 %v1106_v29, 256  ;;  %v1225_v1 = vrot.slane %v1094_v61, %v1892_v14  ;;  %v1246_v2 = vrot.slane %v1094_v61, %v1920_v30  ;;  %v1239_v3 = vrot.slane %v1094_v61, %v1923_v31  ;;  %v1260_v4 = vrot.slane %v1094_v61, %v1936_v38 }
  0x58   : > { %1584 = vmatmul.mubr.msk.f32.gmra.mrb[6].mxu0 %vm338_vm1, %v305_v24  ;;  %v1253_v5 = vrot.slane %v1094_v61, %v1939_v39  ;;  %v1274_v7 = vrot.slane %v1095_v6, %v1904_v20  ;;  %v1267_v9 = vrot.slane %v1095_v6, %v1889_v13  ;;  %v1288_v10 = vrot.slane %v1095_v6, %v1901_v19 }
  0x59   : > { %1608 = vmatmul.mubr.msk.f32.gmra.mrb[6].mxu1 %vm338_vm1, %v321_v25  ;;  %1586 = vmatprep.mubr.msk.f32.mxu0 %vm338_vm1, %v306_v26  ;;  %v1281_v11 = vrot.slane %v1095_v6, %v1892_v14  ;;  %v1302_v12 = vrot.slane %v1095_v6, %v1920_v30  ;;  %v1295_v15 = vrot.slane %v1095_v6, %v1923_v31  ;;  %v706_v20 = vunpack.c.l.s4 %v1732_v18  ;;  %v696_v14 = vld [vmem:[%s284_s10] sm:$0xff] }
  0x5a   : > { %1610 = vmatprep.mubr.msk.f32.mxu1 %vm338_vm1, %v322_v27  ;;  %1136 = vbcast.lane.b32.xlu1 %v1134_v36, 256  ;;  %v1316_v16 = vrot.slane %v1095_v6, %v1936_v38  ;;  %v1309_v17 = vrot.slane %v1095_v6, %v1939_v39  ;;  %v802_v31 = vcombine.high %v698_v22, %v698_v22 }
  0x5b   : > { %1129 = vbcast.lane.b32.xlu0 %v1127_v37, 256  ;;  %v707_v19 = vunpack.c.0.s8 %v706_v20 }
  0x5c   : > { %1587 = vmatmul.mubr.msk.f32.gmra.mrb[8].mxu0 %vm338_vm1, %v307_v32 }
  0x5d   : > { %1611 = vmatmul.mubr.msk.f32.gmra.mrb[8].mxu1 %vm338_vm1, %v323_v33  ;;  %1589 = vmatprep.mubr.msk.f32.mxu0 %vm338_vm1, %v308_v34  ;;  %v710_v21 = vsub.s32 %v707_v19, %v1870_v8  ;;  %v704_v8 = vcombine.high %v696_v14, %v696_v14 }
  0x5e   : > { %1613 = vmatprep.mubr.msk.f32.mxu1 %vm338_vm1, %v324_v35  ;;  %1150 = vbcast.lane.b32.xlu1 %v1148_v44, 256 }
  0x5f   : > { %1143 = vbcast.lane.b32.xlu0 %v1141_v45, 256  ;;  %v711_v23 = vrot.slane %v696_v14, %v710_v21  ;;  %v809_v24 = vrot.slane %v698_v22, %v710_v21  ;;  %v718_v32 = vrot.slane %v704_v8, %v710_v21  ;;  %v816_v33 = vrot.slane %v802_v31, %v710_v21 }
  0x60   : > { %1590 = vmatmul.mubr.msk.f32.gmra.mrb[10].mxu0 %vm338_vm1, %v309_v40  ;;  %v697_v40 = vld [vmem:[%s284_s10 + $0x8] sm:$0xff] }
  0x61   : > { %1614 = vmatmul.mubr.msk.f32.gmra.mrb[10].mxu1 %vm338_vm1, %v325_v41  ;;  %1592 = vmatprep.mubr.msk.f32.mxu0 %vm338_vm1, %v310_v42  ;;  %v719_v25 = vcombine.high %v711_v23, %v711_v23  ;;  %v817_v26 = vcombine.high %v809_v24, %v809_v24  ;;  %v2004_v29 = vrot.slane %v711_v23, %v710_v21  ;;  %v699_v41 = vld [vmem:[%s284_s10 + $0x18] sm:$0xff] }
  0x62   : > { %1616 = vmatprep.mubr.msk.f32.mxu1 %vm338_vm1, %v326_v43  ;;  %1164 = vbcast.lane.b32.xlu1 %v1162_v51, 256  ;;  %v2006_v30 = vrot.slane %v809_v24, %v710_v21  ;;  %v720_v34 = vcombine.high %v718_v32, %v718_v32  ;;  %v818_v35 = vcombine.high %v816_v33, %v816_v33 }
  0x63   : > { %1157 = vbcast.lane.b32.xlu0 %v1155_v52, 256  ;;  %v2000_v27 = vrot.slane %v719_v25, %v710_v21  ;;  %v2002_v28 = vrot.slane %v817_v26, %v710_v21  ;;  %v2012_v38 = vrot.slane %v718_v32, %v710_v21  ;;  %v2014_v39 = vrot.slane %v816_v33, %v710_v21 }
  0x64   : > { %1593 = vmatmul.mubr.msk.f32.gmra.mrb[12].mxu0 %vm338_vm1, %v311_v47  ;;  %v2008_v36 = vrot.slane %v720_v34, %v710_v21  ;;  %v2010_v37 = vrot.slane %v818_v35, %v710_v21  ;;  %v760_v42 = vrot.slane %v697_v40, %v710_v21  ;;  %v858_v43 = vrot.slane %v699_v41, %v710_v21 }
  0x65   : > { %1617 = vmatmul.mubr.msk.f32.gmra.mrb[12].mxu1 %vm338_vm1, %v327_v48  ;;  %1595 = vmatprep.mubr.msk.f32.mxu0 %vm338_vm1, %v312_v49  ;;  %v851_v51 = vcombine.high %v699_v41, %v699_v41  ;;  %v749_v18 = vcombine.high %v2004_v29, %v2004_v29  ;;  %v849_v20 = vcombine.high %v2002_v28, %v2002_v28 }
  0x66   : > { %1619 = vmatprep.mubr.msk.f32.mxu1 %vm338_vm1, %v328_v50  ;;  %1178 = vbcast.lane.b32.xlu1 %v1176_v55, 256  ;;  %v768_v44 = vcombine.high %v760_v42, %v760_v42  ;;  %v866_v45 = vcombine.high %v858_v43, %v858_v43  ;;  %v2020_v48 = vrot.slane %v760_v42, %v710_v21 }
  0x67   : > { %1171 = vbcast.lane.b32.xlu0 %v1169_v56, 256  ;;  %v2022_v49 = vrot.slane %v858_v43, %v710_v21  ;;  %v753_v50 = vcombine.high %v697_v40, %v697_v40  ;;  %v847_v19 = vcombine.high %v2006_v30, %v2006_v30  ;;  %v752_v26 = vcombine.high %v2008_v36, %v2008_v36 }
  0x68   : > { %1596 = vmatmul.mubr.msk.f32.gmra.mrb[14].mxu0 %vm338_vm1, %v313_v53  ;;  %v2016_v46 = vrot.slane %v768_v44, %v710_v21  ;;  %v2018_v47 = vrot.slane %v866_v45, %v710_v21  ;;  %v865_v53 = vrot.slane %v851_v51, %v710_v21  ;;  %v750_v8 = vcombine.high %v2012_v38, %v2012_v38 }
  0x69   : > { %1620 = vmatmul.mubr.msk.f32.gmra.mrb[14].mxu1 %vm338_vm1, %v329_v54  ;;  %v767_v52 = vrot.slane %v753_v50, %v710_v21  ;;  %v850_v31 = vcombine.high %v2010_v37, %v2010_v37  ;;  %v848_v32 = vcombine.high %v2014_v39, %v2014_v39  ;;  %v2100_v34 = vrot.slane %v749_v18, %v1889_v13 }
  0x6a   : > { %1192 = vbcast.lane.b32.xlu1 %v1190_v57, 256  ;;  %v867_v55 = vcombine.high %v865_v53, %v865_v53  ;;  %v2103_v35 = vrot.slane %v849_v20, %v1889_v13  ;;  %v2106_v40 = vrot.slane %v847_v19, %v1889_v13  ;;  %v800_v43 = vcombine.high %v2016_v46, %v2016_v46  ;;  %v2140_v19 = vld [vmem:[#allocation4] ss:$0 sm:$0xff] }
  0x6b   : > { %1185 = vbcast.lane.b32.xlu0 %v1183_v58, 256  ;;  %v769_v54 = vcombine.high %v767_v52, %v767_v52  ;;  %v2028_v58 = vrot.slane %v767_v52, %v710_v21  ;;  %v898_v44 = vcombine.high %v2018_v47, %v2018_v47  ;;  %v798_v51 = vcombine.high %v2020_v48, %v2020_v48 }
  0x6c   : > { %v2026_v57 = vrot.slane %v867_v55, %v710_v21  ;;  %v896_v52 = vcombine.high %v2022_v49, %v2022_v49  ;;  %v2135_v18 = vrot.slane %v850_v31, %v1889_v13  ;;  %v2138_v20 = vrot.slane %v848_v32, %v1889_v13 }
  0x6d   : > { %v2024_v56 = vrot.slane %v769_v54, %v710_v21  ;;  %2380 = vst [vmem:[#allocation9_spill] sm:$0xff] %v2028_v58  ;;  %v2128_v54 = vrot.slane %v750_v8, %v1889_v13  ;;  %v2151_v31 = vrot.slane %v800_v43, %v1889_v13  ;;  %v2154_v32 = vrot.slane %v898_v44, %v1889_v13 }
  0x6e   : > { %1206 = vbcast.lane.b32.xlu1 %v1204_v59, 256  ;;  %2379 = vst [vmem:[#allocation8_spill] sm:$0xff] %v2026_v57  ;;  %v2030_v59 = vrot.slane %v865_v53, %v710_v21  ;;  %v2125_v53 = vrot.slane %v752_v26, %v1889_v13  ;;  %v899_v50 = vcombine.high %v2026_v57, %v2026_v57 }
  0x6f   : > { %1199 = vbcast.lane.b32.xlu0 %v1197_v60, 256  ;;  %v801_v42 = vcombine.high %v2024_v56, %v2024_v56  ;;  %v2161_v25 = vrot.slane %v798_v51, %v1889_v13  ;;  %v2164_v8 = vrot.slane %v896_v52, %v1889_v13  ;;  %v799_v43 = vcombine.high %v2028_v58, %v2028_v58 }
  0x70   : > { %v897_v44 = vcombine.high %v2030_v59, %v2030_v59 }
  0x71   : > { %v2193_v58 = vrot.slane %v799_v43, %v1889_v13 }
  0x72   : > { %1220 = vbcast.lane.b32.xlu1 %v1218_v62, 256 }
  0x73   : > { %1213 = vbcast.lane.b32.xlu0 %v1211_v63, 256 }
  0x76   : > { %1234 = vbcast.lane.b32.xlu1 %v1232_v0, 256 }
  0x77   : > { %1227 = vbcast.lane.b32.xlu0 %v1225_v1, 256 }
  0x7a   : > { %1248 = vbcast.lane.b32.xlu1 %v1246_v2, 256 }
  0x7b   : > { %1241 = vbcast.lane.b32.xlu0 %v1239_v3, 256 }
  0x7e   : > { %1262 = vbcast.lane.b32.xlu1 %v1260_v4, 256 }
  0x7f   : > { %1255 = vbcast.lane.b32.xlu0 %v1253_v5, 256 }
  0x82   : > { %1276 = vbcast.lane.b32.xlu1 %v1274_v7, 256 }
  0x83   : > { %1269 = vbcast.lane.b32.xlu0 %v1267_v9, 256 }
  0x86   : > { %1290 = vbcast.lane.b32.xlu1 %v1288_v10, 256 }
  0x87   : > { %1283 = vbcast.lane.b32.xlu0 %v1281_v11, 256 }
  0x8a   : > { %1304 = vbcast.lane.b32.xlu1 %v1302_v12, 256 }
  0x8b   : > { %1297 = vbcast.lane.b32.xlu0 %v1295_v15, 256 }
  0x8e   : > { %1318 = vbcast.lane.b32.xlu1 %v1316_v16, 256 }
  0x8f   : > { %1311 = vbcast.lane.b32.xlu0 %v1309_v17, 256  ;;  %v751_v17 = vcombine.high %v2000_v27, %v2000_v27 }
  0x91   : > { %v2097_v33 = vrot.slane %v751_v17, %v1889_v13 }
  0xc4   : > { %v2032_v60 = vpop.permute.xlu1 %1115 }
  0xc5   : > { %v2034_v61 = vpop.permute.xlu0 %1101 }
  0xc8   : > { %v2036_v62 = vpop.permute.xlu1 %1122 }
  0xc9   : > { %v2038_v63 = vpop.permute.xlu0 %1108 }
  0xcc   : > { %v2040_v0 = vpop.permute.xlu1 %1136 }
  0xcd   : > { %v2042_v1 = vpop.permute.xlu0 %1129 }
  0xd0   : > { %v2044_v2 = vpop.permute.xlu1 %1150 }
  0xd1   : > { %v2046_v3 = vpop.permute.xlu0 %1143 }
  0xd4   : > { %v2048_v4 = vpop.permute.xlu1 %1164 }
  0xd5   : > { %v2050_v5 = vpop.permute.xlu0 %1157 }
  0xd8   : > { %v2052_v6 = vpop.permute.xlu1 %1178 }
  0xd9   : > { %2381 = vst [vmem:[#allocation10_spill] sm:$0xff] %v2052_v6  ;;  %v2054_v7 = vpop.permute.xlu0 %1171 }
  0xda   : > { %2382 = vst [vmem:[#allocation11_spill] sm:$0xff] %v2054_v7 }
  0xdc   : > { %v2056_v9 = vpop.permute.xlu1 %1192 }
  0xdd   : > { %2383 = vst [vmem:[#allocation12_spill] sm:$0xff] %v2056_v9  ;;  %v2058_v10 = vpop.permute.xlu0 %1185 }
  0xde   : > { %2384 = vst [vmem:[#allocation13_spill] sm:$0xff] %v2058_v10 }
  0xe0   : > { %v2060_v11 = vpop.permute.xlu1 %1206 }
  0xe1   : > { %2385 = vst [vmem:[#allocation14_spill] sm:$0xff] %v2060_v11  ;;  %v2062_v12 = vpop.permute.xlu0 %1199 }
  0xe2   : > { %2386 = vst [vmem:[#allocation15_spill] sm:$0xff] %v2062_v12  ;;  %v2187_v12 = vrot.slane %v801_v42, %v1889_v13 }
  0xe4   : > { %v2064_v15 = vpop.permute.xlu1 %1220  ;;  %2387 = vst [vmem:[#allocation16_spill] sm:$0xff] %v2187_v12 }
  0xe5   : > { %v2066_v16 = vpop.permute.xlu0 %1213 }
  0xe8   : > { %v2076_v21 = vpop.permute.xlu1 %1234 }
  0xe9   : > { %v2078_v14 = vpop.permute.xlu0 %1227 }
  0xec   : > { %v2130_v55 = vpop.permute.xlu1 %1248 }
  0xed   : > { %v2132_v17 = vpop.permute.xlu0 %1241 }
  0xf0   : > { %v2182_v7 = vpop.permute.xlu1 %1262 }
  0xf1   : > { %v2184_v6 = vpop.permute.xlu0 %1255 }
 0x11f   : > { %v1576_v41 = vpop.f32.mrb[0].mxu0 }
 0x120   : > { %v1600_v26 = vpop.f32.mrb[0].mxu1  ;;  %v511_v45 = vadd.f32 %v1576_v41, %v2140_v19  ;;  %v505_v24 = vpop.f32.mrb[1].mxu0 }
 0x121   : > { %v591_v23 = vadd.f32 %v1600_v26, %v2140_v19  ;;  %v585_v22 = vpop.f32.mrb[1].mxu1  ;;  %v506_v52 = vadd.f32 %v2140_v19, %v505_v24  ;;  %v2190_v24 = vrot.slane %v899_v50, %v1889_v13 }
 0x122   : > { %v586_v11 = vadd.f32 %v2140_v19, %v585_v22  ;;  %v665_v9 = vmul.f32 11.313708, %v511_v45  ;;  %v2390_v45 = vrot.slane %v2000_v27, %v1889_v13  ;;  %v2392_v27 = vrot.slane %v2004_v29, %v1889_v13 }
 0x123   : > { %v681_v26 = vmul.f32 11.313708, %v591_v23  ;;  %2388 = vst [vmem:[#allocation17_spill] sm:$0xff] %v2190_v24  ;;  %v664_v22 = vmul.f32 11.313708, %v506_v52  ;;  %v1579_v57 = vpop.f32.mrb[2].mxu0  ;;  %v2196_v23 = vrot.slane %v897_v44, %v1889_v13 }
 0x124   : > { %v680_v51 = vmul.f32 11.313708, %v586_v11  ;;  %v1603_v10 = vpop.f32.mrb[2].mxu1  ;;  %v1061_v41 = vadd.f32 %v2390_v45, %v665_v9  ;;  %v521_v42 = vadd.f32 %v1579_v57, %v2140_v19  ;;  %v515_v50 = vpop.f32.mrb[3].mxu0  ;;  %v2391_v11 = vrot.slane %v2002_v28, %v1889_v13 }
 0x125   : > { %2389 = vst [vmem:[#allocation18_spill] sm:$0xff] %v2196_v23  ;;  %v601_v12 = vadd.f32 %v1603_v10, %v2140_v19  ;;  %v595_v24 = vpop.f32.mrb[3].mxu1  ;;  %v1060_v9 = vadd.f32 %v2392_v27, %v664_v22  ;;  %v516_v57 = vadd.f32 %v2140_v19, %v515_v50  ;;  %v2393_v28 = vrot.slane %v2006_v30, %v1889_v13 }
 0x126   : > { %v1077_v52 = vadd.f32 %v2391_v11, %v681_v26  ;;  %v596_v10 = vadd.f32 %v2140_v19, %v595_v24  ;;  %v1321_v44 = vadd.f32 %v2038_v63, %v1061_v41  ;;  %v667_v26 = vmul.f32 11.313708, %v521_v42 }
 0x127   : > { %v1076_v43 = vadd.f32 %v2393_v28, %v680_v51  ;;  %v683_v45 = vmul.f32 11.313708, %v601_v12  ;;  %v1320_v29 = vadd.f32 %v2034_v61, %v1060_v9  ;;  %v666_v22 = vmul.f32 11.313708, %v516_v57  ;;  %v1582_v23 = vpop.f32.mrb[4].mxu0 }
 0x128   : > { %v1337_v11 = vadd.f32 %v2064_v15, %v1077_v52  ;;  %v682_v27 = vmul.f32 11.313708, %v596_v10  ;;  %v1606_v24 = vpop.f32.mrb[4].mxu1  ;;  %1353 = vst [vmem:[%s2211_s13 + $0x8] sm:$0xff] %v1321_v44  ;;  %v1063_v30 = vadd.f32 %v2097_v33, %v667_v26  ;;  %v531_v63 = vadd.f32 %v1582_v23, %v2140_v19  ;;  %v525_v51 = vpop.f32.mrb[5].mxu0 }
 0x129   : > { %v1336_v50 = vadd.f32 %v2066_v16, %v1076_v43  ;;  %v611_v12 = vadd.f32 %v1606_v24, %v2140_v19  ;;  %v605_v41 = vpop.f32.mrb[5].mxu1  ;;  %v1079_v15 = vadd.f32 %v2103_v35, %v683_v45  ;;  %1352 = vst [vmem:[%s2211_s13] sm:$0xff] %v1320_v29  ;;  %v1062_v61 = vadd.f32 %v2100_v34, %v666_v22  ;;  %v2239_v10 = vpop.permute.xlu1 %1276 }
 0x12a   : > { %1369 = vst [vmem:[%s2211_s13 + $0x88] sm:$0xff] %v1337_v11  ;;  %v526_v16 = vadd.f32 %v2140_v19, %v525_v51  ;;  %v606_v42 = vadd.f32 %v2140_v19, %v605_v41  ;;  %v1078_v33 = vadd.f32 %v2106_v40, %v682_v27  ;;  %v1323_v23 = vadd.f32 %v2036_v62, %v1063_v30  ;;  %v2241_v35 = vpop.permute.xlu0 %1269 }
 0x12b   : > { %1368 = vst [vmem:[%s2211_s13 + $0x80] sm:$0xff] %v1336_v50  ;;  %v669_v52 = vmul.f32 11.313708, %v531_v63  ;;  %v685_v9 = vmul.f32 11.313708, %v611_v12  ;;  %v1339_v57 = vadd.f32 %v2076_v21, %v1079_v15  ;;  %v1322_v34 = vadd.f32 %v2032_v60, %v1062_v61  ;;  %v1585_v26 = vpop.f32.mrb[6].mxu0 }
 0x12c   : > { %v668_v28 = vmul.f32 11.313708, %v526_v16  ;;  %v684_v43 = vmul.f32 11.313708, %v606_v42  ;;  %v1338_v44 = vadd.f32 %v2078_v14, %v1078_v33  ;;  %v1609_v40 = vpop.f32.mrb[6].mxu1  ;;  %1355 = vst [vmem:[%s2211_s13 + $0x18] sm:$0xff] %v1323_v23  ;;  %v2394_v62 = vrot.slane %v2008_v36, %v1889_v13 }
 0x12d   : > { %1371 = vst [vmem:[%s2211_s13 + $0x98] sm:$0xff] %v1339_v57  ;;  %v541_v21 = vadd.f32 %v1585_v26, %v2140_v19  ;;  %v621_v11 = vadd.f32 %v1609_v40, %v2140_v19  ;;  %v535_v29 = vpop.f32.mrb[7].mxu0  ;;  %v615_v22 = vpop.f32.mrb[7].mxu1  ;;  %v2395_v60 = vrot.slane %v2010_v37, %v1889_v13  ;;  %1354 = vst [vmem:[%s2211_s13 + $0x10] sm:$0xff] %v1322_v34 }
 0x12e   : > { %v1065_v45 = vadd.f32 %v2394_v62, %v669_v52  ;;  %v2396_v14 = vrot.slane %v2012_v38, %v1889_v13  ;;  %1370 = vst [vmem:[%s2211_s13 + $0x90] sm:$0xff] %v1338_v44  ;;  %v536_v36 = vadd.f32 %v2140_v19, %v535_v29  ;;  %v616_v24 = vadd.f32 %v2140_v19, %v615_v22  ;;  %v1291_v26 = vpop.permute.xlu1 %1290 }
 0x12f   : > { %v1081_v27 = vadd.f32 %v2395_v60, %v685_v9  ;;  %v2397_v30 = vrot.slane %v2014_v39, %v1889_v13  ;;  %v671_v37 = vmul.f32 11.313708, %v541_v21  ;;  %v687_v51 = vmul.f32 11.313708, %v621_v11  ;;  %v1588_v42 = vpop.f32.mrb[8].mxu0 }
 0x130   : > { %v1064_v50 = vadd.f32 %v2396_v14, %v668_v28  ;;  %v1325_v12 = vadd.f32 %v2040_v0, %v1065_v45  ;;  %v670_v15 = vmul.f32 11.313708, %v536_v36  ;;  %v686_v61 = vmul.f32 11.313708, %v616_v24  ;;  %v1612_v33 = vpop.f32.mrb[8].mxu1  ;;  %v545_v52 = vpop.f32.mrb[9].mxu0 }
 0x131   : > { %v1080_v63 = vadd.f32 %v2397_v30, %v684_v43  ;;  %v1341_v41 = vadd.f32 %v2130_v55, %v1081_v27  ;;  %v1067_v39 = vadd.f32 %v2125_v53, %v671_v37  ;;  %v551_v0 = vadd.f32 %v1588_v42, %v2140_v19  ;;  %v625_v9 = vpop.f32.mrb[9].mxu1 }
 0x132   : > { %v1324_v38 = vadd.f32 %v2042_v1, %v1064_v50  ;;  %1357 = vst [vmem:[%s2211_s13 + $0x28] sm:$0xff] %v1325_v12  ;;  %v631_v23 = vadd.f32 %v1612_v33, %v2140_v19  ;;  %v1083_v55 = vadd.f32 %v2135_v18, %v687_v51  ;;  %v1066_v1 = vadd.f32 %v2128_v54, %v670_v15  ;;  %v1284_v18 = vpop.permute.xlu0 %1283 }
 0x133   : > { %v1340_v16 = vadd.f32 %v2132_v17, %v1080_v63  ;;  %1373 = vst [vmem:[%s2211_s13 + $0xa8] sm:$0xff] %v1341_v41  ;;  %v546_v17 = vadd.f32 %v2140_v19, %v545_v52  ;;  %v626_v57 = vadd.f32 %v2140_v19, %v625_v9  ;;  %v1082_v53 = vadd.f32 %v2138_v20, %v686_v61  ;;  %v1591_v21 = vpop.f32.mrb[10].mxu0 }
 0x134   : > { %1356 = vst [vmem:[%s2211_s13 + $0x20] sm:$0xff] %v1324_v38  ;;  %v1327_v34 = vadd.f32 %v2044_v2, %v1067_v39  ;;  %v673_v28 = vmul.f32 11.313708, %v551_v0  ;;  %v689_v43 = vmul.f32 11.313708, %v631_v23  ;;  %v1343_v44 = vadd.f32 %v2182_v7, %v1083_v55  ;;  %v1615_v11 = vpop.f32.mrb[10].mxu1  ;;  %v1305_v39 = vpop.permute.xlu1 %1304 }
 0x135   : > { %1372 = vst [vmem:[%s2211_s13 + $0xa0] sm:$0xff] %v1340_v16  ;;  %v1326_v54 = vadd.f32 %v2046_v3, %v1066_v1  ;;  %v672_v40 = vmul.f32 11.313708, %v546_v17  ;;  %v688_v62 = vmul.f32 11.313708, %v626_v57  ;;  %v1342_v45 = vadd.f32 %v2184_v6, %v1082_v53  ;;  %v555_v22 = vpop.f32.mrb[11].mxu0 }
 0x136   : > { %1359 = vst [vmem:[%s2211_s13 + $0x38] sm:$0xff] %v1327_v34  ;;  %v2398_v2 = vrot.slane %v2016_v46, %v1889_v13  ;;  %1375 = vst [vmem:[%s2211_s13 + $0xb8] sm:$0xff] %v1343_v44  ;;  %v561_v7 = vadd.f32 %v1591_v21, %v2140_v19  ;;  %v641_v29 = vadd.f32 %v1615_v11, %v2140_v19  ;;  %v635_v60 = vpop.f32.mrb[11].mxu1  ;;  %v2402_v0 = vld [vmem:[#allocation10_spill] sm:$0xff]  ;;  %v2403_v1 = vld [vmem:[#allocation11_spill] sm:$0xff] }
 0x137   : > { %v2399_v3 = vrot.slane %v2018_v47, %v1889_v13  ;;  %1358 = vst [vmem:[%s2211_s13 + $0x30] sm:$0xff] %v1326_v54  ;;  %v2400_v6 = vrot.slane %v2020_v48, %v1889_v13  ;;  %1374 = vst [vmem:[%s2211_s13 + $0xb0] sm:$0xff] %v1342_v45  ;;  %v556_v46 = vadd.f32 %v2140_v19, %v555_v22  ;;  %v1594_v38 = vpop.f32.mrb[12].mxu0  ;;  %v2410_v22 = vld [vmem:[#allocation12_spill] sm:$0xff] }
 0x138   : > { %v1069_v20 = vadd.f32 %v2398_v2, %v673_v28  ;;  %v636_v50 = vadd.f32 %v2140_v19, %v635_v60  ;;  %v2401_v36 = vrot.slane %v2022_v49, %v1889_v13  ;;  %v675_v47 = vmul.f32 11.313708, %v561_v7  ;;  %v1618_v15 = vpop.f32.mrb[12].mxu1  ;;  %v565_v16 = vpop.f32.mrb[13].mxu0 }
 0x139   : > { %v1085_v27 = vadd.f32 %v2399_v3, %v689_v43  ;;  %v1068_v14 = vadd.f32 %v2400_v6, %v672_v40  ;;  %v691_v63 = vmul.f32 11.313708, %v641_v29  ;;  %v674_v37 = vmul.f32 11.313708, %v556_v46  ;;  %v645_v42 = vpop.f32.mrb[13].mxu1 }
 0x13a   : > { %v1084_v24 = vadd.f32 %v2401_v36, %v688_v62  ;;  %v1329_v30 = vadd.f32 %v2048_v4, %v1069_v20  ;;  %v690_v51 = vmul.f32 11.313708, %v636_v50  ;;  %v1071_v49 = vadd.f32 %v2151_v31, %v675_v47  ;;  %v2405_v62 = vld [vmem:[#allocation8_spill] sm:$0xff] }
 0x13b   : > { %v1345_v12 = vadd.f32 %v2239_v10, %v1085_v27  ;;  %v1328_v48 = vadd.f32 %v2050_v5, %v1068_v14  ;;  %v571_v4 = vadd.f32 %v1594_v38, %v2140_v19  ;;  %v651_v61 = vadd.f32 %v1618_v15, %v2140_v19  ;;  %v1597_v34 = vpop.f32.mrb[14].mxu0  ;;  %v2411_v14 = vld [vmem:[#allocation13_spill] sm:$0xff]  ;;  %v2416_v15 = vld [vmem:[#allocation15_spill] sm:$0xff] }
 0x13c   : > { %v1344_v41 = vadd.f32 %v2241_v35, %v1084_v24  ;;  %1361 = vst [vmem:[%s2211_s13 + $0x48] sm:$0xff] %v1329_v30  ;;  %v1087_v10 = vadd.f32 %v2154_v32, %v691_v63  ;;  %v1070_v5 = vadd.f32 %v2161_v25, %v674_v37  ;;  %v566_v35 = vadd.f32 %v2140_v19, %v565_v16  ;;  %v1298_v32 = vpop.permute.xlu0 %1297  ;;  %v1621_v28 = vpop.f32.mrb[14].mxu1 }
 0x13d   : > { %1377 = vst [vmem:[%s2211_s13 + $0xc8] sm:$0xff] %v1345_v12  ;;  %1360 = vst [vmem:[%s2211_s13 + $0x40] sm:$0xff] %v1328_v48  ;;  %v646_v33 = vadd.f32 %v2140_v19, %v645_v42  ;;  %v1086_v31 = vadd.f32 %v2164_v8, %v690_v51  ;;  %v1331_v23 = vadd.f32 %v2402_v0, %v1071_v49  ;;  %v677_v52 = vmul.f32 11.313708, %v571_v4  ;;  %v575_v54 = vpop.f32.mrb[15].mxu0  ;;  %v655_v40 = vpop.f32.mrb[15].mxu1 }
 0x13e   : > { %1376 = vst [vmem:[%s2211_s13 + $0xc0] sm:$0xff] %v1344_v41  ;;  %v693_v9 = vmul.f32 11.313708, %v651_v61  ;;  %v1347_v55 = vadd.f32 %v1291_v26, %v1087_v10  ;;  %v1330_v17 = vadd.f32 %v2403_v1, %v1070_v5  ;;  %v676_v25 = vmul.f32 11.313708, %v566_v35  ;;  %v1319_v30 = vpop.permute.xlu1 %1318  ;;  %v2414_v48 = vld [vmem:[#allocation18_spill] sm:$0xff] }
 0x13f   : > { %v692_v57 = vmul.f32 11.313708, %v646_v33  ;;  %v1346_v53 = vadd.f32 %v1284_v18, %v1086_v31  ;;  %1363 = vst [vmem:[%s2211_s13 + $0x58] sm:$0xff] %v1331_v23  ;;  %v2404_v8 = vrot.slane %v2024_v56, %v1889_v13  ;;  %v581_v44 = vadd.f32 %v1597_v34, %v2140_v19  ;;  %v2407_v18 = vld [vmem:[#allocation9_spill] sm:$0xff]  ;;  %v2415_v51 = vld [vmem:[#allocation14_spill] sm:$0xff] }
 0x140   : > { %1379 = vst [vmem:[%s2211_s13 + $0xd8] sm:$0xff] %v1347_v55  ;;  %v661_v26 = vadd.f32 %v1621_v28, %v2140_v19  ;;  %v2406_v45 = vrot.slane %v2405_v62, %v1889_v13  ;;  %1362 = vst [vmem:[%s2211_s13 + $0x50] sm:$0xff] %v1330_v17  ;;  %v2408_v11 = vrot.slane %v2407_v18, %v1889_v13  ;;  %v1312_v63 = vpop.permute.xlu0 %1311 }
 0x141   : > { %v1073_v43 = vadd.f32 %v2404_v8, %v677_v52  ;;  %1378 = vst [vmem:[%s2211_s13 + $0xd0] sm:$0xff] %v1346_v53  ;;  %v576_v56 = vadd.f32 %v2140_v19, %v575_v54  ;;  %v656_v20 = vadd.f32 %v2140_v19, %v655_v40  ;;  %v2409_v7 = vrot.slane %v2030_v59, %v1889_v13  ;;  %v2412_v19 = vld [vmem:[#allocation16_spill] sm:$0xff]  ;;  %v2413_v59 = vld [vmem:[#allocation17_spill] sm:$0xff] }
 0x142   : > { %v1089_v21 = vadd.f32 %v2406_v45, %v693_v9  ;;  %v1072_v2 = vadd.f32 %v2408_v11, %v676_v25  ;;  %v679_v3 = vmul.f32 11.313708, %v581_v44  ;;  %v695_v27 = vmul.f32 11.313708, %v661_v26 }
 0x143   : > { %v1088_v29 = vadd.f32 %v2409_v7, %v692_v57  ;;  %v1333_v60 = vadd.f32 %v2410_v22, %v1073_v43  ;;  %v678_v50 = vmul.f32 11.313708, %v576_v56  ;;  %v694_v36 = vmul.f32 11.313708, %v656_v20 }
 0x144   : > { %v1349_v6 = vadd.f32 %v1305_v39, %v1089_v21  ;;  %v1332_v46 = vadd.f32 %v2411_v14, %v1072_v2  ;;  %v1075_v13 = vadd.f32 %v2412_v19, %v679_v3  ;;  %v1091_v47 = vadd.f32 %v2413_v59, %v695_v27 }
 0x145   : > { %v1348_v24 = vadd.f32 %v1298_v32, %v1088_v29  ;;  %1365 = vst [vmem:[%s2211_s13 + $0x68] sm:$0xff] %v1333_v60  ;;  %v1074_v12 = vadd.f32 %v2193_v58, %v678_v50  ;;  %v1090_v37 = vadd.f32 %v2414_v48, %v694_v36 }
 0x146   : > { %1381 = vst [vmem:[%s2211_s13 + $0xe8] sm:$0xff] %v1349_v6  ;;  %1364 = vst [vmem:[%s2211_s13 + $0x60] sm:$0xff] %v1332_v46  ;;  %v1335_v41 = vadd.f32 %v2415_v51, %v1075_v13  ;;  %v1351_v38 = vadd.f32 %v1319_v30, %v1091_v47 }
 0x147   : > { %1380 = vst [vmem:[%s2211_s13 + $0xe0] sm:$0xff] %v1348_v24  ;;  %v1334_v49 = vadd.f32 %v2416_v15, %v1074_v12  ;;  %v1350_v4 = vadd.f32 %v1312_v63, %v1090_v37 }
 0x148   : > { %1367 = vst [vmem:[%s2211_s13 + $0x78] sm:$0xff] %v1335_v41  ;;  %1383 = vst [vmem:[%s2211_s13 + $0xf8] sm:$0xff] %v1351_v38 }
 0x149   : > { %1366 = vst [vmem:[%s2211_s13 + $0x70] sm:$0xff] %v1334_v49  ;;  %1382 = vst [vmem:[%s2211_s13 + $0xf0] sm:$0xff] %v1350_v4 }
 0x14a PF: > { %s17_s18 = sadd.s32 1, %s1728_s18  }
 0x14b   : > { %p14_p10 = scmp.ge.s32.totalorder %s17_s18, 4  }
 0x14d   :  { %16 = sbr.rel (!%p14_p10) target bundleno = 2 (0x2), region = 85 }
 0x154   :  { %1406 = vsyncpa [#allocation3], 1 }
 0x155   :  { %1408 = vsyncpa [#allocation3 + $0x1], 1 }
 0x156   :  { %1409 = vsyncpa [#allocation5], 1 }

// kernel: ts_transformer_forward.13
= control target key start
LH: loop header
LB: loop body
LE: loop exit
PB: predicated region body
PF: predicated region fallthrough
CT: control target
= control target key end

     0   :  { %8 = vsyncpa [#allocation3], 0  ;;  %s1244_s12 = smov 0   ;;  %s1630_s0 = inlined_call_operand.vmem [shape: f32[512,128], index: 0, kind: input, shape index: {}]   ;;  %s1631_s1 = inlined_call_operand.hbm [shape: f32[128,384], index: 1, kind: input, shape index: {}]   ;;  %s1632_s2 = inlined_call_operand.vmem [shape: f32[1,384], index: 2, kind: input, shape index: {}]   ;;  %s1633_s3 = inlined_call_operand.vmem [shape: f32[512,384], index: 3, kind: output, shape index: {}]  }
   0x1 LB: > { %s936_s13 = sadd.s32 4294967295, %s1218_s12   ;;  %p938_p0 = scmp.ge.s32.totalorder %s1218_s12, 1  ;;  %s1218_s12 = sphi %s1244_s12, %s14_s12  }
   0x2   : > { %p113_p1 = scmp.lt.s32.totalorder %s1218_s12, 3  ;;  %s1220_s14 = smov [#allocation2]  }
   0x3   : > { %s125_s15 = sshll.u32 %s1220_s14, 4  ;;  %p1258_p3 = scmp.eq.s32.totalorder %s936_s13, 0  ;;  %s126_s15 = int_to_ptr.vmem [resolvable:$true] %s125_s15 }
   0x4   : > { %p1252_p2 = pnand %p938_p0, %p113_p1  ;;  %s1180_s21 = scalar_lea.hbm %s1631_s1, 6144 }
   0x5   : > { %s1638_s17 = scalar_select %p1258_p3, 1, 0 }
   0x6   : > { %s1637_s16 = scalar_select %p1252_p2, 1, 0 }
   0x7   : > { %p1162_p4 = pneg %p1252_p2  ;;  %p1181_p6 = scmp.ne.s32.totalorder %s1631_s1, %s1180_s21 }
   0x8   : > { %p1187_p10 = scmp.lt.u32.totalorder %s1180_s21, %s1631_s1 }
   0x9   : > { %p1266_p5 = pnand %p1258_p3, %p1162_p4 }
   0xb   : > { %p1182_p7 = pneg %p1266_p5 }
   0xd   : > { %p1183_p8 = pnand %p1182_p7, %p1181_p6 }
   0xf   : > { %p1184_p9 = pneg %p1183_p8 }
  0x11   : > { %p1189_p11 = pnand %p1187_p10, %p1184_p9 }
  0x13   : > { %1192 = shalt.err (!%p1189_p11)
}
  0x14   : > { %s1193_s26 = scalar_lea.vmem %s126_s15, 6144  ;;  %p1201_p1 = scmp.lt.s32.totalorder %s126_s15, %s126_s15 }
  0x15   : > { %p1194_p12 = scmp.ne.s32.totalorder %s126_s15, %s1193_s26  ;;  %p1202_p4 = scmp.lt.s32.totalorder %s1193_s26, %s1193_s26 }
  0x17   : > { %p1196_p13 = pnand %p1194_p12, %p1182_p7  ;;  %p1203_p3 = por %p1202_p4, %p1201_p1 }
  0x19   : > { %p1197_p0 = pneg %p1196_p13 }
  0x1b   : > { %p1204_p2 = pnand %p1203_p3, %p1197_p0 }
  0x1d   : > { %1207 = shalt.err (!%p1204_p2)
}
  0x1e   : > { %s1221_s27 = smov 384   ;;  %s1222_s28 = smov 24  }
  0x1f   : > { %1165 = dma.hbm_to_vmem [thread:$0]  (!%p1266_p5), %s1631_s1, 6144, %s126_s15, [#allocation3], %s1221_s27, %s1221_s27, %s1222_s28  }
  0x20   : > { %p1640_p6 = scmp.ne.s32.totalorder %s1637_s16, 0 }
  0x21   : > { %p1641_p8 = scmp.ne.s32.totalorder (!%p1640_p6), %s1638_s17, 0 }
  0x22   : > { %153 = sbr.rel (%p1640_p6) target bundleno = 385 (0x181), region = 32 }
  0x29   : > { %1213 = dma.done.wait (%p1641_p8), [#allocation3], 6144  }
  0x2a   : > { %1215 = vsyncadd (%p1641_p8), [#allocation3], 4294961152  ;;  %v1223_v0 = vmov 0.0   ;;  %v224_v1 = vld [vmem:[#allocation2 + $0x8] sm:$0xff]  ;;  %v227_v2 = vld [vmem:[#allocation2 + $0x20] sm:$0xff]  ;;  %s943_s4 = sshll.u32 %s936_s13, 5 }
  0x2b   : > { %352 = vmatprep.mubr.f32.mxu0 %v1223_v0  ;;  %496 = vmatprep.mubr.f32.mxu1 %v1223_v0  ;;  %v223_v3 = vld [vmem:[#allocation2] sm:$0xff]  ;;  %v1077_v4 = vpack.c.bf16 %v227_v2, %v224_v1  ;;  %v226_v5 = vld [vmem:[#allocation2 + $0x18] sm:$0xff]  ;;  %v233_v7 = vld [vmem:[#allocation2 + $0x50] sm:$0xff]  ;;  %p179_p2 = scmp.lt.s32.totalorder %s943_s4, 63 }
  0x2c   : > { %v230_v6 = vld [vmem:[#allocation2 + $0x38] sm:$0xff]  ;;  %v1079_v8 = vpack.c.bf16 %v226_v5, %v223_v3  ;;  %v229_v10 = vld [vmem:[#allocation2 + $0x30] sm:$0xff]  ;;  %v232_v11 = vld [vmem:[#allocation2 + $0x48] sm:$0xff] }
  0x2d   : > { %v1081_v9 = vpack.c.bf16 %v233_v7, %v230_v6  ;;  %v236_v12 = vld [vmem:[#allocation2 + $0x68] sm:$0xff]  ;;  %1078 = vmatprep.subr.bf16.mxu0 %v1077_v4  ;;  %1141 = vmatprep.subr.bf16.mxu1 %v1077_v4  ;;  %v239_v13 = vld [vmem:[#allocation2 + $0x80] sm:$0xff]  ;;  %v1083_v14 = vpack.c.bf16 %v232_v11, %v229_v10  ;;  %v238_v17 = vld [vmem:[#allocation2 + $0x78] sm:$0xff]  ;;  %s1643_s4 = smov (!%p179_p2, %s943_s4), 63 }
  0x2e   : > { %1080 = vmatpush1.bf16.msra.mxu0 %v1079_v8  ;;  %1149 = vmatpush1.bf16.msra.mxu1 %v1079_v8  ;;  %v1085_v15 = vpack.c.bf16 %v239_v13, %v236_v12  ;;  %v235_v16 = vld [vmem:[#allocation2 + $0x60] sm:$0xff]  ;;  %v242_v18 = vld [vmem:[#allocation2 + $0x98] sm:$0xff]  ;;  %v245_v19 = vld [vmem:[#allocation2 + $0xb0] sm:$0xff]  ;;  %s944_s5 = sshll.u32 %s1643_s4, 3  ;;  %s1157_s11 = smul.u32 24, %s1643_s4 }
  0x2f   : > { %1082 = vmatprep.subr.bf16.mxu0 %v1081_v9  ;;  %1142 = vmatprep.subr.bf16.mxu1 %v1081_v9  ;;  %v1087_v20 = vpack.c.bf16 %v238_v17, %v235_v16  ;;  %v1089_v21 = vpack.c.bf16 %v245_v19, %v242_v18  ;;  %v241_v22 = vld [vmem:[#allocation2 + $0x90] sm:$0xff]  ;;  %v244_v23 = vld [vmem:[#allocation2 + $0xa8] sm:$0xff]  ;;  %v251_v25 = vld [vmem:[#allocation2 + $0xe0] sm:$0xff]  ;;  %s1302_s8 = scalar_lea.vmem %s1630_s0, %s944_s5 }
  0x30   : > { %v248_v24 = vld [vmem:[#allocation2 + $0xc8] sm:$0xff]  ;;  %v1091_v26 = vpack.c.bf16 %v244_v23, %v241_v22  ;;  %v247_v28 = vld [vmem:[#allocation2 + $0xc0] sm:$0xff]  ;;  %v250_v29 = vld [vmem:[#allocation2 + $0xd8] sm:$0xff]  ;;  %s1429_s15 = scalar_lea.vmem %s1633_s3, %s1157_s11 }
  0x31   : > { %v1093_v27 = vpack.c.bf16 %v251_v25, %v248_v24  ;;  %v254_v30 = vld [vmem:[#allocation2 + $0xf8] sm:$0xff]  ;;  %v257_v31 = vld [vmem:[#allocation2 + $0x110] sm:$0xff]  ;;  %v1095_v32 = vpack.c.bf16 %v250_v29, %v247_v28  ;;  %v256_v35 = vld [vmem:[#allocation2 + $0x108] sm:$0xff] }
  0x32   : > { %1084 = vmatpush1.bf16.msra.mxu0 %v1083_v14  ;;  %1150 = vmatpush1.bf16.msra.mxu1 %v1083_v14  ;;  %v1097_v33 = vpack.c.bf16 %v257_v31, %v254_v30  ;;  %v253_v34 = vld [vmem:[#allocation2 + $0xf0] sm:$0xff]  ;;  %v260_v36 = vld [vmem:[#allocation2 + $0x128] sm:$0xff]  ;;  %v263_v37 = vld [vmem:[#allocation2 + $0x140] sm:$0xff] }
  0x33   : > { %1086 = vmatprep.subr.bf16.mxu0 %v1085_v15  ;;  %1143 = vmatprep.subr.bf16.mxu1 %v1085_v15  ;;  %v1099_v38 = vpack.c.bf16 %v256_v35, %v253_v34  ;;  %v1101_v39 = vpack.c.bf16 %v263_v37, %v260_v36  ;;  %v259_v40 = vld [vmem:[#allocation2 + $0x120] sm:$0xff]  ;;  %v262_v41 = vld [vmem:[#allocation2 + $0x138] sm:$0xff]  ;;  %v269_v43 = vld [vmem:[#allocation2 + $0x170] sm:$0xff] }
  0x34   : > { %v266_v42 = vld [vmem:[#allocation2 + $0x158] sm:$0xff]  ;;  %v1103_v44 = vpack.c.bf16 %v262_v41, %v259_v40  ;;  %v265_v46 = vld [vmem:[#allocation2 + $0x150] sm:$0xff]  ;;  %v268_v47 = vld [vmem:[#allocation2 + $0x168] sm:$0xff] }
  0x35   : > { %v1105_v45 = vpack.c.bf16 %v269_v43, %v266_v42  ;;  %v225_v48 = vld [vmem:[#allocation2 + $0x10] sm:$0xff]  ;;  %v228_v49 = vld [vmem:[#allocation2 + $0x28] sm:$0xff]  ;;  %v1107_v50 = vpack.c.bf16 %v268_v47, %v265_v46  ;;  %v231_v52 = vld [vmem:[#allocation2 + $0x40] sm:$0xff]  ;;  %v273_v42 = vlaneseq }
  0x36   : > { %1088 = vmatpush1.bf16.msra.mxu0 %v1087_v20  ;;  %1151 = vmatpush1.bf16.msra.mxu1 %v1087_v20  ;;  %v1109_v51 = vpack.c.bf16 %v228_v49, %v225_v48  ;;  %v234_v53 = vld [vmem:[#allocation2 + $0x58] sm:$0xff]  ;;  %v1305_v54 = vld [vmem:[%s1302_s8] sm:$0xff]  ;;  %v237_v57 = vld [vmem:[#allocation2 + $0x70] sm:$0xff] }
  0x37   : > { %1090 = vmatprep.subr.bf16.mxu0 %v1089_v21  ;;  %1144 = vmatprep.subr.bf16.mxu1 %v1089_v21  ;;  %v1308_v55 = vld [vmem:[%s1302_s8 + $0xc0] sm:$0xff]  ;;  %v1113_v56 = vpack.c.bf16 %v234_v53, %v231_v52  ;;  %v240_v58 = vld [vmem:[#allocation2 + $0x88] sm:$0xff]  ;;  %v246_v63 = vld [vmem:[#allocation2 + $0xb8] sm:$0xff]  ;;  %v1410_v43 = vshrl.u32 %v273_v42, 7 }
  0x38   : > { %v1314_v59 = vld [vmem:[%s1302_s8 + $0x8] sm:$0xff]  ;;  %v1117_v61 = vpack.c.bf16 %v240_v58, %v237_v57  ;;  %v243_v62 = vld [vmem:[#allocation2 + $0xa0] sm:$0xff]  ;;  %v1324_v1 = vld [vmem:[%s1302_s8 + $0x10] sm:$0xff] }
  0x39   : > { %v1317_v60 = vld [vmem:[%s1302_s8 + $0xc8] sm:$0xff]  ;;  %v1327_v2 = vld [vmem:[%s1302_s8 + $0xd0] sm:$0xff]  ;;  %v1121_v3 = vpack.c.bf16 %v246_v63, %v243_v62  ;;  %v194_v6 = vld [vmem:[%s1302_s8 + $0x18] sm:$0xff]  ;;  %v279_v46 = vsub.s32 1, %v1410_v43 }
  0x3a   : > { %1092 = vmatpush1.bf16.msra.mxu0 %v1091_v26  ;;  %1152 = vmatpush1.bf16.msra.mxu1 %v1091_v26  ;;  %v249_v4 = vld [vmem:[#allocation2 + $0xd0] sm:$0xff]  ;;  %v252_v5 = vld [vmem:[#allocation2 + $0xe8] sm:$0xff]  ;;  %v1335_v7 = vld [vmem:[%s1302_s8 + $0xd8] sm:$0xff] }
  0x3b   : > { %1094 = vmatprep.subr.bf16.mxu0 %v1093_v27  ;;  %1145 = vmatprep.subr.bf16.mxu1 %v1093_v27  ;;  %v1125_v8 = vpack.c.bf16 %v252_v5, %v249_v4  ;;  %v255_v9 = vld [vmem:[#allocation2 + $0x100] sm:$0xff]  ;;  %v258_v10 = vld [vmem:[#allocation2 + $0x118] sm:$0xff]  ;;  %v261_v14 = vld [vmem:[#allocation2 + $0x130] sm:$0xff] }
  0x3c   : > { %v195_v11 = vld [vmem:[%s1302_s8 + $0x20] sm:$0xff]  ;;  %v1129_v13 = vpack.c.bf16 %v258_v10, %v255_v9  ;;  %v264_v15 = vld [vmem:[#allocation2 + $0x148] sm:$0xff]  ;;  %v270_v20 = vld [vmem:[#allocation2 + $0x178] sm:$0xff] }
  0x3d   : > { %v1342_v12 = vld [vmem:[%s1302_s8 + $0xe0] sm:$0xff]  ;;  %v196_v16 = vld [vmem:[%s1302_s8 + $0x28] sm:$0xff]  ;;  %v1133_v18 = vpack.c.bf16 %v264_v15, %v261_v14  ;;  %v197_v21 = vld [vmem:[%s1302_s8 + $0x30] sm:$0xff] }
  0x3e   : > { %1096 = vmatpush1.bf16.msra.mxu0 %v1095_v32  ;;  %1153 = vmatpush1.bf16.msra.mxu1 %v1095_v32  ;;  %v1349_v17 = vld [vmem:[%s1302_s8 + $0xe8] sm:$0xff]  ;;  %v267_v19 = vld [vmem:[#allocation2 + $0x160] sm:$0xff]  ;;  %v1356_v22 = vld [vmem:[%s1302_s8 + $0xf0] sm:$0xff] }
  0x3f   : > { %1098 = vmatprep.subr.bf16.mxu0 %v1097_v33  ;;  %1146 = vmatprep.subr.bf16.mxu1 %v1097_v33  ;;  %v1137_v23 = vpack.c.bf16 %v270_v20, %v267_v19  ;;  %v198_v24 = vld [vmem:[%s1302_s8 + $0x38] sm:$0xff]  ;;  %v199_v26 = vld [vmem:[%s1302_s8 + $0x40] sm:$0xff]  ;;  %v200_v27 = vld [vmem:[%s1302_s8 + $0x48] sm:$0xff] }
  0x40   : > { %v1363_v25 = vld [vmem:[%s1302_s8 + $0xf8] sm:$0xff]  ;;  %v201_v28 = vld [vmem:[%s1302_s8 + $0x50] sm:$0xff]  ;;  %v203_v30 = vld [vmem:[%s1302_s8 + $0x60] sm:$0xff] }
  0x41   : > { %v202_v29 = vld [vmem:[%s1302_s8 + $0x58] sm:$0xff]  ;;  %v204_v31 = vld [vmem:[%s1302_s8 + $0x68] sm:$0xff]  ;;  %v205_v32 = vld [vmem:[%s1302_s8 + $0x70] sm:$0xff] }
  0x42   : > { %1100 = vmatpush1.bf16.msra.mxu0 %v1099_v38  ;;  %1154 = vmatpush1.bf16.msra.mxu1 %v1099_v38  ;;  %v206_v33 = vld [vmem:[%s1302_s8 + $0x78] sm:$0xff]  ;;  %v207_v34 = vld [vmem:[%s1302_s8 + $0x80] sm:$0xff]  ;;  %v208_v35 = vld [vmem:[%s1302_s8 + $0x88] sm:$0xff] }
  0x43   : > { %1102 = vmatprep.subr.bf16.mxu0 %v1101_v39  ;;  %1147 = vmatprep.subr.bf16.mxu1 %v1101_v39  ;;  %v209_v36 = vld [vmem:[%s1302_s8 + $0x90] sm:$0xff]  ;;  %v210_v37 = vld [vmem:[%s1302_s8 + $0x98] sm:$0xff]  ;;  %v211_v38 = vld [vmem:[%s1302_s8 + $0xa0] sm:$0xff] }
  0x44   : > { %v212_v39 = vld [vmem:[%s1302_s8 + $0xa8] sm:$0xff]  ;;  %v213_v40 = vld [vmem:[%s1302_s8 + $0xb0] sm:$0xff]  ;;  %v214_v41 = vld [vmem:[%s1302_s8 + $0xb8] sm:$0xff] }
  0x46   : > { %1104 = vmatpush1.bf16.msra.mxu0 %v1103_v44  ;;  %1155 = vmatpush1.bf16.msra.mxu1 %v1103_v44  ;;  %v275_v44 = vsub.s32 0, %v1410_v43 }
  0x47   : > { %1106 = vmatprep.subr.bf16.mxu0 %v1105_v45  ;;  %1148 = vmatprep.subr.bf16.mxu1 %v1105_v45  ;;  %v1416_v45 = vld [vmem:[%s1632_s2] sm:$0x7] }
  0x48   : > { %v1424_v47 = vrot.slane %v1416_v45, %v279_v46 }
  0x4a   : > { %1108 = vmatpush1.bf16.msra.mxu0 %v1107_v50  ;;  %1156 = vmatpush1.bf16.msra.mxu1 %v1107_v50 }
  0x4b   : > { %1110 = vmatprep.subr.bf16.mxu1 %v1109_v51 }
  0x4d   : > { %353 = vmatmul.mubr.f32.vlgmr.msra.gmra.mrb[0].mxu0 %v1305_v54  ;;  %497 = vmatmul.mubr.f32.vlgmr.msra.gmra.mrb[0].mxu1 %v1308_v55 }
  0x4e   : > { %1112 = vmatpush3.bf16.msra.mxu1 %v1109_v51  ;;  %358 = vmatprep.mubr.f32.mxu0 %v1223_v0 }
  0x4f   : > { %502 = vmatprep.mubr.f32.mxu1 %v1223_v0  ;;  %1114 = vmatprep.subr.bf16.mxu1 %v1113_v56 }
  0x51   : > { %359 = vmatmul.mubr.f32.gmra.mrb[2].mxu0 %v1314_v59  ;;  %503 = vmatmul.mubr.f32.gmra.mrb[2].mxu1 %v1317_v60 }
  0x52   : > { %1116 = vmatpush3.bf16.msra.mxu1 %v1113_v56  ;;  %364 = vmatprep.mubr.f32.mxu0 %v1223_v0 }
  0x53   : > { %508 = vmatprep.mubr.f32.mxu1 %v1223_v0  ;;  %1118 = vmatprep.subr.bf16.mxu1 %v1117_v61 }
  0x55   : > { %365 = vmatmul.mubr.f32.gmra.mrb[4].mxu0 %v1324_v1  ;;  %509 = vmatmul.mubr.f32.gmra.mrb[4].mxu1 %v1327_v2 }
  0x56   : > { %1120 = vmatpush3.bf16.msra.mxu1 %v1117_v61  ;;  %370 = vmatprep.mubr.f32.mxu0 %v1223_v0 }
  0x57   : > { %514 = vmatprep.mubr.f32.mxu1 %v1223_v0  ;;  %1122 = vmatprep.subr.bf16.mxu1 %v1121_v3 }
  0x59   : > { %371 = vmatmul.mubr.f32.gmra.mrb[6].mxu0 %v194_v6  ;;  %515 = vmatmul.mubr.f32.gmra.mrb[6].mxu1 %v1335_v7 }
  0x5a   : > { %1124 = vmatpush3.bf16.msra.mxu1 %v1121_v3  ;;  %376 = vmatprep.mubr.f32.mxu0 %v1223_v0 }
  0x5b   : > { %520 = vmatprep.mubr.f32.mxu1 %v1223_v0  ;;  %1126 = vmatprep.subr.bf16.mxu1 %v1125_v8 }
  0x5d   : > { %377 = vmatmul.mubr.f32.gmra.mrb[8].mxu0 %v195_v11  ;;  %521 = vmatmul.mubr.f32.gmra.mrb[8].mxu1 %v1342_v12 }
  0x5e   : > { %1128 = vmatpush3.bf16.msra.mxu1 %v1125_v8  ;;  %382 = vmatprep.mubr.f32.mxu0 %v1223_v0 }
  0x5f   : > { %526 = vmatprep.mubr.f32.mxu1 %v1223_v0  ;;  %1130 = vmatprep.subr.bf16.mxu1 %v1129_v13 }
  0x61   : > { %383 = vmatmul.mubr.f32.gmra.mrb[10].mxu0 %v196_v16  ;;  %527 = vmatmul.mubr.f32.gmra.mrb[10].mxu1 %v1349_v17 }
  0x62   : > { %1132 = vmatpush3.bf16.msra.mxu1 %v1129_v13  ;;  %388 = vmatprep.mubr.f32.mxu0 %v1223_v0 }
  0x63   : > { %532 = vmatprep.mubr.f32.mxu1 %v1223_v0  ;;  %1134 = vmatprep.subr.bf16.mxu1 %v1133_v18 }
  0x65   : > { %389 = vmatmul.mubr.f32.gmra.mrb[12].mxu0 %v197_v21  ;;  %533 = vmatmul.mubr.f32.gmra.mrb[12].mxu1 %v1356_v22 }
  0x66   : > { %1136 = vmatpush3.bf16.msra.mxu1 %v1133_v18  ;;  %394 = vmatprep.mubr.f32.mxu0 %v1223_v0 }
  0x67   : > { %538 = vmatprep.mubr.f32.mxu1 %v1223_v0  ;;  %1138 = vmatprep.subr.bf16.mxu1 %v1137_v23 }
  0x69   : > { %395 = vmatmul.mubr.f32.gmra.mrb[14].mxu0 %v198_v24  ;;  %539 = vmatmul.mubr.f32.gmra.mrb[14].mxu1 %v1363_v25 }
  0x6a   : > { %1140 = vmatpush3.bf16.msra.mxu1 %v1137_v23  ;;  %400 = vmatprep.mubr.f32.mxu0 %v1223_v0 }
  0x6b   : > { %1029 = vmatprep.mubr.f32.mxu1 %v1305_v54 }
  0x6d   : > { %401 = vmatmul.mubr.f32.gmra.mrb[16].mxu0 %v199_v26  ;;  %1030 = vmatmul.mubr.f32.vlgmr.msra.gmra.mrb[16].mxu1 %v1314_v59 }
  0x6e   : > { %406 = vmatprep.mubr.f32.mxu0 %v1223_v0  ;;  %1032 = vmatprep.mubr.f32.mxu1 %v1324_v1 }
  0x71   : > { %407 = vmatmul.mubr.f32.gmra.mrb[18].mxu0 %v200_v27  ;;  %1033 = vmatmul.mubr.f32.gmra.mrb[18].mxu1 %v194_v6 }
  0x72   : > { %412 = vmatprep.mubr.f32.mxu0 %v1223_v0  ;;  %1035 = vmatprep.mubr.f32.mxu1 %v195_v11 }
  0x75   : > { %413 = vmatmul.mubr.f32.gmra.mrb[20].mxu0 %v201_v28  ;;  %1036 = vmatmul.mubr.f32.gmra.mrb[20].mxu1 %v196_v16 }
  0x76   : > { %418 = vmatprep.mubr.f32.mxu0 %v1223_v0  ;;  %1038 = vmatprep.mubr.f32.mxu1 %v197_v21 }
  0x79   : > { %419 = vmatmul.mubr.f32.gmra.mrb[22].mxu0 %v202_v29  ;;  %1039 = vmatmul.mubr.f32.gmra.mrb[22].mxu1 %v198_v24 }
  0x7a   : > { %424 = vmatprep.mubr.f32.mxu0 %v1223_v0  ;;  %1041 = vmatprep.mubr.f32.mxu1 %v199_v26 }
  0x7d   : > { %425 = vmatmul.mubr.f32.gmra.mrb[24].mxu0 %v203_v30  ;;  %1042 = vmatmul.mubr.f32.gmra.mrb[24].mxu1 %v200_v27 }
  0x7e   : > { %430 = vmatprep.mubr.f32.mxu0 %v1223_v0  ;;  %1044 = vmatprep.mubr.f32.mxu1 %v201_v28 }
  0x81   : > { %431 = vmatmul.mubr.f32.gmra.mrb[26].mxu0 %v204_v31  ;;  %1045 = vmatmul.mubr.f32.gmra.mrb[26].mxu1 %v202_v29 }
  0x82   : > { %436 = vmatprep.mubr.f32.mxu0 %v1223_v0  ;;  %1047 = vmatprep.mubr.f32.mxu1 %v203_v30 }
  0x85   : > { %437 = vmatmul.mubr.f32.gmra.mrb[28].mxu0 %v205_v32  ;;  %1048 = vmatmul.mubr.f32.gmra.mrb[28].mxu1 %v204_v31 }
  0x86   : > { %442 = vmatprep.mubr.f32.mxu0 %v1223_v0  ;;  %1050 = vmatprep.mubr.f32.mxu1 %v205_v32 }
  0x89   : > { %443 = vmatmul.mubr.f32.gmra.mrb[30].mxu0 %v206_v33  ;;  %1051 = vmatmul.mubr.f32.gmra.mrb[30].mxu1 %v206_v33 }
  0x8a   : > { %448 = vmatprep.mubr.f32.mxu0 %v1223_v0  ;;  %1053 = vmatprep.mubr.f32.mxu1 %v207_v34 }
  0x8d   : > { %449 = vmatmul.mubr.f32.gmra.mrb[32].mxu0 %v207_v34  ;;  %1054 = vmatmul.mubr.f32.gmra.mrb[32].mxu1 %v208_v35 }
  0x8e   : > { %454 = vmatprep.mubr.f32.mxu0 %v1223_v0  ;;  %1056 = vmatprep.mubr.f32.mxu1 %v209_v36 }
  0x91   : > { %455 = vmatmul.mubr.f32.gmra.mrb[34].mxu0 %v208_v35  ;;  %1057 = vmatmul.mubr.f32.gmra.mrb[34].mxu1 %v210_v37 }
  0x92   : > { %460 = vmatprep.mubr.f32.mxu0 %v1223_v0  ;;  %1059 = vmatprep.mubr.f32.mxu1 %v211_v38 }
  0x95   : > { %461 = vmatmul.mubr.f32.gmra.mrb[36].mxu0 %v209_v36  ;;  %1060 = vmatmul.mubr.f32.gmra.mrb[36].mxu1 %v212_v39 }
  0x96   : > { %466 = vmatprep.mubr.f32.mxu0 %v1223_v0  ;;  %1062 = vmatprep.mubr.f32.mxu1 %v213_v40 }
  0x99   : > { %467 = vmatmul.mubr.f32.gmra.mrb[38].mxu0 %v210_v37  ;;  %1063 = vmatmul.mubr.f32.gmra.mrb[38].mxu1 %v214_v41 }
  0x9a   : > { %472 = vmatprep.mubr.f32.mxu0 %v1223_v0  ;;  %1065 = vmatprep.mubr.f32.mxu1 %v1308_v55 }
  0x9d   : > { %473 = vmatmul.mubr.f32.gmra.mrb[40].mxu0 %v211_v38  ;;  %1066 = vmatmul.mubr.f32.gmra.mrb[40].mxu1 %v1317_v60 }
  0x9e   : > { %478 = vmatprep.mubr.f32.mxu0 %v1223_v0  ;;  %1068 = vmatprep.mubr.f32.mxu1 %v1327_v2 }
  0xa1   : > { %479 = vmatmul.mubr.f32.gmra.mrb[42].mxu0 %v212_v39  ;;  %1069 = vmatmul.mubr.f32.gmra.mrb[42].mxu1 %v1335_v7  ;;  %v283_v39 = vsub.s32 2, %v1410_v43 }
  0xa2   : > { %484 = vmatprep.mubr.f32.mxu0 %v1223_v0  ;;  %1071 = vmatprep.mubr.f32.mxu1 %v1342_v12 }
  0xa5   : > { %485 = vmatmul.mubr.f32.gmra.mrb[44].mxu0 %v213_v40  ;;  %1072 = vmatmul.mubr.f32.gmra.mrb[44].mxu1 %v1349_v17 }
  0xa6   : > { %490 = vmatprep.mubr.f32.mxu0 %v1223_v0  ;;  %1074 = vmatprep.mubr.f32.mxu1 %v1356_v22  ;;  %v1421_v0 = vrot.slane %v1416_v45, %v275_v44 }
  0xa9   : > { %491 = vmatmul.mubr.f32.gmra.mrb[46].mxu0 %v214_v41  ;;  %1075 = vmatmul.mubr.f32.gmra.mrb[46].mxu1 %v1363_v25 }
 0x120   : > { %v354_v48 = vpop.f32.mrb[0].mxu0  ;;  %v498_v49 = vpop.f32.mrb[0].mxu1 }
 0x121   : > { %v355_v50 = vadd.f32 %v354_v48, %v1421_v0  ;;  %v499_v51 = vadd.f32 %v498_v49, %v1421_v0  ;;  %v356_v52 = vpop.f32.mrb[1].mxu0  ;;  %v500_v53 = vpop.f32.mrb[1].mxu1 }
 0x122   : > { %v357_v54 = vadd.f32 %v356_v52, %v1424_v47  ;;  %v501_v55 = vadd.f32 %v500_v53, %v1424_v47 }
 0x123   : > { %770 = vst [vmem:[%s1429_s15] sm:$0xff] %v355_v50  ;;  %842 = vst [vmem:[%s1429_s15 + $0x240] sm:$0xff] %v499_v51  ;;  %v1491_v50 = vrot.slane %v1416_v45, %v283_v39 }
 0x124   : > { %771 = vst [vmem:[%s1429_s15 + $0x8] sm:$0xff] %v357_v54  ;;  %843 = vst [vmem:[%s1429_s15 + $0x248] sm:$0xff] %v501_v55  ;;  %v360_v56 = vpop.f32.mrb[2].mxu0  ;;  %v504_v57 = vpop.f32.mrb[2].mxu1 }
 0x125   : > { %v361_v58 = vadd.f32 %v360_v56, %v1421_v0  ;;  %v505_v59 = vadd.f32 %v504_v57, %v1421_v0  ;;  %v362_v60 = vpop.f32.mrb[3].mxu0  ;;  %v506_v61 = vpop.f32.mrb[3].mxu1 }
 0x126   : > { %v363_v62 = vadd.f32 %v362_v60, %v1424_v47  ;;  %v507_v63 = vadd.f32 %v506_v61, %v1424_v47 }
 0x127   : > { %773 = vst [vmem:[%s1429_s15 + $0x18] sm:$0xff] %v361_v58  ;;  %845 = vst [vmem:[%s1429_s15 + $0x258] sm:$0xff] %v505_v59 }
 0x128   : > { %774 = vst [vmem:[%s1429_s15 + $0x20] sm:$0xff] %v363_v62  ;;  %846 = vst [vmem:[%s1429_s15 + $0x260] sm:$0xff] %v507_v63  ;;  %v366_v1 = vpop.f32.mrb[4].mxu0  ;;  %v510_v2 = vpop.f32.mrb[4].mxu1 }
 0x129   : > { %v367_v3 = vadd.f32 %v366_v1, %v1421_v0  ;;  %v511_v4 = vadd.f32 %v510_v2, %v1421_v0  ;;  %v368_v5 = vpop.f32.mrb[5].mxu0  ;;  %v512_v6 = vpop.f32.mrb[5].mxu1 }
 0x12a   : > { %v369_v7 = vadd.f32 %v368_v5, %v1424_v47  ;;  %v513_v8 = vadd.f32 %v512_v6, %v1424_v47 }
 0x12b   : > { %776 = vst [vmem:[%s1429_s15 + $0x30] sm:$0xff] %v367_v3  ;;  %848 = vst [vmem:[%s1429_s15 + $0x270] sm:$0xff] %v511_v4 }
 0x12c   : > { %777 = vst [vmem:[%s1429_s15 + $0x38] sm:$0xff] %v369_v7  ;;  %849 = vst [vmem:[%s1429_s15 + $0x278] sm:$0xff] %v513_v8  ;;  %v372_v9 = vpop.f32.mrb[6].mxu0  ;;  %v516_v10 = vpop.f32.mrb[6].mxu1 }
 0x12d   : > { %v373_v11 = vadd.f32 %v372_v9, %v1421_v0  ;;  %v517_v12 = vadd.f32 %v516_v10, %v1421_v0  ;;  %v374_v13 = vpop.f32.mrb[7].mxu0  ;;  %v518_v14 = vpop.f32.mrb[7].mxu1 }
 0x12e   : > { %v375_v15 = vadd.f32 %v374_v13, %v1424_v47  ;;  %v519_v16 = vadd.f32 %v518_v14, %v1424_v47 }
 0x12f   : > { %779 = vst [vmem:[%s1429_s15 + $0x48] sm:$0xff] %v373_v11  ;;  %851 = vst [vmem:[%s1429_s15 + $0x288] sm:$0xff] %v517_v12 }
 0x130   : > { %780 = vst [vmem:[%s1429_s15 + $0x50] sm:$0xff] %v375_v15  ;;  %852 = vst [vmem:[%s1429_s15 + $0x290] sm:$0xff] %v519_v16  ;;  %v378_v17 = vpop.f32.mrb[8].mxu0  ;;  %v522_v18 = vpop.f32.mrb[8].mxu1 }
 0x131   : > { %v379_v19 = vadd.f32 %v378_v17, %v1421_v0  ;;  %v523_v20 = vadd.f32 %v522_v18, %v1421_v0  ;;  %v380_v21 = vpop.f32.mrb[9].mxu0  ;;  %v524_v22 = vpop.f32.mrb[9].mxu1 }
 0x132   : > { %v381_v23 = vadd.f32 %v380_v21, %v1424_v47  ;;  %v525_v24 = vadd.f32 %v524_v22, %v1424_v47 }
 0x133   : > { %782 = vst [vmem:[%s1429_s15 + $0x60] sm:$0xff] %v379_v19  ;;  %854 = vst [vmem:[%s1429_s15 + $0x2a0] sm:$0xff] %v523_v20 }
 0x134   : > { %783 = vst [vmem:[%s1429_s15 + $0x68] sm:$0xff] %v381_v23  ;;  %855 = vst [vmem:[%s1429_s15 + $0x2a8] sm:$0xff] %v525_v24  ;;  %v384_v25 = vpop.f32.mrb[10].mxu0  ;;  %v528_v26 = vpop.f32.mrb[10].mxu1 }
 0x135   : > { %v385_v27 = vadd.f32 %v384_v25, %v1421_v0  ;;  %v529_v28 = vadd.f32 %v528_v26, %v1421_v0  ;;  %v386_v29 = vpop.f32.mrb[11].mxu0  ;;  %v530_v30 = vpop.f32.mrb[11].mxu1 }
 0x136   : > { %v387_v31 = vadd.f32 %v386_v29, %v1424_v47  ;;  %v531_v32 = vadd.f32 %v530_v30, %v1424_v47 }
 0x137   : > { %785 = vst [vmem:[%s1429_s15 + $0x78] sm:$0xff] %v385_v27  ;;  %857 = vst [vmem:[%s1429_s15 + $0x2b8] sm:$0xff] %v529_v28 }
 0x138   : > { %786 = vst [vmem:[%s1429_s15 + $0x80] sm:$0xff] %v387_v31  ;;  %858 = vst [vmem:[%s1429_s15 + $0x2c0] sm:$0xff] %v531_v32  ;;  %v390_v33 = vpop.f32.mrb[12].mxu0  ;;  %v534_v34 = vpop.f32.mrb[12].mxu1 }
 0x139   : > { %v391_v35 = vadd.f32 %v390_v33, %v1421_v0  ;;  %v535_v36 = vadd.f32 %v534_v34, %v1421_v0  ;;  %v392_v37 = vpop.f32.mrb[13].mxu0  ;;  %v536_v38 = vpop.f32.mrb[13].mxu1 }
 0x13a   : > { %v393_v40 = vadd.f32 %v392_v37, %v1424_v47  ;;  %v537_v41 = vadd.f32 %v536_v38, %v1424_v47 }
 0x13b   : > { %788 = vst [vmem:[%s1429_s15 + $0x90] sm:$0xff] %v391_v35  ;;  %860 = vst [vmem:[%s1429_s15 + $0x2d0] sm:$0xff] %v535_v36 }
 0x13c   : > { %789 = vst [vmem:[%s1429_s15 + $0x98] sm:$0xff] %v393_v40  ;;  %861 = vst [vmem:[%s1429_s15 + $0x2d8] sm:$0xff] %v537_v41  ;;  %v396_v42 = vpop.f32.mrb[14].mxu0  ;;  %v540_v44 = vpop.f32.mrb[14].mxu1 }
 0x13d   : > { %v397_v46 = vadd.f32 %v396_v42, %v1421_v0  ;;  %v541_v48 = vadd.f32 %v540_v44, %v1421_v0  ;;  %v398_v49 = vpop.f32.mrb[15].mxu0  ;;  %v542_v43 = vpop.f32.mrb[15].mxu1 }
 0x13e   : > { %v399_v51 = vadd.f32 %v398_v49, %v1424_v47  ;;  %v543_v52 = vadd.f32 %v542_v43, %v1424_v47 }
 0x13f   : > { %791 = vst [vmem:[%s1429_s15 + $0xa8] sm:$0xff] %v397_v46  ;;  %863 = vst [vmem:[%s1429_s15 + $0x2e8] sm:$0xff] %v541_v48 }
 0x140   : > { %792 = vst [vmem:[%s1429_s15 + $0xb0] sm:$0xff] %v399_v51  ;;  %864 = vst [vmem:[%s1429_s15 + $0x2f0] sm:$0xff] %v543_v52  ;;  %v402_v53 = vpop.f32.mrb[16].mxu0  ;;  %v1031_v54 = vpop.f32.mrb[16].mxu1 }
 0x141   : > { %v403_v55 = vadd.f32 %v402_v53, %v1421_v0  ;;  %v617_v56 = vadd.f32 %v1031_v54, %v1491_v50  ;;  %v404_v57 = vpop.f32.mrb[17].mxu0  ;;  %v611_v45 = vpop.f32.mrb[17].mxu1 }
 0x142   : > { %v405_v58 = vadd.f32 %v404_v57, %v1424_v47  ;;  %v612_v59 = vadd.f32 %v611_v45, %v1491_v50 }
 0x143   : > { %794 = vst [vmem:[%s1429_s15 + $0xc0] sm:$0xff] %v403_v55  ;;  %775 = vst [vmem:[%s1429_s15 + $0x28] sm:$0xff] %v617_v56 }
 0x144   : > { %795 = vst [vmem:[%s1429_s15 + $0xc8] sm:$0xff] %v405_v58  ;;  %772 = vst [vmem:[%s1429_s15 + $0x10] sm:$0xff] %v612_v59  ;;  %v408_v60 = vpop.f32.mrb[18].mxu0  ;;  %v1034_v61 = vpop.f32.mrb[18].mxu1 }
 0x145   : > { %v409_v62 = vadd.f32 %v408_v60, %v1421_v0  ;;  %v627_v63 = vadd.f32 %v1034_v61, %v1491_v50  ;;  %v410_v1 = vpop.f32.mrb[19].mxu0  ;;  %v621_v2 = vpop.f32.mrb[19].mxu1 }
 0x146   : > { %v411_v3 = vadd.f32 %v410_v1, %v1424_v47  ;;  %v622_v4 = vadd.f32 %v621_v2, %v1491_v50 }
 0x147   : > { %797 = vst [vmem:[%s1429_s15 + $0xd8] sm:$0xff] %v409_v62  ;;  %781 = vst [vmem:[%s1429_s15 + $0x58] sm:$0xff] %v627_v63 }
 0x148   : > { %798 = vst [vmem:[%s1429_s15 + $0xe0] sm:$0xff] %v411_v3  ;;  %778 = vst [vmem:[%s1429_s15 + $0x40] sm:$0xff] %v622_v4  ;;  %v414_v5 = vpop.f32.mrb[20].mxu0  ;;  %v1037_v6 = vpop.f32.mrb[20].mxu1 }
 0x149   : > { %v415_v7 = vadd.f32 %v414_v5, %v1421_v0  ;;  %v637_v8 = vadd.f32 %v1037_v6, %v1491_v50  ;;  %v416_v9 = vpop.f32.mrb[21].mxu0  ;;  %v631_v10 = vpop.f32.mrb[21].mxu1 }
 0x14a   : > { %v417_v11 = vadd.f32 %v416_v9, %v1424_v47  ;;  %v632_v12 = vadd.f32 %v631_v10, %v1491_v50 }
 0x14b   : > { %800 = vst [vmem:[%s1429_s15 + $0xf0] sm:$0xff] %v415_v7  ;;  %787 = vst [vmem:[%s1429_s15 + $0x88] sm:$0xff] %v637_v8 }
 0x14c   : > { %801 = vst [vmem:[%s1429_s15 + $0xf8] sm:$0xff] %v417_v11  ;;  %784 = vst [vmem:[%s1429_s15 + $0x70] sm:$0xff] %v632_v12  ;;  %v420_v13 = vpop.f32.mrb[22].mxu0  ;;  %v1040_v14 = vpop.f32.mrb[22].mxu1 }
 0x14d   : > { %v421_v15 = vadd.f32 %v420_v13, %v1421_v0  ;;  %v647_v16 = vadd.f32 %v1040_v14, %v1491_v50  ;;  %v422_v17 = vpop.f32.mrb[23].mxu0  ;;  %v641_v18 = vpop.f32.mrb[23].mxu1 }
 0x14e   : > { %v423_v19 = vadd.f32 %v422_v17, %v1424_v47  ;;  %v642_v20 = vadd.f32 %v641_v18, %v1491_v50 }
 0x14f   : > { %803 = vst [vmem:[%s1429_s15 + $0x108] sm:$0xff] %v421_v15  ;;  %793 = vst [vmem:[%s1429_s15 + $0xb8] sm:$0xff] %v647_v16 }
 0x150   : > { %804 = vst [vmem:[%s1429_s15 + $0x110] sm:$0xff] %v423_v19  ;;  %790 = vst [vmem:[%s1429_s15 + $0xa0] sm:$0xff] %v642_v20  ;;  %v426_v21 = vpop.f32.mrb[24].mxu0  ;;  %v1043_v22 = vpop.f32.mrb[24].mxu1 }
 0x151   : > { %v427_v23 = vadd.f32 %v426_v21, %v1421_v0  ;;  %v657_v24 = vadd.f32 %v1043_v22, %v1491_v50  ;;  %v428_v25 = vpop.f32.mrb[25].mxu0  ;;  %v651_v26 = vpop.f32.mrb[25].mxu1 }
 0x152   : > { %v429_v27 = vadd.f32 %v428_v25, %v1424_v47  ;;  %v652_v28 = vadd.f32 %v651_v26, %v1491_v50 }
 0x153   : > { %806 = vst [vmem:[%s1429_s15 + $0x120] sm:$0xff] %v427_v23  ;;  %799 = vst [vmem:[%s1429_s15 + $0xe8] sm:$0xff] %v657_v24 }
 0x154   : > { %807 = vst [vmem:[%s1429_s15 + $0x128] sm:$0xff] %v429_v27  ;;  %796 = vst [vmem:[%s1429_s15 + $0xd0] sm:$0xff] %v652_v28  ;;  %v432_v29 = vpop.f32.mrb[26].mxu0  ;;  %v1046_v30 = vpop.f32.mrb[26].mxu1 }
 0x155   : > { %v433_v31 = vadd.f32 %v432_v29, %v1421_v0  ;;  %v667_v32 = vadd.f32 %v1046_v30, %v1491_v50  ;;  %v434_v33 = vpop.f32.mrb[27].mxu0  ;;  %v661_v34 = vpop.f32.mrb[27].mxu1 }
 0x156   : > { %v435_v35 = vadd.f32 %v434_v33, %v1424_v47  ;;  %v662_v36 = vadd.f32 %v661_v34, %v1491_v50 }
 0x157   : > { %809 = vst [vmem:[%s1429_s15 + $0x138] sm:$0xff] %v433_v31  ;;  %805 = vst [vmem:[%s1429_s15 + $0x118] sm:$0xff] %v667_v32 }
 0x158   : > { %810 = vst [vmem:[%s1429_s15 + $0x140] sm:$0xff] %v435_v35  ;;  %802 = vst [vmem:[%s1429_s15 + $0x100] sm:$0xff] %v662_v36  ;;  %v438_v37 = vpop.f32.mrb[28].mxu0  ;;  %v1049_v38 = vpop.f32.mrb[28].mxu1 }
 0x159   : > { %v439_v39 = vadd.f32 %v438_v37, %v1421_v0  ;;  %v677_v40 = vadd.f32 %v1049_v38, %v1491_v50  ;;  %v440_v41 = vpop.f32.mrb[29].mxu0  ;;  %v671_v42 = vpop.f32.mrb[29].mxu1 }
 0x15a   : > { %v441_v44 = vadd.f32 %v440_v41, %v1424_v47  ;;  %v672_v46 = vadd.f32 %v671_v42, %v1491_v50 }
 0x15b   : > { %812 = vst [vmem:[%s1429_s15 + $0x150] sm:$0xff] %v439_v39  ;;  %811 = vst [vmem:[%s1429_s15 + $0x148] sm:$0xff] %v677_v40 }
 0x15c   : > { %813 = vst [vmem:[%s1429_s15 + $0x158] sm:$0xff] %v441_v44  ;;  %808 = vst [vmem:[%s1429_s15 + $0x130] sm:$0xff] %v672_v46  ;;  %v444_v48 = vpop.f32.mrb[30].mxu0  ;;  %v1052_v49 = vpop.f32.mrb[30].mxu1 }
 0x15d   : > { %v445_v43 = vadd.f32 %v444_v48, %v1421_v0  ;;  %v687_v51 = vadd.f32 %v1052_v49, %v1491_v50  ;;  %v446_v52 = vpop.f32.mrb[31].mxu0  ;;  %v681_v53 = vpop.f32.mrb[31].mxu1 }
 0x15e   : > { %v447_v54 = vadd.f32 %v446_v52, %v1424_v47  ;;  %v682_v55 = vadd.f32 %v681_v53, %v1491_v50 }
 0x15f   : > { %815 = vst [vmem:[%s1429_s15 + $0x168] sm:$0xff] %v445_v43  ;;  %817 = vst [vmem:[%s1429_s15 + $0x178] sm:$0xff] %v687_v51 }
 0x160   : > { %816 = vst [vmem:[%s1429_s15 + $0x170] sm:$0xff] %v447_v54  ;;  %814 = vst [vmem:[%s1429_s15 + $0x160] sm:$0xff] %v682_v55  ;;  %v450_v56 = vpop.f32.mrb[32].mxu0  ;;  %v1055_v57 = vpop.f32.mrb[32].mxu1 }
 0x161   : > { %v451_v45 = vadd.f32 %v450_v56, %v1421_v0  ;;  %v697_v58 = vadd.f32 %v1055_v57, %v1491_v50  ;;  %v452_v59 = vpop.f32.mrb[33].mxu0  ;;  %v691_v60 = vpop.f32.mrb[33].mxu1 }
 0x162   : > { %v453_v61 = vadd.f32 %v452_v59, %v1424_v47  ;;  %v692_v62 = vadd.f32 %v691_v60, %v1491_v50 }
 0x163   : > { %818 = vst [vmem:[%s1429_s15 + $0x180] sm:$0xff] %v451_v45  ;;  %823 = vst [vmem:[%s1429_s15 + $0x1a8] sm:$0xff] %v697_v58 }
 0x164   : > { %819 = vst [vmem:[%s1429_s15 + $0x188] sm:$0xff] %v453_v61  ;;  %820 = vst [vmem:[%s1429_s15 + $0x190] sm:$0xff] %v692_v62  ;;  %v456_v63 = vpop.f32.mrb[34].mxu0  ;;  %v1058_v1 = vpop.f32.mrb[34].mxu1 }
 0x165   : > { %v457_v2 = vadd.f32 %v456_v63, %v1421_v0  ;;  %v707_v3 = vadd.f32 %v1058_v1, %v1491_v50  ;;  %v458_v4 = vpop.f32.mrb[35].mxu0  ;;  %v701_v5 = vpop.f32.mrb[35].mxu1 }
 0x166   : > { %v459_v6 = vadd.f32 %v458_v4, %v1424_v47  ;;  %v702_v7 = vadd.f32 %v701_v5, %v1491_v50 }
 0x167   : > { %821 = vst [vmem:[%s1429_s15 + $0x198] sm:$0xff] %v457_v2  ;;  %829 = vst [vmem:[%s1429_s15 + $0x1d8] sm:$0xff] %v707_v3 }
 0x168   : > { %822 = vst [vmem:[%s1429_s15 + $0x1a0] sm:$0xff] %v459_v6  ;;  %826 = vst [vmem:[%s1429_s15 + $0x1c0] sm:$0xff] %v702_v7  ;;  %v462_v8 = vpop.f32.mrb[36].mxu0  ;;  %v1061_v9 = vpop.f32.mrb[36].mxu1 }
 0x169   : > { %v463_v10 = vadd.f32 %v462_v8, %v1421_v0  ;;  %v717_v11 = vadd.f32 %v1061_v9, %v1491_v50  ;;  %v464_v12 = vpop.f32.mrb[37].mxu0  ;;  %v711_v13 = vpop.f32.mrb[37].mxu1 }
 0x16a   : > { %v465_v14 = vadd.f32 %v464_v12, %v1424_v47  ;;  %v712_v15 = vadd.f32 %v711_v13, %v1491_v50 }
 0x16b   : > { %824 = vst [vmem:[%s1429_s15 + $0x1b0] sm:$0xff] %v463_v10  ;;  %835 = vst [vmem:[%s1429_s15 + $0x208] sm:$0xff] %v717_v11 }
 0x16c   : > { %825 = vst [vmem:[%s1429_s15 + $0x1b8] sm:$0xff] %v465_v14  ;;  %832 = vst [vmem:[%s1429_s15 + $0x1f0] sm:$0xff] %v712_v15  ;;  %v468_v16 = vpop.f32.mrb[38].mxu0  ;;  %v1064_v17 = vpop.f32.mrb[38].mxu1 }
 0x16d   : > { %v469_v18 = vadd.f32 %v468_v16, %v1421_v0  ;;  %v727_v19 = vadd.f32 %v1064_v17, %v1491_v50  ;;  %v470_v20 = vpop.f32.mrb[39].mxu0  ;;  %v721_v21 = vpop.f32.mrb[39].mxu1 }
 0x16e   : > { %v471_v22 = vadd.f32 %v470_v20, %v1424_v47  ;;  %v722_v23 = vadd.f32 %v721_v21, %v1491_v50 }
 0x16f   : > { %827 = vst [vmem:[%s1429_s15 + $0x1c8] sm:$0xff] %v469_v18  ;;  %841 = vst [vmem:[%s1429_s15 + $0x238] sm:$0xff] %v727_v19 }
 0x170   : > { %828 = vst [vmem:[%s1429_s15 + $0x1d0] sm:$0xff] %v471_v22  ;;  %838 = vst [vmem:[%s1429_s15 + $0x220] sm:$0xff] %v722_v23  ;;  %v474_v24 = vpop.f32.mrb[40].mxu0  ;;  %v1067_v25 = vpop.f32.mrb[40].mxu1 }
 0x171   : > { %v475_v26 = vadd.f32 %v474_v24, %v1421_v0  ;;  %v737_v27 = vadd.f32 %v1067_v25, %v1491_v50  ;;  %v476_v28 = vpop.f32.mrb[41].mxu0  ;;  %v731_v29 = vpop.f32.mrb[41].mxu1 }
 0x172   : > { %v477_v30 = vadd.f32 %v476_v28, %v1424_v47  ;;  %v732_v31 = vadd.f32 %v731_v29, %v1491_v50 }
 0x173   : > { %830 = vst [vmem:[%s1429_s15 + $0x1e0] sm:$0xff] %v475_v26  ;;  %847 = vst [vmem:[%s1429_s15 + $0x268] sm:$0xff] %v737_v27 }
 0x174   : > { %831 = vst [vmem:[%s1429_s15 + $0x1e8] sm:$0xff] %v477_v30  ;;  %844 = vst [vmem:[%s1429_s15 + $0x250] sm:$0xff] %v732_v31  ;;  %v480_v32 = vpop.f32.mrb[42].mxu0  ;;  %v1070_v33 = vpop.f32.mrb[42].mxu1 }
 0x175   : > { %v481_v34 = vadd.f32 %v480_v32, %v1421_v0  ;;  %v747_v35 = vadd.f32 %v1070_v33, %v1491_v50  ;;  %v482_v36 = vpop.f32.mrb[43].mxu0  ;;  %v741_v37 = vpop.f32.mrb[43].mxu1 }
 0x176   : > { %v483_v38 = vadd.f32 %v482_v36, %v1424_v47  ;;  %v742_v39 = vadd.f32 %v741_v37, %v1491_v50 }
 0x177   : > { %833 = vst [vmem:[%s1429_s15 + $0x1f8] sm:$0xff] %v481_v34  ;;  %853 = vst [vmem:[%s1429_s15 + $0x298] sm:$0xff] %v747_v35 }
 0x178   : > { %834 = vst [vmem:[%s1429_s15 + $0x200] sm:$0xff] %v483_v38  ;;  %850 = vst [vmem:[%s1429_s15 + $0x280] sm:$0xff] %v742_v39  ;;  %v486_v40 = vpop.f32.mrb[44].mxu0  ;;  %v1073_v41 = vpop.f32.mrb[44].mxu1 }
 0x179   : > { %v487_v42 = vadd.f32 %v486_v40, %v1421_v0  ;;  %v757_v44 = vadd.f32 %v1073_v41, %v1491_v50  ;;  %v488_v46 = vpop.f32.mrb[45].mxu0  ;;  %v751_v48 = vpop.f32.mrb[45].mxu1 }
 0x17a   : > { %v489_v49 = vadd.f32 %v488_v46, %v1424_v47  ;;  %v752_v43 = vadd.f32 %v751_v48, %v1491_v50 }
 0x17b   : > { %836 = vst [vmem:[%s1429_s15 + $0x210] sm:$0xff] %v487_v42  ;;  %859 = vst [vmem:[%s1429_s15 + $0x2c8] sm:$0xff] %v757_v44 }
 0x17c   : > { %837 = vst [vmem:[%s1429_s15 + $0x218] sm:$0xff] %v489_v49  ;;  %856 = vst [vmem:[%s1429_s15 + $0x2b0] sm:$0xff] %v752_v43  ;;  %v492_v51 = vpop.f32.mrb[46].mxu0  ;;  %v1076_v52 = vpop.f32.mrb[46].mxu1 }
 0x17d   : > { %v493_v53 = vadd.f32 %v492_v51, %v1421_v0  ;;  %v767_v54 = vadd.f32 %v1076_v52, %v1491_v50  ;;  %v494_v55 = vpop.f32.mrb[47].mxu0  ;;  %v761_v56 = vpop.f32.mrb[47].mxu1 }
 0x17e   : > { %v495_v57 = vadd.f32 %v494_v55, %v1424_v47  ;;  %v762_v45 = vadd.f32 %v761_v56, %v1491_v50 }
 0x17f   : > { %839 = vst [vmem:[%s1429_s15 + $0x228] sm:$0xff] %v493_v53  ;;  %865 = vst [vmem:[%s1429_s15 + $0x2f8] sm:$0xff] %v767_v54 }
 0x180   : > { %840 = vst [vmem:[%s1429_s15 + $0x230] sm:$0xff] %v495_v57  ;;  %862 = vst [vmem:[%s1429_s15 + $0x2e0] sm:$0xff] %v762_v45 }
 0x181 PF: > { %s14_s12 = sadd.s32 1, %s1218_s12  }
 0x182   : > { %p11_p3 = scmp.ge.s32.totalorder %s14_s12, 4  }
 0x184   :  { %13 = sbr.rel (!%p11_p3) target bundleno = 1 (0x1), region = 67 }
 0x18b   :  { %890 = vsyncpa [#allocation3], 1 }
 0x18c   :  { %892 = vsyncpa [#allocation3 + $0x1], 1 }

// kernel: ts_transformer_forward.14
= control target key start
LH: loop header
LB: loop body
LE: loop exit
PB: predicated region body
PF: predicated region fallthrough
CT: control target
= control target key end

     0   :  { %s1198_s15 = smov 0   ;;  %s1200_s16 = smov 0   ;;  %s1350_s0 = inlined_call_operand.vmem [shape: f32[8,4,64,32], index: 0, kind: input, shape index: {}]   ;;  %s1351_s1 = inlined_call_operand.vmem [shape: f32[8,4,64,32], index: 1, kind: input, shape index: {}]   ;;  %s1352_s2 = inlined_call_operand.vmem [shape: f32[8,4,64,32], index: 2, kind: input, shape index: {}]   ;;  %s1353_s3 = inlined_call_operand.vmem [shape: f32[8,1,64], index: 3, kind: input, shape index: {}]   ;;  %s1354_s4 = inlined_call_operand.vmem [shape: f32[8,4,64,32], index: 4, kind: output, shape index: {}]  }
   0x1   :  { %s1202_s17 = smov 0   ;;  %s1204_s18 = smov 0  }
   0x2   :  { %s1206_s19 = smov 0  }
   0x3 LB: > { %s23_s20 = sadd.s32 1, %s1163_s17  ;;  %s26_s21 = sadd.s32 1, %s1167_s18  ;;  %s1171_s19 = sphi %s1206_s19, %s14_s19   ;;  %s1167_s18 = sphi %s1204_s18, %s1360_s18   ;;  %s1163_s17 = sphi %s1202_s17, %s1359_s17   ;;  %s1159_s16 = sphi %s1200_s16, %s1358_s16   ;;  %s1155_s15 = sphi %s1198_s15, %s1357_s15  }
   0x4   : > { %p24_p0 = scmp.ge.s32.totalorder %s23_s20, 4  ;;  %p893_p1 = scmp.ge.s32.totalorder %s1171_s19, 1 }
   0x5   : > { %p222_p2 = scmp.lt.s32.totalorder %s1171_s19, 33 }
   0x6   : > { %s1362_s20 = smov (%p24_p0, %s23_s20), 0  ;;  %s1364_s21 = smov (!%p24_p0, %s26_s21), %s1167_s18 }
   0x7   : > { %p223_p3 = pnand %p893_p1, %p222_p2  ;;  %p28_p4 = scmp.ge.s32.totalorder %s1364_s21, 8 }
   0x8   : > { %p277_p5 = scmp.lt.s32.totalorder (!%p223_p3), %s1159_s16, 7  ;;  %p279_p6 = scmp.lt.s32.totalorder (!%p223_p3), %s1155_s15, 3  ;;  %vm340_vm0 = vcmask (!%p223_p3), 261120   ;;  %vm517_vm2 = vcmask (!%p223_p3), 523264  }
   0x9   : > { %s1366_s21 = smov (%p28_p4, %s1364_s21), 0  ;;  %226 = sbr.rel (%p223_p3) target bundleno = 663 (0x297), region = 36 }
   0xa   : > { %vm1239_vm1 = vmpackc.low (!%p223_p3), %vm340_vm0, %vm340_vm0 }
  0x10   : > { %s1368_s16 = smov (!%p277_p5, %s1159_s16), 7  ;;  %s1370_s15 = smov (!%p279_p6, %s1155_s15), 3 }
  0x11   : > { %s895_s22 = sshll.u32 %s1368_s16, 5  ;;  %s894_s23 = sshll.u32 %s1370_s15, 3 }
  0x12   : > { %s283_s24 = sadd.s32 %s895_s22, %s894_s23  ;;  %s306_s8 = scalar_lea.vmem %s1353_s3, %s1368_s16 }
  0x13   : > { %s1231_s25 = sshll.u32 %s283_s24, 3  ;;  %v922_v23 = vld [vmem:[%s306_s8] ss:$0 sm:$0xff] }
  0x14   : > { %s294_s28 = scalar_lea.vmem %s1351_s1, %s1231_s25  ;;  %s1247_s5 = scalar_lea.vmem %s1350_s0, %s1231_s25 }
  0x15   : > { %v324_v1 = vld [vmem:[%s294_s28] sm:$0xff]  ;;  %v325_v2 = vld [vmem:[%s294_s28 + $0x8] sm:$0xff]  ;;  %v326_v3 = vld [vmem:[%s294_s28 + $0x10] sm:$0xff]  ;;  %s303_s11 = scalar_lea.vmem %s1352_s2, %s1231_s25  ;;  %s1317_s14 = scalar_lea.vmem %s1354_s4, %s1231_s25 }
  0x16   : > { %v1021_v4 = vpack.c.bf16 %v325_v2, %v324_v1  ;;  %v327_v5 = vld [vmem:[%s294_s28 + $0x18] sm:$0xff]  ;;  %v316_v7 = vld [vmem:[%s1247_s5] sm:$0xff]  ;;  %v329_v9 = vld [vmem:[%s294_s28 + $0x28] sm:$0xff] }
  0x17   : > { %v1027_v6 = vpack.c.bf16 %v327_v5, %v326_v3  ;;  %981 = vmatprep.mubr.msk.f32.mxu0 %vm340_vm0, %v316_v7  ;;  %v328_v8 = vld [vmem:[%s294_s28 + $0x20] sm:$0xff]  ;;  %v330_v11 = vld [vmem:[%s294_s28 + $0x30] sm:$0xff]  ;;  %v331_v12 = vld [vmem:[%s294_s28 + $0x38] sm:$0xff] }
  0x18   : > { %1023 = vmatprep.subr.msk.bf16.mxu0 %vm1239_vm1, %v1021_v4  ;;  %v1033_v10 = vpack.c.bf16 %v329_v9, %v328_v8  ;;  %v1039_v13 = vpack.c.bf16 %v331_v12, %v330_v11  ;;  %v317_v14 = vld [vmem:[%s1247_s5 + $0x8] sm:$0xff]  ;;  %v318_v15 = vld [vmem:[%s1247_s5 + $0x10] sm:$0xff]  ;;  %v319_v16 = vld [vmem:[%s1247_s5 + $0x18] sm:$0xff] }
  0x19   : > { %1026 = vmatpush3.bf16.xpose.msk.msra.mxu0 %vm1239_vm1, %v1021_v4  ;;  %v320_v17 = vld [vmem:[%s1247_s5 + $0x20] sm:$0xff]  ;;  %v321_v18 = vld [vmem:[%s1247_s5 + $0x28] sm:$0xff]  ;;  %v322_v19 = vld [vmem:[%s1247_s5 + $0x30] sm:$0xff] }
  0x1a   : > { %1029 = vmatprep.subr.msk.bf16.mxu0 %vm1239_vm1, %v1027_v6  ;;  %v323_v20 = vld [vmem:[%s1247_s5 + $0x38] sm:$0xff]  ;;  %v332_v53 = vld [vmem:[%s303_s11] sm:$0xff]  ;;  %v333_v54 = vld [vmem:[%s303_s11 + $0x8] sm:$0xff] }
  0x1b   : > { %v1045_v56 = vpack.c.bf16 %v333_v54, %v332_v53  ;;  %v334_v57 = vld [vmem:[%s303_s11 + $0x10] sm:$0xff]  ;;  %v335_v58 = vld [vmem:[%s303_s11 + $0x18] sm:$0xff]  ;;  %v336_v60 = vld [vmem:[%s303_s11 + $0x20] sm:$0xff] }
  0x1c   : > { %v1049_v59 = vpack.c.bf16 %v335_v58, %v334_v57  ;;  %v337_v61 = vld [vmem:[%s303_s11 + $0x28] sm:$0xff]  ;;  %v338_v63 = vld [vmem:[%s303_s11 + $0x30] sm:$0xff]  ;;  %v339_v0 = vld [vmem:[%s303_s11 + $0x38] sm:$0xff] }
  0x1d   : > { %1046 = vmatprep.subr.bf16.mxu1 %v1045_v56  ;;  %v1053_v62 = vpack.c.bf16 %v337_v61, %v336_v60  ;;  %v1057_v1 = vpack.c.bf16 %v339_v0, %v338_v63 }
  0x1e   : > { %1048 = vmatpush3.bf16.msra.mxu1 %v1045_v56 }
  0x1f   : > { %1050 = vmatprep.subr.bf16.mxu1 %v1049_v59 }
  0x21   : > { %1032 = vmatpush3.bf16.xpose.msk.msra.mxu0 %vm1239_vm1, %v1027_v6 }
  0x22   : > { %1035 = vmatprep.subr.msk.bf16.mxu0 %vm1239_vm1, %v1033_v10  ;;  %1052 = vmatpush3.bf16.msra.mxu1 %v1049_v59 }
  0x23   : > { %1054 = vmatprep.subr.bf16.mxu1 %v1053_v62 }
  0x26   : > { %1056 = vmatpush3.bf16.msra.mxu1 %v1053_v62 }
  0x27   : > { %1058 = vmatprep.subr.bf16.mxu1 %v1057_v1 }
  0x29   : > { %1038 = vmatpush3.bf16.xpose.msk.msra.mxu0 %vm1239_vm1, %v1033_v10 }
  0x2a   : > { %1041 = vmatprep.subr.msk.bf16.mxu0 %vm1239_vm1, %v1039_v13  ;;  %1060 = vmatpush3.bf16.msra.mxu1 %v1057_v1 }
  0x31   : > { %1044 = vmatpush3.bf16.xpose.msk.msra.mxu0 %vm1239_vm1, %v1039_v13 }
  0x38   : > { %982 = vmatmul.mubr.msk.f32.vlgmr.msra.gmra.mrb[0].mxu0 %vm340_vm0, %v317_v14 }
  0x39   : > { %984 = vmatprep.mubr.msk.f32.mxu0 %vm340_vm0, %v318_v15 }
  0x3c   : > { %985 = vmatmul.mubr.msk.f32.gmra.mrb[2].mxu0 %vm340_vm0, %v319_v16 }
  0x3d   : > { %987 = vmatprep.mubr.msk.f32.mxu0 %vm340_vm0, %v320_v17 }
  0x40   : > { %988 = vmatmul.mubr.msk.f32.gmra.mrb[4].mxu0 %vm340_vm0, %v321_v18 }
  0x41   : > { %990 = vmatprep.mubr.msk.f32.mxu0 %vm340_vm0, %v322_v19 }
  0x44   : > { %991 = vmatmul.mubr.msk.f32.gmra.mrb[6].mxu0 %vm340_vm0, %v323_v20 }
 0x10b   : > { %v983_v21 = vpop.f32.mrb[0].mxu0 }
 0x10c   : > { %v455_v22 = vpop.f32.mrb[1].mxu0  ;;  %v495_v24 = vmul.f32 0.17677669, %v983_v21 }
 0x10d   : > { %v494_v25 = vmul.f32 0.17677669, %v455_v22 }
 0x10e   : > { %v510_v32 = vadd.f32 %v922_v23, %v495_v24 }
 0x10f   : > { %v986_v26 = vpop.f32.mrb[2].mxu0  ;;  %v509_v27 = vadd.f32 %v922_v23, %v494_v25 }
 0x110   : > { %v497_v28 = vmul.f32 0.17677669, %v986_v26  ;;  %v465_v29 = vpop.f32.mrb[3].mxu0  ;;  %v521_v39 = vsel %vm517_vm2, %v510_v32, -inf }
 0x111   : > { %v496_v30 = vmul.f32 0.17677669, %v465_v29  ;;  %v518_v31 = vsel %vm517_vm2, %v509_v27, -inf }
 0x112   : > { %519 = vmax.xlane.f32.xlu0 %v518_v31  ;;  %v512_v36 = vadd.f32 %v922_v23, %v497_v28 }
 0x113   : > { %v989_v33 = vpop.f32.mrb[4].mxu0  ;;  %v511_v34 = vadd.f32 %v922_v23, %v496_v30 }
 0x114   : > { %v475_v35 = vpop.f32.mrb[5].mxu0  ;;  %v499_v37 = vmul.f32 0.17677669, %v989_v33  ;;  %v527_v44 = vsel %vm517_vm2, %v512_v36, -inf }
 0x115   : > { %v498_v38 = vmul.f32 0.17677669, %v475_v35  ;;  %v524_v40 = vsel %vm517_vm2, %v511_v34, -inf }
 0x116   : > { %522 = vmax.xlane.f32.xlu0 %v521_v39  ;;  %525 = vmax.xlane.f32.xlu1 %v524_v40  ;;  %v514_v48 = vadd.f32 %v922_v23, %v499_v37 }
 0x117   : > { %v992_v41 = vpop.f32.mrb[6].mxu0  ;;  %v513_v42 = vadd.f32 %v922_v23, %v498_v38 }
 0x118   : > { %v485_v43 = vpop.f32.mrb[7].mxu0  ;;  %v501_v45 = vmul.f32 0.17677669, %v992_v41  ;;  %v533_v50 = vsel %vm517_vm2, %v514_v48, -inf }
 0x119   : > { %v500_v46 = vmul.f32 0.17677669, %v485_v43  ;;  %v530_v47 = vsel %vm517_vm2, %v513_v42, -inf }
 0x11a   : > { %528 = vmax.xlane.f32.xlu1 %v527_v44  ;;  %531 = vmax.xlane.f32.xlu0 %v530_v47  ;;  %v516_v52 = vadd.f32 %v922_v23, %v501_v45 }
 0x11b   : > { %v515_v49 = vadd.f32 %v922_v23, %v500_v46 }
 0x11c   : > { %v539_v55 = vsel %vm517_vm2, %v516_v52, -inf }
 0x11d   : > { %v536_v51 = vsel %vm517_vm2, %v515_v49, -inf }
 0x11e   : > { %534 = vmax.xlane.f32.xlu1 %v533_v50  ;;  %537 = vmax.xlane.f32.xlu0 %v536_v51 }
 0x122   : > { %540 = vmax.xlane.f32.xlu1 %v539_v55 }
 0x19f   : > { %v520_v2 = vpop.xlane.xlu0 %519 }
 0x1a0   : > { %v542_v3 = vsub.f32 %v509_v27, %v520_v2 }
 0x1a2   : > { %v550_v4 = vmul.f32 1.442695, %v542_v3 }
 0x1a3   : > { %v523_v5 = vpop.xlane.xlu0 %522  ;;  %v526_v6 = vpop.xlane.xlu1 %525 }
 0x1a4   : > { %1101 = vpow2.f32 %v550_v4  ;;  %v543_v7 = vsub.f32 %v510_v32, %v523_v5  ;;  %v544_v8 = vsub.f32 %v511_v34, %v526_v6 }
 0x1a6   : > { %v552_v9 = vmul.f32 1.442695, %v543_v7  ;;  %v554_v10 = vmul.f32 1.442695, %v544_v8 }
 0x1a7   : > { %v529_v11 = vpop.xlane.xlu1 %528  ;;  %v532_v12 = vpop.xlane.xlu0 %531 }
 0x1a8   : > { %1103 = vpow2.f32 %v552_v9  ;;  %v545_v13 = vsub.f32 %v512_v36, %v529_v11  ;;  %v546_v14 = vsub.f32 %v513_v42, %v532_v12 }
 0x1a9   : > { %1105 = vpow2.f32 %v554_v10 }
 0x1aa   : > { %v556_v15 = vmul.f32 1.442695, %v545_v13  ;;  %v558_v16 = vmul.f32 1.442695, %v546_v14 }
 0x1ab   : > { %v535_v17 = vpop.xlane.xlu1 %534  ;;  %v538_v18 = vpop.xlane.xlu0 %537 }
 0x1ac   : > { %1107 = vpow2.f32 %v556_v15  ;;  %v547_v19 = vsub.f32 %v514_v48, %v535_v17  ;;  %v548_v20 = vsub.f32 %v515_v49, %v538_v18 }
 0x1ad   : > { %1109 = vpow2.f32 %v558_v16 }
 0x1ae   : > { %v1102_v21 = vpop.eup %1101  ;;  %v560_v22 = vmul.f32 1.442695, %v547_v19  ;;  %v562_v23 = vmul.f32 1.442695, %v548_v20 }
 0x1af   : > { %1009 = vmatprep.mubr.msk.f32.mxu1 %vm517_vm2, %v1102_v21  ;;  %v541_v24 = vpop.xlane.xlu1 %540  ;;  %v566_v25 = vsel %vm517_vm2, %v1102_v21, 0.0 }
 0x1b0   : > { %1111 = vpow2.f32 %v560_v22  ;;  %v549_v26 = vsub.f32 %v516_v52, %v541_v24  ;;  %567 = vadd.xlane.f32.xlu0 %v566_v25 }
 0x1b1   : > { %1113 = vpow2.f32 %v562_v23 }
 0x1b2   : > { %v1104_v27 = vpop.eup %1103  ;;  %v564_v28 = vmul.f32 1.442695, %v549_v26 }
 0x1b3   : > { %v1106_v29 = vpop.eup %1105  ;;  %1010 = vmatmul.mubr.msk.f32.vlgmr.msra.gmra.mrb[0].mxu1 %vm517_vm2, %v1104_v27  ;;  %v569_v30 = vsel %vm517_vm2, %v1104_v27, 0.0 }
 0x1b4   : > { %1115 = vpow2.f32 %v564_v28  ;;  %1012 = vmatprep.mubr.msk.f32.mxu1 %vm517_vm2, %v1106_v29  ;;  %570 = vadd.xlane.f32.xlu1 %v569_v30  ;;  %v572_v31 = vsel %vm517_vm2, %v1106_v29, 0.0 }
 0x1b5   : > { %573 = vadd.xlane.f32.xlu0 %v572_v31 }
 0x1b6   : > { %v1108_v32 = vpop.eup %1107 }
 0x1b7   : > { %v1110_v33 = vpop.eup %1109  ;;  %1013 = vmatmul.mubr.msk.f32.gmra.mrb[2].mxu1 %vm517_vm2, %v1108_v32  ;;  %v575_v34 = vsel %vm517_vm2, %v1108_v32, 0.0 }
 0x1b8   : > { %1015 = vmatprep.mubr.msk.f32.mxu1 %vm517_vm2, %v1110_v33  ;;  %576 = vadd.xlane.f32.xlu1 %v575_v34  ;;  %v578_v35 = vsel %vm517_vm2, %v1110_v33, 0.0 }
 0x1b9   : > { %579 = vadd.xlane.f32.xlu0 %v578_v35 }
 0x1ba   : > { %v1112_v36 = vpop.eup %1111 }
 0x1bb   : > { %v1114_v37 = vpop.eup %1113  ;;  %1016 = vmatmul.mubr.msk.f32.gmra.mrb[4].mxu1 %vm517_vm2, %v1112_v36  ;;  %v581_v38 = vsel %vm517_vm2, %v1112_v36, 0.0 }
 0x1bc   : > { %582 = vadd.xlane.f32.xlu1 %v581_v38  ;;  %1018 = vmatprep.mubr.msk.f32.mxu1 %vm517_vm2, %v1114_v37  ;;  %v584_v39 = vsel %vm517_vm2, %v1114_v37, 0.0 }
 0x1bd   : > { %585 = vadd.xlane.f32.xlu0 %v584_v39 }
 0x1be   : > { %v1116_v40 = vpop.eup %1115 }
 0x1bf   : > { %1019 = vmatmul.mubr.msk.f32.gmra.mrb[6].mxu1 %vm517_vm2, %v1116_v40  ;;  %v587_v41 = vsel %vm517_vm2, %v1116_v40, 0.0 }
 0x1c0   : > { %588 = vadd.xlane.f32.xlu1 %v587_v41 }
 0x23d   : > { %v568_v43 = vpop.xlane.xlu0 %567 }
 0x241   : > { %v571_v42 = vpop.xlane.xlu1 %570 }
 0x242   : > { %v574_v45 = vpop.xlane.xlu0 %573  ;;  %1117 = vrcp.f32 %v571_v42 }
 0x243   : > { %1119 = vrcp.f32 %v568_v43 }
 0x245   : > { %v577_v44 = vpop.xlane.xlu1 %576 }
 0x246   : > { %1121 = vrcp.f32 %v577_v44  ;;  %v580_v47 = vpop.xlane.xlu0 %579 }
 0x247   : > { %1123 = vrcp.f32 %v574_v45 }
 0x249   : > { %v583_v46 = vpop.xlane.xlu1 %582 }
 0x24a   : > { %1125 = vrcp.f32 %v583_v46  ;;  %v586_v50 = vpop.xlane.xlu0 %585 }
 0x24b   : > { %1127 = vrcp.f32 %v580_v47 }
 0x24c   : > { %v1118_v49 = vpop.eup %1117 }
 0x24d   : > { %v589_v48 = vpop.xlane.xlu1 %588  ;;  %v1120_v52 = vpop.eup %1119 }
 0x24e   : > { %1129 = vrcp.f32 %v589_v48 }
 0x24f   : > { %1131 = vrcp.f32 %v586_v50 }
 0x250   : > { %v1122_v56 = vpop.eup %1121 }
 0x251   : > { %v1124_v58 = vpop.eup %1123 }
 0x254   : > { %v1126_v62 = vpop.eup %1125 }
 0x255   : > { %v1128_v0 = vpop.eup %1127 }
 0x258   : > { %v1130_v4 = vpop.eup %1129 }
 0x259   : > { %v1132_v6 = vpop.eup %1131 }
 0x286   : > { %v1011_v51 = vpop.f32.mrb[0].mxu1 }
 0x287   : > { %v722_v53 = vmul.f32 %v1118_v49, %v1011_v51  ;;  %v680_v54 = vpop.f32.mrb[1].mxu1 }
 0x288   : > { %v720_v55 = vmul.f32 %v1120_v52, %v680_v54 }
 0x289   : > { %736 = vst.msk [vmem:[%s1317_s14 + $0x8] sm:$0xff] %vm340_vm0, %v722_v53 }
 0x28a   : > { %735 = vst.msk [vmem:[%s1317_s14] sm:$0xff] %vm340_vm0, %v720_v55  ;;  %v1014_v57 = vpop.f32.mrb[2].mxu1 }
 0x28b   : > { %v726_v59 = vmul.f32 %v1122_v56, %v1014_v57  ;;  %v690_v60 = vpop.f32.mrb[3].mxu1 }
 0x28c   : > { %v724_v61 = vmul.f32 %v1124_v58, %v690_v60 }
 0x28d   : > { %738 = vst.msk [vmem:[%s1317_s14 + $0x18] sm:$0xff] %vm340_vm0, %v726_v59 }
 0x28e   : > { %737 = vst.msk [vmem:[%s1317_s14 + $0x10] sm:$0xff] %vm340_vm0, %v724_v61  ;;  %v1017_v63 = vpop.f32.mrb[4].mxu1 }
 0x28f   : > { %v730_v1 = vmul.f32 %v1126_v62, %v1017_v63  ;;  %v700_v2 = vpop.f32.mrb[5].mxu1 }
 0x290   : > { %v728_v3 = vmul.f32 %v1128_v0, %v700_v2 }
 0x291   : > { %740 = vst.msk [vmem:[%s1317_s14 + $0x28] sm:$0xff] %vm340_vm0, %v730_v1 }
 0x292   : > { %739 = vst.msk [vmem:[%s1317_s14 + $0x20] sm:$0xff] %vm340_vm0, %v728_v3  ;;  %v1020_v5 = vpop.f32.mrb[6].mxu1 }
 0x293   : > { %v734_v7 = vmul.f32 %v1130_v4, %v1020_v5  ;;  %v710_v8 = vpop.f32.mrb[7].mxu1 }
 0x294   : > { %v732_v9 = vmul.f32 %v1132_v6, %v710_v8 }
 0x295   : > { %742 = vst.msk [vmem:[%s1317_s14 + $0x38] sm:$0xff] %vm340_vm0, %v734_v7 }
 0x296   : > { %741 = vst.msk [vmem:[%s1317_s14 + $0x30] sm:$0xff] %vm340_vm0, %v732_v9 }
 0x297 PF: > { %s14_s19 = sadd.s32 1, %s1171_s19   ;;  %s1357_s15 = smov %s1163_s17 }
 0x298   : > { %p11_p7 = scmp.ge.s32.totalorder %s14_s19, 34   ;;  %s1358_s16 = smov %s1167_s18 }
 0x299   : > { %s1359_s17 = smov %s1362_s20  ;;  %s1360_s18 = smov %s1366_s21 }
 0x29a   :  { %13 = sbr.rel (!%p11_p7) target bundleno = 3 (0x3), region = 75 }

// kernel: ts_transformer_forward.15
= control target key start
LH: loop header
LB: loop body
LE: loop exit
PB: predicated region body
PF: predicated region fallthrough
CT: control target
= control target key end

     0   :  { %s1042_s21 = smov 0   ;;  %s1328_s0 = inlined_call_operand.vmem [shape: f32[512,128], index: 0, kind: input, shape index: {}]   ;;  %s1329_s1 = inlined_call_operand.vmem [shape: f32[128,128], index: 1, kind: input, shape index: {}]   ;;  %s1330_s2 = inlined_call_operand.vmem [shape: f32[1,128], index: 2, kind: input, shape index: {}]   ;;  %s1331_s3 = inlined_call_operand.vmem [shape: f32[512,128], index: 3, kind: input, shape index: {}]   ;;  %s1332_s4 = inlined_call_operand.vmem [shape: f32[1,128], index: 4, kind: input, shape index: {}]   ;;  %s1333_s5 = inlined_call_operand.vmem [shape: f32[1,128], index: 5, kind: input, shape index: {}]   ;;  %s1334_s6 = inlined_call_operand.vmem [shape: f32[512,128], index: 6, kind: output, shape index: {}]  }
   0x1 LB: > { %s799_s22 = sadd.s32 4294967295, %s1005_s21   ;;  %p803_p0 = scmp.ge.s32.totalorder %s1005_s21, 1  ;;  %s1005_s21 = sphi %s1042_s21, %s16_s21  }
   0x2   : > { %p224_p1 = scmp.lt.s32.totalorder %s1005_s21, 3 }
   0x4   : > { %p225_p2 = pnand %p803_p0, %p224_p1 }
   0x5   : > { %v309_v0 = vld [vmem:[%s1329_s1] sm:$0xff] (!%p225_p2)  ;;  %v310_v1 = vld [vmem:[%s1329_s1 + $0x8] sm:$0xff] (!%p225_p2)  ;;  %v311_v2 = vld [vmem:[%s1329_s1 + $0x10] sm:$0xff] (!%p225_p2)  ;;  %s804_s29 = sshll.u32 (!%p225_p2), %s799_s22, 5 }
   0x6   : > { %228 = sbr.rel (%p225_p2) target bundleno = 293 (0x125), region = 44  ;;  %v943_v3 = vpack.c.bf16 (!%p225_p2), %v310_v1, %v309_v0  ;;  %v312_v4 = vld [vmem:[%s1329_s1 + $0x18] sm:$0xff] (!%p225_p2)  ;;  %p260_p3 = scmp.lt.s32.totalorder (!%p225_p2), %s804_s29, 63  ;;  %v313_v6 = vld [vmem:[%s1329_s1 + $0x20] sm:$0xff] (!%p225_p2)  ;;  %v314_v7 = vld [vmem:[%s1329_s1 + $0x28] sm:$0xff] (!%p225_p2) }
   0x7   : > { %v947_v5 = vpack.c.bf16 (!%p225_p2), %v312_v4, %v311_v2  ;;  %v951_v8 = vpack.c.bf16 (!%p225_p2), %v314_v7, %v313_v6  ;;  %v315_v9 = vld [vmem:[%s1329_s1 + $0x30] sm:$0xff] (!%p225_p2)  ;;  %v316_v10 = vld [vmem:[%s1329_s1 + $0x38] sm:$0xff] (!%p225_p2)  ;;  %v317_v14 = vld [vmem:[%s1329_s1 + $0x40] sm:$0xff] (!%p225_p2) }
   0x8   : > { %944 = vmatprep.subr.bf16.mxu0 (!%p225_p2), %v943_v3  ;;  %975 = vmatprep.subr.bf16.mxu1 (!%p225_p2), %v943_v3  ;;  %v955_v13 = vpack.c.bf16 (!%p225_p2), %v316_v10, %v315_v9  ;;  %v318_v15 = vld [vmem:[%s1329_s1 + $0x48] sm:$0xff] (!%p225_p2)  ;;  %v319_v17 = vld [vmem:[%s1329_s1 + $0x50] sm:$0xff] (!%p225_p2)  ;;  %v320_v18 = vld [vmem:[%s1329_s1 + $0x58] sm:$0xff] (!%p225_p2) }
   0x9   : > { %946 = vmatpush3.bf16.msra.mxu0 (!%p225_p2), %v943_v3  ;;  %983 = vmatpush3.bf16.msra.mxu1 (!%p225_p2), %v943_v3  ;;  %v959_v16 = vpack.c.bf16 (!%p225_p2), %v318_v15, %v317_v14  ;;  %v963_v19 = vpack.c.bf16 (!%p225_p2), %v320_v18, %v319_v17  ;;  %v321_v20 = vld [vmem:[%s1329_s1 + $0x60] sm:$0xff] (!%p225_p2)  ;;  %v322_v21 = vld [vmem:[%s1329_s1 + $0x68] sm:$0xff] (!%p225_p2)  ;;  %v323_v23 = vld [vmem:[%s1329_s1 + $0x70] sm:$0xff] (!%p225_p2) }
   0xa   : > { %948 = vmatprep.subr.bf16.mxu0 (!%p225_p2), %v947_v5  ;;  %976 = vmatprep.subr.bf16.mxu1 (!%p225_p2), %v947_v5  ;;  %v967_v22 = vpack.c.bf16 (!%p225_p2), %v322_v21, %v321_v20  ;;  %v324_v24 = vld [vmem:[%s1329_s1 + $0x78] sm:$0xff] (!%p225_p2)  ;;  %v1147_v56 = vld [vmem:[%s1330_s2] ss:$0 sm:$0xff] (!%p225_p2) }
   0xb   : > { %v971_v25 = vpack.c.bf16 (!%p225_p2), %v324_v24, %v323_v23  ;;  %v1158_v3 = vld [vmem:[%s1332_s4] ss:$0 sm:$0xff] (!%p225_p2) }
   0xd   : > { %s1336_s29 = smov (!%p260_p3, %s804_s29), 63  ;;  %950 = vmatpush3.bf16.msra.mxu0 %v947_v5  ;;  %984 = vmatpush3.bf16.msra.mxu1 %v947_v5 }
   0xe   : > { %s1068_s12 = sshll.u32 %s1336_s29, 3  ;;  %952 = vmatprep.subr.bf16.mxu0 %v951_v8  ;;  %977 = vmatprep.subr.bf16.mxu1 %v951_v8 }
   0xf   : > { %s1080_s19 = scalar_lea.vmem %s1328_s0, %s1068_s12  ;;  %s1142_s16 = scalar_lea.vmem %s1331_s3, %s1068_s12 }
  0x10   : > { %v277_v11 = vld [vmem:[%s1080_s19] sm:$0xff]  ;;  %v278_v26 = vld [vmem:[%s1080_s19 + $0x8] sm:$0xff]  ;;  %v279_v28 = vld [vmem:[%s1080_s19 + $0x10] sm:$0xff]  ;;  %s1179_s26 = scalar_lea.vmem %s1334_s6, %s1068_s12 }
  0x11   : > { %v293_v12 = vld [vmem:[%s1080_s19 + $0x80] sm:$0xff]  ;;  %895 = vmatprep.mubr.f32.mxu0 %v277_v11  ;;  %954 = vmatpush3.bf16.msra.mxu0 %v951_v8  ;;  %v294_v27 = vld [vmem:[%s1080_s19 + $0x88] sm:$0xff]  ;;  %v295_v29 = vld [vmem:[%s1080_s19 + $0x90] sm:$0xff] }
  0x12   : > { %919 = vmatprep.mubr.f32.mxu1 %v293_v12  ;;  %985 = vmatpush3.bf16.msra.mxu1 %v951_v8  ;;  %v280_v30 = vld [vmem:[%s1080_s19 + $0x18] sm:$0xff]  ;;  %v281_v32 = vld [vmem:[%s1080_s19 + $0x20] sm:$0xff]  ;;  %v282_v34 = vld [vmem:[%s1080_s19 + $0x28] sm:$0xff] }
  0x13   : > { %956 = vmatprep.subr.bf16.mxu0 %v955_v13  ;;  %978 = vmatprep.subr.bf16.mxu1 %v955_v13  ;;  %v296_v31 = vld [vmem:[%s1080_s19 + $0x98] sm:$0xff]  ;;  %v297_v33 = vld [vmem:[%s1080_s19 + $0xa0] sm:$0xff]  ;;  %v298_v35 = vld [vmem:[%s1080_s19 + $0xa8] sm:$0xff] }
  0x14   : > { %v283_v36 = vld [vmem:[%s1080_s19 + $0x30] sm:$0xff]  ;;  %v284_v38 = vld [vmem:[%s1080_s19 + $0x38] sm:$0xff]  ;;  %v285_v40 = vld [vmem:[%s1080_s19 + $0x40] sm:$0xff] }
  0x15   : > { %958 = vmatpush3.bf16.msra.mxu0 %v955_v13  ;;  %v299_v37 = vld [vmem:[%s1080_s19 + $0xb0] sm:$0xff]  ;;  %v300_v39 = vld [vmem:[%s1080_s19 + $0xb8] sm:$0xff]  ;;  %v301_v41 = vld [vmem:[%s1080_s19 + $0xc0] sm:$0xff] }
  0x16   : > { %986 = vmatpush3.bf16.msra.mxu1 %v955_v13  ;;  %960 = vmatprep.subr.bf16.mxu0 %v959_v16  ;;  %v286_v42 = vld [vmem:[%s1080_s19 + $0x48] sm:$0xff]  ;;  %v287_v44 = vld [vmem:[%s1080_s19 + $0x50] sm:$0xff]  ;;  %v288_v46 = vld [vmem:[%s1080_s19 + $0x58] sm:$0xff] }
  0x17   : > { %979 = vmatprep.subr.bf16.mxu1 %v959_v16  ;;  %v302_v43 = vld [vmem:[%s1080_s19 + $0xc8] sm:$0xff]  ;;  %v303_v45 = vld [vmem:[%s1080_s19 + $0xd0] sm:$0xff]  ;;  %v304_v47 = vld [vmem:[%s1080_s19 + $0xd8] sm:$0xff] }
  0x18   : > { %v289_v48 = vld [vmem:[%s1080_s19 + $0x60] sm:$0xff]  ;;  %v290_v50 = vld [vmem:[%s1080_s19 + $0x68] sm:$0xff]  ;;  %v291_v52 = vld [vmem:[%s1080_s19 + $0x70] sm:$0xff] }
  0x19   : > { %962 = vmatpush3.bf16.msra.mxu0 %v959_v16  ;;  %v305_v49 = vld [vmem:[%s1080_s19 + $0xe0] sm:$0xff]  ;;  %v306_v51 = vld [vmem:[%s1080_s19 + $0xe8] sm:$0xff]  ;;  %v307_v53 = vld [vmem:[%s1080_s19 + $0xf0] sm:$0xff] }
  0x1a   : > { %987 = vmatpush3.bf16.msra.mxu1 %v959_v16  ;;  %964 = vmatprep.subr.bf16.mxu0 %v963_v19  ;;  %v292_v54 = vld [vmem:[%s1080_s19 + $0x78] sm:$0xff]  ;;  %v558_v58 = vld [vmem:[%s1142_s16 + $0x8] sm:$0xff]  ;;  %v557_v0 = vld [vmem:[%s1142_s16] sm:$0xff] }
  0x1b   : > { %980 = vmatprep.subr.bf16.mxu1 %v963_v19  ;;  %v308_v55 = vld [vmem:[%s1080_s19 + $0xf8] sm:$0xff]  ;;  %v574_v60 = vld [vmem:[%s1142_s16 + $0x88] sm:$0xff]  ;;  %v573_v2 = vld [vmem:[%s1142_s16 + $0x80] sm:$0xff] }
  0x1c   : > { %v1165_v8 = vld [vmem:[%s1333_s5] ss:$0 sm:$0xff]  ;;  %v560_v12 = vld [vmem:[%s1142_s16 + $0x18] sm:$0xff]  ;;  %v559_v20 = vld [vmem:[%s1142_s16 + $0x10] sm:$0xff] }
  0x1d   : > { %966 = vmatpush3.bf16.msra.mxu0 %v963_v19  ;;  %v576_v14 = vld [vmem:[%s1142_s16 + $0x98] sm:$0xff] }
  0x1e   : > { %988 = vmatpush3.bf16.msra.mxu1 %v963_v19  ;;  %968 = vmatprep.subr.bf16.mxu0 %v967_v22 }
  0x1f   : > { %981 = vmatprep.subr.bf16.mxu1 %v967_v22 }
  0x21   : > { %970 = vmatpush3.bf16.msra.mxu0 %v967_v22 }
  0x22   : > { %989 = vmatpush3.bf16.msra.mxu1 %v967_v22  ;;  %972 = vmatprep.subr.bf16.mxu0 %v971_v25  ;;  %v575_v22 = vld [vmem:[%s1142_s16 + $0x90] sm:$0xff] }
  0x23   : > { %982 = vmatprep.subr.bf16.mxu1 %v971_v25 }
  0x25   : > { %974 = vmatpush3.bf16.msra.mxu0 %v971_v25 }
  0x26   : > { %990 = vmatpush3.bf16.msra.mxu1 %v971_v25 }
  0x28   : > { %896 = vmatmul.mubr.f32.vlgmr.msra.gmra.mrb[0].mxu0 %v278_v26 }
  0x29   : > { %920 = vmatmul.mubr.f32.vlgmr.msra.gmra.mrb[0].mxu1 %v294_v27  ;;  %898 = vmatprep.mubr.f32.mxu0 %v279_v28 }
  0x2a   : > { %922 = vmatprep.mubr.f32.mxu1 %v295_v29 }
  0x2c   : > { %899 = vmatmul.mubr.f32.gmra.mrb[2].mxu0 %v280_v30 }
  0x2d   : > { %923 = vmatmul.mubr.f32.gmra.mrb[2].mxu1 %v296_v31  ;;  %901 = vmatprep.mubr.f32.mxu0 %v281_v32 }
  0x2e   : > { %925 = vmatprep.mubr.f32.mxu1 %v297_v33 }
  0x30   : > { %902 = vmatmul.mubr.f32.gmra.mrb[4].mxu0 %v282_v34 }
  0x31   : > { %926 = vmatmul.mubr.f32.gmra.mrb[4].mxu1 %v298_v35  ;;  %904 = vmatprep.mubr.f32.mxu0 %v283_v36  ;;  %v562_v36 = vld [vmem:[%s1142_s16 + $0x28] sm:$0xff] }
  0x32   : > { %928 = vmatprep.mubr.f32.mxu1 %v299_v37 }
  0x34   : > { %905 = vmatmul.mubr.f32.gmra.mrb[6].mxu0 %v284_v38  ;;  %v578_v38 = vld [vmem:[%s1142_s16 + $0xa8] sm:$0xff] }
  0x35   : > { %929 = vmatmul.mubr.f32.gmra.mrb[6].mxu1 %v300_v39  ;;  %907 = vmatprep.mubr.f32.mxu0 %v285_v40 }
  0x36   : > { %931 = vmatprep.mubr.f32.mxu1 %v301_v41 }
  0x38   : > { %908 = vmatmul.mubr.f32.gmra.mrb[8].mxu0 %v286_v42 }
  0x39   : > { %932 = vmatmul.mubr.f32.gmra.mrb[8].mxu1 %v302_v43  ;;  %910 = vmatprep.mubr.f32.mxu0 %v287_v44  ;;  %v561_v44 = vld [vmem:[%s1142_s16 + $0x20] sm:$0xff] }
  0x3a   : > { %934 = vmatprep.mubr.f32.mxu1 %v303_v45 }
  0x3c   : > { %911 = vmatmul.mubr.f32.gmra.mrb[10].mxu0 %v288_v46  ;;  %v577_v46 = vld [vmem:[%s1142_s16 + $0xa0] sm:$0xff] }
  0x3d   : > { %935 = vmatmul.mubr.f32.gmra.mrb[10].mxu1 %v304_v47  ;;  %913 = vmatprep.mubr.f32.mxu0 %v289_v48 }
  0x3e   : > { %937 = vmatprep.mubr.f32.mxu1 %v305_v49 }
  0x40   : > { %914 = vmatmul.mubr.f32.gmra.mrb[12].mxu0 %v290_v50 }
  0x41   : > { %938 = vmatmul.mubr.f32.gmra.mrb[12].mxu1 %v306_v51  ;;  %916 = vmatprep.mubr.f32.mxu0 %v291_v52 }
  0x42   : > { %940 = vmatprep.mubr.f32.mxu1 %v307_v53 }
  0x44   : > { %917 = vmatmul.mubr.f32.gmra.mrb[14].mxu0 %v292_v54 }
  0x45   : > { %941 = vmatmul.mubr.f32.gmra.mrb[14].mxu1 %v308_v55 }
  0xfb   : > { %v897_v57 = vpop.f32.mrb[0].mxu0 }
  0xfc   : > { %v921_v59 = vpop.f32.mrb[0].mxu1  ;;  %v404_v61 = vadd.f32 %v897_v57, %v1147_v56  ;;  %v398_v63 = vpop.f32.mrb[1].mxu0 }
  0xfd   : > { %v484_v62 = vadd.f32 %v921_v59, %v1147_v56  ;;  %v478_v1 = vpop.f32.mrb[1].mxu1  ;;  %v399_v4 = vadd.f32 %v1147_v56, %v398_v63  ;;  %v580_v63 = vld [vmem:[%s1142_s16 + $0xb8] sm:$0xff] }
  0xfe   : > { %v479_v5 = vadd.f32 %v1147_v56, %v478_v1  ;;  %v590_v6 = vadd.f32 %v558_v58, %v404_v61  ;;  %v564_v61 = vld [vmem:[%s1142_s16 + $0x38] sm:$0xff] }
  0xff   : > { %v606_v7 = vadd.f32 %v574_v60, %v484_v62  ;;  %v589_v9 = vadd.f32 %v557_v0, %v399_v4  ;;  %v900_v11 = vpop.f32.mrb[2].mxu0 }
 0x100   : > { %v605_v10 = vadd.f32 %v573_v2, %v479_v5  ;;  %v924_v13 = vpop.f32.mrb[2].mxu1  ;;  %v629_v15 = vmul.f32 %v1158_v3, %v590_v6  ;;  %v414_v17 = vadd.f32 %v900_v11, %v1147_v56  ;;  %v408_v19 = vpop.f32.mrb[3].mxu0  ;;  %v563_v6 = vld [vmem:[%s1142_s16 + $0x30] sm:$0xff] }
 0x101   : > { %v645_v16 = vmul.f32 %v1158_v3, %v606_v7  ;;  %v494_v18 = vadd.f32 %v924_v13, %v1147_v56  ;;  %v488_v21 = vpop.f32.mrb[3].mxu1  ;;  %v628_v23 = vmul.f32 %v1158_v3, %v589_v9  ;;  %v409_v25 = vadd.f32 %v1147_v56, %v408_v19  ;;  %v579_v9 = vld [vmem:[%s1142_s16 + $0xb0] sm:$0xff] }
 0x102   : > { %v644_v24 = vmul.f32 %v1158_v3, %v605_v10  ;;  %v489_v26 = vadd.f32 %v1147_v56, %v488_v21  ;;  %v668_v27 = vadd.f32 %v1165_v8, %v629_v15  ;;  %v592_v29 = vadd.f32 %v560_v12, %v414_v17 }
 0x103   : > { %v684_v28 = vadd.f32 %v1165_v8, %v645_v16  ;;  %v608_v30 = vadd.f32 %v576_v14, %v494_v18  ;;  %v667_v31 = vadd.f32 %v1165_v8, %v628_v23  ;;  %v591_v33 = vadd.f32 %v559_v20, %v409_v25  ;;  %v903_v35 = vpop.f32.mrb[4].mxu0  ;;  %v566_v23 = vld [vmem:[%s1142_s16 + $0x48] sm:$0xff] }
 0x104   : > { %v683_v32 = vadd.f32 %v1165_v8, %v644_v24  ;;  %v607_v34 = vadd.f32 %v575_v22, %v489_v26  ;;  %v927_v37 = vpop.f32.mrb[4].mxu1  ;;  %700 = vst [vmem:[%s1179_s26 + $0x8] sm:$0xff] %v668_v27  ;;  %v631_v39 = vmul.f32 %v1158_v3, %v592_v29  ;;  %v424_v41 = vadd.f32 %v903_v35, %v1147_v56  ;;  %v418_v43 = vpop.f32.mrb[5].mxu0  ;;  %v582_v25 = vld [vmem:[%s1142_s16 + $0xc8] sm:$0xff] }
 0x105   : > { %716 = vst [vmem:[%s1179_s26 + $0x88] sm:$0xff] %v684_v28  ;;  %v647_v40 = vmul.f32 %v1158_v3, %v608_v30  ;;  %v504_v42 = vadd.f32 %v927_v37, %v1147_v56  ;;  %v498_v45 = vpop.f32.mrb[5].mxu1  ;;  %699 = vst [vmem:[%s1179_s26] sm:$0xff] %v667_v31  ;;  %v630_v47 = vmul.f32 %v1158_v3, %v591_v33  ;;  %v565_v31 = vld [vmem:[%s1142_s16 + $0x40] sm:$0xff] }
 0x106   : > { %715 = vst [vmem:[%s1179_s26 + $0x80] sm:$0xff] %v683_v32  ;;  %v646_v48 = vmul.f32 %v1158_v3, %v607_v34  ;;  %v419_v49 = vadd.f32 %v1147_v56, %v418_v43  ;;  %v499_v50 = vadd.f32 %v1147_v56, %v498_v45  ;;  %v670_v51 = vadd.f32 %v1165_v8, %v631_v39  ;;  %v581_v33 = vld [vmem:[%s1142_s16 + $0xc0] sm:$0xff] }
 0x107   : > { %v686_v52 = vadd.f32 %v1165_v8, %v647_v40  ;;  %v594_v53 = vadd.f32 %v562_v36, %v424_v41  ;;  %v610_v54 = vadd.f32 %v578_v38, %v504_v42  ;;  %v669_v55 = vadd.f32 %v1165_v8, %v630_v47  ;;  %v906_v60 = vpop.f32.mrb[6].mxu0  ;;  %v568_v47 = vld [vmem:[%s1142_s16 + $0x58] sm:$0xff] }
 0x108   : > { %v685_v57 = vadd.f32 %v1165_v8, %v646_v48  ;;  %v593_v58 = vadd.f32 %v561_v44, %v419_v49  ;;  %v609_v59 = vadd.f32 %v577_v46, %v499_v50  ;;  %v930_v62 = vpop.f32.mrb[6].mxu1  ;;  %702 = vst [vmem:[%s1179_s26 + $0x18] sm:$0xff] %v670_v51  ;;  %v434_v2 = vadd.f32 %v906_v60, %v1147_v56  ;;  %v428_v5 = vpop.f32.mrb[7].mxu0  ;;  %v584_v49 = vld [vmem:[%s1142_s16 + $0xd8] sm:$0xff] }
 0x109   : > { %718 = vst [vmem:[%s1179_s26 + $0x98] sm:$0xff] %v686_v52  ;;  %v633_v0 = vmul.f32 %v1158_v3, %v594_v53  ;;  %v649_v1 = vmul.f32 %v1158_v3, %v610_v54  ;;  %v514_v4 = vadd.f32 %v930_v62, %v1147_v56  ;;  %v508_v7 = vpop.f32.mrb[7].mxu1  ;;  %701 = vst [vmem:[%s1179_s26 + $0x10] sm:$0xff] %v669_v55  ;;  %v567_v55 = vld [vmem:[%s1142_s16 + $0x50] sm:$0xff] }
 0x10a   : > { %717 = vst [vmem:[%s1179_s26 + $0x90] sm:$0xff] %v685_v57  ;;  %v632_v10 = vmul.f32 %v1158_v3, %v593_v58  ;;  %v648_v11 = vmul.f32 %v1158_v3, %v609_v59  ;;  %v429_v12 = vadd.f32 %v1147_v56, %v428_v5  ;;  %v509_v13 = vadd.f32 %v1147_v56, %v508_v7  ;;  %v583_v58 = vld [vmem:[%s1142_s16 + $0xd0] sm:$0xff] }
 0x10b   : > { %v672_v14 = vadd.f32 %v1165_v8, %v633_v0  ;;  %v688_v15 = vadd.f32 %v1165_v8, %v649_v1  ;;  %v596_v16 = vadd.f32 %v564_v61, %v434_v2  ;;  %v612_v17 = vadd.f32 %v580_v63, %v514_v4  ;;  %v909_v22 = vpop.f32.mrb[8].mxu0 }
 0x10c   : > { %v671_v18 = vadd.f32 %v1165_v8, %v632_v10  ;;  %v687_v19 = vadd.f32 %v1165_v8, %v648_v11  ;;  %v595_v20 = vadd.f32 %v563_v6, %v429_v12  ;;  %v611_v21 = vadd.f32 %v579_v9, %v509_v13  ;;  %v933_v24 = vpop.f32.mrb[8].mxu1  ;;  %v438_v30 = vpop.f32.mrb[9].mxu0  ;;  %v570_v10 = vld [vmem:[%s1142_s16 + $0x68] sm:$0xff] }
 0x10d   : > { %704 = vst [vmem:[%s1179_s26 + $0x28] sm:$0xff] %v672_v14  ;;  %720 = vst [vmem:[%s1179_s26 + $0xa8] sm:$0xff] %v688_v15  ;;  %v635_v26 = vmul.f32 %v1158_v3, %v596_v16  ;;  %v651_v27 = vmul.f32 %v1158_v3, %v612_v17  ;;  %v444_v28 = vadd.f32 %v909_v22, %v1147_v56  ;;  %v518_v32 = vpop.f32.mrb[9].mxu1  ;;  %v586_v12 = vld [vmem:[%s1142_s16 + $0xe8] sm:$0xff] }
 0x10e   : > { %v524_v29 = vadd.f32 %v933_v24, %v1147_v56  ;;  %703 = vst [vmem:[%s1179_s26 + $0x20] sm:$0xff] %v671_v18  ;;  %719 = vst [vmem:[%s1179_s26 + $0xa0] sm:$0xff] %v687_v19  ;;  %v634_v34 = vmul.f32 %v1158_v3, %v595_v20  ;;  %v650_v35 = vmul.f32 %v1158_v3, %v611_v21  ;;  %v569_v18 = vld [vmem:[%s1142_s16 + $0x60] sm:$0xff] }
 0x10f   : > { %v439_v36 = vadd.f32 %v1147_v56, %v438_v30  ;;  %v519_v37 = vadd.f32 %v1147_v56, %v518_v32  ;;  %v674_v38 = vadd.f32 %v1165_v8, %v635_v26  ;;  %v690_v39 = vadd.f32 %v1165_v8, %v651_v27  ;;  %v912_v46 = vpop.f32.mrb[10].mxu0  ;;  %v585_v20 = vld [vmem:[%s1142_s16 + $0xe0] sm:$0xff] }
 0x110   : > { %v598_v40 = vadd.f32 %v566_v23, %v444_v28  ;;  %v614_v41 = vadd.f32 %v582_v25, %v524_v29  ;;  %v673_v42 = vadd.f32 %v1165_v8, %v634_v34  ;;  %v689_v43 = vadd.f32 %v1165_v8, %v650_v35  ;;  %v936_v48 = vpop.f32.mrb[10].mxu1  ;;  %v448_v54 = vpop.f32.mrb[11].mxu0  ;;  %v572_v34 = vld [vmem:[%s1142_s16 + $0x78] sm:$0xff] }
 0x111   : > { %v597_v44 = vadd.f32 %v565_v31, %v439_v36  ;;  %v613_v45 = vadd.f32 %v581_v33, %v519_v37  ;;  %706 = vst [vmem:[%s1179_s26 + $0x38] sm:$0xff] %v674_v38  ;;  %722 = vst [vmem:[%s1179_s26 + $0xb8] sm:$0xff] %v690_v39  ;;  %v454_v52 = vadd.f32 %v912_v46, %v1147_v56  ;;  %v528_v57 = vpop.f32.mrb[11].mxu1  ;;  %v588_v36 = vld [vmem:[%s1142_s16 + $0xf8] sm:$0xff] }
 0x112   : > { %v637_v50 = vmul.f32 %v1158_v3, %v598_v40  ;;  %v653_v51 = vmul.f32 %v1158_v3, %v614_v41  ;;  %v534_v53 = vadd.f32 %v936_v48, %v1147_v56  ;;  %705 = vst [vmem:[%s1179_s26 + $0x30] sm:$0xff] %v673_v42  ;;  %721 = vst [vmem:[%s1179_s26 + $0xb0] sm:$0xff] %v689_v43  ;;  %v571_v42 = vld [vmem:[%s1142_s16 + $0x70] sm:$0xff] }
 0x113   : > { %v636_v59 = vmul.f32 %v1158_v3, %v597_v44  ;;  %v652_v60 = vmul.f32 %v1158_v3, %v613_v45  ;;  %v449_v61 = vadd.f32 %v1147_v56, %v448_v54  ;;  %v529_v62 = vadd.f32 %v1147_v56, %v528_v57  ;;  %v915_v9 = vpop.f32.mrb[12].mxu0  ;;  %v587_v44 = vld [vmem:[%s1142_s16 + $0xf0] sm:$0xff] }
 0x114   : > { %v676_v63 = vadd.f32 %v1165_v8, %v637_v50  ;;  %v692_v0 = vadd.f32 %v1165_v8, %v653_v51  ;;  %v600_v1 = vadd.f32 %v568_v47, %v454_v52  ;;  %v616_v2 = vadd.f32 %v584_v49, %v534_v53  ;;  %v939_v11 = vpop.f32.mrb[12].mxu1  ;;  %v458_v17 = vpop.f32.mrb[13].mxu0 }
 0x115   : > { %v675_v4 = vadd.f32 %v1165_v8, %v636_v59  ;;  %v691_v5 = vadd.f32 %v1165_v8, %v652_v60  ;;  %v599_v6 = vadd.f32 %v567_v55, %v449_v61  ;;  %v615_v7 = vadd.f32 %v583_v58, %v529_v62  ;;  %v538_v19 = vpop.f32.mrb[13].mxu1 }
 0x116   : > { %708 = vst [vmem:[%s1179_s26 + $0x48] sm:$0xff] %v676_v63  ;;  %724 = vst [vmem:[%s1179_s26 + $0xc8] sm:$0xff] %v692_v0  ;;  %v639_v13 = vmul.f32 %v1158_v3, %v600_v1  ;;  %v655_v14 = vmul.f32 %v1158_v3, %v616_v2  ;;  %v464_v15 = vadd.f32 %v915_v9, %v1147_v56 }
 0x117   : > { %v544_v16 = vadd.f32 %v939_v11, %v1147_v56  ;;  %707 = vst [vmem:[%s1179_s26 + $0x40] sm:$0xff] %v675_v4  ;;  %723 = vst [vmem:[%s1179_s26 + $0xc0] sm:$0xff] %v691_v5  ;;  %v638_v21 = vmul.f32 %v1158_v3, %v599_v6  ;;  %v654_v22 = vmul.f32 %v1158_v3, %v615_v7  ;;  %v918_v33 = vpop.f32.mrb[14].mxu0 }
 0x118   : > { %v459_v23 = vadd.f32 %v1147_v56, %v458_v17  ;;  %v539_v24 = vadd.f32 %v1147_v56, %v538_v19  ;;  %v678_v25 = vadd.f32 %v1165_v8, %v639_v13  ;;  %v694_v26 = vadd.f32 %v1165_v8, %v655_v14  ;;  %v942_v35 = vpop.f32.mrb[14].mxu1  ;;  %v468_v41 = vpop.f32.mrb[15].mxu0 }
 0x119   : > { %v602_v27 = vadd.f32 %v570_v10, %v464_v15  ;;  %v618_v28 = vadd.f32 %v586_v12, %v544_v16  ;;  %v677_v29 = vadd.f32 %v1165_v8, %v638_v21  ;;  %v693_v30 = vadd.f32 %v1165_v8, %v654_v22  ;;  %v548_v43 = vpop.f32.mrb[15].mxu1 }
 0x11a   : > { %v601_v31 = vadd.f32 %v569_v18, %v459_v23  ;;  %v617_v32 = vadd.f32 %v585_v20, %v539_v24  ;;  %710 = vst [vmem:[%s1179_s26 + $0x58] sm:$0xff] %v678_v25  ;;  %726 = vst [vmem:[%s1179_s26 + $0xd8] sm:$0xff] %v694_v26  ;;  %v474_v39 = vadd.f32 %v918_v33, %v1147_v56 }
 0x11b   : > { %v641_v37 = vmul.f32 %v1158_v3, %v602_v27  ;;  %v657_v38 = vmul.f32 %v1158_v3, %v618_v28  ;;  %v554_v40 = vadd.f32 %v942_v35, %v1147_v56  ;;  %709 = vst [vmem:[%s1179_s26 + $0x50] sm:$0xff] %v677_v29  ;;  %725 = vst [vmem:[%s1179_s26 + $0xd0] sm:$0xff] %v693_v30 }
 0x11c   : > { %v640_v45 = vmul.f32 %v1158_v3, %v601_v31  ;;  %v656_v46 = vmul.f32 %v1158_v3, %v617_v32  ;;  %v469_v47 = vadd.f32 %v1147_v56, %v468_v41  ;;  %v549_v48 = vadd.f32 %v1147_v56, %v548_v43 }
 0x11d   : > { %v680_v49 = vadd.f32 %v1165_v8, %v641_v37  ;;  %v696_v50 = vadd.f32 %v1165_v8, %v657_v38  ;;  %v604_v51 = vadd.f32 %v572_v34, %v474_v39  ;;  %v620_v52 = vadd.f32 %v588_v36, %v554_v40 }
 0x11e   : > { %v679_v53 = vadd.f32 %v1165_v8, %v640_v45  ;;  %v695_v54 = vadd.f32 %v1165_v8, %v656_v46  ;;  %v603_v55 = vadd.f32 %v571_v42, %v469_v47  ;;  %v619_v57 = vadd.f32 %v587_v44, %v549_v48 }
 0x11f   : > { %712 = vst [vmem:[%s1179_s26 + $0x68] sm:$0xff] %v680_v49  ;;  %728 = vst [vmem:[%s1179_s26 + $0xe8] sm:$0xff] %v696_v50  ;;  %v643_v56 = vmul.f32 %v1158_v3, %v604_v51  ;;  %v659_v58 = vmul.f32 %v1158_v3, %v620_v52 }
 0x120   : > { %711 = vst [vmem:[%s1179_s26 + $0x60] sm:$0xff] %v679_v53  ;;  %727 = vst [vmem:[%s1179_s26 + $0xe0] sm:$0xff] %v695_v54  ;;  %v642_v59 = vmul.f32 %v1158_v3, %v603_v55  ;;  %v658_v60 = vmul.f32 %v1158_v3, %v619_v57 }
 0x121   : > { %v682_v61 = vadd.f32 %v1165_v8, %v643_v56  ;;  %v698_v62 = vadd.f32 %v1165_v8, %v659_v58 }
 0x122   : > { %v681_v63 = vadd.f32 %v1165_v8, %v642_v59  ;;  %v697_v0 = vadd.f32 %v1165_v8, %v658_v60 }
 0x123   : > { %714 = vst [vmem:[%s1179_s26 + $0x78] sm:$0xff] %v682_v61  ;;  %730 = vst [vmem:[%s1179_s26 + $0xf8] sm:$0xff] %v698_v62 }
 0x124   : > { %713 = vst [vmem:[%s1179_s26 + $0x70] sm:$0xff] %v681_v63  ;;  %729 = vst [vmem:[%s1179_s26 + $0xf0] sm:$0xff] %v697_v0 }
 0x125 PF: > { %s16_s21 = sadd.s32 1, %s1005_s21  }
 0x126   : > { %p13_p4 = scmp.ge.s32.totalorder %s16_s21, 4  }
 0x128   :  { %15 = sbr.rel (!%p13_p4) target bundleno = 1 (0x1), region = 77 }

// kernel: ts_transformer_forward.16
= control target key start
LH: loop header
LB: loop body
LE: loop exit
PB: predicated region body
PF: predicated region fallthrough
CT: control target
= control target key end

     0   :  { %s1434_s12 = smov 0   ;;  %s2341_s0 = inlined_call_operand.vmem [shape: f32[512,128], index: 0, kind: input, shape index: {}]   ;;  %s2342_s1 = inlined_call_operand.vmem [shape: f32[128,256], index: 1, kind: input, shape index: {}]   ;;  %s2343_s2 = inlined_call_operand.vmem [shape: f32[1,256], index: 2, kind: input, shape index: {}]   ;;  %s2344_s3 = inlined_call_operand.vmem [shape: f32[512,256], index: 3, kind: output, shape index: {}]  }
   0x1 LB: > { %s1207_s13 = sadd.s32 4294967295, %s1411_s12   ;;  %p1211_p0 = scmp.ge.s32.totalorder %s1411_s12, 1  ;;  %s1411_s12 = sphi %s1434_s12, %s13_s12  }
   0x2   : > { %p138_p1 = scmp.lt.s32.totalorder %s1411_s12, 3 }
   0x4   : > { %p139_p2 = pnand %p1211_p0, %p138_p1 }
   0x6   : > { %142 = sbr.rel (%p139_p2) target bundleno = 442 (0x1ba), region = 32 }
   0xd   : > { %v209_v0 = vld [vmem:[%s2342_s1 + $0x8] sm:$0xff]  ;;  %v211_v1 = vld [vmem:[%s2342_s1 + $0x18] sm:$0xff]  ;;  %v208_v2 = vld [vmem:[%s2342_s1] sm:$0xff]  ;;  %v1413_v7 = vmov 0.0   ;;  %s1212_s6 = sshll.u32 %s1207_s13, 5 }
   0xe   : > { %v1220_v3 = vpack.c.bf16 %v211_v1, %v209_v0  ;;  %v210_v4 = vld [vmem:[%s2342_s1 + $0x10] sm:$0xff]  ;;  %v213_v5 = vld [vmem:[%s2342_s1 + $0x28] sm:$0xff]  ;;  %v215_v6 = vld [vmem:[%s2342_s1 + $0x38] sm:$0xff]  ;;  %316 = vmatprep.mubr.f32.mxu0 %v1413_v7  ;;  %412 = vmatprep.mubr.f32.mxu1 %v1413_v7  ;;  %p164_p3 = scmp.lt.s32.totalorder %s1212_s6, 63 }
   0xf   : > { %v1222_v8 = vpack.c.bf16 %v210_v4, %v208_v2  ;;  %v1224_v9 = vpack.c.bf16 %v215_v6, %v213_v5  ;;  %v212_v10 = vld [vmem:[%s2342_s1 + $0x20] sm:$0xff]  ;;  %v214_v11 = vld [vmem:[%s2342_s1 + $0x30] sm:$0xff]  ;;  %v217_v12 = vld [vmem:[%s2342_s1 + $0x48] sm:$0xff] }
  0x10   : > { %1221 = vmatprep.subr.bf16.mxu0 %v1220_v3  ;;  %1252 = vmatprep.subr.bf16.mxu1 %v1220_v3  ;;  %v219_v13 = vld [vmem:[%s2342_s1 + $0x58] sm:$0xff]  ;;  %v1226_v14 = vpack.c.bf16 %v214_v11, %v212_v10  ;;  %v216_v16 = vld [vmem:[%s2342_s1 + $0x40] sm:$0xff]  ;;  %v218_v17 = vld [vmem:[%s2342_s1 + $0x50] sm:$0xff]  ;;  %s2348_s6 = smov (!%p164_p3, %s1212_s6), 63 }
  0x11   : > { %1223 = vmatpush1.bf16.msra.mxu0 %v1222_v8  ;;  %1260 = vmatpush1.bf16.msra.mxu1 %v1222_v8  ;;  %v1228_v15 = vpack.c.bf16 %v219_v13, %v217_v12  ;;  %v221_v18 = vld [vmem:[%s2342_s1 + $0x68] sm:$0xff]  ;;  %v223_v19 = vld [vmem:[%s2342_s1 + $0x78] sm:$0xff]  ;;  %v1230_v20 = vpack.c.bf16 %v218_v17, %v216_v16  ;;  %v220_v22 = vld [vmem:[%s2342_s1 + $0x60] sm:$0xff]  ;;  %s1213_s28 = sshll.u32 %s2348_s6, 3  ;;  %s1219_s8 = sshll.u32 %s2348_s6, 4 }
  0x12   : > { %1225 = vmatprep.subr.bf16.mxu0 %v1224_v9  ;;  %1253 = vmatprep.subr.bf16.mxu1 %v1224_v9  ;;  %v1232_v21 = vpack.c.bf16 %v223_v19, %v221_v18  ;;  %v222_v23 = vld [vmem:[%s2342_s1 + $0x70] sm:$0xff]  ;;  %v225_v24 = vld [vmem:[%s2342_s1 + $0x88] sm:$0xff]  ;;  %v227_v25 = vld [vmem:[%s2342_s1 + $0x98] sm:$0xff]  ;;  %s1548_s4 = scalar_lea.vmem %s2341_s0, %s1213_s28  ;;  %v242_v18 = vlaneseq  ;;  %s1753_s10 = scalar_lea.vmem %s2344_s3, %s1219_s8 }
  0x13   : > { %v1234_v26 = vpack.c.bf16 %v222_v23, %v220_v22  ;;  %v1236_v27 = vpack.c.bf16 %v227_v25, %v225_v24  ;;  %v224_v28 = vld [vmem:[%s2342_s1 + $0x80] sm:$0xff]  ;;  %v226_v29 = vld [vmem:[%s2342_s1 + $0x90] sm:$0xff]  ;;  %v229_v30 = vld [vmem:[%s2342_s1 + $0xa8] sm:$0xff] }
  0x14   : > { %v231_v31 = vld [vmem:[%s2342_s1 + $0xb8] sm:$0xff]  ;;  %v1238_v32 = vpack.c.bf16 %v226_v29, %v224_v28  ;;  %v228_v34 = vld [vmem:[%s2342_s1 + $0xa0] sm:$0xff]  ;;  %v230_v35 = vld [vmem:[%s2342_s1 + $0xb0] sm:$0xff]  ;;  %v243_v19 = vshrl.u32 %v242_v18, 7 }
  0x15   : > { %1227 = vmatpush1.bf16.msra.mxu0 %v1226_v14  ;;  %1261 = vmatpush1.bf16.msra.mxu1 %v1226_v14  ;;  %v1240_v33 = vpack.c.bf16 %v231_v31, %v229_v30  ;;  %v233_v36 = vld [vmem:[%s2342_s1 + $0xc8] sm:$0xff]  ;;  %v235_v37 = vld [vmem:[%s2342_s1 + $0xd8] sm:$0xff]  ;;  %v1242_v38 = vpack.c.bf16 %v230_v35, %v228_v34  ;;  %v232_v40 = vld [vmem:[%s2342_s1 + $0xc0] sm:$0xff] }
  0x16   : > { %1229 = vmatprep.subr.bf16.mxu0 %v1228_v15  ;;  %1254 = vmatprep.subr.bf16.mxu1 %v1228_v15  ;;  %v1244_v39 = vpack.c.bf16 %v235_v37, %v233_v36  ;;  %v234_v41 = vld [vmem:[%s2342_s1 + $0xd0] sm:$0xff]  ;;  %v237_v42 = vld [vmem:[%s2342_s1 + $0xe8] sm:$0xff]  ;;  %v239_v43 = vld [vmem:[%s2342_s1 + $0xf8] sm:$0xff]  ;;  %v248_v22 = vsub.s32 1, %v243_v19 }
  0x17   : > { %v1246_v44 = vpack.c.bf16 %v234_v41, %v232_v40  ;;  %v1248_v45 = vpack.c.bf16 %v239_v43, %v237_v42  ;;  %v236_v46 = vld [vmem:[%s2342_s1 + $0xe0] sm:$0xff]  ;;  %v238_v47 = vld [vmem:[%s2342_s1 + $0xf0] sm:$0xff]  ;;  %v177_v51 = vld [vmem:[%s1548_s4 + $0x8] sm:$0xff] }
  0x18   : > { %v1250_v48 = vpack.c.bf16 %v238_v47, %v236_v46  ;;  %v176_v49 = vld [vmem:[%s1548_s4] sm:$0xff]  ;;  %v193_v52 = vld [vmem:[%s1548_s4 + $0x88] sm:$0xff]  ;;  %v178_v53 = vld [vmem:[%s1548_s4 + $0x10] sm:$0xff] }
  0x19   : > { %1231 = vmatpush1.bf16.msra.mxu0 %v1230_v20  ;;  %1262 = vmatpush1.bf16.msra.mxu1 %v1230_v20  ;;  %v192_v50 = vld [vmem:[%s1548_s4 + $0x80] sm:$0xff]  ;;  %v194_v54 = vld [vmem:[%s1548_s4 + $0x90] sm:$0xff]  ;;  %v179_v55 = vld [vmem:[%s1548_s4 + $0x18] sm:$0xff]  ;;  %v244_v20 = vsub.s32 0, %v243_v19 }
  0x1a   : > { %1233 = vmatprep.subr.bf16.mxu0 %v1232_v21  ;;  %1255 = vmatprep.subr.bf16.mxu1 %v1232_v21  ;;  %v195_v56 = vld [vmem:[%s1548_s4 + $0x98] sm:$0xff]  ;;  %v180_v57 = vld [vmem:[%s1548_s4 + $0x20] sm:$0xff]  ;;  %v181_v59 = vld [vmem:[%s1548_s4 + $0x28] sm:$0xff] }
  0x1b   : > { %v196_v58 = vld [vmem:[%s1548_s4 + $0xa0] sm:$0xff]  ;;  %v197_v60 = vld [vmem:[%s1548_s4 + $0xa8] sm:$0xff]  ;;  %v182_v61 = vld [vmem:[%s1548_s4 + $0x30] sm:$0xff] }
  0x1c   : > { %v198_v62 = vld [vmem:[%s1548_s4 + $0xb0] sm:$0xff]  ;;  %v183_v63 = vld [vmem:[%s1548_s4 + $0x38] sm:$0xff]  ;;  %v184_v1 = vld [vmem:[%s1548_s4 + $0x40] sm:$0xff] }
  0x1d   : > { %1235 = vmatpush1.bf16.msra.mxu0 %v1234_v26  ;;  %1263 = vmatpush1.bf16.msra.mxu1 %v1234_v26  ;;  %v199_v0 = vld [vmem:[%s1548_s4 + $0xb8] sm:$0xff]  ;;  %v200_v2 = vld [vmem:[%s1548_s4 + $0xc0] sm:$0xff]  ;;  %v185_v3 = vld [vmem:[%s1548_s4 + $0x48] sm:$0xff] }
  0x1e   : > { %1237 = vmatprep.subr.bf16.mxu0 %v1236_v27  ;;  %1256 = vmatprep.subr.bf16.mxu1 %v1236_v27  ;;  %v201_v4 = vld [vmem:[%s1548_s4 + $0xc8] sm:$0xff]  ;;  %v186_v5 = vld [vmem:[%s1548_s4 + $0x50] sm:$0xff]  ;;  %v187_v8 = vld [vmem:[%s1548_s4 + $0x58] sm:$0xff] }
  0x1f   : > { %v202_v6 = vld [vmem:[%s1548_s4 + $0xd0] sm:$0xff]  ;;  %v203_v9 = vld [vmem:[%s1548_s4 + $0xd8] sm:$0xff]  ;;  %v188_v10 = vld [vmem:[%s1548_s4 + $0x60] sm:$0xff] }
  0x20   : > { %v204_v11 = vld [vmem:[%s1548_s4 + $0xe0] sm:$0xff]  ;;  %v189_v12 = vld [vmem:[%s1548_s4 + $0x68] sm:$0xff]  ;;  %v190_v14 = vld [vmem:[%s1548_s4 + $0x70] sm:$0xff] }
  0x21   : > { %1239 = vmatpush1.bf16.msra.mxu0 %v1238_v32  ;;  %1264 = vmatpush1.bf16.msra.mxu1 %v1238_v32  ;;  %v205_v13 = vld [vmem:[%s1548_s4 + $0xe8] sm:$0xff]  ;;  %v206_v15 = vld [vmem:[%s1548_s4 + $0xf0] sm:$0xff]  ;;  %v191_v16 = vld [vmem:[%s1548_s4 + $0x78] sm:$0xff] }
  0x22   : > { %1241 = vmatprep.subr.bf16.mxu0 %v1240_v33  ;;  %1257 = vmatprep.subr.bf16.mxu1 %v1240_v33  ;;  %v207_v17 = vld [vmem:[%s1548_s4 + $0xf8] sm:$0xff]  ;;  %v240_v21 = vld [vmem:[%s2343_s2] sm:$0x3] }
  0x23   : > { %v1615_v23 = vrot.slane %v240_v21, %v244_v20  ;;  %v1617_v24 = vrot.slane %v240_v21, %v248_v22 }
  0x25   : > { %1243 = vmatpush1.bf16.msra.mxu0 %v1242_v38  ;;  %1265 = vmatpush1.bf16.msra.mxu1 %v1242_v38 }
  0x26   : > { %1245 = vmatprep.subr.bf16.mxu0 %v1244_v39  ;;  %1258 = vmatprep.subr.bf16.mxu1 %v1244_v39 }
  0x29   : > { %1247 = vmatpush1.bf16.msra.mxu0 %v1246_v44  ;;  %1266 = vmatpush1.bf16.msra.mxu1 %v1246_v44 }
  0x2a   : > { %1249 = vmatprep.subr.bf16.mxu0 %v1248_v45  ;;  %1259 = vmatprep.subr.bf16.mxu1 %v1248_v45 }
  0x2d   : > { %1251 = vmatpush1.bf16.msra.mxu0 %v1250_v48  ;;  %1267 = vmatpush1.bf16.msra.mxu1 %v1250_v48 }
  0x30   : > { %317 = vmatmul.mubr.f32.vlgmr.msra.gmra.mrb[0].mxu0 %v176_v49  ;;  %413 = vmatmul.mubr.f32.vlgmr.msra.gmra.mrb[0].mxu1 %v192_v50 }
  0x31   : > { %322 = vmatprep.mubr.f32.mxu0 %v1413_v7  ;;  %418 = vmatprep.mubr.f32.mxu1 %v1413_v7 }
  0x34   : > { %323 = vmatmul.mubr.f32.gmra.mrb[2].mxu0 %v177_v51  ;;  %419 = vmatmul.mubr.f32.gmra.mrb[2].mxu1 %v193_v52 }
  0x35   : > { %328 = vmatprep.mubr.f32.mxu0 %v1413_v7  ;;  %424 = vmatprep.mubr.f32.mxu1 %v1413_v7 }
  0x38   : > { %329 = vmatmul.mubr.f32.gmra.mrb[4].mxu0 %v178_v53  ;;  %425 = vmatmul.mubr.f32.gmra.mrb[4].mxu1 %v194_v54 }
  0x39   : > { %334 = vmatprep.mubr.f32.mxu0 %v1413_v7  ;;  %430 = vmatprep.mubr.f32.mxu1 %v1413_v7 }
  0x3c   : > { %335 = vmatmul.mubr.f32.gmra.mrb[6].mxu0 %v179_v55  ;;  %431 = vmatmul.mubr.f32.gmra.mrb[6].mxu1 %v195_v56 }
  0x3d   : > { %340 = vmatprep.mubr.f32.mxu0 %v1413_v7  ;;  %436 = vmatprep.mubr.f32.mxu1 %v1413_v7 }
  0x40   : > { %341 = vmatmul.mubr.f32.gmra.mrb[8].mxu0 %v180_v57  ;;  %437 = vmatmul.mubr.f32.gmra.mrb[8].mxu1 %v196_v58 }
  0x41   : > { %346 = vmatprep.mubr.f32.mxu0 %v1413_v7  ;;  %442 = vmatprep.mubr.f32.mxu1 %v1413_v7 }
  0x44   : > { %347 = vmatmul.mubr.f32.gmra.mrb[10].mxu0 %v181_v59  ;;  %443 = vmatmul.mubr.f32.gmra.mrb[10].mxu1 %v197_v60 }
  0x45   : > { %352 = vmatprep.mubr.f32.mxu0 %v1413_v7  ;;  %448 = vmatprep.mubr.f32.mxu1 %v1413_v7 }
  0x48   : > { %353 = vmatmul.mubr.f32.gmra.mrb[12].mxu0 %v182_v61  ;;  %449 = vmatmul.mubr.f32.gmra.mrb[12].mxu1 %v198_v62 }
  0x49   : > { %358 = vmatprep.mubr.f32.mxu0 %v1413_v7  ;;  %454 = vmatprep.mubr.f32.mxu1 %v1413_v7 }
  0x4c   : > { %359 = vmatmul.mubr.f32.gmra.mrb[14].mxu0 %v183_v63  ;;  %455 = vmatmul.mubr.f32.gmra.mrb[14].mxu1 %v199_v0 }
  0x4d   : > { %364 = vmatprep.mubr.f32.mxu0 %v1413_v7  ;;  %460 = vmatprep.mubr.f32.mxu1 %v1413_v7 }
  0x50   : > { %365 = vmatmul.mubr.f32.gmra.mrb[16].mxu0 %v184_v1  ;;  %461 = vmatmul.mubr.f32.gmra.mrb[16].mxu1 %v200_v2 }
  0x51   : > { %370 = vmatprep.mubr.f32.mxu0 %v1413_v7  ;;  %466 = vmatprep.mubr.f32.mxu1 %v1413_v7 }
  0x54   : > { %371 = vmatmul.mubr.f32.gmra.mrb[18].mxu0 %v185_v3  ;;  %467 = vmatmul.mubr.f32.gmra.mrb[18].mxu1 %v201_v4 }
  0x55   : > { %376 = vmatprep.mubr.f32.mxu0 %v1413_v7  ;;  %472 = vmatprep.mubr.f32.mxu1 %v1413_v7 }
  0x58   : > { %377 = vmatmul.mubr.f32.gmra.mrb[20].mxu0 %v186_v5  ;;  %473 = vmatmul.mubr.f32.gmra.mrb[20].mxu1 %v202_v6 }
  0x59   : > { %382 = vmatprep.mubr.f32.mxu0 %v1413_v7  ;;  %478 = vmatprep.mubr.f32.mxu1 %v1413_v7 }
  0x5c   : > { %383 = vmatmul.mubr.f32.gmra.mrb[22].mxu0 %v187_v8  ;;  %479 = vmatmul.mubr.f32.gmra.mrb[22].mxu1 %v203_v9 }
  0x5d   : > { %388 = vmatprep.mubr.f32.mxu0 %v1413_v7  ;;  %484 = vmatprep.mubr.f32.mxu1 %v1413_v7 }
  0x60   : > { %389 = vmatmul.mubr.f32.gmra.mrb[24].mxu0 %v188_v10  ;;  %485 = vmatmul.mubr.f32.gmra.mrb[24].mxu1 %v204_v11 }
  0x61   : > { %394 = vmatprep.mubr.f32.mxu0 %v1413_v7  ;;  %490 = vmatprep.mubr.f32.mxu1 %v1413_v7 }
  0x64   : > { %395 = vmatmul.mubr.f32.gmra.mrb[26].mxu0 %v189_v12  ;;  %491 = vmatmul.mubr.f32.gmra.mrb[26].mxu1 %v205_v13 }
  0x65   : > { %400 = vmatprep.mubr.f32.mxu0 %v1413_v7  ;;  %496 = vmatprep.mubr.f32.mxu1 %v1413_v7 }
  0x68   : > { %401 = vmatmul.mubr.f32.gmra.mrb[28].mxu0 %v190_v14  ;;  %497 = vmatmul.mubr.f32.gmra.mrb[28].mxu1 %v206_v15 }
  0x69   : > { %406 = vmatprep.mubr.f32.mxu0 %v1413_v7  ;;  %502 = vmatprep.mubr.f32.mxu1 %v1413_v7 }
  0x6c   : > { %407 = vmatmul.mubr.f32.gmra.mrb[30].mxu0 %v191_v16  ;;  %503 = vmatmul.mubr.f32.gmra.mrb[30].mxu1 %v207_v17 }
 0x103   : > { %v318_v25 = vpop.f32.mrb[0].mxu0  ;;  %v414_v26 = vpop.f32.mrb[0].mxu1 }
 0x104   : > { %v1620_v7 = vadd.f32 %v318_v25, %v1615_v23  ;;  %v1623_v27 = vadd.f32 %v414_v26, %v1615_v23  ;;  %v320_v28 = vpop.f32.mrb[1].mxu0  ;;  %v416_v29 = vpop.f32.mrb[1].mxu1 }
 0x105   : > { %v1626_v30 = vadd.f32 %v320_v28, %v1617_v24  ;;  %v1629_v31 = vadd.f32 %v416_v29, %v1617_v24 }
 0x106   : > { %v509_v32 = vmul.f32 %v1620_v7, %v1620_v7  ;;  %v541_v33 = vmul.f32 %v1623_v27, %v1623_v27 }
 0x107   : > { %v510_v34 = vmul.f32 %v1626_v30, %v1626_v30  ;;  %v542_v35 = vmul.f32 %v1629_v31, %v1629_v31  ;;  %v324_v36 = vpop.f32.mrb[2].mxu0  ;;  %v420_v37 = vpop.f32.mrb[2].mxu1 }
 0x108   : > { %v573_v38 = vmul.f32 %v509_v32, %v1620_v7  ;;  %v605_v39 = vmul.f32 %v541_v33, %v1623_v27  ;;  %v1642_v40 = vadd.f32 %v324_v36, %v1615_v23  ;;  %v1645_v41 = vadd.f32 %v420_v37, %v1615_v23  ;;  %v326_v42 = vpop.f32.mrb[3].mxu0  ;;  %v422_v43 = vpop.f32.mrb[3].mxu1 }
 0x109   : > { %v574_v44 = vmul.f32 %v510_v34, %v1626_v30  ;;  %v606_v45 = vmul.f32 %v542_v35, %v1629_v31  ;;  %v1650_v46 = vadd.f32 %v326_v42, %v1617_v24  ;;  %v1653_v47 = vadd.f32 %v422_v43, %v1617_v24 }
 0x10a   : > { %v637_v48 = vmul.f32 0.044715, %v573_v38  ;;  %v669_v49 = vmul.f32 0.044715, %v605_v39  ;;  %v511_v50 = vmul.f32 %v1642_v40, %v1642_v40  ;;  %v543_v51 = vmul.f32 %v1645_v41, %v1645_v41 }
 0x10b   : > { %v638_v52 = vmul.f32 0.044715, %v574_v44  ;;  %v670_v53 = vmul.f32 0.044715, %v606_v45  ;;  %v512_v54 = vmul.f32 %v1650_v46, %v1650_v46  ;;  %v544_v55 = vmul.f32 %v1653_v47, %v1653_v47  ;;  %v330_v56 = vpop.f32.mrb[4].mxu0  ;;  %v426_v57 = vpop.f32.mrb[4].mxu1 }
 0x10c   : > { %v701_v58 = vadd.f32 %v637_v48, %v1620_v7  ;;  %v733_v59 = vadd.f32 %v669_v49, %v1623_v27  ;;  %v575_v60 = vmul.f32 %v511_v50, %v1642_v40  ;;  %v607_v61 = vmul.f32 %v543_v51, %v1645_v41  ;;  %v332_v62 = vpop.f32.mrb[5].mxu0  ;;  %v428_v63 = vpop.f32.mrb[5].mxu1 }
 0x10d   : > { %v702_v0 = vadd.f32 %v638_v52, %v1626_v30  ;;  %v734_v1 = vadd.f32 %v670_v53, %v1629_v31  ;;  %v576_v2 = vmul.f32 %v512_v54, %v1650_v46  ;;  %v608_v3 = vmul.f32 %v544_v55, %v1653_v47 }
 0x10e   : > { %v765_v4 = vmul.f32 0.7978846, %v701_v58  ;;  %v797_v5 = vmul.f32 0.7978846, %v733_v59  ;;  %v639_v6 = vmul.f32 0.044715, %v575_v60  ;;  %v1672_v8 = vadd.f32 %v330_v56, %v1615_v23 }
 0x10f   : > { %v766_v9 = vmul.f32 0.7978846, %v702_v0  ;;  %v798_v10 = vmul.f32 0.7978846, %v734_v1  ;;  %v671_v11 = vmul.f32 0.044715, %v607_v61  ;;  %v1675_v12 = vadd.f32 %v426_v57, %v1615_v23 }
 0x110   : > { %1277 = vtanh.f32 %v765_v4  ;;  %v703_v13 = vadd.f32 %v639_v6, %v1642_v40  ;;  %v640_v14 = vmul.f32 0.044715, %v576_v2  ;;  %v672_v15 = vmul.f32 0.044715, %v608_v3  ;;  %v336_v16 = vpop.f32.mrb[6].mxu0  ;;  %v432_v17 = vpop.f32.mrb[6].mxu1 }
 0x111   : > { %1279 = vtanh.f32 %v797_v5  ;;  %v735_v18 = vadd.f32 %v671_v11, %v1645_v41  ;;  %v513_v19 = vmul.f32 %v1672_v8, %v1672_v8  ;;  %v545_v20 = vmul.f32 %v1675_v12, %v1675_v12  ;;  %v338_v21 = vpop.f32.mrb[7].mxu0  ;;  %v434_v22 = vpop.f32.mrb[7].mxu1 }
 0x112   : > { %1281 = vtanh.f32 %v766_v9  ;;  %v767_v25 = vmul.f32 0.7978846, %v703_v13  ;;  %v704_v26 = vadd.f32 %v640_v14, %v1650_v46  ;;  %v736_v28 = vadd.f32 %v672_v15, %v1653_v47 }
 0x113   : > { %1283 = vtanh.f32 %v798_v10  ;;  %v799_v29 = vmul.f32 0.7978846, %v735_v18  ;;  %v577_v32 = vmul.f32 %v513_v19, %v1672_v8  ;;  %v609_v33 = vmul.f32 %v545_v20, %v1675_v12  ;;  %v1687_v34 = vpop.f32.mrb[8].mxu0  ;;  %v1689_v35 = vpop.f32.mrb[8].mxu1 }
 0x114   : > { %1285 = vtanh.f32 %v767_v25  ;;  %v768_v36 = vmul.f32 0.7978846, %v704_v26  ;;  %v800_v37 = vmul.f32 0.7978846, %v736_v28  ;;  %v1692_v38 = vadd.f32 %v332_v62, %v1617_v24  ;;  %v1694_v39 = vpop.f32.mrb[9].mxu0  ;;  %v1696_v42 = vpop.f32.mrb[9].mxu1 }
 0x115   : > { %1287 = vtanh.f32 %v799_v29  ;;  %v641_v43 = vmul.f32 0.044715, %v577_v32  ;;  %v673_v44 = vmul.f32 0.044715, %v609_v33  ;;  %v1699_v45 = vadd.f32 %v428_v63, %v1617_v24 }
 0x116   : > { %1289 = vtanh.f32 %v768_v36  ;;  %v514_v48 = vmul.f32 %v1692_v38, %v1692_v38  ;;  %v1704_v49 = vadd.f32 %v336_v16, %v1615_v23  ;;  %v1707_v50 = vadd.f32 %v432_v17, %v1615_v23 }
 0x117   : > { %1291 = vtanh.f32 %v800_v37  ;;  %v705_v51 = vadd.f32 %v641_v43, %v1672_v8  ;;  %v737_v52 = vadd.f32 %v673_v44, %v1675_v12  ;;  %v546_v53 = vmul.f32 %v1699_v45, %v1699_v45  ;;  %v1713_v54 = vpop.f32.mrb[10].mxu0  ;;  %v1715_v55 = vpop.f32.mrb[10].mxu1 }
 0x118   : > { %v578_v56 = vmul.f32 %v514_v48, %v1692_v38  ;;  %v515_v57 = vmul.f32 %v1704_v49, %v1704_v49  ;;  %v547_v58 = vmul.f32 %v1707_v50, %v1707_v50  ;;  %v1723_v59 = vadd.f32 %v338_v21, %v1617_v24  ;;  %v1725_v60 = vpop.f32.mrb[11].mxu0  ;;  %v1727_v61 = vpop.f32.mrb[11].mxu1 }
 0x119   : > { %v769_v62 = vmul.f32 0.7978846, %v705_v51  ;;  %v801_v63 = vmul.f32 0.7978846, %v737_v52  ;;  %v610_v0 = vmul.f32 %v546_v53, %v1699_v45  ;;  %v1731_v1 = vadd.f32 %v434_v22, %v1617_v24 }
 0x11a   : > { %v1278_v2 = vpop.eup %1277  ;;  %v642_v3 = vmul.f32 0.044715, %v578_v56  ;;  %v579_v4 = vmul.f32 %v515_v57, %v1704_v49  ;;  %v611_v5 = vmul.f32 %v547_v58, %v1707_v50  ;;  %v516_v6 = vmul.f32 %v1723_v59, %v1723_v59 }
 0x11b   : > { %v1280_v9 = vpop.eup %1279  ;;  %v893_v10 = vadd.f32 1.0, %v1278_v2  ;;  %1293 = vtanh.f32 %v769_v62  ;;  %v674_v11 = vmul.f32 0.044715, %v610_v0  ;;  %v548_v13 = vmul.f32 %v1731_v1, %v1731_v1  ;;  %v1740_v14 = vpop.f32.mrb[12].mxu0 }
 0x11c   : > { %v1742_v15 = vpop.f32.mrb[12].mxu1  ;;  %v1282_v16 = vpop.eup %1281  ;;  %v925_v17 = vadd.f32 1.0, %v1280_v9  ;;  %1295 = vtanh.f32 %v801_v63  ;;  %v706_v18 = vadd.f32 %v642_v3, %v1692_v38  ;;  %v643_v19 = vmul.f32 0.044715, %v579_v4 }
 0x11d   : > { %v1745_v20 = vpop.f32.mrb[13].mxu0  ;;  %v1747_v21 = vpop.f32.mrb[13].mxu1  ;;  %v957_v25 = vmul.f32 0.5, %v893_v10  ;;  %v894_v26 = vadd.f32 1.0, %v1282_v16  ;;  %v738_v28 = vadd.f32 %v674_v11, %v1699_v45  ;;  %v675_v29 = vmul.f32 0.044715, %v611_v5 }
 0x11e   : > { %v1284_v22 = vpop.eup %1283  ;;  %v989_v33 = vmul.f32 0.5, %v925_v17  ;;  %v770_v37 = vmul.f32 0.7978846, %v706_v18  ;;  %v707_v43 = vadd.f32 %v643_v19, %v1704_v49 }
 0x11f   : > { %v1286_v32 = vpop.eup %1285  ;;  %v926_v36 = vadd.f32 1.0, %v1284_v22  ;;  %v1021_v48 = vmul.f32 %v957_v25, %v1620_v7  ;;  %v958_v51 = vmul.f32 0.5, %v894_v26  ;;  %v802_v53 = vmul.f32 0.7978846, %v738_v28  ;;  %v1757_v56 = vpop.f32.mrb[14].mxu0 }
 0x120   : > { %v1288_v44 = vpop.eup %1287  ;;  %v895_v52 = vadd.f32 1.0, %v1286_v32  ;;  %v1759_v57 = vpop.f32.mrb[14].mxu1  ;;  %v1053_v62 = vmul.f32 %v989_v33, %v1623_v27  ;;  %1297 = vtanh.f32 %v770_v37  ;;  %v771_v16 = vmul.f32 0.7978846, %v707_v43 }
 0x121   : > { %v1290_v58 = vpop.eup %1289  ;;  %v990_v63 = vmul.f32 0.5, %v926_v36  ;;  %v927_v0 = vadd.f32 1.0, %v1288_v44  ;;  %v1762_v2 = vpop.f32.mrb[15].mxu0  ;;  %1085 = vst [vmem:[%s1753_s10] sm:$0xff] %v1021_v48  ;;  %v1022_v4 = vmul.f32 %v958_v51, %v1626_v30  ;;  %1299 = vtanh.f32 %v802_v53 }
 0x122   : > { %v1764_v3 = vpop.f32.mrb[15].mxu1  ;;  %v1292_v7 = vpop.eup %1291  ;;  %v959_v5 = vmul.f32 0.5, %v895_v52  ;;  %v896_v9 = vadd.f32 1.0, %v1290_v58  ;;  %1117 = vst [vmem:[%s1753_s10 + $0x100] sm:$0xff] %v1053_v62  ;;  %v739_v19 = vadd.f32 %v675_v29, %v1707_v50  ;;  %v580_v22 = vmul.f32 %v516_v6, %v1723_v59 }
 0x123   : > { %v1054_v10 = vmul.f32 %v990_v63, %v1629_v31  ;;  %v991_v27 = vmul.f32 0.5, %v927_v0  ;;  %v928_v11 = vadd.f32 1.0, %v1292_v7  ;;  %1086 = vst [vmem:[%s1753_s10 + $0x8] sm:$0xff] %v1022_v4  ;;  %v1774_v30 = vpop.f32.mrb[16].mxu0  ;;  %v1776_v25 = vpop.f32.mrb[16].mxu1  ;;  %1301 = vtanh.f32 %v771_v16 }
 0x124   : > { %v1023_v17 = vmul.f32 %v959_v5, %v1642_v40  ;;  %v960_v18 = vmul.f32 0.5, %v896_v9  ;;  %v612_v28 = vmul.f32 %v548_v13, %v1731_v1  ;;  %v1781_v32 = vpop.f32.mrb[17].mxu0  ;;  %v1783_v40 = vpop.f32.mrb[17].mxu1  ;;  %v803_v33 = vmul.f32 0.7978846, %v739_v19 }
 0x125   : > { %1118 = vst [vmem:[%s1753_s10 + $0x108] sm:$0xff] %v1054_v10  ;;  %v1055_v31 = vmul.f32 %v991_v27, %v1645_v41  ;;  %v992_v26 = vmul.f32 0.5, %v928_v11  ;;  %v1294_v29 = vpop.eup %1293  ;;  %v644_v36 = vmul.f32 0.044715, %v580_v22  ;;  %v1789_v37 = vadd.f32 %v1687_v34, %v1615_v23 }
 0x126   : > { %1087 = vst [vmem:[%s1753_s10 + $0x10] sm:$0xff] %v1023_v17  ;;  %v1024_v6 = vmul.f32 %v960_v18, %v1650_v46  ;;  %v1296_v41 = vpop.eup %1295  ;;  %v897_v13 = vadd.f32 1.0, %v1294_v29  ;;  %v676_v44 = vmul.f32 0.044715, %v612_v28  ;;  %v1795_v48 = vadd.f32 %v1689_v35, %v1615_v23 }
 0x127   : > { %1119 = vst [vmem:[%s1753_s10 + $0x110] sm:$0xff] %v1055_v31  ;;  %v1056_v43 = vmul.f32 %v992_v26, %v1653_v47  ;;  %v929_v51 = vadd.f32 1.0, %v1296_v41  ;;  %1303 = vtanh.f32 %v803_v33  ;;  %v708_v46 = vadd.f32 %v644_v36, %v1723_v59  ;;  %v1801_v34 = vpop.f32.mrb[18].mxu0  ;;  %v1803_v53 = vpop.f32.mrb[18].mxu1 }
 0x128   : > { %1088 = vst [vmem:[%s1753_s10 + $0x18] sm:$0xff] %v1024_v6  ;;  %v517_v52 = vmul.f32 %v1789_v37, %v1789_v37  ;;  %v961_v47 = vmul.f32 0.5, %v897_v13  ;;  %v740_v58 = vadd.f32 %v676_v44, %v1731_v1  ;;  %v549_v35 = vmul.f32 %v1795_v48, %v1795_v48  ;;  %v1813_v63 = vpop.f32.mrb[19].mxu0  ;;  %v1815_v0 = vpop.f32.mrb[19].mxu1 }
 0x129   : > { %1120 = vst [vmem:[%s1753_s10 + $0x118] sm:$0xff] %v1056_v43  ;;  %v1811_v62 = vadd.f32 %v1694_v39, %v1617_v24  ;;  %v993_v7 = vmul.f32 0.5, %v929_v51  ;;  %v772_v4 = vmul.f32 0.7978846, %v708_v46  ;;  %v1820_v9 = vadd.f32 %v1696_v42, %v1617_v24 }
 0x12a   : > { %v581_v5 = vmul.f32 %v517_v52, %v1789_v37  ;;  %v1298_v10 = vpop.eup %1297  ;;  %v1025_v27 = vmul.f32 %v961_v47, %v1672_v8  ;;  %v804_v11 = vmul.f32 0.7978846, %v740_v58  ;;  %v613_v39 = vmul.f32 %v549_v35, %v1795_v48 }
 0x12b   : > { %v518_v16 = vmul.f32 %v1811_v62, %v1811_v62  ;;  %v1300_v17 = vpop.eup %1299  ;;  %v1057_v18 = vmul.f32 %v993_v7, %v1675_v12  ;;  %v898_v19 = vadd.f32 1.0, %v1298_v10  ;;  %1305 = vtanh.f32 %v772_v4  ;;  %v1827_v31 = vpop.f32.mrb[20].mxu0 }
 0x12c   : > { %v645_v22 = vmul.f32 0.044715, %v581_v5  ;;  %v1829_v42 = vpop.f32.mrb[20].mxu1  ;;  %1089 = vst [vmem:[%s1753_s10 + $0x20] sm:$0xff] %v1025_v27  ;;  %v930_v26 = vadd.f32 1.0, %v1300_v17  ;;  %1307 = vtanh.f32 %v804_v11  ;;  %v1833_v29 = vpop.f32.mrb[21].mxu0  ;;  %v550_v36 = vmul.f32 %v1820_v9, %v1820_v9 }
 0x12d   : > { %v677_v8 = vmul.f32 0.044715, %v613_v39  ;;  %v582_v28 = vmul.f32 %v518_v16, %v1811_v62  ;;  %v1835_v6 = vpop.f32.mrb[21].mxu1  ;;  %1121 = vst [vmem:[%s1753_s10 + $0x120] sm:$0xff] %v1057_v18  ;;  %v962_v33 = vmul.f32 0.5, %v898_v19  ;;  %v1843_v41 = vadd.f32 %v1713_v54, %v1615_v23  ;;  %v1302_v43 = vpop.eup %1301 }
 0x12e   : > { %v709_v12 = vadd.f32 %v645_v22, %v1789_v37  ;;  %v994_v13 = vmul.f32 0.5, %v930_v26  ;;  %v1848_v46 = vadd.f32 %v1715_v55, %v1615_v23  ;;  %v899_v47 = vadd.f32 1.0, %v1302_v43 }
 0x12f   : > { %v741_v44 = vadd.f32 %v677_v8, %v1795_v48  ;;  %v646_v51 = vmul.f32 0.044715, %v582_v28  ;;  %v1026_v52 = vmul.f32 %v962_v33, %v1692_v38  ;;  %v614_v35 = vmul.f32 %v550_v36, %v1820_v9  ;;  %v1852_v7 = vpop.f32.mrb[22].mxu0  ;;  %v1854_v54 = vpop.f32.mrb[22].mxu1 }
 0x130   : > { %v773_v58 = vmul.f32 0.7978846, %v709_v12  ;;  %v1058_v4 = vmul.f32 %v994_v13, %v1699_v45  ;;  %v519_v55 = vmul.f32 %v1843_v41, %v1843_v41  ;;  %v1860_v27 = vpop.f32.mrb[23].mxu0  ;;  %v1862_v38 = vpop.f32.mrb[23].mxu1  ;;  %v963_v39 = vmul.f32 0.5, %v899_v47 }
 0x131   : > { %v805_v5 = vmul.f32 0.7978846, %v741_v44  ;;  %v710_v10 = vadd.f32 %v646_v51, %v1811_v62  ;;  %v1304_v11 = vpop.eup %1303  ;;  %1090 = vst [vmem:[%s1753_s10 + $0x28] sm:$0xff] %v1026_v52  ;;  %v678_v16 = vmul.f32 0.044715, %v614_v35  ;;  %v551_v17 = vmul.f32 %v1848_v46, %v1848_v46 }
 0x132   : > { %1309 = vtanh.f32 %v773_v58  ;;  %1122 = vst [vmem:[%s1753_s10 + $0x128] sm:$0xff] %v1058_v4  ;;  %v931_v45 = vadd.f32 1.0, %v1304_v11  ;;  %v583_v19 = vmul.f32 %v519_v55, %v1843_v41  ;;  %v1027_v22 = vmul.f32 %v963_v39, %v1704_v49 }
 0x133   : > { %1311 = vtanh.f32 %v805_v5  ;;  %v774_v18 = vmul.f32 0.7978846, %v710_v10  ;;  %v742_v26 = vadd.f32 %v678_v16, %v1820_v9  ;;  %v615_v8 = vmul.f32 %v551_v17, %v1848_v46  ;;  %v1876_v33 = vpop.f32.mrb[24].mxu0  ;;  %v1878_v12 = vpop.f32.mrb[24].mxu1 }
 0x134   : > { %v1874_v28 = vadd.f32 %v1725_v60, %v1617_v24  ;;  %v995_v36 = vmul.f32 0.5, %v931_v45  ;;  %v647_v43 = vmul.f32 0.044715, %v583_v19  ;;  %v1882_v13 = vadd.f32 %v1727_v61, %v1617_v24  ;;  %v1884_v49 = vpop.f32.mrb[25].mxu0  ;;  %v1886_v44 = vpop.f32.mrb[25].mxu1  ;;  %1091 = vst [vmem:[%s1753_s10 + $0x30] sm:$0xff] %v1027_v22 }
 0x135   : > { %1313 = vtanh.f32 %v774_v18  ;;  %v1306_v51 = vpop.eup %1305  ;;  %v806_v60 = vmul.f32 0.7978846, %v742_v26  ;;  %v679_v52 = vmul.f32 0.044715, %v615_v8  ;;  %v1893_v58 = vadd.f32 %v1740_v14, %v1615_v23 }
 0x136   : > { %v520_v47 = vmul.f32 %v1874_v28, %v1874_v28  ;;  %v1308_v35 = vpop.eup %1307  ;;  %v1059_v61 = vmul.f32 %v995_v36, %v1707_v50  ;;  %v900_v4 = vadd.f32 1.0, %v1306_v51  ;;  %v711_v5 = vadd.f32 %v647_v43, %v1843_v41 }
 0x137   : > { %v552_v10 = vmul.f32 %v1882_v13, %v1882_v13  ;;  %v932_v55 = vadd.f32 1.0, %v1308_v35  ;;  %1315 = vtanh.f32 %v806_v60  ;;  %v743_v11 = vadd.f32 %v679_v52, %v1848_v46  ;;  %v1901_v16 = vpop.f32.mrb[26].mxu0  ;;  %v1903_v17 = vpop.f32.mrb[26].mxu1 }
 0x138   : > { %v584_v39 = vmul.f32 %v520_v47, %v1874_v28  ;;  %1123 = vst [vmem:[%s1753_s10 + $0x130] sm:$0xff] %v1059_v61  ;;  %v964_v14 = vmul.f32 0.5, %v900_v4  ;;  %v775_v45 = vmul.f32 0.7978846, %v711_v5  ;;  %v521_v18 = vmul.f32 %v1893_v58, %v1893_v58  ;;  %v1909_v19 = vpop.f32.mrb[27].mxu0  ;;  %v1911_v22 = vpop.f32.mrb[27].mxu1 }
 0x139   : > { %v616_v50 = vmul.f32 %v552_v10, %v1882_v13  ;;  %v996_v26 = vmul.f32 0.5, %v932_v55  ;;  %v807_v8 = vmul.f32 0.7978846, %v743_v11  ;;  %v1915_v43 = vadd.f32 %v1742_v15, %v1615_v23 }
 0x13a   : > { %v648_v36 = vmul.f32 0.044715, %v584_v39  ;;  %v1028_v51 = vmul.f32 %v964_v14, %v1723_v59  ;;  %1317 = vtanh.f32 %v775_v45  ;;  %v585_v52 = vmul.f32 %v521_v18, %v1893_v58 }
 0x13b   : > { %v680_v60 = vmul.f32 0.044715, %v616_v50  ;;  %v1060_v35 = vmul.f32 %v996_v26, %v1731_v1  ;;  %1319 = vtanh.f32 %v807_v8  ;;  %v553_v4 = vmul.f32 %v1915_v43, %v1915_v43  ;;  %v1923_v5 = vpop.f32.mrb[28].mxu0  ;;  %v1925_v15 = vpop.f32.mrb[28].mxu1 }
 0x13c   : > { %v1310_v47 = vpop.eup %1309  ;;  %v712_v61 = vadd.f32 %v648_v36, %v1874_v28  ;;  %1092 = vst [vmem:[%s1753_s10 + $0x38] sm:$0xff] %v1028_v51  ;;  %v649_v11 = vmul.f32 0.044715, %v585_v52  ;;  %v1931_v39 = vadd.f32 %v1745_v20, %v1617_v24  ;;  %v1933_v1 = vpop.f32.mrb[29].mxu0  ;;  %v1941_v26 = vadd.f32 %v1747_v21, %v1617_v24 }
 0x13d   : > { %v1312_v10 = vpop.eup %1311  ;;  %v901_v59 = vadd.f32 1.0, %v1310_v47  ;;  %v744_v55 = vadd.f32 %v680_v60, %v1882_v13  ;;  %v1935_v14 = vpop.f32.mrb[29].mxu1  ;;  %1124 = vst [vmem:[%s1753_s10 + $0x138] sm:$0xff] %v1060_v35  ;;  %v617_v18 = vmul.f32 %v553_v4, %v1915_v43 }
 0x13e   : > { %v933_v45 = vadd.f32 1.0, %v1312_v10  ;;  %v776_v50 = vmul.f32 0.7978846, %v712_v61  ;;  %v713_v60 = vadd.f32 %v649_v11, %v1893_v58  ;;  %v522_v20 = vmul.f32 %v1931_v39, %v1931_v39 }
 0x13f   : > { %v1314_v8 = vpop.eup %1313  ;;  %v965_v36 = vmul.f32 0.5, %v901_v59  ;;  %v808_v51 = vmul.f32 0.7978846, %v744_v55  ;;  %v681_v35 = vmul.f32 0.044715, %v617_v18  ;;  %v1946_v61 = vpop.f32.mrb[30].mxu0 }
 0x140   : > { %v997_v52 = vmul.f32 0.5, %v933_v45  ;;  %v902_v47 = vadd.f32 1.0, %v1314_v8  ;;  %1321 = vtanh.f32 %v776_v50  ;;  %v1948_v4 = vpop.f32.mrb[30].mxu1  ;;  %v777_v10 = vmul.f32 0.7978846, %v713_v60  ;;  %v1952_v55 = vpop.f32.mrb[31].mxu0 }
 0x141   : > { %2345 = vst [vmem:[#allocation2_spill] sm:$0xff] %v1948_v4  ;;  %v1029_v21 = vmul.f32 %v965_v36, %v1789_v37  ;;  %1323 = vtanh.f32 %v808_v51  ;;  %v586_v59 = vmul.f32 %v522_v20, %v1931_v39  ;;  %v1954_v11 = vpop.f32.mrb[31].mxu1  ;;  %v1316_v45 = vpop.eup %1315  ;;  %v745_v18 = vadd.f32 %v681_v35, %v1915_v43 }
 0x142   : > { %v1061_v8 = vmul.f32 %v997_v52, %v1795_v48  ;;  %v966_v50 = vmul.f32 0.5, %v902_v47  ;;  %v554_v4 = vmul.f32 %v1941_v26, %v1941_v26  ;;  %v934_v37 = vadd.f32 1.0, %v1316_v45 }
 0x143   : > { %1093 = vst [vmem:[%s1753_s10 + $0x40] sm:$0xff] %v1029_v21  ;;  %1325 = vtanh.f32 %v777_v10  ;;  %v650_v36 = vmul.f32 0.044715, %v586_v59  ;;  %v1963_v51 = vadd.f32 %v1757_v56, %v1615_v23  ;;  %v809_v20 = vmul.f32 0.7978846, %v745_v18 }
 0x144   : > { %1125 = vst [vmem:[%s1753_s10 + $0x140] sm:$0xff] %v1061_v8  ;;  %v1030_v60 = vmul.f32 %v966_v50, %v1811_v62  ;;  %v618_v48 = vmul.f32 %v554_v4, %v1941_v26  ;;  %v1970_v52 = vadd.f32 %v1759_v57, %v1615_v23  ;;  %v1318_v47 = vpop.eup %1317  ;;  %v998_v35 = vmul.f32 0.5, %v934_v37 }
 0x145   : > { %v714_v21 = vadd.f32 %v650_v36, %v1931_v39  ;;  %v523_v10 = vmul.f32 %v1963_v51, %v1963_v51  ;;  %v1977_v56 = vadd.f32 %v1762_v2, %v1617_v24  ;;  %v1320_v62 = vpop.eup %1319  ;;  %v903_v59 = vadd.f32 1.0, %v1318_v47 }
 0x146   : > { %1094 = vst [vmem:[%s1753_s10 + $0x48] sm:$0xff] %v1030_v60  ;;  %1327 = vtanh.f32 %v809_v20  ;;  %v682_v4 = vmul.f32 0.044715, %v618_v48  ;;  %v555_v57 = vmul.f32 %v1970_v52, %v1970_v52  ;;  %v1062_v45 = vmul.f32 %v998_v35, %v1820_v9 }
 0x147   : > { %v935_v8 = vadd.f32 1.0, %v1320_v62  ;;  %v778_v50 = vmul.f32 0.7978846, %v714_v21  ;;  %v587_v18 = vmul.f32 %v523_v10, %v1963_v51  ;;  %v967_v37 = vmul.f32 0.5, %v903_v59 }
 0x148   : > { %v746_v36 = vadd.f32 %v682_v4, %v1941_v26  ;;  %v619_v2 = vmul.f32 %v555_v57, %v1970_v52  ;;  %v524_v60 = vmul.f32 %v1977_v56, %v1977_v56  ;;  %1126 = vst [vmem:[%s1753_s10 + $0x148] sm:$0xff] %v1062_v45  ;;  %v1991_v9 = vadd.f32 %v1764_v3, %v1617_v24 }
 0x149   : > { %v999_v20 = vmul.f32 0.5, %v935_v8  ;;  %1329 = vtanh.f32 %v778_v50  ;;  %v651_v48 = vmul.f32 0.044715, %v587_v18  ;;  %v1031_v35 = vmul.f32 %v967_v37, %v1843_v41 }
 0x14a   : > { %v1322_v47 = vpop.eup %1321  ;;  %v810_v21 = vmul.f32 0.7978846, %v746_v36  ;;  %v683_v10 = vmul.f32 0.044715, %v619_v2  ;;  %v588_v62 = vmul.f32 %v524_v60, %v1977_v56  ;;  %v556_v8 = vmul.f32 %v1991_v9, %v1991_v9 }
 0x14b   : > { %v1324_v59 = vpop.eup %1323  ;;  %v1063_v4 = vmul.f32 %v999_v20, %v1848_v46  ;;  %v904_v57 = vadd.f32 1.0, %v1322_v47  ;;  %v715_v45 = vadd.f32 %v651_v48, %v1963_v51  ;;  %1095 = vst [vmem:[%s1753_s10 + $0x50] sm:$0xff] %v1031_v35  ;;  %v2005_v46 = vadd.f32 %v1774_v30, %v1615_v23 }
 0x14c   : > { %v936_v3 = vadd.f32 1.0, %v1324_v59  ;;  %1331 = vtanh.f32 %v810_v21  ;;  %v747_v50 = vadd.f32 %v683_v10, %v1970_v52  ;;  %v652_v18 = vmul.f32 0.044715, %v588_v62 }
 0x14d   : > { %v1326_v41 = vpop.eup %1325  ;;  %1127 = vst [vmem:[%s1753_s10 + $0x150] sm:$0xff] %v1063_v4  ;;  %v968_v37 = vmul.f32 0.5, %v904_v57  ;;  %v779_v36 = vmul.f32 0.7978846, %v715_v45  ;;  %v620_v2 = vmul.f32 %v556_v8, %v1991_v9  ;;  %v525_v10 = vmul.f32 %v2005_v46, %v2005_v46 }
 0x14e   : > { %v1000_v60 = vmul.f32 0.5, %v936_v3  ;;  %v905_v20 = vadd.f32 1.0, %v1326_v41  ;;  %v811_v48 = vmul.f32 0.7978846, %v747_v50  ;;  %v716_v47 = vadd.f32 %v652_v18, %v1977_v56 }
 0x14f   : > { %v1032_v35 = vmul.f32 %v968_v37, %v1874_v28  ;;  %1333 = vtanh.f32 %v779_v36  ;;  %v684_v21 = vmul.f32 0.044715, %v620_v2  ;;  %v589_v8 = vmul.f32 %v525_v10, %v2005_v46 }
 0x150   : > { %v1328_v62 = vpop.eup %1327  ;;  %v1064_v59 = vmul.f32 %v1000_v60, %v1882_v13  ;;  %v969_v4 = vmul.f32 0.5, %v905_v20  ;;  %1335 = vtanh.f32 %v811_v48  ;;  %v780_v30 = vmul.f32 0.7978846, %v716_v47 }
 0x151   : > { %1096 = vst [vmem:[%s1753_s10 + $0x58] sm:$0xff] %v1032_v35  ;;  %v937_v57 = vadd.f32 1.0, %v1328_v62  ;;  %v748_v45 = vadd.f32 %v684_v21, %v1991_v9  ;;  %v2017_v28 = vadd.f32 %v1776_v25, %v1615_v23  ;;  %v2023_v13 = vadd.f32 %v1781_v32, %v1617_v24 }
 0x152   : > { %1128 = vst [vmem:[%s1753_s10 + $0x158] sm:$0xff] %v1064_v59  ;;  %v1033_v3 = vmul.f32 %v969_v4, %v1893_v58  ;;  %1337 = vtanh.f32 %v780_v30  ;;  %v2027_v50 = vadd.f32 %v1783_v40, %v1617_v24  ;;  %v653_v36 = vmul.f32 0.044715, %v589_v8 }
 0x153   : > { %v1330_v18 = vpop.eup %1329  ;;  %v1001_v41 = vmul.f32 0.5, %v937_v57  ;;  %v812_v37 = vmul.f32 0.7978846, %v748_v45  ;;  %v557_v25 = vmul.f32 %v2017_v28, %v2017_v28  ;;  %v526_v58 = vmul.f32 %v2023_v13, %v2023_v13 }
 0x154   : > { %1097 = vst [vmem:[%s1753_s10 + $0x60] sm:$0xff] %v1033_v3  ;;  %v906_v2 = vadd.f32 1.0, %v1330_v18  ;;  %v558_v32 = vmul.f32 %v2027_v50, %v2027_v50  ;;  %v2038_v40 = vadd.f32 %v1801_v34, %v1615_v23  ;;  %v717_v20 = vadd.f32 %v653_v36, %v2005_v46 }
 0x155   : > { %v1065_v60 = vmul.f32 %v1001_v41, %v1915_v43  ;;  %1339 = vtanh.f32 %v812_v37  ;;  %v621_v48 = vmul.f32 %v557_v25, %v2017_v28  ;;  %v590_v21 = vmul.f32 %v526_v58, %v2023_v13 }
 0x156   : > { %v1332_v47 = vpop.eup %1331  ;;  %v970_v35 = vmul.f32 0.5, %v906_v2  ;;  %v622_v10 = vmul.f32 %v558_v32, %v2027_v50  ;;  %v527_v62 = vmul.f32 %v2038_v40, %v2038_v40  ;;  %v781_v59 = vmul.f32 0.7978846, %v717_v20 }
 0x157   : > { %1129 = vst [vmem:[%s1753_s10 + $0x160] sm:$0xff] %v1065_v60  ;;  %v938_v34 = vadd.f32 1.0, %v1332_v47  ;;  %v685_v4 = vmul.f32 0.044715, %v621_v48  ;;  %v2050_v43 = vadd.f32 %v1803_v53, %v1615_v23  ;;  %v654_v57 = vmul.f32 0.044715, %v590_v21 }
 0x158   : > { %v1034_v30 = vmul.f32 %v970_v35, %v1931_v39  ;;  %v686_v45 = vmul.f32 0.044715, %v622_v10  ;;  %v591_v8 = vmul.f32 %v527_v62, %v2038_v40  ;;  %1341 = vtanh.f32 %v781_v59 }
 0x159   : > { %v1334_v3 = vpop.eup %1333  ;;  %v1002_v18 = vmul.f32 0.5, %v938_v34  ;;  %v749_v41 = vadd.f32 %v685_v4, %v2017_v28  ;;  %v559_v37 = vmul.f32 %v2050_v43, %v2050_v43  ;;  %v718_v53 = vadd.f32 %v654_v57, %v2023_v13 }
 0x15a   : > { %v1336_v36 = vpop.eup %1335  ;;  %1098 = vst [vmem:[%s1753_s10 + $0x68] sm:$0xff] %v1034_v30  ;;  %v907_v25 = vadd.f32 1.0, %v1334_v3  ;;  %v750_v39 = vadd.f32 %v686_v45, %v2027_v50  ;;  %v655_v2 = vmul.f32 0.044715, %v591_v8  ;;  %v2067_v30 = vadd.f32 %v1813_v63, %v1617_v24 }
 0x15b   : > { %v1066_v58 = vmul.f32 %v1002_v18, %v1941_v26  ;;  %v939_v32 = vadd.f32 1.0, %v1336_v36  ;;  %v813_v60 = vmul.f32 0.7978846, %v749_v41  ;;  %v623_v20 = vmul.f32 %v559_v37, %v2050_v43 }
 0x15c   : > { %v1338_v48 = vpop.eup %1337  ;;  %v971_v47 = vmul.f32 0.5, %v907_v25  ;;  %v782_v35 = vmul.f32 0.7978846, %v718_v53  ;;  %v814_v21 = vmul.f32 0.7978846, %v750_v39  ;;  %v719_v10 = vadd.f32 %v655_v2, %v2038_v40 }
 0x15d   : > { %1130 = vst [vmem:[%s1753_s10 + $0x168] sm:$0xff] %v1066_v58  ;;  %v1003_v62 = vmul.f32 0.5, %v939_v32  ;;  %v908_v34 = vadd.f32 1.0, %v1338_v48  ;;  %1343 = vtanh.f32 %v813_v60  ;;  %v687_v59 = vmul.f32 0.044715, %v623_v20 }
 0x15e   : > { %v1035_v4 = vmul.f32 %v971_v47, %v1963_v51  ;;  %1345 = vtanh.f32 %v782_v35  ;;  %v783_v26 = vmul.f32 0.7978846, %v719_v10  ;;  %v528_v51 = vmul.f32 %v2067_v30, %v2067_v30 }
 0x15f   : > { %v1340_v57 = vpop.eup %1339  ;;  %v1067_v45 = vmul.f32 %v1003_v62, %v1970_v52  ;;  %v972_v8 = vmul.f32 0.5, %v908_v34  ;;  %1347 = vtanh.f32 %v814_v21  ;;  %v751_v3 = vadd.f32 %v687_v59, %v2050_v43 }
 0x160   : > { %1099 = vst [vmem:[%s1753_s10 + $0x70] sm:$0xff] %v1035_v4  ;;  %v940_v18 = vadd.f32 1.0, %v1340_v57  ;;  %1349 = vtanh.f32 %v783_v26  ;;  %v2076_v41 = vadd.f32 %v1815_v0, %v1617_v24  ;;  %v2082_v52 = vadd.f32 %v1827_v31, %v1615_v23 }
 0x161   : > { %1131 = vst [vmem:[%s1753_s10 + $0x170] sm:$0xff] %v1067_v45  ;;  %v1036_v63 = vmul.f32 %v972_v8, %v1977_v56  ;;  %v815_v37 = vmul.f32 0.7978846, %v751_v3  ;;  %v2086_v36 = vadd.f32 %v1829_v42, %v1615_v23  ;;  %v592_v53 = vmul.f32 %v528_v51, %v2067_v30 }
 0x162   : > { %v1004_v25 = vmul.f32 0.5, %v940_v18  ;;  %v560_v39 = vmul.f32 %v2076_v41, %v2076_v41  ;;  %v2093_v0 = vadd.f32 %v1833_v29, %v1617_v24  ;;  %v1342_v56 = vpop.eup %1341  ;;  %v529_v31 = vmul.f32 %v2082_v52, %v2082_v52 }
 0x163   : > { %1100 = vst [vmem:[%s1753_s10 + $0x78] sm:$0xff] %v1036_v63  ;;  %1351 = vtanh.f32 %v815_v37  ;;  %v561_v42 = vmul.f32 %v2086_v36, %v2086_v36  ;;  %v2102_v2 = vadd.f32 %v1835_v6, %v1617_v24  ;;  %v909_v32 = vadd.f32 1.0, %v1342_v56 }
 0x164   : > { %v1068_v58 = vmul.f32 %v1004_v25, %v1991_v9  ;;  %v656_v60 = vmul.f32 0.044715, %v592_v53  ;;  %v624_v29 = vmul.f32 %v560_v39, %v2076_v41  ;;  %v593_v20 = vmul.f32 %v529_v31, %v2082_v52 }
 0x165   : > { %v625_v48 = vmul.f32 %v561_v42, %v2086_v36  ;;  %v530_v47 = vmul.f32 %v2093_v0, %v2093_v0  ;;  %v562_v35 = vmul.f32 %v2102_v2, %v2102_v2  ;;  %v973_v21 = vmul.f32 0.5, %v909_v32 }
 0x166   : > { %1132 = vst [vmem:[%s1753_s10 + $0x178] sm:$0xff] %v1068_v58  ;;  %v720_v6 = vadd.f32 %v656_v60, %v2067_v30  ;;  %v688_v10 = vmul.f32 0.044715, %v624_v29  ;;  %v2116_v9 = vadd.f32 %v1852_v7, %v1615_v23  ;;  %v657_v34 = vmul.f32 0.044715, %v593_v20 }
 0x167   : > { %v1344_v62 = vpop.eup %1343  ;;  %v689_v59 = vmul.f32 0.044715, %v625_v48  ;;  %v594_v4 = vmul.f32 %v530_v47, %v2093_v0  ;;  %v626_v26 = vmul.f32 %v562_v35, %v2102_v2  ;;  %v1037_v45 = vmul.f32 %v973_v21, %v2005_v46 }
 0x168   : > { %v1346_v57 = vpop.eup %1345  ;;  %v941_v8 = vadd.f32 1.0, %v1344_v62  ;;  %v784_v3 = vmul.f32 0.7978846, %v720_v6  ;;  %v752_v18 = vadd.f32 %v688_v10, %v2076_v41  ;;  %v721_v7 = vadd.f32 %v657_v34, %v2082_v52 }
 0x169   : > { %v1348_v51 = vpop.eup %1347  ;;  %v910_v63 = vadd.f32 1.0, %v1346_v57  ;;  %v753_v37 = vadd.f32 %v689_v59, %v2086_v36  ;;  %v658_v25 = vmul.f32 0.044715, %v594_v4  ;;  %1101 = vst [vmem:[%s1753_s10 + $0x80] sm:$0xff] %v1037_v45  ;;  %v690_v21 = vmul.f32 0.044715, %v626_v26 }
 0x16a   : > { %v1350_v53 = vpop.eup %1349  ;;  %v1005_v39 = vmul.f32 0.5, %v941_v8  ;;  %v942_v56 = vadd.f32 1.0, %v1348_v51  ;;  %1353 = vtanh.f32 %v784_v3  ;;  %v816_v31 = vmul.f32 0.7978846, %v752_v18 }
 0x16b   : > { %v974_v42 = vmul.f32 0.5, %v910_v63  ;;  %v911_v46 = vadd.f32 1.0, %v1350_v53  ;;  %v785_v58 = vmul.f32 0.7978846, %v721_v7  ;;  %v817_v32 = vmul.f32 0.7978846, %v753_v37 }
 0x16c   : > { %v1069_v60 = vmul.f32 %v1005_v39, %v2017_v28  ;;  %v1006_v29 = vmul.f32 0.5, %v942_v56  ;;  %1355 = vtanh.f32 %v816_v31  ;;  %v722_v20 = vadd.f32 %v658_v25, %v2093_v0 }
 0x16d   : > { %v1352_v48 = vpop.eup %1351  ;;  %v1038_v47 = vmul.f32 %v974_v42, %v2023_v13  ;;  %v975_v35 = vmul.f32 0.5, %v911_v46  ;;  %1357 = vtanh.f32 %v785_v58  ;;  %v754_v34 = vadd.f32 %v690_v21, %v2102_v2 }
 0x16e   : > { %1133 = vst [vmem:[%s1753_s10 + $0x180] sm:$0xff] %v1069_v60  ;;  %v1070_v6 = vmul.f32 %v1006_v29, %v2027_v50  ;;  %v943_v10 = vadd.f32 1.0, %v1352_v48  ;;  %1359 = vtanh.f32 %v817_v32  ;;  %v786_v62 = vmul.f32 0.7978846, %v722_v20 }
 0x16f   : > { %1102 = vst [vmem:[%s1753_s10 + $0x88] sm:$0xff] %v1038_v47  ;;  %v1039_v28 = vmul.f32 %v975_v35, %v2038_v40  ;;  %v531_v59 = vmul.f32 %v2116_v9, %v2116_v9  ;;  %v2137_v13 = vadd.f32 %v1854_v54, %v1615_v23  ;;  %v2142_v50 = vadd.f32 %v1860_v27, %v1617_v24 }
 0x170   : > { %1134 = vst [vmem:[%s1753_s10 + $0x188] sm:$0xff] %v1070_v6  ;;  %v1007_v4 = vmul.f32 0.5, %v943_v10  ;;  %1361 = vtanh.f32 %v786_v62  ;;  %v2146_v40 = vadd.f32 %v1862_v38, %v1617_v24  ;;  %v818_v26 = vmul.f32 0.7978846, %v754_v34 }
 0x171   : > { %1103 = vst [vmem:[%s1753_s10 + $0x90] sm:$0xff] %v1039_v28  ;;  %v595_v57 = vmul.f32 %v531_v59, %v2116_v9  ;;  %v563_v54 = vmul.f32 %v2137_v13, %v2137_v13  ;;  %v2154_v45 = vadd.f32 %v1876_v33, %v1615_v23  ;;  %v532_v27 = vmul.f32 %v2142_v50, %v2142_v50 }
 0x172   : > { %v1071_v8 = vmul.f32 %v1007_v4, %v2050_v43  ;;  %v564_v38 = vmul.f32 %v2146_v40, %v2146_v40  ;;  %v2163_v3 = vadd.f32 %v1878_v12, %v1615_v23  ;;  %1363 = vtanh.f32 %v818_v26 }
 0x173   : > { %v659_v18 = vmul.f32 0.044715, %v595_v57  ;;  %v627_v51 = vmul.f32 %v563_v54, %v2137_v13  ;;  %v533_v33 = vmul.f32 %v2154_v45, %v2154_v45  ;;  %v596_v43 = vmul.f32 %v532_v27, %v2142_v50 }
 0x174   : > { %v1354_v63 = vpop.eup %1353  ;;  %1135 = vst [vmem:[%s1753_s10 + $0x190] sm:$0xff] %v1071_v8  ;;  %v628_v7 = vmul.f32 %v564_v38, %v2146_v40  ;;  %v565_v37 = vmul.f32 %v2163_v3, %v2163_v3  ;;  %v2175_v12 = vadd.f32 %v1884_v49, %v1617_v24 }
 0x175   : > { %v912_v25 = vadd.f32 1.0, %v1354_v63  ;;  %v723_v53 = vadd.f32 %v659_v18, %v2116_v9  ;;  %v691_v39 = vmul.f32 0.044715, %v627_v51  ;;  %v597_v56 = vmul.f32 %v533_v33, %v2154_v45 }
 0x176   : > { %v1356_v31 = vpop.eup %1355  ;;  %v660_v42 = vmul.f32 0.044715, %v596_v43  ;;  %v692_v46 = vmul.f32 0.044715, %v628_v7  ;;  %v629_v58 = vmul.f32 %v565_v37, %v2163_v3  ;;  %v534_v32 = vmul.f32 %v2175_v12, %v2175_v12 }
 0x177   : > { %v1358_v60 = vpop.eup %1357  ;;  %v976_v29 = vmul.f32 0.5, %v912_v25  ;;  %v944_v20 = vadd.f32 1.0, %v1356_v31  ;;  %v787_v48 = vmul.f32 0.7978846, %v723_v53  ;;  %v755_v49 = vadd.f32 %v691_v39, %v2137_v13 }
 0x178   : > { %v1360_v47 = vpop.eup %1359  ;;  %v913_v35 = vadd.f32 1.0, %v1358_v60  ;;  %v724_v21 = vadd.f32 %v660_v42, %v2142_v50  ;;  %v756_v6 = vadd.f32 %v692_v46, %v2146_v40  ;;  %v661_v10 = vmul.f32 0.044715, %v597_v56 }
 0x179   : > { %v1040_v62 = vmul.f32 %v976_v29, %v2067_v30  ;;  %v1008_v28 = vmul.f32 0.5, %v944_v20  ;;  %v945_v34 = vadd.f32 1.0, %v1360_v47  ;;  %1365 = vtanh.f32 %v787_v48 }
 0x17a   : > { %v1362_v59 = vpop.eup %1361  ;;  %v977_v4 = vmul.f32 0.5, %v913_v35  ;;  %v819_v26 = vmul.f32 0.7978846, %v755_v49  ;;  %v788_v57 = vmul.f32 0.7978846, %v724_v21  ;;  %v725_v54 = vadd.f32 %v661_v10, %v2154_v45 }
 0x17b   : > { %1104 = vst [vmem:[%s1753_s10 + $0x98] sm:$0xff] %v1040_v62  ;;  %v1072_v8 = vmul.f32 %v1008_v28, %v2076_v41  ;;  %v1009_v27 = vmul.f32 0.5, %v945_v34  ;;  %v914_v38 = vadd.f32 1.0, %v1362_v59  ;;  %v820_v18 = vmul.f32 0.7978846, %v756_v6 }
 0x17c   : > { %v1041_v30 = vmul.f32 %v977_v4, %v2082_v52  ;;  %1367 = vtanh.f32 %v819_v26  ;;  %v789_v51 = vmul.f32 0.7978846, %v725_v54  ;;  %v693_v33 = vmul.f32 0.044715, %v629_v58  ;;  %v1364_v63 = vpop.eup %1363 }
 0x17d   : > { %1136 = vst [vmem:[%s1753_s10 + $0x198] sm:$0xff] %v1072_v8  ;;  %v1073_v43 = vmul.f32 %v1009_v27, %v2086_v36  ;;  %v978_v7 = vmul.f32 0.5, %v914_v38  ;;  %1369 = vtanh.f32 %v788_v57  ;;  %v598_v37 = vmul.f32 %v534_v32, %v2175_v12 }
 0x17e   : > { %1105 = vst [vmem:[%s1753_s10 + $0xa0] sm:$0xff] %v1041_v30  ;;  %v946_v41 = vadd.f32 1.0, %v1364_v63  ;;  %1371 = vtanh.f32 %v820_v18  ;;  %v757_v25 = vadd.f32 %v693_v33, %v2163_v3  ;;  %v2197_v52 = vadd.f32 %v1886_v44, %v1617_v24 }
 0x17f   : > { %1137 = vst [vmem:[%s1753_s10 + $0x1a0] sm:$0xff] %v1073_v43  ;;  %v1042_v53 = vmul.f32 %v978_v7, %v2093_v0  ;;  %1373 = vtanh.f32 %v789_v51  ;;  %v662_v39 = vmul.f32 0.044715, %v598_v37  ;;  %v2203_v36 = vadd.f32 %v1901_v16, %v1615_v23 }
 0x180   : > { %v1010_v56 = vmul.f32 0.5, %v946_v41  ;;  %v821_v31 = vmul.f32 0.7978846, %v757_v25  ;;  %v566_v42 = vmul.f32 %v2197_v52, %v2197_v52  ;;  %v2209_v46 = vadd.f32 %v1903_v17, %v1615_v23 }
 0x181   : > { %1106 = vst [vmem:[%s1753_s10 + $0xa8] sm:$0xff] %v1042_v53  ;;  %v726_v44 = vadd.f32 %v662_v39, %v2175_v12  ;;  %v535_v0 = vmul.f32 %v2203_v36, %v2203_v36  ;;  %v2217_v16 = vadd.f32 %v1909_v19, %v1617_v24  ;;  %v2221_v58 = vadd.f32 %v1911_v22, %v1617_v24 }
 0x182   : > { %v1074_v32 = vmul.f32 %v1010_v56, %v2102_v2  ;;  %1375 = vtanh.f32 %v821_v31  ;;  %v630_v17 = vmul.f32 %v566_v42, %v2197_v52  ;;  %v567_v60 = vmul.f32 %v2209_v46, %v2209_v46 }
 0x183   : > { %v1366_v29 = vpop.eup %1365  ;;  %v790_v20 = vmul.f32 0.7978846, %v726_v44  ;;  %v599_v48 = vmul.f32 %v535_v0, %v2203_v36  ;;  %v536_v19 = vmul.f32 %v2217_v16, %v2217_v16  ;;  %v568_v49 = vmul.f32 %v2221_v58, %v2221_v58 }
 0x184   : > { %1138 = vst [vmem:[%s1753_s10 + $0x1a8] sm:$0xff] %v1074_v32  ;;  %v915_v22 = vadd.f32 1.0, %v1366_v29  ;;  %v694_v47 = vmul.f32 0.044715, %v630_v17  ;;  %v631_v2 = vmul.f32 %v567_v60, %v2209_v46  ;;  %v2236_v35 = vadd.f32 %v1923_v5, %v1615_v23 }
 0x185   : > { %1377 = vtanh.f32 %v790_v20  ;;  %v663_v21 = vmul.f32 0.044715, %v599_v48  ;;  %v600_v6 = vmul.f32 %v536_v19, %v2217_v16  ;;  %v632_v10 = vmul.f32 %v568_v49, %v2221_v58 }
 0x186   : > { %v1368_v62 = vpop.eup %1367  ;;  %v979_v28 = vmul.f32 0.5, %v915_v22  ;;  %v758_v34 = vadd.f32 %v694_v47, %v2197_v52  ;;  %v695_v59 = vmul.f32 0.044715, %v631_v2  ;;  %v537_v4 = vmul.f32 %v2236_v35, %v2236_v35 }
 0x187   : > { %v1370_v26 = vpop.eup %1369  ;;  %v947_v57 = vadd.f32 1.0, %v1368_v62  ;;  %v727_v5 = vadd.f32 %v663_v21, %v2203_v36  ;;  %v664_v54 = vmul.f32 0.044715, %v600_v6  ;;  %v696_v8 = vmul.f32 0.044715, %v632_v10  ;;  %v2346_v62 = vld [vmem:[#allocation2_spill] sm:$0xff] }
 0x188   : > { %v1372_v27 = vpop.eup %1371  ;;  %v1043_v38 = vmul.f32 %v979_v28, %v2116_v9  ;;  %v916_v18 = vadd.f32 1.0, %v1370_v26  ;;  %v822_v30 = vmul.f32 0.7978846, %v758_v34  ;;  %v759_v51 = vadd.f32 %v695_v59, %v2209_v46 }
 0x189   : > { %v1374_v33 = vpop.eup %1373  ;;  %v1011_v63 = vmul.f32 0.5, %v947_v57  ;;  %v948_v43 = vadd.f32 1.0, %v1372_v27  ;;  %v791_v7 = vmul.f32 0.7978846, %v727_v5  ;;  %v728_v37 = vadd.f32 %v664_v54, %v2217_v16 }
 0x18a   : > { %1107 = vst [vmem:[%s1753_s10 + $0xb0] sm:$0xff] %v1043_v38  ;;  %v980_v41 = vmul.f32 0.5, %v916_v18  ;;  %v917_v25 = vadd.f32 1.0, %v1374_v33  ;;  %1379 = vtanh.f32 %v822_v30  ;;  %v823_v53 = vmul.f32 0.7978846, %v759_v51 }
 0x18b   : > { %v1075_v39 = vmul.f32 %v1011_v63, %v2137_v13  ;;  %v1012_v9 = vmul.f32 0.5, %v948_v43  ;;  %1381 = vtanh.f32 %v791_v7  ;;  %v792_v56 = vmul.f32 0.7978846, %v728_v37 }
 0x18c   : > { %v1376_v31 = vpop.eup %1375  ;;  %v1044_v42 = vmul.f32 %v980_v41, %v2142_v50  ;;  %v981_v44 = vmul.f32 0.5, %v917_v25  ;;  %1383 = vtanh.f32 %v823_v53  ;;  %v760_v0 = vadd.f32 %v696_v8, %v2221_v58 }
 0x18d   : > { %1139 = vst [vmem:[%s1753_s10 + $0x1b0] sm:$0xff] %v1075_v39  ;;  %v1076_v32 = vmul.f32 %v1012_v9, %v2146_v40  ;;  %v949_v17 = vadd.f32 1.0, %v1376_v31  ;;  %1385 = vtanh.f32 %v792_v56  ;;  %v601_v60 = vmul.f32 %v537_v4, %v2236_v35 }
 0x18e   : > { %1108 = vst [vmem:[%s1753_s10 + $0xb8] sm:$0xff] %v1044_v42  ;;  %v1045_v13 = vmul.f32 %v981_v44, %v2154_v45  ;;  %v824_v29 = vmul.f32 0.7978846, %v760_v0  ;;  %v2258_v20 = vadd.f32 %v1925_v15, %v1615_v23  ;;  %v2262_v50 = vadd.f32 %v1933_v1, %v1617_v24 }
 0x18f   : > { %v1378_v48 = vpop.eup %1377  ;;  %1140 = vst [vmem:[%s1753_s10 + $0x1b8] sm:$0xff] %v1076_v32  ;;  %v1013_v19 = vmul.f32 0.5, %v949_v17  ;;  %v665_v40 = vmul.f32 0.044715, %v601_v60  ;;  %v2267_v49 = vadd.f32 %v1935_v14, %v1617_v24  ;;  %v2271_v45 = vadd.f32 %v1946_v61, %v1615_v23 }
 0x190   : > { %1109 = vst [vmem:[%s1753_s10 + $0xc0] sm:$0xff] %v1045_v13  ;;  %v918_v15 = vadd.f32 1.0, %v1378_v48  ;;  %1387 = vtanh.f32 %v824_v29  ;;  %v569_v1 = vmul.f32 %v2258_v20, %v2258_v20  ;;  %v538_v22 = vmul.f32 %v2262_v50, %v2262_v50 }
 0x191   : > { %v1077_v47 = vmul.f32 %v1013_v19, %v2163_v3  ;;  %v729_v2 = vadd.f32 %v665_v40, %v2236_v35  ;;  %v570_v14 = vmul.f32 %v2267_v49, %v2267_v49  ;;  %v539_v61 = vmul.f32 %v2271_v45, %v2271_v45 }
 0x192   : > { %v982_v21 = vmul.f32 0.5, %v918_v15  ;;  %v633_v6 = vmul.f32 %v569_v1, %v2258_v20  ;;  %v602_v10 = vmul.f32 %v538_v22, %v2262_v50  ;;  %v2288_v28 = vadd.f32 %v2346_v62, %v1615_v23 }
 0x193   : > { %1141 = vst [vmem:[%s1753_s10 + $0x1c0] sm:$0xff] %v1077_v47  ;;  %v793_v3 = vmul.f32 0.7978846, %v729_v2  ;;  %v634_v34 = vmul.f32 %v570_v14, %v2267_v49  ;;  %v603_v59 = vmul.f32 %v539_v61, %v2271_v45  ;;  %v2295_v4 = vadd.f32 %v1952_v55, %v1617_v24 }
 0x194   : > { %v1380_v26 = vpop.eup %1379  ;;  %v1046_v57 = vmul.f32 %v982_v21, %v2175_v12  ;;  %v697_v5 = vmul.f32 0.044715, %v633_v6  ;;  %v666_v54 = vmul.f32 0.044715, %v602_v10  ;;  %v571_v23 = vmul.f32 %v2288_v28, %v2288_v28 }
 0x195   : > { %v1382_v8 = vpop.eup %1381  ;;  %v950_v27 = vadd.f32 1.0, %v1380_v26  ;;  %1389 = vtanh.f32 %v793_v3  ;;  %v698_v38 = vmul.f32 0.044715, %v634_v34  ;;  %v667_v18 = vmul.f32 0.044715, %v603_v59 }
 0x196   : > { %v1384_v30 = vpop.eup %1383  ;;  %1110 = vst [vmem:[%s1753_s10 + $0xc8] sm:$0xff] %v1046_v57  ;;  %v919_v51 = vadd.f32 1.0, %v1382_v8  ;;  %v761_v33 = vadd.f32 %v697_v5, %v2258_v20  ;;  %v730_v55 = vadd.f32 %v666_v54, %v2262_v50  ;;  %v635_v63 = vmul.f32 %v571_v23, %v2288_v28 }
 0x197   : > { %v1386_v12 = vpop.eup %1385  ;;  %v1014_v43 = vmul.f32 0.5, %v950_v27  ;;  %v951_v7 = vadd.f32 1.0, %v1384_v30  ;;  %v762_v37 = vadd.f32 %v698_v38, %v2267_v49  ;;  %v731_v41 = vadd.f32 %v667_v18, %v2271_v45 }
 0x198   : > { %v983_v25 = vmul.f32 0.5, %v919_v51  ;;  %v920_v53 = vadd.f32 1.0, %v1386_v12  ;;  %v825_v39 = vmul.f32 0.7978846, %v761_v33  ;;  %v794_v9 = vmul.f32 0.7978846, %v730_v55 }
 0x199   : > { %v1078_v56 = vmul.f32 %v1014_v43, %v2197_v52  ;;  %v1015_v31 = vmul.f32 0.5, %v951_v7  ;;  %v826_v42 = vmul.f32 0.7978846, %v762_v37  ;;  %v795_v44 = vmul.f32 0.7978846, %v731_v41 }
 0x19a   : > { %v1388_v0 = vpop.eup %1387  ;;  %v1047_v32 = vmul.f32 %v983_v25, %v2203_v36  ;;  %v984_v17 = vmul.f32 0.5, %v920_v53  ;;  %1391 = vtanh.f32 %v825_v39  ;;  %v699_v60 = vmul.f32 0.044715, %v635_v63 }
 0x19b   : > { %1142 = vst [vmem:[%s1753_s10 + $0x1c8] sm:$0xff] %v1078_v56  ;;  %v1079_v13 = vmul.f32 %v1015_v31, %v2209_v46  ;;  %v952_v29 = vadd.f32 1.0, %v1388_v0  ;;  %1393 = vtanh.f32 %v794_v9  ;;  %v540_v48 = vmul.f32 %v2295_v4, %v2295_v4 }
 0x19c   : > { %1111 = vst [vmem:[%s1753_s10 + $0xd0] sm:$0xff] %v1047_v32  ;;  %v1048_v52 = vmul.f32 %v984_v17, %v2217_v16  ;;  %1395 = vtanh.f32 %v826_v42  ;;  %v763_v19 = vadd.f32 %v699_v60, %v2288_v28  ;;  %v507_v36 = vadd.f32 %v1954_v11, %v1617_v24 }
 0x19d   : > { %1143 = vst [vmem:[%s1753_s10 + $0x1d0] sm:$0xff] %v1079_v13  ;;  %v1016_v40 = vmul.f32 0.5, %v952_v29  ;;  %1397 = vtanh.f32 %v795_v44  ;;  %v604_v46 = vmul.f32 %v540_v48, %v2295_v4 }
 0x19e   : > { %1112 = vst [vmem:[%s1753_s10 + $0xd8] sm:$0xff] %v1048_v52  ;;  %v827_v15 = vmul.f32 0.7978846, %v763_v19  ;;  %v572_v1 = vmul.f32 %v507_v36, %v507_v36 }
 0x19f   : > { %v1390_v22 = vpop.eup %1389  ;;  %v1080_v47 = vmul.f32 %v1016_v40, %v2221_v58  ;;  %v668_v2 = vmul.f32 0.044715, %v604_v46 }
 0x1a0   : > { %v921_v16 = vadd.f32 1.0, %v1390_v22  ;;  %1399 = vtanh.f32 %v827_v15  ;;  %v636_v14 = vmul.f32 %v572_v1, %v507_v36 }
 0x1a1   : > { %1144 = vst [vmem:[%s1753_s10 + $0x1d8] sm:$0xff] %v1080_v47  ;;  %v732_v61 = vadd.f32 %v668_v2, %v2295_v4 }
 0x1a2   : > { %v985_v24 = vmul.f32 0.5, %v921_v16  ;;  %v700_v11 = vmul.f32 0.044715, %v636_v14 }
 0x1a3   : > { %v796_v21 = vmul.f32 0.7978846, %v732_v61 }
 0x1a4   : > { %v1392_v6 = vpop.eup %1391  ;;  %v1049_v10 = vmul.f32 %v985_v24, %v2236_v35  ;;  %v764_v62 = vadd.f32 %v700_v11, %v507_v36 }
 0x1a5   : > { %v1394_v3 = vpop.eup %1393  ;;  %v953_v34 = vadd.f32 1.0, %v1392_v6  ;;  %1401 = vtanh.f32 %v796_v21 }
 0x1a6   : > { %v1396_v58 = vpop.eup %1395  ;;  %1113 = vst [vmem:[%s1753_s10 + $0xe0] sm:$0xff] %v1049_v10  ;;  %v922_v59 = vadd.f32 1.0, %v1394_v3  ;;  %v828_v26 = vmul.f32 0.7978846, %v764_v62 }
 0x1a7   : > { %v1398_v57 = vpop.eup %1397  ;;  %v1017_v5 = vmul.f32 0.5, %v953_v34  ;;  %v954_v54 = vadd.f32 1.0, %v1396_v58 }
 0x1a8   : > { %v986_v23 = vmul.f32 0.5, %v922_v59  ;;  %v923_v8 = vadd.f32 1.0, %v1398_v57  ;;  %1403 = vtanh.f32 %v828_v26 }
 0x1a9   : > { %v1081_v35 = vmul.f32 %v1017_v5, %v2258_v20  ;;  %v1018_v27 = vmul.f32 0.5, %v954_v54 }
 0x1aa   : > { %v1400_v38 = vpop.eup %1399  ;;  %v1050_v18 = vmul.f32 %v986_v23, %v2262_v50  ;;  %v987_v30 = vmul.f32 0.5, %v923_v8 }
 0x1ab   : > { %1145 = vst [vmem:[%s1753_s10 + $0x1e0] sm:$0xff] %v1081_v35  ;;  %v1082_v51 = vmul.f32 %v1018_v27, %v2267_v49  ;;  %v955_v33 = vadd.f32 1.0, %v1400_v38 }
 0x1ac   : > { %1114 = vst [vmem:[%s1753_s10 + $0xe8] sm:$0xff] %v1050_v18  ;;  %v1051_v55 = vmul.f32 %v987_v30, %v2271_v45 }
 0x1ad   : > { %1146 = vst [vmem:[%s1753_s10 + $0x1e8] sm:$0xff] %v1082_v51  ;;  %v1019_v63 = vmul.f32 0.5, %v955_v33 }
 0x1ae   : > { %1115 = vst [vmem:[%s1753_s10 + $0xf0] sm:$0xff] %v1051_v55 }
 0x1af   : > { %v1402_v12 = vpop.eup %1401  ;;  %v1083_v20 = vmul.f32 %v1019_v63, %v2288_v28 }
 0x1b0   : > { %v924_v43 = vadd.f32 1.0, %v1402_v12 }
 0x1b1   : > { %1147 = vst [vmem:[%s1753_s10 + $0x1f0] sm:$0xff] %v1083_v20 }
 0x1b2   : > { %v1404_v7 = vpop.eup %1403  ;;  %v988_v50 = vmul.f32 0.5, %v924_v43 }
 0x1b3   : > { %v956_v37 = vadd.f32 1.0, %v1404_v7 }
 0x1b4   : > { %v1052_v41 = vmul.f32 %v988_v50, %v2295_v4 }
 0x1b5   : > { %v1020_v49 = vmul.f32 0.5, %v956_v37 }
 0x1b6   : > { %1116 = vst [vmem:[%s1753_s10 + $0xf8] sm:$0xff] %v1052_v41 }
 0x1b7   : > { %v1084_v25 = vmul.f32 %v1020_v49, %v507_v36 }
 0x1b9   : > { %1148 = vst [vmem:[%s1753_s10 + $0x1f8] sm:$0xff] %v1084_v25 }
 0x1ba PF: > { %s13_s12 = sadd.s32 1, %s1411_s12  }
 0x1bb   : > { %p10_p4 = scmp.ge.s32.totalorder %s13_s12, 4  }
 0x1bd   :  { %12 = sbr.rel (!%p10_p4) target bundleno = 1 (0x1), region = 62 }

// kernel: ts_transformer_forward.17
= control target key start
LH: loop header
LB: loop body
LE: loop exit
PB: predicated region body
PF: predicated region fallthrough
CT: control target
= control target key end

     0   :  { %s1001_s21 = smov 0   ;;  %s1398_s0 = inlined_call_operand.vmem [shape: f32[512,256], index: 0, kind: input, shape index: {}]   ;;  %s1399_s1 = inlined_call_operand.vmem [shape: f32[256,128], index: 1, kind: input, shape index: {}]   ;;  %s1400_s2 = inlined_call_operand.vmem [shape: f32[1,128], index: 2, kind: input, shape index: {}]   ;;  %s1401_s3 = inlined_call_operand.vmem [shape: f32[512,128], index: 3, kind: input, shape index: {}]   ;;  %s1402_s4 = inlined_call_operand.vmem [shape: f32[1,128], index: 4, kind: input, shape index: {}]   ;;  %s1403_s5 = inlined_call_operand.vmem [shape: f32[1,128], index: 5, kind: input, shape index: {}]   ;;  %s1404_s6 = inlined_call_operand.vmem [shape: f32[512,128], index: 6, kind: output, shape index: {}]  }
   0x1 LB: > { %s850_s22 = sadd.s32 4294967295, %s963_s21   ;;  %p854_p0 = scmp.ge.s32.totalorder %s963_s21, 1  ;;  %s963_s21 = sphi %s1001_s21, %s16_s21  }
   0x2   : > { %p225_p1 = scmp.lt.s32.totalorder %s963_s21, 3 }
   0x4   : > { %p226_p2 = pnand %p854_p0, %p225_p1 }
   0x5   : > { %v344_v0 = vld [vmem:[%s1399_s1] sm:$0xff] (!%p226_p2)  ;;  %v345_v1 = vld [vmem:[%s1399_s1 + $0x8] sm:$0xff] (!%p226_p2)  ;;  %v346_v2 = vld [vmem:[%s1399_s1 + $0x10] sm:$0xff] (!%p226_p2)  ;;  %s855_s29 = sshll.u32 (!%p226_p2), %s850_s22, 5  ;;  %v965_v3 = vmov (!%p226_p2), 0.0|0.0  }
   0x6   : > { %229 = sbr.rel (%p226_p2) target bundleno = 352 (0x160), region = 44  ;;  %868 = vmatprep.subr.bf16.mxu0 (!%p226_p2), %v965_v3  ;;  %916 = vmatprep.subr.bf16.mxu1 (!%p226_p2), %v965_v3  ;;  %v869_v4 = vpack.c.bf16 (!%p226_p2), %v345_v1, %v344_v0  ;;  %v347_v5 = vld [vmem:[%s1399_s1 + $0x18] sm:$0xff] (!%p226_p2)  ;;  %p262_p3 = scmp.lt.s32.totalorder (!%p226_p2), %s855_s29, 63  ;;  %v348_v7 = vld [vmem:[%s1399_s1 + $0x20] sm:$0xff] (!%p226_p2)  ;;  %v349_v8 = vld [vmem:[%s1399_s1 + $0x28] sm:$0xff] (!%p226_p2) }
   0x7   : > { %v872_v6 = vpack.c.bf16 (!%p226_p2), %v347_v5, %v346_v2  ;;  %v875_v9 = vpack.c.bf16 (!%p226_p2), %v349_v8, %v348_v7  ;;  %v350_v10 = vld [vmem:[%s1399_s1 + $0x30] sm:$0xff] (!%p226_p2)  ;;  %v351_v11 = vld [vmem:[%s1399_s1 + $0x38] sm:$0xff] (!%p226_p2)  ;;  %v352_v15 = vld [vmem:[%s1399_s1 + $0x40] sm:$0xff] (!%p226_p2) }
   0x8   : > { %870 = vmatpush1.bf16.msra.mxu0 (!%p226_p2), %v869_v4  ;;  %932 = vmatpush1.bf16.msra.mxu1 (!%p226_p2), %v869_v4  ;;  %v878_v13 = vpack.c.bf16 (!%p226_p2), %v351_v11, %v350_v10  ;;  %v353_v16 = vld [vmem:[%s1399_s1 + $0x48] sm:$0xff] (!%p226_p2)  ;;  %v354_v18 = vld [vmem:[%s1399_s1 + $0x50] sm:$0xff] (!%p226_p2)  ;;  %v355_v19 = vld [vmem:[%s1399_s1 + $0x58] sm:$0xff] (!%p226_p2) }
   0x9   : > { %871 = vmatprep.subr.bf16.mxu0 (!%p226_p2), %v965_v3  ;;  %917 = vmatprep.subr.bf16.mxu1 (!%p226_p2), %v965_v3  ;;  %v881_v17 = vpack.c.bf16 (!%p226_p2), %v353_v16, %v352_v15  ;;  %v884_v20 = vpack.c.bf16 (!%p226_p2), %v355_v19, %v354_v18  ;;  %v356_v21 = vld [vmem:[%s1399_s1 + $0x60] sm:$0xff] (!%p226_p2)  ;;  %v357_v22 = vld [vmem:[%s1399_s1 + $0x68] sm:$0xff] (!%p226_p2)  ;;  %v358_v24 = vld [vmem:[%s1399_s1 + $0x70] sm:$0xff] (!%p226_p2) }
   0xa   : > { %v887_v23 = vpack.c.bf16 (!%p226_p2), %v357_v22, %v356_v21  ;;  %v359_v25 = vld [vmem:[%s1399_s1 + $0x78] sm:$0xff] (!%p226_p2)  ;;  %v360_v27 = vld [vmem:[%s1399_s1 + $0x80] sm:$0xff] (!%p226_p2)  ;;  %v361_v28 = vld [vmem:[%s1399_s1 + $0x88] sm:$0xff] (!%p226_p2) }
   0xb   : > { %v890_v26 = vpack.c.bf16 (!%p226_p2), %v359_v25, %v358_v24  ;;  %v893_v29 = vpack.c.bf16 (!%p226_p2), %v361_v28, %v360_v27  ;;  %v362_v30 = vld [vmem:[%s1399_s1 + $0x90] sm:$0xff] (!%p226_p2)  ;;  %v363_v31 = vld [vmem:[%s1399_s1 + $0x98] sm:$0xff] (!%p226_p2)  ;;  %v364_v33 = vld [vmem:[%s1399_s1 + $0xa0] sm:$0xff] (!%p226_p2) }
   0xc   : > { %873 = vmatpush1.bf16.msra.mxu0 (!%p226_p2), %v872_v6  ;;  %933 = vmatpush1.bf16.msra.mxu1 (!%p226_p2), %v872_v6  ;;  %v896_v32 = vpack.c.bf16 (!%p226_p2), %v363_v31, %v362_v30  ;;  %v365_v34 = vld [vmem:[%s1399_s1 + $0xa8] sm:$0xff] (!%p226_p2)  ;;  %v366_v36 = vld [vmem:[%s1399_s1 + $0xb0] sm:$0xff] (!%p226_p2)  ;;  %v367_v37 = vld [vmem:[%s1399_s1 + $0xb8] sm:$0xff] (!%p226_p2) }
   0xd   : > { %s1406_s29 = smov (!%p262_p3, %s855_s29), 63  ;;  %874 = vmatprep.subr.bf16.mxu0 %v965_v3  ;;  %918 = vmatprep.subr.bf16.mxu1 %v965_v3  ;;  %v899_v35 = vpack.c.bf16 %v365_v34, %v364_v33  ;;  %v902_v38 = vpack.c.bf16 %v367_v37, %v366_v36  ;;  %v368_v39 = vld [vmem:[%s1399_s1 + $0xc0] sm:$0xff]  ;;  %v369_v40 = vld [vmem:[%s1399_s1 + $0xc8] sm:$0xff]  ;;  %v370_v42 = vld [vmem:[%s1399_s1 + $0xd0] sm:$0xff] }
   0xe   : > { %s867_s12 = sshll.u32 %s1406_s29, 4  ;;  %v905_v41 = vpack.c.bf16 %v369_v40, %v368_v39  ;;  %v371_v43 = vld [vmem:[%s1399_s1 + $0xd8] sm:$0xff]  ;;  %v372_v45 = vld [vmem:[%s1399_s1 + $0xe0] sm:$0xff]  ;;  %v373_v46 = vld [vmem:[%s1399_s1 + $0xe8] sm:$0xff]  ;;  %s859_s27 = sshll.u32 %s1406_s29, 3 }
   0xf   : > { %s1037_s15 = scalar_lea.vmem %s1398_s0, %s867_s12  ;;  %v908_v44 = vpack.c.bf16 %v371_v43, %v370_v42  ;;  %v911_v47 = vpack.c.bf16 %v373_v46, %v372_v45  ;;  %v374_v48 = vld [vmem:[%s1399_s1 + $0xf0] sm:$0xff]  ;;  %v375_v49 = vld [vmem:[%s1399_s1 + $0xf8] sm:$0xff]  ;;  %s1213_s7 = scalar_lea.vmem %s1401_s3, %s859_s27 }
  0x10   : > { %v281_v12 = vld [vmem:[%s1037_s15 + $0x8] sm:$0xff]  ;;  %876 = vmatpush1.bf16.msra.mxu0 %v875_v9  ;;  %934 = vmatpush1.bf16.msra.mxu1 %v875_v9  ;;  %v914_v50 = vpack.c.bf16 %v375_v49, %v374_v48  ;;  %v280_v51 = vld [vmem:[%s1037_s15] sm:$0xff]  ;;  %v283_v53 = vld [vmem:[%s1037_s15 + $0x18] sm:$0xff]  ;;  %s1243_s14 = scalar_lea.vmem %s1404_s6, %s859_s27 }
  0x11   : > { %v313_v14 = vld [vmem:[%s1037_s15 + $0x108] sm:$0xff]  ;;  %877 = vmatprep.subr.bf16.mxu0 %v965_v3  ;;  %919 = vmatprep.subr.bf16.mxu1 %v965_v3  ;;  %v312_v52 = vld [vmem:[%s1037_s15 + $0x100] sm:$0xff]  ;;  %v315_v54 = vld [vmem:[%s1037_s15 + $0x118] sm:$0xff] }
  0x12   : > { %447 = vmatprep.mubr.f32.mxu0 %v281_v12  ;;  %527 = vmatprep.mubr.f32.mxu1 %v313_v14  ;;  %v282_v55 = vld [vmem:[%s1037_s15 + $0x10] sm:$0xff]  ;;  %v285_v57 = vld [vmem:[%s1037_s15 + $0x28] sm:$0xff]  ;;  %v284_v59 = vld [vmem:[%s1037_s15 + $0x20] sm:$0xff] }
  0x13   : > { %v314_v56 = vld [vmem:[%s1037_s15 + $0x110] sm:$0xff]  ;;  %v317_v58 = vld [vmem:[%s1037_s15 + $0x128] sm:$0xff]  ;;  %v316_v60 = vld [vmem:[%s1037_s15 + $0x120] sm:$0xff] }
  0x14   : > { %879 = vmatpush1.bf16.msra.mxu0 %v878_v13  ;;  %935 = vmatpush1.bf16.msra.mxu1 %v878_v13  ;;  %v287_v61 = vld [vmem:[%s1037_s15 + $0x38] sm:$0xff]  ;;  %v286_v63 = vld [vmem:[%s1037_s15 + $0x30] sm:$0xff]  ;;  %v289_v1 = vld [vmem:[%s1037_s15 + $0x48] sm:$0xff] }
  0x15   : > { %880 = vmatprep.subr.bf16.mxu0 %v965_v3  ;;  %920 = vmatprep.subr.bf16.mxu1 %v965_v3  ;;  %v319_v62 = vld [vmem:[%s1037_s15 + $0x138] sm:$0xff]  ;;  %v318_v0 = vld [vmem:[%s1037_s15 + $0x130] sm:$0xff]  ;;  %v321_v2 = vld [vmem:[%s1037_s15 + $0x148] sm:$0xff] }
  0x16   : > { %v320_v4 = vld [vmem:[%s1037_s15 + $0x140] sm:$0xff]  ;;  %v291_v5 = vld [vmem:[%s1037_s15 + $0x58] sm:$0xff]  ;;  %v290_v7 = vld [vmem:[%s1037_s15 + $0x50] sm:$0xff] }
  0x17   : > { %v323_v6 = vld [vmem:[%s1037_s15 + $0x158] sm:$0xff]  ;;  %v322_v8 = vld [vmem:[%s1037_s15 + $0x150] sm:$0xff]  ;;  %v293_v9 = vld [vmem:[%s1037_s15 + $0x68] sm:$0xff] }
  0x18   : > { %882 = vmatpush1.bf16.msra.mxu0 %v881_v17  ;;  %936 = vmatpush1.bf16.msra.mxu1 %v881_v17  ;;  %v325_v10 = vld [vmem:[%s1037_s15 + $0x168] sm:$0xff]  ;;  %v292_v11 = vld [vmem:[%s1037_s15 + $0x60] sm:$0xff]  ;;  %v295_v13 = vld [vmem:[%s1037_s15 + $0x78] sm:$0xff] }
  0x19   : > { %883 = vmatprep.subr.bf16.mxu0 %v965_v3  ;;  %921 = vmatprep.subr.bf16.mxu1 %v965_v3  ;;  %v324_v12 = vld [vmem:[%s1037_s15 + $0x160] sm:$0xff]  ;;  %v327_v14 = vld [vmem:[%s1037_s15 + $0x178] sm:$0xff]  ;;  %v294_v15 = vld [vmem:[%s1037_s15 + $0x70] sm:$0xff] }
  0x1a   : > { %v326_v16 = vld [vmem:[%s1037_s15 + $0x170] sm:$0xff]  ;;  %v297_v17 = vld [vmem:[%s1037_s15 + $0x88] sm:$0xff]  ;;  %v296_v19 = vld [vmem:[%s1037_s15 + $0x80] sm:$0xff] }
  0x1b   : > { %v329_v18 = vld [vmem:[%s1037_s15 + $0x188] sm:$0xff]  ;;  %v299_v21 = vld [vmem:[%s1037_s15 + $0x98] sm:$0xff]  ;;  %v330_v24 = vld [vmem:[%s1037_s15 + $0x190] sm:$0xff] }
  0x1c   : > { %885 = vmatpush1.bf16.msra.mxu0 %v884_v20  ;;  %937 = vmatpush1.bf16.msra.mxu1 %v884_v20  ;;  %v328_v20 = vld [vmem:[%s1037_s15 + $0x180] sm:$0xff]  ;;  %v331_v22 = vld [vmem:[%s1037_s15 + $0x198] sm:$0xff]  ;;  %v301_v25 = vld [vmem:[%s1037_s15 + $0xa8] sm:$0xff] }
  0x1d   : > { %886 = vmatprep.subr.bf16.mxu0 %v965_v3  ;;  %922 = vmatprep.subr.bf16.mxu1 %v965_v3  ;;  %v300_v27 = vld [vmem:[%s1037_s15 + $0xa0] sm:$0xff]  ;;  %v335_v30 = vld [vmem:[%s1037_s15 + $0x1b8] sm:$0xff]  ;;  %v302_v31 = vld [vmem:[%s1037_s15 + $0xb0] sm:$0xff] }
  0x1e   : > { %v332_v28 = vld [vmem:[%s1037_s15 + $0x1a0] sm:$0xff]  ;;  %v305_v33 = vld [vmem:[%s1037_s15 + $0xc8] sm:$0xff]  ;;  %v307_v37 = vld [vmem:[%s1037_s15 + $0xd8] sm:$0xff] }
  0x1f   : > { %v337_v34 = vld [vmem:[%s1037_s15 + $0x1c8] sm:$0xff]  ;;  %v336_v36 = vld [vmem:[%s1037_s15 + $0x1c0] sm:$0xff]  ;;  %v306_v39 = vld [vmem:[%s1037_s15 + $0xd0] sm:$0xff] }
  0x20   : > { %888 = vmatpush1.bf16.msra.mxu0 %v887_v23  ;;  %938 = vmatpush1.bf16.msra.mxu1 %v887_v23  ;;  %v298_v23 = vld [vmem:[%s1037_s15 + $0x90] sm:$0xff]  ;;  %v341_v42 = vld [vmem:[%s1037_s15 + $0x1e8] sm:$0xff]  ;;  %v308_v43 = vld [vmem:[%s1037_s15 + $0xe0] sm:$0xff] }
  0x21   : > { %889 = vmatprep.subr.bf16.mxu0 %v965_v3  ;;  %923 = vmatprep.subr.bf16.mxu1 %v965_v3  ;;  %v338_v40 = vld [vmem:[%s1037_s15 + $0x1d0] sm:$0xff]  ;;  %v311_v45 = vld [vmem:[%s1037_s15 + $0xf8] sm:$0xff]  ;;  %v1218_v49 = vld [vmem:[%s1400_s2] ss:$0 sm:$0xff] }
  0x22   : > { %v343_v46 = vld [vmem:[%s1037_s15 + $0x1f8] sm:$0xff]  ;;  %v342_v48 = vld [vmem:[%s1037_s15 + $0x1f0] sm:$0xff] }
  0x24   : > { %891 = vmatpush1.bf16.msra.mxu0 %v890_v26  ;;  %939 = vmatpush1.bf16.msra.mxu1 %v890_v26  ;;  %v333_v26 = vld [vmem:[%s1037_s15 + $0x1a8] sm:$0xff] }
  0x25   : > { %892 = vmatprep.subr.bf16.mxu0 %v965_v3  ;;  %924 = vmatprep.subr.bf16.mxu1 %v965_v3 }
  0x28   : > { %894 = vmatpush1.bf16.msra.mxu0 %v893_v29  ;;  %940 = vmatpush1.bf16.msra.mxu1 %v893_v29  ;;  %v303_v29 = vld [vmem:[%s1037_s15 + $0xb8] sm:$0xff] }
  0x29   : > { %895 = vmatprep.subr.bf16.mxu0 %v965_v3  ;;  %925 = vmatprep.subr.bf16.mxu1 %v965_v3 }
  0x2c   : > { %897 = vmatpush1.bf16.msra.mxu0 %v896_v32  ;;  %941 = vmatpush1.bf16.msra.mxu1 %v896_v32  ;;  %v334_v32 = vld [vmem:[%s1037_s15 + $0x1b0] sm:$0xff] }
  0x2d   : > { %898 = vmatprep.subr.bf16.mxu0 %v965_v3  ;;  %926 = vmatprep.subr.bf16.mxu1 %v965_v3 }
  0x30   : > { %900 = vmatpush1.bf16.msra.mxu0 %v899_v35  ;;  %942 = vmatpush1.bf16.msra.mxu1 %v899_v35  ;;  %v304_v35 = vld [vmem:[%s1037_s15 + $0xc0] sm:$0xff] }
  0x31   : > { %901 = vmatprep.subr.bf16.mxu0 %v965_v3  ;;  %927 = vmatprep.subr.bf16.mxu1 %v965_v3 }
  0x34   : > { %903 = vmatpush1.bf16.msra.mxu0 %v902_v38  ;;  %943 = vmatpush1.bf16.msra.mxu1 %v902_v38  ;;  %v339_v38 = vld [vmem:[%s1037_s15 + $0x1d8] sm:$0xff] }
  0x35   : > { %904 = vmatprep.subr.bf16.mxu0 %v965_v3  ;;  %928 = vmatprep.subr.bf16.mxu1 %v965_v3 }
  0x38   : > { %906 = vmatpush1.bf16.msra.mxu0 %v905_v41  ;;  %944 = vmatpush1.bf16.msra.mxu1 %v905_v41  ;;  %v309_v41 = vld [vmem:[%s1037_s15 + $0xe8] sm:$0xff] }
  0x39   : > { %907 = vmatprep.subr.bf16.mxu0 %v965_v3  ;;  %929 = vmatprep.subr.bf16.mxu1 %v965_v3 }
  0x3c   : > { %909 = vmatpush1.bf16.msra.mxu0 %v908_v44  ;;  %945 = vmatpush1.bf16.msra.mxu1 %v908_v44  ;;  %v340_v44 = vld [vmem:[%s1037_s15 + $0x1e0] sm:$0xff] }
  0x3d   : > { %910 = vmatprep.subr.bf16.mxu0 %v965_v3  ;;  %930 = vmatprep.subr.bf16.mxu1 %v965_v3 }
  0x40   : > { %912 = vmatpush1.bf16.msra.mxu0 %v911_v47  ;;  %946 = vmatpush1.bf16.msra.mxu1 %v911_v47  ;;  %v310_v47 = vld [vmem:[%s1037_s15 + $0xf0] sm:$0xff] }
  0x41   : > { %913 = vmatprep.subr.bf16.mxu0 %v965_v3  ;;  %931 = vmatprep.subr.bf16.mxu1 %v965_v3  ;;  %v288_v3 = vld [vmem:[%s1037_s15 + $0x40] sm:$0xff] }
  0x44   : > { %915 = vmatpush1.bf16.msra.mxu0 %v914_v50  ;;  %947 = vmatpush1.bf16.msra.mxu1 %v914_v50 }
  0x47   : > { %448 = vmatmul.mubr.f32.vlgmr.msra.gmra.mrb[0].mxu0 %v280_v51  ;;  %528 = vmatmul.mubr.f32.vlgmr.msra.gmra.mrb[0].mxu1 %v312_v52  ;;  %v608_v51 = vld [vmem:[%s1213_s7] sm:$0xff] }
  0x48   : > { %452 = vmatprep.mubr.f32.mxu0 %v283_v53  ;;  %532 = vmatprep.mubr.f32.mxu1 %v315_v54  ;;  %v624_v53 = vld [vmem:[%s1213_s7 + $0x80] sm:$0xff] }
  0x4b   : > { %453 = vmatmul.mubr.f32.gmra.mrb[2].mxu0 %v282_v55  ;;  %533 = vmatmul.mubr.f32.gmra.mrb[2].mxu1 %v314_v56 }
  0x4c   : > { %457 = vmatprep.mubr.f32.mxu0 %v285_v57  ;;  %537 = vmatprep.mubr.f32.mxu1 %v317_v58  ;;  %v1227_v58 = vld [vmem:[%s1402_s4] ss:$0 sm:$0xff] }
  0x4f   : > { %458 = vmatmul.mubr.f32.gmra.mrb[4].mxu0 %v284_v59  ;;  %538 = vmatmul.mubr.f32.gmra.mrb[4].mxu1 %v316_v60 }
  0x50   : > { %462 = vmatprep.mubr.f32.mxu0 %v287_v61  ;;  %542 = vmatprep.mubr.f32.mxu1 %v319_v62  ;;  %v1232_v61 = vld [vmem:[%s1403_s5] ss:$0 sm:$0xff] }
  0x53   : > { %463 = vmatmul.mubr.f32.gmra.mrb[6].mxu0 %v286_v63  ;;  %543 = vmatmul.mubr.f32.gmra.mrb[6].mxu1 %v318_v0  ;;  %v609_v63 = vld [vmem:[%s1213_s7 + $0x8] sm:$0xff] }
  0x54   : > { %467 = vmatprep.mubr.f32.mxu0 %v289_v1  ;;  %547 = vmatprep.mubr.f32.mxu1 %v321_v2  ;;  %v625_v1 = vld [vmem:[%s1213_s7 + $0x88] sm:$0xff] }
  0x57   : > { %468 = vmatmul.mubr.f32.gmra.mrb[8].mxu0 %v288_v3  ;;  %548 = vmatmul.mubr.f32.gmra.mrb[8].mxu1 %v320_v4 }
  0x58   : > { %472 = vmatprep.mubr.f32.mxu0 %v291_v5  ;;  %552 = vmatprep.mubr.f32.mxu1 %v323_v6 }
  0x5b   : > { %473 = vmatmul.mubr.f32.gmra.mrb[10].mxu0 %v290_v7  ;;  %553 = vmatmul.mubr.f32.gmra.mrb[10].mxu1 %v322_v8 }
  0x5c   : > { %477 = vmatprep.mubr.f32.mxu0 %v293_v9  ;;  %557 = vmatprep.mubr.f32.mxu1 %v325_v10 }
  0x5f   : > { %478 = vmatmul.mubr.f32.gmra.mrb[12].mxu0 %v292_v11  ;;  %558 = vmatmul.mubr.f32.gmra.mrb[12].mxu1 %v324_v12 }
  0x60   : > { %482 = vmatprep.mubr.f32.mxu0 %v295_v13  ;;  %562 = vmatprep.mubr.f32.mxu1 %v327_v14  ;;  %v610_v13 = vld [vmem:[%s1213_s7 + $0x10] sm:$0xff] }
  0x63   : > { %483 = vmatmul.mubr.f32.gmra.mrb[14].mxu0 %v294_v15  ;;  %563 = vmatmul.mubr.f32.gmra.mrb[14].mxu1 %v326_v16  ;;  %v626_v15 = vld [vmem:[%s1213_s7 + $0x90] sm:$0xff] }
  0x64   : > { %487 = vmatprep.mubr.f32.mxu0 %v297_v17  ;;  %567 = vmatprep.mubr.f32.mxu1 %v329_v18 }
  0x67   : > { %488 = vmatmul.mubr.f32.gmra.mrb[16].mxu0 %v296_v19  ;;  %568 = vmatmul.mubr.f32.gmra.mrb[16].mxu1 %v328_v20 }
  0x68   : > { %492 = vmatprep.mubr.f32.mxu0 %v299_v21  ;;  %572 = vmatprep.mubr.f32.mxu1 %v331_v22 }
  0x6b   : > { %493 = vmatmul.mubr.f32.gmra.mrb[18].mxu0 %v298_v23  ;;  %573 = vmatmul.mubr.f32.gmra.mrb[18].mxu1 %v330_v24 }
  0x6c   : > { %497 = vmatprep.mubr.f32.mxu0 %v301_v25  ;;  %577 = vmatprep.mubr.f32.mxu1 %v333_v26 }
  0x6f   : > { %498 = vmatmul.mubr.f32.gmra.mrb[20].mxu0 %v300_v27  ;;  %578 = vmatmul.mubr.f32.gmra.mrb[20].mxu1 %v332_v28  ;;  %v611_v27 = vld [vmem:[%s1213_s7 + $0x18] sm:$0xff] }
  0x70   : > { %502 = vmatprep.mubr.f32.mxu0 %v303_v29  ;;  %582 = vmatprep.mubr.f32.mxu1 %v335_v30  ;;  %v627_v29 = vld [vmem:[%s1213_s7 + $0x98] sm:$0xff] }
  0x73   : > { %503 = vmatmul.mubr.f32.gmra.mrb[22].mxu0 %v302_v31  ;;  %583 = vmatmul.mubr.f32.gmra.mrb[22].mxu1 %v334_v32 }
  0x74   : > { %507 = vmatprep.mubr.f32.mxu0 %v305_v33  ;;  %587 = vmatprep.mubr.f32.mxu1 %v337_v34 }
  0x77   : > { %508 = vmatmul.mubr.f32.gmra.mrb[24].mxu0 %v304_v35  ;;  %588 = vmatmul.mubr.f32.gmra.mrb[24].mxu1 %v336_v36 }
  0x78   : > { %512 = vmatprep.mubr.f32.mxu0 %v307_v37  ;;  %592 = vmatprep.mubr.f32.mxu1 %v339_v38 }
  0x7b   : > { %513 = vmatmul.mubr.f32.gmra.mrb[26].mxu0 %v306_v39  ;;  %593 = vmatmul.mubr.f32.gmra.mrb[26].mxu1 %v338_v40 }
  0x7c   : > { %517 = vmatprep.mubr.f32.mxu0 %v309_v41  ;;  %597 = vmatprep.mubr.f32.mxu1 %v341_v42  ;;  %v612_v41 = vld [vmem:[%s1213_s7 + $0x20] sm:$0xff] }
  0x7f   : > { %518 = vmatmul.mubr.f32.gmra.mrb[28].mxu0 %v308_v43  ;;  %598 = vmatmul.mubr.f32.gmra.mrb[28].mxu1 %v340_v44  ;;  %v628_v43 = vld [vmem:[%s1213_s7 + $0xa0] sm:$0xff] }
  0x80   : > { %522 = vmatprep.mubr.f32.mxu0 %v311_v45  ;;  %602 = vmatprep.mubr.f32.mxu1 %v343_v46 }
  0x83   : > { %523 = vmatmul.mubr.f32.gmra.mrb[30].mxu0 %v310_v47  ;;  %603 = vmatmul.mubr.f32.gmra.mrb[30].mxu1 %v342_v48 }
 0x11a   : > { %v449_v50 = vpop.f32.mrb[0].mxu0  ;;  %v529_v52 = vpop.f32.mrb[0].mxu1 }
 0x11b   : > { %v450_v54 = vadd.f32 %v1218_v49, %v449_v50  ;;  %v530_v55 = vadd.f32 %v1218_v49, %v529_v52  ;;  %v451_v56 = vpop.f32.mrb[1].mxu0  ;;  %v531_v57 = vpop.f32.mrb[1].mxu1 }
 0x11c   : > { %v613_v56 = vld [vmem:[%s1213_s7 + $0x28] sm:$0xff] }
 0x11d   : > { %v640_v59 = vadd.f32 %v608_v51, %v450_v54  ;;  %v656_v60 = vadd.f32 %v624_v53, %v530_v55 }
 0x11e   : > { %v454_v62 = vpop.f32.mrb[2].mxu0  ;;  %v534_v0 = vpop.f32.mrb[2].mxu1 }
 0x11f   : > { %v679_v2 = vmul.f32 %v1227_v58, %v640_v59  ;;  %v695_v3 = vmul.f32 %v1227_v58, %v656_v60  ;;  %v455_v4 = vadd.f32 %v1218_v49, %v454_v62  ;;  %v535_v5 = vadd.f32 %v1218_v49, %v534_v0  ;;  %v456_v6 = vpop.f32.mrb[3].mxu0  ;;  %v536_v7 = vpop.f32.mrb[3].mxu1  ;;  %v629_v59 = vld [vmem:[%s1213_s7 + $0xa8] sm:$0xff] }
 0x121   : > { %v718_v8 = vadd.f32 %v1232_v61, %v679_v2  ;;  %v734_v9 = vadd.f32 %v1232_v61, %v695_v3  ;;  %v641_v10 = vadd.f32 %v609_v63, %v455_v4  ;;  %v657_v11 = vadd.f32 %v625_v1, %v535_v5 }
 0x122   : > { %v459_v12 = vpop.f32.mrb[4].mxu0  ;;  %v539_v14 = vpop.f32.mrb[4].mxu1 }
 0x123   : > { %750 = vst [vmem:[%s1243_s14] sm:$0xff] %v718_v8  ;;  %766 = vst [vmem:[%s1243_s14 + $0x80] sm:$0xff] %v734_v9  ;;  %v680_v16 = vmul.f32 %v1227_v58, %v641_v10  ;;  %v696_v17 = vmul.f32 %v1227_v58, %v657_v11  ;;  %v460_v18 = vadd.f32 %v1218_v49, %v459_v12  ;;  %v461_v20 = vpop.f32.mrb[5].mxu0  ;;  %v541_v21 = vpop.f32.mrb[5].mxu1  ;;  %v614_v8 = vld [vmem:[%s1213_s7 + $0x30] sm:$0xff] }
 0x124   : > { %v540_v19 = vadd.f32 %v1218_v49, %v539_v14  ;;  %v630_v10 = vld [vmem:[%s1213_s7 + $0xb0] sm:$0xff] }
 0x125   : > { %v719_v22 = vadd.f32 %v1232_v61, %v680_v16  ;;  %v735_v23 = vadd.f32 %v1232_v61, %v696_v17  ;;  %v642_v24 = vadd.f32 %v610_v13, %v460_v18 }
 0x126   : > { %v658_v25 = vadd.f32 %v626_v15, %v540_v19  ;;  %v464_v26 = vpop.f32.mrb[6].mxu0  ;;  %v544_v28 = vpop.f32.mrb[6].mxu1 }
 0x127   : > { %751 = vst [vmem:[%s1243_s14 + $0x8] sm:$0xff] %v719_v22  ;;  %767 = vst [vmem:[%s1243_s14 + $0x88] sm:$0xff] %v735_v23  ;;  %v681_v30 = vmul.f32 %v1227_v58, %v642_v24  ;;  %v465_v32 = vadd.f32 %v1218_v49, %v464_v26  ;;  %v545_v33 = vadd.f32 %v1218_v49, %v544_v28  ;;  %v466_v34 = vpop.f32.mrb[7].mxu0  ;;  %v546_v35 = vpop.f32.mrb[7].mxu1  ;;  %v615_v22 = vld [vmem:[%s1213_s7 + $0x38] sm:$0xff] }
 0x128   : > { %v697_v31 = vmul.f32 %v1227_v58, %v658_v25  ;;  %v631_v24 = vld [vmem:[%s1213_s7 + $0xb8] sm:$0xff] }
 0x129   : > { %v720_v36 = vadd.f32 %v1232_v61, %v681_v30  ;;  %v643_v38 = vadd.f32 %v611_v27, %v465_v32  ;;  %v659_v39 = vadd.f32 %v627_v29, %v545_v33 }
 0x12a   : > { %v736_v37 = vadd.f32 %v1232_v61, %v697_v31  ;;  %v469_v40 = vpop.f32.mrb[8].mxu0  ;;  %v549_v42 = vpop.f32.mrb[8].mxu1 }
 0x12b   : > { %752 = vst [vmem:[%s1243_s14 + $0x10] sm:$0xff] %v720_v36  ;;  %v682_v44 = vmul.f32 %v1227_v58, %v643_v38  ;;  %v698_v45 = vmul.f32 %v1227_v58, %v659_v39  ;;  %v470_v46 = vadd.f32 %v1218_v49, %v469_v40  ;;  %v550_v47 = vadd.f32 %v1218_v49, %v549_v42  ;;  %v471_v48 = vpop.f32.mrb[9].mxu0  ;;  %v551_v50 = vpop.f32.mrb[9].mxu1  ;;  %v616_v36 = vld [vmem:[%s1213_s7 + $0x40] sm:$0xff] }
 0x12c   : > { %768 = vst [vmem:[%s1243_s14 + $0x90] sm:$0xff] %v736_v37  ;;  %v632_v38 = vld [vmem:[%s1213_s7 + $0xc0] sm:$0xff] }
 0x12d   : > { %v721_v51 = vadd.f32 %v1232_v61, %v682_v44  ;;  %v737_v52 = vadd.f32 %v1232_v61, %v698_v45  ;;  %v644_v53 = vadd.f32 %v612_v41, %v470_v46  ;;  %v660_v54 = vadd.f32 %v628_v43, %v550_v47 }
 0x12e   : > { %v474_v55 = vpop.f32.mrb[10].mxu0  ;;  %v554_v57 = vpop.f32.mrb[10].mxu1 }
 0x12f   : > { %753 = vst [vmem:[%s1243_s14 + $0x18] sm:$0xff] %v721_v51  ;;  %769 = vst [vmem:[%s1243_s14 + $0x98] sm:$0xff] %v737_v52  ;;  %v683_v60 = vmul.f32 %v1227_v58, %v644_v53  ;;  %v699_v62 = vmul.f32 %v1227_v58, %v660_v54  ;;  %v475_v63 = vadd.f32 %v1218_v49, %v474_v55  ;;  %v476_v1 = vpop.f32.mrb[11].mxu0  ;;  %v556_v2 = vpop.f32.mrb[11].mxu1  ;;  %v617_v51 = vld [vmem:[%s1213_s7 + $0x48] sm:$0xff] }
 0x130   : > { %v555_v0 = vadd.f32 %v1218_v49, %v554_v57  ;;  %v633_v53 = vld [vmem:[%s1213_s7 + $0xc8] sm:$0xff] }
 0x131   : > { %v722_v3 = vadd.f32 %v1232_v61, %v683_v60  ;;  %v738_v4 = vadd.f32 %v1232_v61, %v699_v62  ;;  %v645_v5 = vadd.f32 %v613_v56, %v475_v63 }
 0x132   : > { %v661_v6 = vadd.f32 %v629_v59, %v555_v0  ;;  %v479_v7 = vpop.f32.mrb[12].mxu0  ;;  %v559_v9 = vpop.f32.mrb[12].mxu1 }
 0x133   : > { %754 = vst [vmem:[%s1243_s14 + $0x20] sm:$0xff] %v722_v3  ;;  %770 = vst [vmem:[%s1243_s14 + $0xa0] sm:$0xff] %v738_v4  ;;  %v684_v11 = vmul.f32 %v1227_v58, %v645_v5  ;;  %v480_v13 = vadd.f32 %v1218_v49, %v479_v7  ;;  %v560_v14 = vadd.f32 %v1218_v49, %v559_v9  ;;  %v481_v15 = vpop.f32.mrb[13].mxu0  ;;  %v561_v16 = vpop.f32.mrb[13].mxu1  ;;  %v618_v3 = vld [vmem:[%s1213_s7 + $0x50] sm:$0xff] }
 0x134   : > { %v700_v12 = vmul.f32 %v1227_v58, %v661_v6  ;;  %v634_v5 = vld [vmem:[%s1213_s7 + $0xd0] sm:$0xff] }
 0x135   : > { %v723_v17 = vadd.f32 %v1232_v61, %v684_v11  ;;  %v646_v19 = vadd.f32 %v614_v8, %v480_v13  ;;  %v662_v20 = vadd.f32 %v630_v10, %v560_v14 }
 0x136   : > { %v739_v18 = vadd.f32 %v1232_v61, %v700_v12  ;;  %v484_v21 = vpop.f32.mrb[14].mxu0  ;;  %v564_v23 = vpop.f32.mrb[14].mxu1 }
 0x137   : > { %755 = vst [vmem:[%s1243_s14 + $0x28] sm:$0xff] %v723_v17  ;;  %v685_v25 = vmul.f32 %v1227_v58, %v646_v19  ;;  %v701_v26 = vmul.f32 %v1227_v58, %v662_v20  ;;  %v485_v27 = vadd.f32 %v1218_v49, %v484_v21  ;;  %v565_v28 = vadd.f32 %v1218_v49, %v564_v23  ;;  %v486_v29 = vpop.f32.mrb[15].mxu0  ;;  %v566_v30 = vpop.f32.mrb[15].mxu1  ;;  %v619_v17 = vld [vmem:[%s1213_s7 + $0x58] sm:$0xff] }
 0x138   : > { %771 = vst [vmem:[%s1243_s14 + $0xa8] sm:$0xff] %v739_v18  ;;  %v635_v19 = vld [vmem:[%s1213_s7 + $0xd8] sm:$0xff] }
 0x139   : > { %v724_v31 = vadd.f32 %v1232_v61, %v685_v25  ;;  %v740_v32 = vadd.f32 %v1232_v61, %v701_v26  ;;  %v647_v33 = vadd.f32 %v615_v22, %v485_v27  ;;  %v663_v34 = vadd.f32 %v631_v24, %v565_v28 }
 0x13a   : > { %v489_v35 = vpop.f32.mrb[16].mxu0  ;;  %v569_v37 = vpop.f32.mrb[16].mxu1 }
 0x13b   : > { %756 = vst [vmem:[%s1243_s14 + $0x30] sm:$0xff] %v724_v31  ;;  %772 = vst [vmem:[%s1243_s14 + $0xb0] sm:$0xff] %v740_v32  ;;  %v686_v39 = vmul.f32 %v1227_v58, %v647_v33  ;;  %v702_v40 = vmul.f32 %v1227_v58, %v663_v34  ;;  %v490_v41 = vadd.f32 %v1218_v49, %v489_v35  ;;  %v491_v43 = vpop.f32.mrb[17].mxu0  ;;  %v571_v44 = vpop.f32.mrb[17].mxu1  ;;  %v620_v31 = vld [vmem:[%s1213_s7 + $0x60] sm:$0xff] }
 0x13c   : > { %v570_v42 = vadd.f32 %v1218_v49, %v569_v37  ;;  %v636_v33 = vld [vmem:[%s1213_s7 + $0xe0] sm:$0xff] }
 0x13d   : > { %v725_v45 = vadd.f32 %v1232_v61, %v686_v39  ;;  %v741_v46 = vadd.f32 %v1232_v61, %v702_v40  ;;  %v648_v47 = vadd.f32 %v616_v36, %v490_v41 }
 0x13e   : > { %v664_v48 = vadd.f32 %v632_v38, %v570_v42  ;;  %v494_v50 = vpop.f32.mrb[18].mxu0  ;;  %v574_v52 = vpop.f32.mrb[18].mxu1 }
 0x13f   : > { %757 = vst [vmem:[%s1243_s14 + $0x38] sm:$0xff] %v725_v45  ;;  %773 = vst [vmem:[%s1243_s14 + $0xb8] sm:$0xff] %v741_v46  ;;  %v687_v54 = vmul.f32 %v1227_v58, %v648_v47  ;;  %v495_v56 = vadd.f32 %v1218_v49, %v494_v50  ;;  %v575_v57 = vadd.f32 %v1218_v49, %v574_v52  ;;  %v496_v59 = vpop.f32.mrb[19].mxu0  ;;  %v576_v60 = vpop.f32.mrb[19].mxu1  ;;  %v621_v45 = vld [vmem:[%s1213_s7 + $0x68] sm:$0xff] }
 0x140   : > { %v703_v55 = vmul.f32 %v1227_v58, %v664_v48  ;;  %v637_v47 = vld [vmem:[%s1213_s7 + $0xe8] sm:$0xff] }
 0x141   : > { %v726_v62 = vadd.f32 %v1232_v61, %v687_v54  ;;  %v649_v0 = vadd.f32 %v617_v51, %v495_v56  ;;  %v665_v1 = vadd.f32 %v633_v53, %v575_v57 }
 0x142   : > { %v742_v63 = vadd.f32 %v1232_v61, %v703_v55  ;;  %v499_v2 = vpop.f32.mrb[20].mxu0  ;;  %v579_v4 = vpop.f32.mrb[20].mxu1 }
 0x143   : > { %758 = vst [vmem:[%s1243_s14 + $0x40] sm:$0xff] %v726_v62  ;;  %v688_v6 = vmul.f32 %v1227_v58, %v649_v0  ;;  %v704_v7 = vmul.f32 %v1227_v58, %v665_v1  ;;  %v500_v8 = vadd.f32 %v1218_v49, %v499_v2  ;;  %v580_v9 = vadd.f32 %v1218_v49, %v579_v4  ;;  %v501_v10 = vpop.f32.mrb[21].mxu0  ;;  %v581_v11 = vpop.f32.mrb[21].mxu1  ;;  %v622_v62 = vld [vmem:[%s1213_s7 + $0x70] sm:$0xff] }
 0x144   : > { %774 = vst [vmem:[%s1243_s14 + $0xc0] sm:$0xff] %v742_v63  ;;  %v638_v0 = vld [vmem:[%s1213_s7 + $0xf0] sm:$0xff] }
 0x145   : > { %v727_v12 = vadd.f32 %v1232_v61, %v688_v6  ;;  %v743_v13 = vadd.f32 %v1232_v61, %v704_v7  ;;  %v650_v14 = vadd.f32 %v618_v3, %v500_v8  ;;  %v666_v15 = vadd.f32 %v634_v5, %v580_v9 }
 0x146   : > { %v504_v16 = vpop.f32.mrb[22].mxu0  ;;  %v584_v18 = vpop.f32.mrb[22].mxu1 }
 0x147   : > { %759 = vst [vmem:[%s1243_s14 + $0x48] sm:$0xff] %v727_v12  ;;  %775 = vst [vmem:[%s1243_s14 + $0xc8] sm:$0xff] %v743_v13  ;;  %v689_v20 = vmul.f32 %v1227_v58, %v650_v14  ;;  %v705_v21 = vmul.f32 %v1227_v58, %v666_v15  ;;  %v505_v22 = vadd.f32 %v1218_v49, %v504_v16  ;;  %v506_v24 = vpop.f32.mrb[23].mxu0  ;;  %v586_v25 = vpop.f32.mrb[23].mxu1  ;;  %v623_v12 = vld [vmem:[%s1213_s7 + $0x78] sm:$0xff] }
 0x148   : > { %v585_v23 = vadd.f32 %v1218_v49, %v584_v18  ;;  %v639_v14 = vld [vmem:[%s1213_s7 + $0xf8] sm:$0xff] }
 0x149   : > { %v728_v26 = vadd.f32 %v1232_v61, %v689_v20  ;;  %v744_v27 = vadd.f32 %v1232_v61, %v705_v21  ;;  %v651_v28 = vadd.f32 %v619_v17, %v505_v22 }
 0x14a   : > { %v667_v29 = vadd.f32 %v635_v19, %v585_v23  ;;  %v509_v30 = vpop.f32.mrb[24].mxu0  ;;  %v589_v32 = vpop.f32.mrb[24].mxu1 }
 0x14b   : > { %760 = vst [vmem:[%s1243_s14 + $0x50] sm:$0xff] %v728_v26  ;;  %776 = vst [vmem:[%s1243_s14 + $0xd0] sm:$0xff] %v744_v27  ;;  %v690_v34 = vmul.f32 %v1227_v58, %v651_v28  ;;  %v510_v36 = vadd.f32 %v1218_v49, %v509_v30  ;;  %v590_v37 = vadd.f32 %v1218_v49, %v589_v32  ;;  %v511_v38 = vpop.f32.mrb[25].mxu0  ;;  %v591_v39 = vpop.f32.mrb[25].mxu1 }
 0x14c   : > { %v706_v35 = vmul.f32 %v1227_v58, %v667_v29 }
 0x14d   : > { %v729_v40 = vadd.f32 %v1232_v61, %v690_v34  ;;  %v652_v42 = vadd.f32 %v620_v31, %v510_v36  ;;  %v668_v43 = vadd.f32 %v636_v33, %v590_v37 }
 0x14e   : > { %v745_v41 = vadd.f32 %v1232_v61, %v706_v35  ;;  %v514_v44 = vpop.f32.mrb[26].mxu0  ;;  %v594_v46 = vpop.f32.mrb[26].mxu1 }
 0x14f   : > { %761 = vst [vmem:[%s1243_s14 + $0x58] sm:$0xff] %v729_v40  ;;  %v691_v48 = vmul.f32 %v1227_v58, %v652_v42  ;;  %v707_v50 = vmul.f32 %v1227_v58, %v668_v43  ;;  %v515_v51 = vadd.f32 %v1218_v49, %v514_v44  ;;  %v595_v52 = vadd.f32 %v1218_v49, %v594_v46  ;;  %v516_v53 = vpop.f32.mrb[27].mxu0  ;;  %v596_v54 = vpop.f32.mrb[27].mxu1 }
 0x150   : > { %777 = vst [vmem:[%s1243_s14 + $0xd8] sm:$0xff] %v745_v41 }
 0x151   : > { %v730_v55 = vadd.f32 %v1232_v61, %v691_v48  ;;  %v746_v56 = vadd.f32 %v1232_v61, %v707_v50  ;;  %v653_v57 = vadd.f32 %v621_v45, %v515_v51  ;;  %v669_v59 = vadd.f32 %v637_v47, %v595_v52 }
 0x152   : > { %v519_v60 = vpop.f32.mrb[28].mxu0  ;;  %v599_v63 = vpop.f32.mrb[28].mxu1 }
 0x153   : > { %762 = vst [vmem:[%s1243_s14 + $0x60] sm:$0xff] %v730_v55  ;;  %778 = vst [vmem:[%s1243_s14 + $0xe0] sm:$0xff] %v746_v56  ;;  %v692_v1 = vmul.f32 %v1227_v58, %v653_v57  ;;  %v708_v2 = vmul.f32 %v1227_v58, %v669_v59  ;;  %v520_v3 = vadd.f32 %v1218_v49, %v519_v60  ;;  %v521_v5 = vpop.f32.mrb[29].mxu0  ;;  %v601_v6 = vpop.f32.mrb[29].mxu1 }
 0x154   : > { %v600_v4 = vadd.f32 %v1218_v49, %v599_v63 }
 0x155   : > { %v731_v7 = vadd.f32 %v1232_v61, %v692_v1  ;;  %v747_v8 = vadd.f32 %v1232_v61, %v708_v2  ;;  %v654_v9 = vadd.f32 %v622_v62, %v520_v3 }
 0x156   : > { %v670_v10 = vadd.f32 %v638_v0, %v600_v4  ;;  %v524_v11 = vpop.f32.mrb[30].mxu0  ;;  %v604_v13 = vpop.f32.mrb[30].mxu1 }
 0x157   : > { %763 = vst [vmem:[%s1243_s14 + $0x68] sm:$0xff] %v731_v7  ;;  %779 = vst [vmem:[%s1243_s14 + $0xe8] sm:$0xff] %v747_v8  ;;  %v693_v15 = vmul.f32 %v1227_v58, %v654_v9  ;;  %v525_v17 = vadd.f32 %v1218_v49, %v524_v11  ;;  %v605_v18 = vadd.f32 %v1218_v49, %v604_v13  ;;  %v526_v19 = vpop.f32.mrb[31].mxu0  ;;  %v606_v20 = vpop.f32.mrb[31].mxu1 }
 0x158   : > { %v709_v16 = vmul.f32 %v1227_v58, %v670_v10 }
 0x159   : > { %v732_v21 = vadd.f32 %v1232_v61, %v693_v15  ;;  %v655_v23 = vadd.f32 %v623_v12, %v525_v17  ;;  %v671_v24 = vadd.f32 %v639_v14, %v605_v18 }
 0x15a   : > { %v748_v22 = vadd.f32 %v1232_v61, %v709_v16 }
 0x15b   : > { %764 = vst [vmem:[%s1243_s14 + $0x70] sm:$0xff] %v732_v21  ;;  %v694_v25 = vmul.f32 %v1227_v58, %v655_v23  ;;  %v710_v26 = vmul.f32 %v1227_v58, %v671_v24 }
 0x15c   : > { %780 = vst [vmem:[%s1243_s14 + $0xf0] sm:$0xff] %v748_v22 }
 0x15d   : > { %v733_v27 = vadd.f32 %v1232_v61, %v694_v25  ;;  %v749_v28 = vadd.f32 %v1232_v61, %v710_v26 }
 0x15f   : > { %765 = vst [vmem:[%s1243_s14 + $0x78] sm:$0xff] %v733_v27  ;;  %781 = vst [vmem:[%s1243_s14 + $0xf8] sm:$0xff] %v749_v28 }
 0x160 PF: > { %s16_s21 = sadd.s32 1, %s963_s21  }
 0x161   : > { %p13_p4 = scmp.ge.s32.totalorder %s16_s21, 4  }
 0x163   :  { %15 = sbr.rel (!%p13_p4) target bundleno = 1 (0x1), region = 77 }

// kernel: ts_transformer_forward.18
= control target key start
LH: loop header
LB: loop body
LE: loop exit
PB: predicated region body
PF: predicated region fallthrough
CT: control target
= control target key end

     0   :  { %s1167_s12 = smov 0   ;;  %s1657_s0 = inlined_call_operand.vmem [shape: f32[512,128], index: 0, kind: input, shape index: {}]   ;;  %s1658_s1 = inlined_call_operand.vmem [shape: f32[128,384], index: 1, kind: input, shape index: {}]   ;;  %s1659_s2 = inlined_call_operand.vmem [shape: f32[1,384], index: 2, kind: input, shape index: {}]   ;;  %s1660_s3 = inlined_call_operand.vmem [shape: f32[512,384], index: 3, kind: output, shape index: {}]  }
   0x1 LB: > { %s909_s13 = sadd.s32 4294967295, %s1144_s12   ;;  %p913_p0 = scmp.ge.s32.totalorder %s1144_s12, 1  ;;  %s1144_s12 = sphi %s1167_s12, %s13_s12  }
   0x2   : > { %p138_p1 = scmp.lt.s32.totalorder %s1144_s12, 3 }
   0x4   : > { %p139_p2 = pnand %p913_p0, %p138_p1 }
   0x5   : > { %v209_v0 = vld [vmem:[%s1658_s1 + $0x8] sm:$0xff] (!%p139_p2)  ;;  %v212_v1 = vld [vmem:[%s1658_s1 + $0x20] sm:$0xff] (!%p139_p2)  ;;  %v211_v4 = vld [vmem:[%s1658_s1 + $0x18] sm:$0xff] (!%p139_p2)  ;;  %v1146_v7 = vmov (!%p139_p2), 0.0   ;;  %s914_s6 = sshll.u32 (!%p139_p2), %s909_s13, 5 }
   0x6   : > { %142 = sbr.rel (%p139_p2) target bundleno = 348 (0x15c), region = 32  ;;  %v208_v2 = vld [vmem:[%s1658_s1] sm:$0xff] (!%p139_p2)  ;;  %v1048_v3 = vpack.c.bf16 (!%p139_p2), %v212_v1, %v209_v0  ;;  %v215_v5 = vld [vmem:[%s1658_s1 + $0x38] sm:$0xff] (!%p139_p2)  ;;  %v218_v6 = vld [vmem:[%s1658_s1 + $0x50] sm:$0xff] (!%p139_p2)  ;;  %337 = vmatprep.mubr.f32.mxu0 (!%p139_p2), %v1146_v7  ;;  %481 = vmatprep.mubr.f32.mxu1 (!%p139_p2), %v1146_v7  ;;  %p164_p3 = scmp.lt.s32.totalorder (!%p139_p2), %s914_s6, 63 }
   0x7   : > { %v1050_v8 = vpack.c.bf16 (!%p139_p2), %v211_v4, %v208_v2  ;;  %v1052_v9 = vpack.c.bf16 (!%p139_p2), %v218_v6, %v215_v5  ;;  %v214_v10 = vld [vmem:[%s1658_s1 + $0x30] sm:$0xff] (!%p139_p2)  ;;  %v217_v11 = vld [vmem:[%s1658_s1 + $0x48] sm:$0xff] (!%p139_p2)  ;;  %v224_v13 = vld [vmem:[%s1658_s1 + $0x80] sm:$0xff] (!%p139_p2) }
   0x8   : > { %v221_v12 = vld [vmem:[%s1658_s1 + $0x68] sm:$0xff] (!%p139_p2)  ;;  %1049 = vmatprep.subr.bf16.mxu0 (!%p139_p2), %v1048_v3  ;;  %1112 = vmatprep.subr.bf16.mxu1 (!%p139_p2), %v1048_v3  ;;  %v1054_v14 = vpack.c.bf16 (!%p139_p2), %v217_v11, %v214_v10  ;;  %v220_v16 = vld [vmem:[%s1658_s1 + $0x60] sm:$0xff] (!%p139_p2)  ;;  %v223_v17 = vld [vmem:[%s1658_s1 + $0x78] sm:$0xff] (!%p139_p2) }
   0x9   : > { %1051 = vmatpush1.bf16.msra.mxu0 (!%p139_p2), %v1050_v8  ;;  %1120 = vmatpush1.bf16.msra.mxu1 (!%p139_p2), %v1050_v8  ;;  %v1056_v15 = vpack.c.bf16 (!%p139_p2), %v224_v13, %v221_v12  ;;  %v227_v18 = vld [vmem:[%s1658_s1 + $0x98] sm:$0xff] (!%p139_p2)  ;;  %v230_v19 = vld [vmem:[%s1658_s1 + $0xb0] sm:$0xff] (!%p139_p2)  ;;  %v1058_v20 = vpack.c.bf16 (!%p139_p2), %v223_v17, %v220_v16  ;;  %v229_v23 = vld [vmem:[%s1658_s1 + $0xa8] sm:$0xff] (!%p139_p2) }
   0xa   : > { %1053 = vmatprep.subr.bf16.mxu0 (!%p139_p2), %v1052_v9  ;;  %1113 = vmatprep.subr.bf16.mxu1 (!%p139_p2), %v1052_v9  ;;  %v1060_v21 = vpack.c.bf16 (!%p139_p2), %v230_v19, %v227_v18  ;;  %v226_v22 = vld [vmem:[%s1658_s1 + $0x90] sm:$0xff] (!%p139_p2)  ;;  %v233_v24 = vld [vmem:[%s1658_s1 + $0xc8] sm:$0xff] (!%p139_p2)  ;;  %v236_v25 = vld [vmem:[%s1658_s1 + $0xe0] sm:$0xff] (!%p139_p2) }
   0xb   : > { %v1062_v26 = vpack.c.bf16 (!%p139_p2), %v229_v23, %v226_v22  ;;  %v1064_v27 = vpack.c.bf16 (!%p139_p2), %v236_v25, %v233_v24  ;;  %v232_v28 = vld [vmem:[%s1658_s1 + $0xc0] sm:$0xff] (!%p139_p2)  ;;  %v235_v29 = vld [vmem:[%s1658_s1 + $0xd8] sm:$0xff] (!%p139_p2)  ;;  %v242_v31 = vld [vmem:[%s1658_s1 + $0x110] sm:$0xff] (!%p139_p2) }
   0xc   : > { %v239_v30 = vld [vmem:[%s1658_s1 + $0xf8] sm:$0xff] (!%p139_p2)  ;;  %v1066_v32 = vpack.c.bf16 (!%p139_p2), %v235_v29, %v232_v28  ;;  %v238_v34 = vld [vmem:[%s1658_s1 + $0xf0] sm:$0xff] (!%p139_p2)  ;;  %v241_v35 = vld [vmem:[%s1658_s1 + $0x108] sm:$0xff] (!%p139_p2) }
   0xd   : > { %1055 = vmatpush1.bf16.msra.mxu0 %v1054_v14  ;;  %1121 = vmatpush1.bf16.msra.mxu1 %v1054_v14  ;;  %v1068_v33 = vpack.c.bf16 %v242_v31, %v239_v30  ;;  %v245_v36 = vld [vmem:[%s1658_s1 + $0x128] sm:$0xff]  ;;  %v248_v37 = vld [vmem:[%s1658_s1 + $0x140] sm:$0xff]  ;;  %v1070_v38 = vpack.c.bf16 %v241_v35, %v238_v34  ;;  %v247_v41 = vld [vmem:[%s1658_s1 + $0x138] sm:$0xff]  ;;  %s1662_s6 = smov (!%p164_p3, %s914_s6), 63 }
   0xe   : > { %1057 = vmatprep.subr.bf16.mxu0 %v1056_v15  ;;  %1114 = vmatprep.subr.bf16.mxu1 %v1056_v15  ;;  %v1072_v39 = vpack.c.bf16 %v248_v37, %v245_v36  ;;  %v244_v40 = vld [vmem:[%s1658_s1 + $0x120] sm:$0xff]  ;;  %v251_v42 = vld [vmem:[%s1658_s1 + $0x158] sm:$0xff]  ;;  %v254_v43 = vld [vmem:[%s1658_s1 + $0x170] sm:$0xff]  ;;  %s915_s28 = sshll.u32 %s1662_s6, 3  ;;  %s1128_s16 = smul.u32 24, %s1662_s6 }
   0xf   : > { %v1074_v44 = vpack.c.bf16 %v247_v41, %v244_v40  ;;  %v1076_v45 = vpack.c.bf16 %v254_v43, %v251_v42  ;;  %v250_v46 = vld [vmem:[%s1658_s1 + $0x150] sm:$0xff]  ;;  %v253_v47 = vld [vmem:[%s1658_s1 + $0x168] sm:$0xff]  ;;  %s1287_s9 = scalar_lea.vmem %s1657_s0, %s915_s28  ;;  %v216_v52 = vld [vmem:[%s1658_s1 + $0x40] sm:$0xff]  ;;  %v258_v42 = vlaneseq }
  0x10   : > { %v210_v48 = vld [vmem:[%s1658_s1 + $0x10] sm:$0xff]  ;;  %v213_v49 = vld [vmem:[%s1658_s1 + $0x28] sm:$0xff]  ;;  %v1078_v50 = vpack.c.bf16 %v253_v47, %v250_v46  ;;  %v219_v53 = vld [vmem:[%s1658_s1 + $0x58] sm:$0xff]  ;;  %s1456_s19 = scalar_lea.vmem %s1660_s3, %s1128_s16 }
  0x11   : > { %1059 = vmatpush1.bf16.msra.mxu0 %v1058_v20  ;;  %1122 = vmatpush1.bf16.msra.mxu1 %v1058_v20  ;;  %v1080_v51 = vpack.c.bf16 %v213_v49, %v210_v48  ;;  %v1296_v54 = vld [vmem:[%s1287_s9] sm:$0xff]  ;;  %v1084_v56 = vpack.c.bf16 %v219_v53, %v216_v52  ;;  %v222_v57 = vld [vmem:[%s1658_s1 + $0x70] sm:$0xff]  ;;  %v225_v58 = vld [vmem:[%s1658_s1 + $0x88] sm:$0xff]  ;;  %v1437_v43 = vshrl.u32 %v258_v42, 7 }
  0x12   : > { %1061 = vmatprep.subr.bf16.mxu0 %v1060_v21  ;;  %1115 = vmatprep.subr.bf16.mxu1 %v1060_v21  ;;  %v1299_v55 = vld [vmem:[%s1287_s9 + $0xc0] sm:$0xff]  ;;  %v1311_v59 = vld [vmem:[%s1287_s9 + $0x8] sm:$0xff]  ;;  %v1088_v61 = vpack.c.bf16 %v225_v58, %v222_v57  ;;  %v231_v63 = vld [vmem:[%s1658_s1 + $0xb8] sm:$0xff] }
  0x13   : > { %v1314_v60 = vld [vmem:[%s1287_s9 + $0xc8] sm:$0xff]  ;;  %v228_v62 = vld [vmem:[%s1658_s1 + $0xa0] sm:$0xff]  ;;  %v1327_v0 = vld [vmem:[%s1287_s9 + $0x10] sm:$0xff]  ;;  %v264_v46 = vsub.s32 1, %v1437_v43 }
  0x14   : > { %v1330_v1 = vld [vmem:[%s1287_s9 + $0xd0] sm:$0xff]  ;;  %v1092_v2 = vpack.c.bf16 %v231_v63, %v228_v62  ;;  %v237_v4 = vld [vmem:[%s1658_s1 + $0xe8] sm:$0xff]  ;;  %v179_v5 = vld [vmem:[%s1287_s9 + $0x18] sm:$0xff] }
  0x15   : > { %1063 = vmatpush1.bf16.msra.mxu0 %v1062_v26  ;;  %1123 = vmatpush1.bf16.msra.mxu1 %v1062_v26  ;;  %v234_v3 = vld [vmem:[%s1658_s1 + $0xd0] sm:$0xff]  ;;  %v1344_v6 = vld [vmem:[%s1287_s9 + $0xd8] sm:$0xff]  ;;  %v240_v9 = vld [vmem:[%s1658_s1 + $0x100] sm:$0xff] }
  0x16   : > { %1065 = vmatprep.subr.bf16.mxu0 %v1064_v27  ;;  %1116 = vmatprep.subr.bf16.mxu1 %v1064_v27  ;;  %v1096_v8 = vpack.c.bf16 %v237_v4, %v234_v3  ;;  %v243_v10 = vld [vmem:[%s1658_s1 + $0x118] sm:$0xff]  ;;  %v180_v11 = vld [vmem:[%s1287_s9 + $0x20] sm:$0xff]  ;;  %v246_v14 = vld [vmem:[%s1658_s1 + $0x130] sm:$0xff] }
  0x17   : > { %v1357_v12 = vld [vmem:[%s1287_s9 + $0xe0] sm:$0xff]  ;;  %v1100_v13 = vpack.c.bf16 %v243_v10, %v240_v9  ;;  %v249_v15 = vld [vmem:[%s1658_s1 + $0x148] sm:$0xff]  ;;  %v255_v20 = vld [vmem:[%s1658_s1 + $0x178] sm:$0xff] }
  0x18   : > { %v181_v16 = vld [vmem:[%s1287_s9 + $0x28] sm:$0xff]  ;;  %v1104_v18 = vpack.c.bf16 %v249_v15, %v246_v14  ;;  %v252_v19 = vld [vmem:[%s1658_s1 + $0x160] sm:$0xff]  ;;  %v182_v21 = vld [vmem:[%s1287_s9 + $0x30] sm:$0xff] }
  0x19   : > { %1067 = vmatpush1.bf16.msra.mxu0 %v1066_v32  ;;  %1124 = vmatpush1.bf16.msra.mxu1 %v1066_v32  ;;  %v1370_v17 = vld [vmem:[%s1287_s9 + $0xe8] sm:$0xff]  ;;  %v1383_v22 = vld [vmem:[%s1287_s9 + $0xf0] sm:$0xff]  ;;  %v1108_v23 = vpack.c.bf16 %v255_v20, %v252_v19  ;;  %v183_v24 = vld [vmem:[%s1287_s9 + $0x38] sm:$0xff] }
  0x1a   : > { %1069 = vmatprep.subr.bf16.mxu0 %v1068_v33  ;;  %1117 = vmatprep.subr.bf16.mxu1 %v1068_v33  ;;  %v1390_v25 = vld [vmem:[%s1287_s9 + $0xf8] sm:$0xff]  ;;  %v184_v26 = vld [vmem:[%s1287_s9 + $0x40] sm:$0xff]  ;;  %v185_v27 = vld [vmem:[%s1287_s9 + $0x48] sm:$0xff] }
  0x1b   : > { %v186_v28 = vld [vmem:[%s1287_s9 + $0x50] sm:$0xff]  ;;  %v187_v29 = vld [vmem:[%s1287_s9 + $0x58] sm:$0xff]  ;;  %v188_v30 = vld [vmem:[%s1287_s9 + $0x60] sm:$0xff] }
  0x1c   : > { %v189_v31 = vld [vmem:[%s1287_s9 + $0x68] sm:$0xff]  ;;  %v190_v32 = vld [vmem:[%s1287_s9 + $0x70] sm:$0xff]  ;;  %v191_v33 = vld [vmem:[%s1287_s9 + $0x78] sm:$0xff] }
  0x1d   : > { %1071 = vmatpush1.bf16.msra.mxu0 %v1070_v38  ;;  %1125 = vmatpush1.bf16.msra.mxu1 %v1070_v38  ;;  %v192_v34 = vld [vmem:[%s1287_s9 + $0x80] sm:$0xff]  ;;  %v193_v35 = vld [vmem:[%s1287_s9 + $0x88] sm:$0xff]  ;;  %v194_v36 = vld [vmem:[%s1287_s9 + $0x90] sm:$0xff] }
  0x1e   : > { %1073 = vmatprep.subr.bf16.mxu0 %v1072_v39  ;;  %1118 = vmatprep.subr.bf16.mxu1 %v1072_v39  ;;  %v195_v37 = vld [vmem:[%s1287_s9 + $0x98] sm:$0xff]  ;;  %v196_v38 = vld [vmem:[%s1287_s9 + $0xa0] sm:$0xff]  ;;  %v197_v39 = vld [vmem:[%s1287_s9 + $0xa8] sm:$0xff] }
  0x1f   : > { %v198_v40 = vld [vmem:[%s1287_s9 + $0xb0] sm:$0xff]  ;;  %v199_v41 = vld [vmem:[%s1287_s9 + $0xb8] sm:$0xff] }
  0x21   : > { %1075 = vmatpush1.bf16.msra.mxu0 %v1074_v44  ;;  %1126 = vmatpush1.bf16.msra.mxu1 %v1074_v44  ;;  %v260_v44 = vsub.s32 0, %v1437_v43 }
  0x22   : > { %1077 = vmatprep.subr.bf16.mxu0 %v1076_v45  ;;  %1119 = vmatprep.subr.bf16.mxu1 %v1076_v45  ;;  %v1443_v45 = vld [vmem:[%s1659_s2] sm:$0x7] }
  0x23   : > { %v1451_v47 = vrot.slane %v1443_v45, %v264_v46 }
  0x25   : > { %1079 = vmatpush1.bf16.msra.mxu0 %v1078_v50  ;;  %1127 = vmatpush1.bf16.msra.mxu1 %v1078_v50 }
  0x26   : > { %1081 = vmatprep.subr.bf16.mxu1 %v1080_v51 }
  0x28   : > { %338 = vmatmul.mubr.f32.vlgmr.msra.gmra.mrb[0].mxu0 %v1296_v54  ;;  %482 = vmatmul.mubr.f32.vlgmr.msra.gmra.mrb[0].mxu1 %v1299_v55 }
  0x29   : > { %1083 = vmatpush3.bf16.msra.mxu1 %v1080_v51  ;;  %343 = vmatprep.mubr.f32.mxu0 %v1146_v7 }
  0x2a   : > { %487 = vmatprep.mubr.f32.mxu1 %v1146_v7  ;;  %1085 = vmatprep.subr.bf16.mxu1 %v1084_v56 }
  0x2c   : > { %344 = vmatmul.mubr.f32.gmra.mrb[2].mxu0 %v1311_v59  ;;  %488 = vmatmul.mubr.f32.gmra.mrb[2].mxu1 %v1314_v60 }
  0x2d   : > { %1087 = vmatpush3.bf16.msra.mxu1 %v1084_v56  ;;  %349 = vmatprep.mubr.f32.mxu0 %v1146_v7 }
  0x2e   : > { %493 = vmatprep.mubr.f32.mxu1 %v1146_v7  ;;  %1089 = vmatprep.subr.bf16.mxu1 %v1088_v61 }
  0x30   : > { %350 = vmatmul.mubr.f32.gmra.mrb[4].mxu0 %v1327_v0  ;;  %494 = vmatmul.mubr.f32.gmra.mrb[4].mxu1 %v1330_v1 }
  0x31   : > { %1091 = vmatpush3.bf16.msra.mxu1 %v1088_v61  ;;  %355 = vmatprep.mubr.f32.mxu0 %v1146_v7 }
  0x32   : > { %499 = vmatprep.mubr.f32.mxu1 %v1146_v7  ;;  %1093 = vmatprep.subr.bf16.mxu1 %v1092_v2 }
  0x34   : > { %356 = vmatmul.mubr.f32.gmra.mrb[6].mxu0 %v179_v5  ;;  %500 = vmatmul.mubr.f32.gmra.mrb[6].mxu1 %v1344_v6 }
  0x35   : > { %1095 = vmatpush3.bf16.msra.mxu1 %v1092_v2  ;;  %361 = vmatprep.mubr.f32.mxu0 %v1146_v7 }
  0x36   : > { %505 = vmatprep.mubr.f32.mxu1 %v1146_v7  ;;  %1097 = vmatprep.subr.bf16.mxu1 %v1096_v8 }
  0x38   : > { %362 = vmatmul.mubr.f32.gmra.mrb[8].mxu0 %v180_v11  ;;  %506 = vmatmul.mubr.f32.gmra.mrb[8].mxu1 %v1357_v12 }
  0x39   : > { %1099 = vmatpush3.bf16.msra.mxu1 %v1096_v8  ;;  %367 = vmatprep.mubr.f32.mxu0 %v1146_v7 }
  0x3a   : > { %511 = vmatprep.mubr.f32.mxu1 %v1146_v7  ;;  %1101 = vmatprep.subr.bf16.mxu1 %v1100_v13 }
  0x3c   : > { %368 = vmatmul.mubr.f32.gmra.mrb[10].mxu0 %v181_v16  ;;  %512 = vmatmul.mubr.f32.gmra.mrb[10].mxu1 %v1370_v17 }
  0x3d   : > { %1103 = vmatpush3.bf16.msra.mxu1 %v1100_v13  ;;  %373 = vmatprep.mubr.f32.mxu0 %v1146_v7 }
  0x3e   : > { %517 = vmatprep.mubr.f32.mxu1 %v1146_v7  ;;  %1105 = vmatprep.subr.bf16.mxu1 %v1104_v18 }
  0x40   : > { %374 = vmatmul.mubr.f32.gmra.mrb[12].mxu0 %v182_v21  ;;  %518 = vmatmul.mubr.f32.gmra.mrb[12].mxu1 %v1383_v22 }
  0x41   : > { %1107 = vmatpush3.bf16.msra.mxu1 %v1104_v18  ;;  %379 = vmatprep.mubr.f32.mxu0 %v1146_v7 }
  0x42   : > { %523 = vmatprep.mubr.f32.mxu1 %v1146_v7  ;;  %1109 = vmatprep.subr.bf16.mxu1 %v1108_v23 }
  0x44   : > { %380 = vmatmul.mubr.f32.gmra.mrb[14].mxu0 %v183_v24  ;;  %524 = vmatmul.mubr.f32.gmra.mrb[14].mxu1 %v1390_v25 }
  0x45   : > { %1111 = vmatpush3.bf16.msra.mxu1 %v1108_v23  ;;  %385 = vmatprep.mubr.f32.mxu0 %v1146_v7 }
  0x46   : > { %1000 = vmatprep.mubr.f32.mxu1 %v1296_v54 }
  0x48   : > { %386 = vmatmul.mubr.f32.gmra.mrb[16].mxu0 %v184_v26  ;;  %1001 = vmatmul.mubr.f32.vlgmr.msra.gmra.mrb[16].mxu1 %v1311_v59 }
  0x49   : > { %391 = vmatprep.mubr.f32.mxu0 %v1146_v7  ;;  %1003 = vmatprep.mubr.f32.mxu1 %v1327_v0 }
  0x4c   : > { %392 = vmatmul.mubr.f32.gmra.mrb[18].mxu0 %v185_v27  ;;  %1004 = vmatmul.mubr.f32.gmra.mrb[18].mxu1 %v179_v5 }
  0x4d   : > { %397 = vmatprep.mubr.f32.mxu0 %v1146_v7  ;;  %1006 = vmatprep.mubr.f32.mxu1 %v180_v11 }
  0x50   : > { %398 = vmatmul.mubr.f32.gmra.mrb[20].mxu0 %v186_v28  ;;  %1007 = vmatmul.mubr.f32.gmra.mrb[20].mxu1 %v181_v16 }
  0x51   : > { %403 = vmatprep.mubr.f32.mxu0 %v1146_v7  ;;  %1009 = vmatprep.mubr.f32.mxu1 %v182_v21 }
  0x54   : > { %404 = vmatmul.mubr.f32.gmra.mrb[22].mxu0 %v187_v29  ;;  %1010 = vmatmul.mubr.f32.gmra.mrb[22].mxu1 %v183_v24 }
  0x55   : > { %409 = vmatprep.mubr.f32.mxu0 %v1146_v7  ;;  %1012 = vmatprep.mubr.f32.mxu1 %v184_v26 }
  0x58   : > { %410 = vmatmul.mubr.f32.gmra.mrb[24].mxu0 %v188_v30  ;;  %1013 = vmatmul.mubr.f32.gmra.mrb[24].mxu1 %v185_v27 }
  0x59   : > { %415 = vmatprep.mubr.f32.mxu0 %v1146_v7  ;;  %1015 = vmatprep.mubr.f32.mxu1 %v186_v28 }
  0x5c   : > { %416 = vmatmul.mubr.f32.gmra.mrb[26].mxu0 %v189_v31  ;;  %1016 = vmatmul.mubr.f32.gmra.mrb[26].mxu1 %v187_v29 }
  0x5d   : > { %421 = vmatprep.mubr.f32.mxu0 %v1146_v7  ;;  %1018 = vmatprep.mubr.f32.mxu1 %v188_v30 }
  0x60   : > { %422 = vmatmul.mubr.f32.gmra.mrb[28].mxu0 %v190_v32  ;;  %1019 = vmatmul.mubr.f32.gmra.mrb[28].mxu1 %v189_v31 }
  0x61   : > { %427 = vmatprep.mubr.f32.mxu0 %v1146_v7  ;;  %1021 = vmatprep.mubr.f32.mxu1 %v190_v32 }
  0x64   : > { %428 = vmatmul.mubr.f32.gmra.mrb[30].mxu0 %v191_v33  ;;  %1022 = vmatmul.mubr.f32.gmra.mrb[30].mxu1 %v191_v33 }
  0x65   : > { %433 = vmatprep.mubr.f32.mxu0 %v1146_v7  ;;  %1024 = vmatprep.mubr.f32.mxu1 %v192_v34 }
  0x68   : > { %434 = vmatmul.mubr.f32.gmra.mrb[32].mxu0 %v192_v34  ;;  %1025 = vmatmul.mubr.f32.gmra.mrb[32].mxu1 %v193_v35 }
  0x69   : > { %439 = vmatprep.mubr.f32.mxu0 %v1146_v7  ;;  %1027 = vmatprep.mubr.f32.mxu1 %v194_v36 }
  0x6c   : > { %440 = vmatmul.mubr.f32.gmra.mrb[34].mxu0 %v193_v35  ;;  %1028 = vmatmul.mubr.f32.gmra.mrb[34].mxu1 %v195_v37 }
  0x6d   : > { %445 = vmatprep.mubr.f32.mxu0 %v1146_v7  ;;  %1030 = vmatprep.mubr.f32.mxu1 %v196_v38 }
  0x70   : > { %446 = vmatmul.mubr.f32.gmra.mrb[36].mxu0 %v194_v36  ;;  %1031 = vmatmul.mubr.f32.gmra.mrb[36].mxu1 %v197_v39 }
  0x71   : > { %451 = vmatprep.mubr.f32.mxu0 %v1146_v7  ;;  %1033 = vmatprep.mubr.f32.mxu1 %v198_v40 }
  0x74   : > { %452 = vmatmul.mubr.f32.gmra.mrb[38].mxu0 %v195_v37  ;;  %1034 = vmatmul.mubr.f32.gmra.mrb[38].mxu1 %v199_v41 }
  0x75   : > { %457 = vmatprep.mubr.f32.mxu0 %v1146_v7  ;;  %1036 = vmatprep.mubr.f32.mxu1 %v1299_v55 }
  0x78   : > { %458 = vmatmul.mubr.f32.gmra.mrb[40].mxu0 %v196_v38  ;;  %1037 = vmatmul.mubr.f32.gmra.mrb[40].mxu1 %v1314_v60 }
  0x79   : > { %463 = vmatprep.mubr.f32.mxu0 %v1146_v7  ;;  %1039 = vmatprep.mubr.f32.mxu1 %v1330_v1 }
  0x7c   : > { %464 = vmatmul.mubr.f32.gmra.mrb[42].mxu0 %v197_v39  ;;  %1040 = vmatmul.mubr.f32.gmra.mrb[42].mxu1 %v1344_v6  ;;  %v268_v39 = vsub.s32 2, %v1437_v43 }
  0x7d   : > { %469 = vmatprep.mubr.f32.mxu0 %v1146_v7  ;;  %1042 = vmatprep.mubr.f32.mxu1 %v1357_v12 }
  0x80   : > { %470 = vmatmul.mubr.f32.gmra.mrb[44].mxu0 %v198_v40  ;;  %1043 = vmatmul.mubr.f32.gmra.mrb[44].mxu1 %v1370_v17 }
  0x81   : > { %475 = vmatprep.mubr.f32.mxu0 %v1146_v7  ;;  %1045 = vmatprep.mubr.f32.mxu1 %v1383_v22  ;;  %v1448_v7 = vrot.slane %v1443_v45, %v260_v44 }
  0x84   : > { %476 = vmatmul.mubr.f32.gmra.mrb[46].mxu0 %v199_v41  ;;  %1046 = vmatmul.mubr.f32.gmra.mrb[46].mxu1 %v1390_v25 }
  0xfb   : > { %v339_v48 = vpop.f32.mrb[0].mxu0  ;;  %v483_v49 = vpop.f32.mrb[0].mxu1 }
  0xfc   : > { %v340_v50 = vadd.f32 %v339_v48, %v1448_v7  ;;  %v484_v51 = vadd.f32 %v483_v49, %v1448_v7  ;;  %v341_v52 = vpop.f32.mrb[1].mxu0  ;;  %v485_v53 = vpop.f32.mrb[1].mxu1 }
  0xfd   : > { %v342_v54 = vadd.f32 %v341_v52, %v1451_v47  ;;  %v486_v55 = vadd.f32 %v485_v53, %v1451_v47 }
  0xfe   : > { %755 = vst [vmem:[%s1456_s19] sm:$0xff] %v340_v50  ;;  %827 = vst [vmem:[%s1456_s19 + $0x240] sm:$0xff] %v484_v51  ;;  %v1518_v50 = vrot.slane %v1443_v45, %v268_v39 }
  0xff   : > { %756 = vst [vmem:[%s1456_s19 + $0x8] sm:$0xff] %v342_v54  ;;  %828 = vst [vmem:[%s1456_s19 + $0x248] sm:$0xff] %v486_v55  ;;  %v345_v56 = vpop.f32.mrb[2].mxu0  ;;  %v489_v57 = vpop.f32.mrb[2].mxu1 }
 0x100   : > { %v346_v58 = vadd.f32 %v345_v56, %v1448_v7  ;;  %v490_v59 = vadd.f32 %v489_v57, %v1448_v7  ;;  %v347_v60 = vpop.f32.mrb[3].mxu0  ;;  %v491_v61 = vpop.f32.mrb[3].mxu1 }
 0x101   : > { %v348_v62 = vadd.f32 %v347_v60, %v1451_v47  ;;  %v492_v63 = vadd.f32 %v491_v61, %v1451_v47 }
 0x102   : > { %758 = vst [vmem:[%s1456_s19 + $0x18] sm:$0xff] %v346_v58  ;;  %830 = vst [vmem:[%s1456_s19 + $0x258] sm:$0xff] %v490_v59 }
 0x103   : > { %759 = vst [vmem:[%s1456_s19 + $0x20] sm:$0xff] %v348_v62  ;;  %831 = vst [vmem:[%s1456_s19 + $0x260] sm:$0xff] %v492_v63  ;;  %v351_v0 = vpop.f32.mrb[4].mxu0  ;;  %v495_v1 = vpop.f32.mrb[4].mxu1 }
 0x104   : > { %v352_v2 = vadd.f32 %v351_v0, %v1448_v7  ;;  %v496_v3 = vadd.f32 %v495_v1, %v1448_v7  ;;  %v353_v4 = vpop.f32.mrb[5].mxu0  ;;  %v497_v5 = vpop.f32.mrb[5].mxu1 }
 0x105   : > { %v354_v6 = vadd.f32 %v353_v4, %v1451_v47  ;;  %v498_v8 = vadd.f32 %v497_v5, %v1451_v47 }
 0x106   : > { %761 = vst [vmem:[%s1456_s19 + $0x30] sm:$0xff] %v352_v2  ;;  %833 = vst [vmem:[%s1456_s19 + $0x270] sm:$0xff] %v496_v3 }
 0x107   : > { %762 = vst [vmem:[%s1456_s19 + $0x38] sm:$0xff] %v354_v6  ;;  %834 = vst [vmem:[%s1456_s19 + $0x278] sm:$0xff] %v498_v8  ;;  %v357_v9 = vpop.f32.mrb[6].mxu0  ;;  %v501_v10 = vpop.f32.mrb[6].mxu1 }
 0x108   : > { %v358_v11 = vadd.f32 %v357_v9, %v1448_v7  ;;  %v502_v12 = vadd.f32 %v501_v10, %v1448_v7  ;;  %v359_v13 = vpop.f32.mrb[7].mxu0  ;;  %v503_v14 = vpop.f32.mrb[7].mxu1 }
 0x109   : > { %v360_v15 = vadd.f32 %v359_v13, %v1451_v47  ;;  %v504_v16 = vadd.f32 %v503_v14, %v1451_v47 }
 0x10a   : > { %764 = vst [vmem:[%s1456_s19 + $0x48] sm:$0xff] %v358_v11  ;;  %836 = vst [vmem:[%s1456_s19 + $0x288] sm:$0xff] %v502_v12 }
 0x10b   : > { %765 = vst [vmem:[%s1456_s19 + $0x50] sm:$0xff] %v360_v15  ;;  %837 = vst [vmem:[%s1456_s19 + $0x290] sm:$0xff] %v504_v16  ;;  %v363_v17 = vpop.f32.mrb[8].mxu0  ;;  %v507_v18 = vpop.f32.mrb[8].mxu1 }
 0x10c   : > { %v364_v19 = vadd.f32 %v363_v17, %v1448_v7  ;;  %v508_v20 = vadd.f32 %v507_v18, %v1448_v7  ;;  %v365_v21 = vpop.f32.mrb[9].mxu0  ;;  %v509_v22 = vpop.f32.mrb[9].mxu1 }
 0x10d   : > { %v366_v23 = vadd.f32 %v365_v21, %v1451_v47  ;;  %v510_v24 = vadd.f32 %v509_v22, %v1451_v47 }
 0x10e   : > { %767 = vst [vmem:[%s1456_s19 + $0x60] sm:$0xff] %v364_v19  ;;  %839 = vst [vmem:[%s1456_s19 + $0x2a0] sm:$0xff] %v508_v20 }
 0x10f   : > { %768 = vst [vmem:[%s1456_s19 + $0x68] sm:$0xff] %v366_v23  ;;  %840 = vst [vmem:[%s1456_s19 + $0x2a8] sm:$0xff] %v510_v24  ;;  %v369_v25 = vpop.f32.mrb[10].mxu0  ;;  %v513_v26 = vpop.f32.mrb[10].mxu1 }
 0x110   : > { %v370_v27 = vadd.f32 %v369_v25, %v1448_v7  ;;  %v514_v28 = vadd.f32 %v513_v26, %v1448_v7  ;;  %v371_v29 = vpop.f32.mrb[11].mxu0  ;;  %v515_v30 = vpop.f32.mrb[11].mxu1 }
 0x111   : > { %v372_v31 = vadd.f32 %v371_v29, %v1451_v47  ;;  %v516_v32 = vadd.f32 %v515_v30, %v1451_v47 }
 0x112   : > { %770 = vst [vmem:[%s1456_s19 + $0x78] sm:$0xff] %v370_v27  ;;  %842 = vst [vmem:[%s1456_s19 + $0x2b8] sm:$0xff] %v514_v28 }
 0x113   : > { %771 = vst [vmem:[%s1456_s19 + $0x80] sm:$0xff] %v372_v31  ;;  %843 = vst [vmem:[%s1456_s19 + $0x2c0] sm:$0xff] %v516_v32  ;;  %v375_v33 = vpop.f32.mrb[12].mxu0  ;;  %v519_v34 = vpop.f32.mrb[12].mxu1 }
 0x114   : > { %v376_v35 = vadd.f32 %v375_v33, %v1448_v7  ;;  %v520_v36 = vadd.f32 %v519_v34, %v1448_v7  ;;  %v377_v37 = vpop.f32.mrb[13].mxu0  ;;  %v521_v38 = vpop.f32.mrb[13].mxu1 }
 0x115   : > { %v378_v40 = vadd.f32 %v377_v37, %v1451_v47  ;;  %v522_v41 = vadd.f32 %v521_v38, %v1451_v47 }
 0x116   : > { %773 = vst [vmem:[%s1456_s19 + $0x90] sm:$0xff] %v376_v35  ;;  %845 = vst [vmem:[%s1456_s19 + $0x2d0] sm:$0xff] %v520_v36 }
 0x117   : > { %774 = vst [vmem:[%s1456_s19 + $0x98] sm:$0xff] %v378_v40  ;;  %846 = vst [vmem:[%s1456_s19 + $0x2d8] sm:$0xff] %v522_v41  ;;  %v381_v42 = vpop.f32.mrb[14].mxu0  ;;  %v525_v44 = vpop.f32.mrb[14].mxu1 }
 0x118   : > { %v382_v46 = vadd.f32 %v381_v42, %v1448_v7  ;;  %v526_v48 = vadd.f32 %v525_v44, %v1448_v7  ;;  %v383_v49 = vpop.f32.mrb[15].mxu0  ;;  %v527_v43 = vpop.f32.mrb[15].mxu1 }
 0x119   : > { %v384_v51 = vadd.f32 %v383_v49, %v1451_v47  ;;  %v528_v52 = vadd.f32 %v527_v43, %v1451_v47 }
 0x11a   : > { %776 = vst [vmem:[%s1456_s19 + $0xa8] sm:$0xff] %v382_v46  ;;  %848 = vst [vmem:[%s1456_s19 + $0x2e8] sm:$0xff] %v526_v48 }
 0x11b   : > { %777 = vst [vmem:[%s1456_s19 + $0xb0] sm:$0xff] %v384_v51  ;;  %849 = vst [vmem:[%s1456_s19 + $0x2f0] sm:$0xff] %v528_v52  ;;  %v387_v53 = vpop.f32.mrb[16].mxu0  ;;  %v1002_v54 = vpop.f32.mrb[16].mxu1 }
 0x11c   : > { %v388_v55 = vadd.f32 %v387_v53, %v1448_v7  ;;  %v602_v56 = vadd.f32 %v1002_v54, %v1518_v50  ;;  %v389_v57 = vpop.f32.mrb[17].mxu0  ;;  %v596_v45 = vpop.f32.mrb[17].mxu1 }
 0x11d   : > { %v390_v58 = vadd.f32 %v389_v57, %v1451_v47  ;;  %v597_v59 = vadd.f32 %v596_v45, %v1518_v50 }
 0x11e   : > { %779 = vst [vmem:[%s1456_s19 + $0xc0] sm:$0xff] %v388_v55  ;;  %760 = vst [vmem:[%s1456_s19 + $0x28] sm:$0xff] %v602_v56 }
 0x11f   : > { %780 = vst [vmem:[%s1456_s19 + $0xc8] sm:$0xff] %v390_v58  ;;  %757 = vst [vmem:[%s1456_s19 + $0x10] sm:$0xff] %v597_v59  ;;  %v393_v60 = vpop.f32.mrb[18].mxu0  ;;  %v1005_v61 = vpop.f32.mrb[18].mxu1 }
 0x120   : > { %v394_v62 = vadd.f32 %v393_v60, %v1448_v7  ;;  %v612_v63 = vadd.f32 %v1005_v61, %v1518_v50  ;;  %v395_v0 = vpop.f32.mrb[19].mxu0  ;;  %v606_v1 = vpop.f32.mrb[19].mxu1 }
 0x121   : > { %v396_v2 = vadd.f32 %v395_v0, %v1451_v47  ;;  %v607_v3 = vadd.f32 %v606_v1, %v1518_v50 }
 0x122   : > { %782 = vst [vmem:[%s1456_s19 + $0xd8] sm:$0xff] %v394_v62  ;;  %766 = vst [vmem:[%s1456_s19 + $0x58] sm:$0xff] %v612_v63 }
 0x123   : > { %783 = vst [vmem:[%s1456_s19 + $0xe0] sm:$0xff] %v396_v2  ;;  %763 = vst [vmem:[%s1456_s19 + $0x40] sm:$0xff] %v607_v3  ;;  %v399_v4 = vpop.f32.mrb[20].mxu0  ;;  %v1008_v5 = vpop.f32.mrb[20].mxu1 }
 0x124   : > { %v400_v6 = vadd.f32 %v399_v4, %v1448_v7  ;;  %v622_v8 = vadd.f32 %v1008_v5, %v1518_v50  ;;  %v401_v9 = vpop.f32.mrb[21].mxu0  ;;  %v616_v10 = vpop.f32.mrb[21].mxu1 }
 0x125   : > { %v402_v11 = vadd.f32 %v401_v9, %v1451_v47  ;;  %v617_v12 = vadd.f32 %v616_v10, %v1518_v50 }
 0x126   : > { %785 = vst [vmem:[%s1456_s19 + $0xf0] sm:$0xff] %v400_v6  ;;  %772 = vst [vmem:[%s1456_s19 + $0x88] sm:$0xff] %v622_v8 }
 0x127   : > { %786 = vst [vmem:[%s1456_s19 + $0xf8] sm:$0xff] %v402_v11  ;;  %769 = vst [vmem:[%s1456_s19 + $0x70] sm:$0xff] %v617_v12  ;;  %v405_v13 = vpop.f32.mrb[22].mxu0  ;;  %v1011_v14 = vpop.f32.mrb[22].mxu1 }
 0x128   : > { %v406_v15 = vadd.f32 %v405_v13, %v1448_v7  ;;  %v632_v16 = vadd.f32 %v1011_v14, %v1518_v50  ;;  %v407_v17 = vpop.f32.mrb[23].mxu0  ;;  %v626_v18 = vpop.f32.mrb[23].mxu1 }
 0x129   : > { %v408_v19 = vadd.f32 %v407_v17, %v1451_v47  ;;  %v627_v20 = vadd.f32 %v626_v18, %v1518_v50 }
 0x12a   : > { %788 = vst [vmem:[%s1456_s19 + $0x108] sm:$0xff] %v406_v15  ;;  %778 = vst [vmem:[%s1456_s19 + $0xb8] sm:$0xff] %v632_v16 }
 0x12b   : > { %789 = vst [vmem:[%s1456_s19 + $0x110] sm:$0xff] %v408_v19  ;;  %775 = vst [vmem:[%s1456_s19 + $0xa0] sm:$0xff] %v627_v20  ;;  %v411_v21 = vpop.f32.mrb[24].mxu0  ;;  %v1014_v22 = vpop.f32.mrb[24].mxu1 }
 0x12c   : > { %v412_v23 = vadd.f32 %v411_v21, %v1448_v7  ;;  %v642_v24 = vadd.f32 %v1014_v22, %v1518_v50  ;;  %v413_v25 = vpop.f32.mrb[25].mxu0  ;;  %v636_v26 = vpop.f32.mrb[25].mxu1 }
 0x12d   : > { %v414_v27 = vadd.f32 %v413_v25, %v1451_v47  ;;  %v637_v28 = vadd.f32 %v636_v26, %v1518_v50 }
 0x12e   : > { %791 = vst [vmem:[%s1456_s19 + $0x120] sm:$0xff] %v412_v23  ;;  %784 = vst [vmem:[%s1456_s19 + $0xe8] sm:$0xff] %v642_v24 }
 0x12f   : > { %792 = vst [vmem:[%s1456_s19 + $0x128] sm:$0xff] %v414_v27  ;;  %781 = vst [vmem:[%s1456_s19 + $0xd0] sm:$0xff] %v637_v28  ;;  %v417_v29 = vpop.f32.mrb[26].mxu0  ;;  %v1017_v30 = vpop.f32.mrb[26].mxu1 }
 0x130   : > { %v418_v31 = vadd.f32 %v417_v29, %v1448_v7  ;;  %v652_v32 = vadd.f32 %v1017_v30, %v1518_v50  ;;  %v419_v33 = vpop.f32.mrb[27].mxu0  ;;  %v646_v34 = vpop.f32.mrb[27].mxu1 }
 0x131   : > { %v420_v35 = vadd.f32 %v419_v33, %v1451_v47  ;;  %v647_v36 = vadd.f32 %v646_v34, %v1518_v50 }
 0x132   : > { %794 = vst [vmem:[%s1456_s19 + $0x138] sm:$0xff] %v418_v31  ;;  %790 = vst [vmem:[%s1456_s19 + $0x118] sm:$0xff] %v652_v32 }
 0x133   : > { %795 = vst [vmem:[%s1456_s19 + $0x140] sm:$0xff] %v420_v35  ;;  %787 = vst [vmem:[%s1456_s19 + $0x100] sm:$0xff] %v647_v36  ;;  %v423_v37 = vpop.f32.mrb[28].mxu0  ;;  %v1020_v38 = vpop.f32.mrb[28].mxu1 }
 0x134   : > { %v424_v39 = vadd.f32 %v423_v37, %v1448_v7  ;;  %v662_v40 = vadd.f32 %v1020_v38, %v1518_v50  ;;  %v425_v41 = vpop.f32.mrb[29].mxu0  ;;  %v656_v42 = vpop.f32.mrb[29].mxu1 }
 0x135   : > { %v426_v44 = vadd.f32 %v425_v41, %v1451_v47  ;;  %v657_v46 = vadd.f32 %v656_v42, %v1518_v50 }
 0x136   : > { %797 = vst [vmem:[%s1456_s19 + $0x150] sm:$0xff] %v424_v39  ;;  %796 = vst [vmem:[%s1456_s19 + $0x148] sm:$0xff] %v662_v40 }
 0x137   : > { %798 = vst [vmem:[%s1456_s19 + $0x158] sm:$0xff] %v426_v44  ;;  %793 = vst [vmem:[%s1456_s19 + $0x130] sm:$0xff] %v657_v46  ;;  %v429_v48 = vpop.f32.mrb[30].mxu0  ;;  %v1023_v49 = vpop.f32.mrb[30].mxu1 }
 0x138   : > { %v430_v43 = vadd.f32 %v429_v48, %v1448_v7  ;;  %v672_v51 = vadd.f32 %v1023_v49, %v1518_v50  ;;  %v431_v52 = vpop.f32.mrb[31].mxu0  ;;  %v666_v53 = vpop.f32.mrb[31].mxu1 }
 0x139   : > { %v432_v54 = vadd.f32 %v431_v52, %v1451_v47  ;;  %v667_v55 = vadd.f32 %v666_v53, %v1518_v50 }
 0x13a   : > { %800 = vst [vmem:[%s1456_s19 + $0x168] sm:$0xff] %v430_v43  ;;  %802 = vst [vmem:[%s1456_s19 + $0x178] sm:$0xff] %v672_v51 }
 0x13b   : > { %801 = vst [vmem:[%s1456_s19 + $0x170] sm:$0xff] %v432_v54  ;;  %799 = vst [vmem:[%s1456_s19 + $0x160] sm:$0xff] %v667_v55  ;;  %v435_v56 = vpop.f32.mrb[32].mxu0  ;;  %v1026_v57 = vpop.f32.mrb[32].mxu1 }
 0x13c   : > { %v436_v45 = vadd.f32 %v435_v56, %v1448_v7  ;;  %v682_v58 = vadd.f32 %v1026_v57, %v1518_v50  ;;  %v437_v59 = vpop.f32.mrb[33].mxu0  ;;  %v676_v60 = vpop.f32.mrb[33].mxu1 }
 0x13d   : > { %v438_v61 = vadd.f32 %v437_v59, %v1451_v47  ;;  %v677_v62 = vadd.f32 %v676_v60, %v1518_v50 }
 0x13e   : > { %803 = vst [vmem:[%s1456_s19 + $0x180] sm:$0xff] %v436_v45  ;;  %808 = vst [vmem:[%s1456_s19 + $0x1a8] sm:$0xff] %v682_v58 }
 0x13f   : > { %804 = vst [vmem:[%s1456_s19 + $0x188] sm:$0xff] %v438_v61  ;;  %805 = vst [vmem:[%s1456_s19 + $0x190] sm:$0xff] %v677_v62  ;;  %v441_v63 = vpop.f32.mrb[34].mxu0  ;;  %v1029_v0 = vpop.f32.mrb[34].mxu1 }
 0x140   : > { %v442_v1 = vadd.f32 %v441_v63, %v1448_v7  ;;  %v692_v2 = vadd.f32 %v1029_v0, %v1518_v50  ;;  %v443_v3 = vpop.f32.mrb[35].mxu0  ;;  %v686_v4 = vpop.f32.mrb[35].mxu1 }
 0x141   : > { %v444_v5 = vadd.f32 %v443_v3, %v1451_v47  ;;  %v687_v6 = vadd.f32 %v686_v4, %v1518_v50 }
 0x142   : > { %806 = vst [vmem:[%s1456_s19 + $0x198] sm:$0xff] %v442_v1  ;;  %814 = vst [vmem:[%s1456_s19 + $0x1d8] sm:$0xff] %v692_v2 }
 0x143   : > { %807 = vst [vmem:[%s1456_s19 + $0x1a0] sm:$0xff] %v444_v5  ;;  %811 = vst [vmem:[%s1456_s19 + $0x1c0] sm:$0xff] %v687_v6  ;;  %v447_v8 = vpop.f32.mrb[36].mxu0  ;;  %v1032_v9 = vpop.f32.mrb[36].mxu1 }
 0x144   : > { %v448_v10 = vadd.f32 %v447_v8, %v1448_v7  ;;  %v702_v11 = vadd.f32 %v1032_v9, %v1518_v50  ;;  %v449_v12 = vpop.f32.mrb[37].mxu0  ;;  %v696_v13 = vpop.f32.mrb[37].mxu1 }
 0x145   : > { %v450_v14 = vadd.f32 %v449_v12, %v1451_v47  ;;  %v697_v15 = vadd.f32 %v696_v13, %v1518_v50 }
 0x146   : > { %809 = vst [vmem:[%s1456_s19 + $0x1b0] sm:$0xff] %v448_v10  ;;  %820 = vst [vmem:[%s1456_s19 + $0x208] sm:$0xff] %v702_v11 }
 0x147   : > { %810 = vst [vmem:[%s1456_s19 + $0x1b8] sm:$0xff] %v450_v14  ;;  %817 = vst [vmem:[%s1456_s19 + $0x1f0] sm:$0xff] %v697_v15  ;;  %v453_v16 = vpop.f32.mrb[38].mxu0  ;;  %v1035_v17 = vpop.f32.mrb[38].mxu1 }
 0x148   : > { %v454_v18 = vadd.f32 %v453_v16, %v1448_v7  ;;  %v712_v19 = vadd.f32 %v1035_v17, %v1518_v50  ;;  %v455_v20 = vpop.f32.mrb[39].mxu0  ;;  %v706_v21 = vpop.f32.mrb[39].mxu1 }
 0x149   : > { %v456_v22 = vadd.f32 %v455_v20, %v1451_v47  ;;  %v707_v23 = vadd.f32 %v706_v21, %v1518_v50 }
 0x14a   : > { %812 = vst [vmem:[%s1456_s19 + $0x1c8] sm:$0xff] %v454_v18  ;;  %826 = vst [vmem:[%s1456_s19 + $0x238] sm:$0xff] %v712_v19 }
 0x14b   : > { %813 = vst [vmem:[%s1456_s19 + $0x1d0] sm:$0xff] %v456_v22  ;;  %823 = vst [vmem:[%s1456_s19 + $0x220] sm:$0xff] %v707_v23  ;;  %v459_v24 = vpop.f32.mrb[40].mxu0  ;;  %v1038_v25 = vpop.f32.mrb[40].mxu1 }
 0x14c   : > { %v460_v26 = vadd.f32 %v459_v24, %v1448_v7  ;;  %v722_v27 = vadd.f32 %v1038_v25, %v1518_v50  ;;  %v461_v28 = vpop.f32.mrb[41].mxu0  ;;  %v716_v29 = vpop.f32.mrb[41].mxu1 }
 0x14d   : > { %v462_v30 = vadd.f32 %v461_v28, %v1451_v47  ;;  %v717_v31 = vadd.f32 %v716_v29, %v1518_v50 }
 0x14e   : > { %815 = vst [vmem:[%s1456_s19 + $0x1e0] sm:$0xff] %v460_v26  ;;  %832 = vst [vmem:[%s1456_s19 + $0x268] sm:$0xff] %v722_v27 }
 0x14f   : > { %816 = vst [vmem:[%s1456_s19 + $0x1e8] sm:$0xff] %v462_v30  ;;  %829 = vst [vmem:[%s1456_s19 + $0x250] sm:$0xff] %v717_v31  ;;  %v465_v32 = vpop.f32.mrb[42].mxu0  ;;  %v1041_v33 = vpop.f32.mrb[42].mxu1 }
 0x150   : > { %v466_v34 = vadd.f32 %v465_v32, %v1448_v7  ;;  %v732_v35 = vadd.f32 %v1041_v33, %v1518_v50  ;;  %v467_v36 = vpop.f32.mrb[43].mxu0  ;;  %v726_v37 = vpop.f32.mrb[43].mxu1 }
 0x151   : > { %v468_v38 = vadd.f32 %v467_v36, %v1451_v47  ;;  %v727_v39 = vadd.f32 %v726_v37, %v1518_v50 }
 0x152   : > { %818 = vst [vmem:[%s1456_s19 + $0x1f8] sm:$0xff] %v466_v34  ;;  %838 = vst [vmem:[%s1456_s19 + $0x298] sm:$0xff] %v732_v35 }
 0x153   : > { %819 = vst [vmem:[%s1456_s19 + $0x200] sm:$0xff] %v468_v38  ;;  %835 = vst [vmem:[%s1456_s19 + $0x280] sm:$0xff] %v727_v39  ;;  %v471_v40 = vpop.f32.mrb[44].mxu0  ;;  %v1044_v41 = vpop.f32.mrb[44].mxu1 }
 0x154   : > { %v472_v42 = vadd.f32 %v471_v40, %v1448_v7  ;;  %v742_v44 = vadd.f32 %v1044_v41, %v1518_v50  ;;  %v473_v46 = vpop.f32.mrb[45].mxu0  ;;  %v736_v48 = vpop.f32.mrb[45].mxu1 }
 0x155   : > { %v474_v49 = vadd.f32 %v473_v46, %v1451_v47  ;;  %v737_v43 = vadd.f32 %v736_v48, %v1518_v50 }
 0x156   : > { %821 = vst [vmem:[%s1456_s19 + $0x210] sm:$0xff] %v472_v42  ;;  %844 = vst [vmem:[%s1456_s19 + $0x2c8] sm:$0xff] %v742_v44 }
 0x157   : > { %822 = vst [vmem:[%s1456_s19 + $0x218] sm:$0xff] %v474_v49  ;;  %841 = vst [vmem:[%s1456_s19 + $0x2b0] sm:$0xff] %v737_v43  ;;  %v477_v51 = vpop.f32.mrb[46].mxu0  ;;  %v1047_v52 = vpop.f32.mrb[46].mxu1 }
 0x158   : > { %v478_v53 = vadd.f32 %v477_v51, %v1448_v7  ;;  %v752_v54 = vadd.f32 %v1047_v52, %v1518_v50  ;;  %v479_v55 = vpop.f32.mrb[47].mxu0  ;;  %v746_v56 = vpop.f32.mrb[47].mxu1 }
 0x159   : > { %v480_v57 = vadd.f32 %v479_v55, %v1451_v47  ;;  %v747_v45 = vadd.f32 %v746_v56, %v1518_v50 }
 0x15a   : > { %824 = vst [vmem:[%s1456_s19 + $0x228] sm:$0xff] %v478_v53  ;;  %850 = vst [vmem:[%s1456_s19 + $0x2f8] sm:$0xff] %v752_v54 }
 0x15b   : > { %825 = vst [vmem:[%s1456_s19 + $0x230] sm:$0xff] %v480_v57  ;;  %847 = vst [vmem:[%s1456_s19 + $0x2e0] sm:$0xff] %v747_v45 }
 0x15c PF: > { %s13_s12 = sadd.s32 1, %s1144_s12  }
 0x15d   : > { %p10_p4 = scmp.ge.s32.totalorder %s13_s12, 4  }
 0x15f   :  { %12 = sbr.rel (!%p10_p4) target bundleno = 1 (0x1), region = 62 }

// kernel: ts_transformer_forward.23
= control target key start
LH: loop header
LB: loop body
LE: loop exit
PB: predicated region body
PF: predicated region fallthrough
CT: control target
= control target key end

     0   :  { %s1119_s12 = smov 0   ;;  %s1576_s0 = inlined_call_operand.vmem [shape: f32[512,128], index: 0, kind: input, shape index: {}]   ;;  %s1577_s1 = inlined_call_operand.vmem [shape: f32[128,3], index: 1, kind: input, shape index: {}]   ;;  %s1578_s2 = inlined_call_operand.vmem [shape: f32[1,3], index: 2, kind: input, shape index: {}]   ;;  %s1579_s3 = inlined_call_operand.vmem [shape: f32[512,3], index: 3, kind: output, shape index: {}]  }
   0x1 LB: > { %s831_s13 = sadd.s32 4294967295, %s1097_s12   ;;  %p835_p0 = scmp.ge.s32.totalorder %s1097_s12, 1  ;;  %s1097_s12 = sphi %s1119_s12, %s13_s12  }
   0x2   : > { %p138_p1 = scmp.lt.s32.totalorder %s1097_s12, 3 }
   0x4   : > { %p139_p2 = pnand %p835_p0, %p138_p1 }
   0x5   : > { %v494_v0 = vld [vmem:[%s1577_s1] sm:$0xff] (!%p139_p2)  ;;  %v495_v1 = vld [vmem:[%s1577_s1 + $0x8] sm:$0xff] (!%p139_p2)  ;;  %v496_v2 = vld [vmem:[%s1577_s1 + $0x10] sm:$0xff] (!%p139_p2)  ;;  %s836_s20 = sshll.u32 (!%p139_p2), %s831_s13, 5  ;;  %vm742_vm0 = vcmask (!%p139_p2), 23552  }
   0x6   : > { %142 = sbr.rel (%p139_p2) target bundleno = 319 (0x13f), region = 32  ;;  %v971_v3 = vpack.c.bf16 (!%p139_p2), %v495_v1, %v494_v0  ;;  %v497_v4 = vld [vmem:[%s1577_s1 + $0x18] sm:$0xff] (!%p139_p2)  ;;  %v498_v5 = vld [vmem:[%s1577_s1 + $0x20] sm:$0xff] (!%p139_p2)  ;;  %v499_v6 = vld [vmem:[%s1577_s1 + $0x28] sm:$0xff] (!%p139_p2)  ;;  %p163_p3 = scmp.lt.s32.totalorder (!%p139_p2), %s836_s20, 63 }
   0x7   : > { %v975_v7 = vpack.c.bf16 (!%p139_p2), %v497_v4, %v496_v2  ;;  %v500_v8 = vld [vmem:[%s1577_s1 + $0x30] sm:$0xff] (!%p139_p2)  ;;  %v501_v9 = vld [vmem:[%s1577_s1 + $0x38] sm:$0xff] (!%p139_p2)  ;;  %v502_v10 = vld [vmem:[%s1577_s1 + $0x40] sm:$0xff] (!%p139_p2)  ;;  %v979_v17 = vpack.c.bf16 (!%p139_p2), %v499_v6, %v498_v5 }
   0x8   : > { %972 = vmatprep.subr.bf16.mxu0 (!%p139_p2), %v971_v3  ;;  %1003 = vmatprep.subr.bf16.mxu1 (!%p139_p2), %v971_v3  ;;  %v503_v11 = vld [vmem:[%s1577_s1 + $0x48] sm:$0xff] (!%p139_p2)  ;;  %v504_v12 = vld [vmem:[%s1577_s1 + $0x50] sm:$0xff] (!%p139_p2)  ;;  %v505_v13 = vld [vmem:[%s1577_s1 + $0x58] sm:$0xff] (!%p139_p2)  ;;  %v983_v19 = vpack.c.bf16 (!%p139_p2), %v501_v9, %v500_v8 }
   0x9   : > { %974 = vmatpush3.bf16.msra.mxu0 (!%p139_p2), %v971_v3  ;;  %1011 = vmatpush3.bf16.msra.mxu1 (!%p139_p2), %v971_v3  ;;  %v506_v14 = vld [vmem:[%s1577_s1 + $0x60] sm:$0xff] (!%p139_p2)  ;;  %v507_v15 = vld [vmem:[%s1577_s1 + $0x68] sm:$0xff] (!%p139_p2)  ;;  %v508_v16 = vld [vmem:[%s1577_s1 + $0x70] sm:$0xff] (!%p139_p2)  ;;  %v1185_v20 = vpack.c.bf16 (!%p139_p2), %v503_v11, %v502_v10  ;;  %v1187_v21 = vpack.c.bf16 (!%p139_p2), %v505_v13, %v504_v12 }
   0xa   : > { %976 = vmatprep.subr.bf16.mxu0 (!%p139_p2), %v975_v7  ;;  %1004 = vmatprep.subr.bf16.mxu1 (!%p139_p2), %v975_v7  ;;  %v509_v18 = vld [vmem:[%s1577_s1 + $0x78] sm:$0xff] (!%p139_p2)  ;;  %v1189_v22 = vpack.c.bf16 (!%p139_p2), %v507_v15, %v506_v14 }
   0xb   : > { %v1191_v23 = vpack.c.bf16 (!%p139_p2), %v509_v18, %v508_v16 }
   0xd   : > { %s1581_s20 = smov (!%p163_p3, %s836_s20), 63  ;;  %978 = vmatpush3.bf16.msra.mxu0 %v975_v7  ;;  %1012 = vmatpush3.bf16.msra.mxu1 %v975_v7 }
   0xe   : > { %s837_s22 = sshll.u32 %s1581_s20, 3  ;;  %980 = vmatprep.subr.bf16.mxu0 %v979_v17  ;;  %1005 = vmatprep.subr.bf16.mxu1 %v979_v17 }
   0xf   : > { %s1183_s25 = scalar_lea.vmem %s1576_s0, %s837_s22  ;;  %s1475_s30 = scalar_lea.vmem %s1579_s3, %s837_s22 }
  0x10   : > { %v1194_v24 = vld [vmem:[%s1183_s25] sm:$0xff]  ;;  %v1200_v26 = vld [vmem:[%s1183_s25 + $0x8] sm:$0xff]  ;;  %v1212_v31 = vld [vmem:[%s1183_s25 + $0x10] sm:$0xff] }
  0x11   : > { %v1197_v25 = vld [vmem:[%s1183_s25 + $0x80] sm:$0xff]  ;;  %v206_v27 = vmul.f32 %v1194_v24, %v1194_v24  ;;  %v207_v29 = vmul.f32 %v1200_v26, %v1200_v26  ;;  %v1209_v30 = vld [vmem:[%s1183_s25 + $0x88] sm:$0xff]  ;;  %v1215_v32 = vld [vmem:[%s1183_s25 + $0x90] sm:$0xff]  ;;  %v208_v34 = vmul.f32 %v1212_v31, %v1212_v31  ;;  %982 = vmatpush3.bf16.msra.mxu0 %v979_v17  ;;  %1013 = vmatpush3.bf16.msra.mxu1 %v979_v17 }
  0x12   : > { %v222_v28 = vmul.f32 %v1197_v25, %v1197_v25  ;;  %v223_v33 = vmul.f32 %v1209_v30, %v1209_v30  ;;  %v224_v35 = vmul.f32 %v1215_v32, %v1215_v32  ;;  %v1224_v36 = vld [vmem:[%s1183_s25 + $0x18] sm:$0xff]  ;;  %984 = vmatprep.subr.bf16.mxu0 %v983_v19  ;;  %1006 = vmatprep.subr.bf16.mxu1 %v983_v19  ;;  %v1245_v58 = vld [vmem:[%s1183_s25 + $0x20] sm:$0xff]  ;;  %v1254_v0 = vld [vmem:[%s1183_s25 + $0x28] sm:$0xff] }
  0x13   : > { %v1227_v37 = vld [vmem:[%s1183_s25 + $0x98] sm:$0xff]  ;;  %v238_v38 = vmul.f32 %v206_v27, %v1194_v24  ;;  %v239_v40 = vmul.f32 %v207_v29, %v1200_v26  ;;  %v209_v41 = vmul.f32 %v1224_v36, %v1224_v36  ;;  %v240_v43 = vmul.f32 %v208_v34, %v1212_v31  ;;  %v1248_v59 = vld [vmem:[%s1183_s25 + $0xa0] sm:$0xff]  ;;  %v1257_v1 = vld [vmem:[%s1183_s25 + $0xa8] sm:$0xff] }
  0x14   : > { %v254_v39 = vmul.f32 %v222_v28, %v1197_v25  ;;  %v255_v42 = vmul.f32 %v223_v33, %v1209_v30  ;;  %v256_v44 = vmul.f32 %v224_v35, %v1215_v32  ;;  %v225_v45 = vmul.f32 %v1227_v37, %v1227_v37  ;;  %v1260_v2 = vld [vmem:[%s1183_s25 + $0x30] sm:$0xff] }
  0x15   : > { %v270_v46 = vmul.f32 0.044715, %v238_v38  ;;  %v271_v48 = vmul.f32 0.044715, %v239_v40  ;;  %v241_v49 = vmul.f32 %v209_v41, %v1224_v36  ;;  %v272_v51 = vmul.f32 0.044715, %v240_v43  ;;  %986 = vmatpush3.bf16.msra.mxu0 %v983_v19  ;;  %1014 = vmatpush3.bf16.msra.mxu1 %v983_v19 }
  0x16   : > { %v286_v47 = vmul.f32 0.044715, %v254_v39  ;;  %v287_v50 = vmul.f32 0.044715, %v255_v42  ;;  %v288_v52 = vmul.f32 0.044715, %v256_v44  ;;  %v257_v53 = vmul.f32 %v225_v45, %v1227_v37  ;;  %988 = vmatprep.subr.bf16.mxu0 %v1185_v20  ;;  %1007 = vmatprep.subr.bf16.mxu1 %v1185_v20 }
  0x17   : > { %v302_v54 = vadd.f32 %v270_v46, %v1194_v24  ;;  %v303_v56 = vadd.f32 %v271_v48, %v1200_v26  ;;  %v273_v57 = vmul.f32 0.044715, %v241_v49  ;;  %v304_v61 = vadd.f32 %v272_v51, %v1212_v31  ;;  %v1271_v14 = vld [vmem:[%s1183_s25 + $0xb0] sm:$0xff]  ;;  %v1292_v41 = vld [vmem:[%s1183_s25 + $0x38] sm:$0xff]  ;;  %v1306_v49 = vld [vmem:[%s1183_s25 + $0x40] sm:$0xff] }
  0x18   : > { %v318_v55 = vadd.f32 %v286_v47, %v1197_v25  ;;  %v319_v60 = vadd.f32 %v287_v50, %v1209_v30  ;;  %v320_v62 = vadd.f32 %v288_v52, %v1215_v32  ;;  %v289_v63 = vmul.f32 0.044715, %v257_v53  ;;  %v1299_v45 = vld [vmem:[%s1183_s25 + $0xb8] sm:$0xff] }
  0x19   : > { %v334_v3 = vmul.f32 0.7978846, %v302_v54  ;;  %v335_v5 = vmul.f32 0.7978846, %v303_v56  ;;  %v305_v6 = vadd.f32 %v273_v57, %v1224_v36  ;;  %v336_v8 = vmul.f32 0.7978846, %v304_v61  ;;  %990 = vmatpush3.bf16.msra.mxu0 %v1185_v20  ;;  %1015 = vmatpush3.bf16.msra.mxu1 %v1185_v20 }
  0x1a   : > { %v350_v4 = vmul.f32 0.7978846, %v318_v55  ;;  %v351_v7 = vmul.f32 0.7978846, %v319_v60  ;;  %v352_v9 = vmul.f32 0.7978846, %v320_v62  ;;  %v321_v10 = vadd.f32 %v289_v63, %v1227_v37  ;;  %992 = vmatprep.subr.bf16.mxu0 %v1187_v21  ;;  %1008 = vmatprep.subr.bf16.mxu1 %v1187_v21 }
  0x1b   : > { %1027 = vtanh.f32 %v334_v3  ;;  %v337_v11 = vmul.f32 0.7978846, %v305_v6  ;;  %v210_v12 = vmul.f32 %v1245_v58, %v1245_v58  ;;  %v226_v13 = vmul.f32 %v1248_v59, %v1248_v59 }
  0x1c   : > { %1029 = vtanh.f32 %v350_v4  ;;  %v353_v15 = vmul.f32 0.7978846, %v321_v10  ;;  %v211_v16 = vmul.f32 %v1254_v0, %v1254_v0  ;;  %v227_v17 = vmul.f32 %v1257_v1, %v1257_v1 }
  0x1d   : > { %1031 = vtanh.f32 %v335_v5  ;;  %v242_v18 = vmul.f32 %v210_v12, %v1245_v58  ;;  %v258_v19 = vmul.f32 %v226_v13, %v1248_v59  ;;  %v212_v27 = vmul.f32 %v1260_v2, %v1260_v2  ;;  %994 = vmatpush3.bf16.msra.mxu0 %v1187_v21  ;;  %1016 = vmatpush3.bf16.msra.mxu1 %v1187_v21 }
  0x1e   : > { %1033 = vtanh.f32 %v351_v7  ;;  %v243_v28 = vmul.f32 %v211_v16, %v1254_v0  ;;  %v259_v29 = vmul.f32 %v227_v17, %v1257_v1  ;;  %v228_v20 = vmul.f32 %v1271_v14, %v1271_v14  ;;  %996 = vmatprep.subr.bf16.mxu0 %v1189_v22  ;;  %1009 = vmatprep.subr.bf16.mxu1 %v1189_v22 }
  0x1f   : > { %1035 = vtanh.f32 %v336_v8  ;;  %v274_v33 = vmul.f32 0.044715, %v242_v18  ;;  %v290_v34 = vmul.f32 0.044715, %v258_v19  ;;  %v244_v35 = vmul.f32 %v212_v27, %v1260_v2 }
  0x20   : > { %1037 = vtanh.f32 %v352_v9  ;;  %v275_v38 = vmul.f32 0.044715, %v243_v28  ;;  %v291_v39 = vmul.f32 0.044715, %v259_v29  ;;  %v260_v40 = vmul.f32 %v228_v20, %v1271_v14 }
  0x21   : > { %1039 = vtanh.f32 %v337_v11  ;;  %v306_v42 = vadd.f32 %v274_v33, %v1245_v58  ;;  %v322_v43 = vadd.f32 %v290_v34, %v1248_v59  ;;  %v276_v44 = vmul.f32 0.044715, %v244_v35  ;;  %998 = vmatpush3.bf16.msra.mxu0 %v1189_v22  ;;  %1017 = vmatpush3.bf16.msra.mxu1 %v1189_v22 }
  0x22   : > { %1041 = vtanh.f32 %v353_v15  ;;  %v307_v46 = vadd.f32 %v275_v38, %v1254_v0  ;;  %v323_v47 = vadd.f32 %v291_v39, %v1257_v1  ;;  %v292_v48 = vmul.f32 0.044715, %v260_v40  ;;  %1000 = vmatprep.subr.bf16.mxu0 %v1191_v23  ;;  %1010 = vmatprep.subr.bf16.mxu1 %v1191_v23 }
  0x23   : > { %v338_v21 = vmul.f32 0.7978846, %v306_v42  ;;  %v354_v50 = vmul.f32 0.7978846, %v322_v43  ;;  %v308_v51 = vadd.f32 %v276_v44, %v1260_v2  ;;  %v213_v52 = vmul.f32 %v1292_v41, %v1292_v41  ;;  %v1331_v43 = vld [vmem:[%s1183_s25 + $0xc0] sm:$0xff] }
  0x24   : > { %v339_v53 = vmul.f32 0.7978846, %v307_v46  ;;  %v355_v54 = vmul.f32 0.7978846, %v323_v47  ;;  %v324_v55 = vadd.f32 %v292_v48, %v1271_v14  ;;  %v229_v56 = vmul.f32 %v1299_v45, %v1299_v45 }
  0x25   : > { %v1028_v57 = vpop.eup %1027  ;;  %1043 = vtanh.f32 %v338_v21  ;;  %v340_v60 = vmul.f32 0.7978846, %v308_v51  ;;  %v245_v61 = vmul.f32 %v213_v52, %v1292_v41  ;;  %v214_v62 = vmul.f32 %v1306_v49, %v1306_v49  ;;  %1002 = vmatpush3.bf16.msra.mxu0 %v1191_v23  ;;  %1018 = vmatpush3.bf16.msra.mxu1 %v1191_v23 }
  0x26   : > { %v1030_v63 = vpop.eup %1029  ;;  %v398_v3 = vadd.f32 1.0, %v1028_v57  ;;  %1045 = vtanh.f32 %v354_v50  ;;  %v356_v4 = vmul.f32 0.7978846, %v324_v55  ;;  %v261_v5 = vmul.f32 %v229_v56, %v1299_v45 }
  0x27   : > { %v1032_v6 = vpop.eup %1031  ;;  %v414_v7 = vadd.f32 1.0, %v1030_v63  ;;  %1047 = vtanh.f32 %v339_v53  ;;  %v277_v22 = vmul.f32 0.044715, %v245_v61  ;;  %v246_v8 = vmul.f32 %v214_v62, %v1306_v49 }
  0x28   : > { %v1034_v9 = vpop.eup %1033  ;;  %v430_v10 = vmul.f32 0.5, %v398_v3  ;;  %v399_v11 = vadd.f32 1.0, %v1032_v6  ;;  %1049 = vtanh.f32 %v355_v54  ;;  %v293_v12 = vmul.f32 0.044715, %v261_v5  ;;  %v1344_v54 = vld [vmem:[%s1183_s25 + $0xc8] sm:$0xff] }
  0x29   : > { %v1036_v13 = vpop.eup %1035  ;;  %v446_v15 = vmul.f32 0.5, %v414_v7  ;;  %v415_v16 = vadd.f32 1.0, %v1034_v9  ;;  %1051 = vtanh.f32 %v340_v60  ;;  %v309_v17 = vadd.f32 %v277_v22, %v1292_v41 }
  0x2a   : > { %v1038_v18 = vpop.eup %1037  ;;  %v462_v19 = vmul.f32 %v430_v10, %v1194_v24  ;;  %v431_v27 = vmul.f32 0.5, %v399_v11  ;;  %v400_v28 = vadd.f32 1.0, %v1036_v13  ;;  %1053 = vtanh.f32 %v356_v4  ;;  %v1334_v24 = vld [vmem:[%s1183_s25 + $0x48] sm:$0xff] }
  0x2b   : > { %v1040_v29 = vpop.eup %1039  ;;  %v478_v20 = vmul.f32 %v446_v15, %v1197_v25  ;;  %v447_v33 = vmul.f32 0.5, %v415_v16  ;;  %v416_v34 = vadd.f32 1.0, %v1038_v18  ;;  %v341_v35 = vmul.f32 0.7978846, %v309_v17  ;;  %v1355_v15 = vld [vmem:[%s1183_s25 + $0x50] sm:$0xff] }
  0x2c   : > { %v1042_v23 = vpop.eup %1041  ;;  %923 = vmatprep.mubr.f32.mxu0 %v462_v19  ;;  %v463_v38 = vmul.f32 %v431_v27, %v1200_v26  ;;  %v432_v39 = vmul.f32 0.5, %v400_v28  ;;  %v401_v40 = vadd.f32 1.0, %v1040_v29  ;;  %v325_v42 = vadd.f32 %v293_v12, %v1299_v45 }
  0x2d   : > { %947 = vmatprep.mubr.f32.mxu1 %v478_v20  ;;  %v479_v44 = vmul.f32 %v447_v33, %v1209_v30  ;;  %v448_v25 = vmul.f32 0.5, %v416_v34  ;;  %v417_v46 = vadd.f32 1.0, %v1042_v23  ;;  %1055 = vtanh.f32 %v341_v35  ;;  %v1363_v20 = vld [vmem:[%s1183_s25 + $0xd0] sm:$0xff] }
  0x2e   : > { %924 = vmatmul.mubr.f32.vlgmr.msra.gmra.mrb[0].mxu0 %v463_v38  ;;  %v464_v47 = vmul.f32 %v432_v39, %v1212_v31  ;;  %v433_v48 = vmul.f32 0.5, %v401_v40  ;;  %v357_v26 = vmul.f32 0.7978846, %v325_v42  ;;  %v278_v21 = vmul.f32 0.044715, %v246_v8  ;;  %v1369_v38 = vld [vmem:[%s1183_s25 + $0x58] sm:$0xff] }
  0x2f   : > { %v1044_v50 = vpop.eup %1043  ;;  %948 = vmatmul.mubr.f32.vlgmr.msra.gmra.mrb[0].mxu1 %v479_v44  ;;  %v480_v51 = vmul.f32 %v448_v25, %v1215_v32  ;;  %v449_v52 = vmul.f32 0.5, %v417_v46  ;;  %v230_v53 = vmul.f32 %v1331_v43, %v1331_v43  ;;  %v215_v30 = vmul.f32 %v1334_v24, %v1334_v24  ;;  %v1373_v44 = vld [vmem:[%s1183_s25 + $0xd8] sm:$0xff] }
  0x30   : > { %v1046_v55 = vpop.eup %1045  ;;  %926 = vmatprep.mubr.f32.mxu0 %v464_v47  ;;  %v465_v31 = vmul.f32 %v433_v48, %v1224_v36  ;;  %v402_v56 = vadd.f32 1.0, %v1044_v50  ;;  %1057 = vtanh.f32 %v357_v26  ;;  %v310_v57 = vadd.f32 %v278_v21, %v1306_v49  ;;  %v1380_v47 = vld [vmem:[%s1183_s25 + $0x60] sm:$0xff] }
  0x31   : > { %v1048_v60 = vpop.eup %1047  ;;  %950 = vmatprep.mubr.f32.mxu1 %v480_v51  ;;  %v481_v32 = vmul.f32 %v449_v52, %v1227_v37  ;;  %v418_v61 = vadd.f32 1.0, %v1046_v55  ;;  %v262_v62 = vmul.f32 %v230_v53, %v1331_v43  ;;  %v247_v63 = vmul.f32 %v215_v30, %v1334_v24  ;;  %v1389_v53 = vld [vmem:[%s1183_s25 + $0xe0] sm:$0xff] }
  0x32   : > { %v1050_v3 = vpop.eup %1049  ;;  %927 = vmatmul.mubr.f32.gmra.mrb[2].mxu0 %v465_v31  ;;  %v434_v4 = vmul.f32 0.5, %v402_v56  ;;  %v403_v5 = vadd.f32 1.0, %v1048_v60  ;;  %v342_v6 = vmul.f32 0.7978846, %v310_v57  ;;  %v231_v36 = vmul.f32 %v1344_v54, %v1344_v54 }
  0x33   : > { %v1052_v7 = vpop.eup %1051  ;;  %951 = vmatmul.mubr.f32.gmra.mrb[2].mxu1 %v481_v32  ;;  %v450_v22 = vmul.f32 0.5, %v418_v61  ;;  %v419_v8 = vadd.f32 1.0, %v1050_v3  ;;  %v294_v9 = vmul.f32 0.044715, %v262_v62  ;;  %v279_v37 = vmul.f32 0.044715, %v247_v63 }
  0x34   : > { %v1054_v10 = vpop.eup %1053  ;;  %v466_v11 = vmul.f32 %v434_v4, %v1245_v58  ;;  %v435_v12 = vmul.f32 0.5, %v403_v5  ;;  %v404_v13 = vadd.f32 1.0, %v1052_v7  ;;  %1059 = vtanh.f32 %v342_v6  ;;  %v1401_v4 = vld [vmem:[%s1183_s25 + $0x68] sm:$0xff] }
  0x35   : > { %v482_v16 = vmul.f32 %v450_v22, %v1248_v59  ;;  %v451_v17 = vmul.f32 0.5, %v419_v8  ;;  %v420_v18 = vadd.f32 1.0, %v1054_v10  ;;  %v326_v19 = vadd.f32 %v294_v9, %v1331_v43  ;;  %v1408_v10 = vld [vmem:[%s1183_s25 + $0xe8] sm:$0xff] }
  0x36   : > { %929 = vmatprep.mubr.f32.mxu0 %v466_v11  ;;  %v467_v27 = vmul.f32 %v435_v12, %v1254_v0  ;;  %v436_v28 = vmul.f32 0.5, %v404_v13  ;;  %v311_v29 = vadd.f32 %v279_v37, %v1334_v24  ;;  %v263_v58 = vmul.f32 %v231_v36, %v1344_v54 }
  0x37   : > { %v1056_v33 = vpop.eup %1055  ;;  %953 = vmatprep.mubr.f32.mxu1 %v482_v16  ;;  %v483_v59 = vmul.f32 %v451_v17, %v1257_v1  ;;  %v452_v34 = vmul.f32 0.5, %v420_v18  ;;  %v358_v35 = vmul.f32 0.7978846, %v326_v19  ;;  %v216_v23 = vmul.f32 %v1355_v15, %v1355_v15 }
  0x38   : > { %930 = vmatmul.mubr.f32.gmra.mrb[4].mxu0 %v467_v27  ;;  %v468_v0 = vmul.f32 %v436_v28, %v1260_v2  ;;  %v405_v39 = vadd.f32 1.0, %v1056_v33  ;;  %v343_v40 = vmul.f32 0.7978846, %v311_v29  ;;  %v295_v42 = vmul.f32 0.044715, %v263_v58  ;;  %v1419_v58 = vld [vmem:[%s1183_s25 + $0x70] sm:$0xff] }
  0x39   : > { %954 = vmatmul.mubr.f32.gmra.mrb[4].mxu1 %v483_v59  ;;  %v484_v25 = vmul.f32 %v452_v34, %v1271_v14  ;;  %1061 = vtanh.f32 %v358_v35  ;;  %v248_v1 = vmul.f32 %v216_v23, %v1355_v15  ;;  %v232_v46 = vmul.f32 %v1363_v20, %v1363_v20  ;;  %v1422_v33 = vld [vmem:[%s1183_s25 + $0xf0] sm:$0xff] }
  0x3a   : > { %v1058_v48 = vpop.eup %1057  ;;  %932 = vmatprep.mubr.f32.mxu0 %v468_v0  ;;  %v437_v2 = vmul.f32 0.5, %v405_v39  ;;  %1063 = vtanh.f32 %v343_v40  ;;  %v327_v26 = vadd.f32 %v295_v42, %v1344_v54  ;;  %v217_v21 = vmul.f32 %v1369_v38, %v1369_v38 }
  0x3b   : > { %956 = vmatprep.mubr.f32.mxu1 %v484_v25  ;;  %v421_v14 = vadd.f32 1.0, %v1058_v48  ;;  %v280_v50 = vmul.f32 0.044715, %v248_v1  ;;  %v264_v51 = vmul.f32 %v232_v46, %v1363_v20  ;;  %v233_v52 = vmul.f32 %v1373_v44, %v1373_v44 }
  0x3c   : > { %v469_v30 = vmul.f32 %v437_v2, %v1292_v41  ;;  %v359_v55 = vmul.f32 0.7978846, %v327_v26  ;;  %v249_v31 = vmul.f32 %v217_v21, %v1369_v38  ;;  %v218_v56 = vmul.f32 %v1380_v47, %v1380_v47  ;;  %v1432_v26 = vld [vmem:[%s1183_s25 + $0x78] sm:$0xff] }
  0x3d   : > { %v453_v57 = vmul.f32 0.5, %v421_v14  ;;  %v312_v60 = vadd.f32 %v280_v50, %v1355_v15  ;;  %v296_v32 = vmul.f32 0.044715, %v264_v51  ;;  %v265_v61 = vmul.f32 %v233_v52, %v1373_v44 }
  0x3e   : > { %v1060_v62 = vpop.eup %1059  ;;  %933 = vmatmul.mubr.f32.gmra.mrb[6].mxu0 %v469_v30  ;;  %1065 = vtanh.f32 %v359_v55  ;;  %v281_v63 = vmul.f32 0.044715, %v249_v31  ;;  %v250_v3 = vmul.f32 %v218_v56, %v1380_v47  ;;  %v234_v41 = vmul.f32 %v1389_v53, %v1389_v53  ;;  %v1438_v30 = vld [vmem:[%s1183_s25 + $0xf8] sm:$0xff] }
  0x3f   : > { %v485_v5 = vmul.f32 %v453_v57, %v1299_v45  ;;  %v406_v6 = vadd.f32 1.0, %v1060_v62  ;;  %v344_v36 = vmul.f32 0.7978846, %v312_v60  ;;  %v328_v7 = vadd.f32 %v296_v32, %v1363_v20 }
  0x40   : > { %v313_v22 = vadd.f32 %v281_v63, %v1369_v38  ;;  %v297_v8 = vmul.f32 0.044715, %v265_v61  ;;  %v282_v9 = vmul.f32 0.044715, %v250_v3  ;;  %v266_v37 = vmul.f32 %v234_v41, %v1389_v53 }
  0x41   : > { %957 = vmatmul.mubr.f32.gmra.mrb[6].mxu1 %v485_v5  ;;  %v438_v11 = vmul.f32 0.5, %v406_v6  ;;  %1067 = vtanh.f32 %v344_v36  ;;  %v360_v12 = vmul.f32 0.7978846, %v328_v7  ;;  %v219_v45 = vmul.f32 %v1401_v4, %v1401_v4 }
  0x42   : > { %v345_v13 = vmul.f32 0.7978846, %v313_v22  ;;  %v329_v16 = vadd.f32 %v297_v8, %v1373_v44  ;;  %v314_v17 = vadd.f32 %v282_v9, %v1380_v47  ;;  %v298_v18 = vmul.f32 0.044715, %v266_v37 }
  0x43   : > { %v1062_v19 = vpop.eup %1061  ;;  %v470_v27 = vmul.f32 %v438_v11, %v1306_v49  ;;  %1069 = vtanh.f32 %v360_v12  ;;  %v251_v28 = vmul.f32 %v219_v45, %v1401_v4  ;;  %v235_v29 = vmul.f32 %v1408_v10, %v1408_v10 }
  0x44   : > { %v1064_v59 = vpop.eup %1063  ;;  %v422_v34 = vadd.f32 1.0, %v1062_v19  ;;  %1071 = vtanh.f32 %v345_v13  ;;  %v361_v35 = vmul.f32 0.7978846, %v329_v16  ;;  %v346_v23 = vmul.f32 0.7978846, %v314_v17 }
  0x45   : > { %935 = vmatprep.mubr.f32.mxu0 %v470_v27  ;;  %v407_v0 = vadd.f32 1.0, %v1064_v59  ;;  %v330_v49 = vadd.f32 %v298_v18, %v1389_v53  ;;  %v283_v39 = vmul.f32 0.044715, %v251_v28  ;;  %v267_v40 = vmul.f32 %v235_v29, %v1408_v10 }
  0x46   : > { %v454_v42 = vmul.f32 0.5, %v422_v34  ;;  %1073 = vtanh.f32 %v361_v35  ;;  %v220_v25 = vmul.f32 %v1419_v58, %v1419_v58  ;;  %v236_v1 = vmul.f32 %v1422_v33, %v1422_v33 }
  0x47   : > { %v439_v46 = vmul.f32 0.5, %v407_v0  ;;  %1075 = vtanh.f32 %v346_v23  ;;  %v362_v48 = vmul.f32 0.7978846, %v330_v49  ;;  %v315_v2 = vadd.f32 %v283_v39, %v1401_v4 }
  0x48   : > { %v1066_v21 = vpop.eup %1065  ;;  %v486_v14 = vmul.f32 %v454_v42, %v1331_v43  ;;  %v299_v50 = vmul.f32 0.044715, %v267_v40  ;;  %v252_v51 = vmul.f32 %v220_v25, %v1419_v58  ;;  %v268_v52 = vmul.f32 %v236_v1, %v1422_v33 }
  0x49   : > { %v471_v55 = vmul.f32 %v439_v46, %v1334_v24  ;;  %v423_v31 = vadd.f32 1.0, %v1066_v21  ;;  %1077 = vtanh.f32 %v362_v48  ;;  %v347_v56 = vmul.f32 0.7978846, %v315_v2 }
  0x4a   : > { %959 = vmatprep.mubr.f32.mxu1 %v486_v14  ;;  %v331_v57 = vadd.f32 %v299_v50, %v1408_v10  ;;  %v284_v60 = vmul.f32 0.044715, %v252_v51  ;;  %v300_v32 = vmul.f32 0.044715, %v268_v52  ;;  %v221_v43 = vmul.f32 %v1432_v26, %v1432_v26 }
  0x4b   : > { %v1068_v61 = vpop.eup %1067  ;;  %936 = vmatmul.mubr.f32.gmra.mrb[8].mxu0 %v471_v55  ;;  %v455_v62 = vmul.f32 0.5, %v423_v31  ;;  %1079 = vtanh.f32 %v347_v56  ;;  %v237_v63 = vmul.f32 %v1438_v30, %v1438_v30 }
  0x4c   : > { %v408_v3 = vadd.f32 1.0, %v1068_v61  ;;  %v363_v24 = vmul.f32 0.7978846, %v331_v57  ;;  %v316_v41 = vadd.f32 %v284_v60, %v1419_v58  ;;  %v332_v5 = vadd.f32 %v300_v32, %v1422_v33 }
  0x4d   : > { %v1070_v6 = vpop.eup %1069  ;;  %v487_v36 = vmul.f32 %v455_v62, %v1344_v54  ;;  %v253_v7 = vmul.f32 %v221_v43, %v1432_v26  ;;  %v269_v22 = vmul.f32 %v237_v63, %v1438_v30 }
  0x4e   : > { %v1072_v8 = vpop.eup %1071  ;;  %v440_v9 = vmul.f32 0.5, %v408_v3  ;;  %v424_v37 = vadd.f32 1.0, %v1070_v6  ;;  %1081 = vtanh.f32 %v363_v24  ;;  %v348_v11 = vmul.f32 0.7978846, %v316_v41  ;;  %v1468_v24 = vld [vmem:[%s1578_s2] ss:$0 sm:$0xff] }
  0x4f   : > { %960 = vmatmul.mubr.f32.gmra.mrb[8].mxu1 %v487_v36  ;;  %v409_v12 = vadd.f32 1.0, %v1072_v8  ;;  %v364_v45 = vmul.f32 0.7978846, %v332_v5  ;;  %v285_v13 = vmul.f32 0.044715, %v253_v7 }
  0x50   : > { %v1074_v16 = vpop.eup %1073  ;;  %v472_v17 = vmul.f32 %v440_v9, %v1355_v15  ;;  %v456_v18 = vmul.f32 0.5, %v424_v37  ;;  %1083 = vtanh.f32 %v348_v11  ;;  %v301_v19 = vmul.f32 0.044715, %v269_v22 }
  0x51   : > { %v1076_v54 = vpop.eup %1075  ;;  %v441_v27 = vmul.f32 0.5, %v409_v12  ;;  %v425_v28 = vadd.f32 1.0, %v1074_v16  ;;  %1085 = vtanh.f32 %v364_v45  ;;  %v317_v29 = vadd.f32 %v285_v13, %v1432_v26 }
  0x52   : > { %938 = vmatprep.mubr.f32.mxu0 %v472_v17  ;;  %v488_v59 = vmul.f32 %v456_v18, %v1363_v20  ;;  %v410_v34 = vadd.f32 1.0, %v1076_v54  ;;  %v333_v35 = vadd.f32 %v301_v19, %v1438_v30 }
  0x53   : > { %v1078_v23 = vpop.eup %1077  ;;  %v473_v0 = vmul.f32 %v441_v27, %v1369_v38  ;;  %v457_v49 = vmul.f32 0.5, %v425_v28  ;;  %v349_v15 = vmul.f32 0.7978846, %v317_v29 }
  0x54   : > { %962 = vmatprep.mubr.f32.mxu1 %v488_v59  ;;  %v442_v39 = vmul.f32 0.5, %v410_v34  ;;  %v426_v40 = vadd.f32 1.0, %v1078_v23  ;;  %v365_v42 = vmul.f32 0.7978846, %v333_v35 }
  0x55   : > { %v1080_v25 = vpop.eup %1079  ;;  %939 = vmatmul.mubr.f32.gmra.mrb[10].mxu0 %v473_v0  ;;  %v489_v1 = vmul.f32 %v457_v49, %v1373_v44  ;;  %1087 = vtanh.f32 %v349_v15 }
  0x56   : > { %v474_v46 = vmul.f32 %v442_v39, %v1380_v47  ;;  %v458_v20 = vmul.f32 0.5, %v426_v40  ;;  %v411_v48 = vadd.f32 1.0, %v1080_v25  ;;  %1089 = vtanh.f32 %v365_v42 }
  0x57   : > { %963 = vmatmul.mubr.f32.gmra.mrb[10].mxu1 %v489_v1 }
  0x58   : > { %v1082_v2 = vpop.eup %1081  ;;  %941 = vmatprep.mubr.f32.mxu0 %v474_v46  ;;  %v490_v38 = vmul.f32 %v458_v20, %v1389_v53  ;;  %v443_v21 = vmul.f32 0.5, %v411_v48 }
  0x59   : > { %v427_v14 = vadd.f32 1.0, %v1082_v2 }
  0x5a   : > { %v1084_v50 = vpop.eup %1083  ;;  %965 = vmatprep.mubr.f32.mxu1 %v490_v38  ;;  %v475_v51 = vmul.f32 %v443_v21, %v1401_v4 }
  0x5b   : > { %v1086_v52 = vpop.eup %1085  ;;  %v459_v55 = vmul.f32 0.5, %v427_v14  ;;  %v412_v44 = vadd.f32 1.0, %v1084_v50 }
  0x5c   : > { %942 = vmatmul.mubr.f32.gmra.mrb[12].mxu0 %v475_v51  ;;  %v428_v31 = vadd.f32 1.0, %v1086_v52 }
  0x5d   : > { %v491_v47 = vmul.f32 %v459_v55, %v1408_v10  ;;  %v444_v56 = vmul.f32 0.5, %v412_v44 }
  0x5e   : > { %v460_v57 = vmul.f32 0.5, %v428_v31 }
  0x5f   : > { %v1088_v60 = vpop.eup %1087  ;;  %966 = vmatmul.mubr.f32.gmra.mrb[12].mxu1 %v491_v47  ;;  %v476_v53 = vmul.f32 %v444_v56, %v1419_v58 }
  0x60   : > { %v1090_v32 = vpop.eup %1089  ;;  %v492_v43 = vmul.f32 %v460_v57, %v1422_v33  ;;  %v413_v61 = vadd.f32 1.0, %v1088_v60 }
  0x61   : > { %944 = vmatprep.mubr.f32.mxu0 %v476_v53  ;;  %v429_v4 = vadd.f32 1.0, %v1090_v32 }
  0x62   : > { %968 = vmatprep.mubr.f32.mxu1 %v492_v43  ;;  %v445_v62 = vmul.f32 0.5, %v413_v61 }
  0x63   : > { %v461_v63 = vmul.f32 0.5, %v429_v4 }
  0x64   : > { %v477_v3 = vmul.f32 %v445_v62, %v1432_v26 }
  0x65   : > { %v493_v10 = vmul.f32 %v461_v63, %v1438_v30 }
  0x66   : > { %945 = vmatmul.mubr.f32.gmra.mrb[14].mxu0 %v477_v3 }
  0x67   : > { %969 = vmatmul.mubr.f32.gmra.mrb[14].mxu1 %v493_v10 }
 0x101   : > { %v925_v58 = vpop.f32.mrb[0].mxu0 }
 0x102   : > { %v589_v33 = vadd.f32 %v925_v58, %v1468_v24  ;;  %v949_v26 = vpop.f32.mrb[0].mxu1  ;;  %v583_v30 = vpop.f32.mrb[1].mxu0 }
 0x103   : > { %v669_v41 = vadd.f32 %v949_v26, %v1468_v24  ;;  %v584_v5 = vadd.f32 %v1468_v24, %v583_v30  ;;  %v663_v6 = vpop.f32.mrb[1].mxu1 }
 0x104   : > { %744 = vst.msk [vmem:[%s1475_s30 + $0x8] sm:$0xff] %vm742_vm0, %v589_v33  ;;  %v664_v36 = vadd.f32 %v1468_v24, %v663_v6 }
 0x105   : > { %760 = vst.msk [vmem:[%s1475_s30 + $0x88] sm:$0xff] %vm742_vm0, %v669_v41  ;;  %743 = vst.msk [vmem:[%s1475_s30] sm:$0xff] %vm742_vm0, %v584_v5  ;;  %v928_v7 = vpop.f32.mrb[2].mxu0 }
 0x106   : > { %759 = vst.msk [vmem:[%s1475_s30 + $0x80] sm:$0xff] %vm742_vm0, %v664_v36  ;;  %v599_v22 = vadd.f32 %v928_v7, %v1468_v24  ;;  %v952_v8 = vpop.f32.mrb[2].mxu1  ;;  %v593_v9 = vpop.f32.mrb[3].mxu0 }
 0x107   : > { %v679_v37 = vadd.f32 %v952_v8, %v1468_v24  ;;  %v594_v11 = vadd.f32 %v1468_v24, %v593_v9  ;;  %v673_v12 = vpop.f32.mrb[3].mxu1 }
 0x108   : > { %746 = vst.msk [vmem:[%s1475_s30 + $0x18] sm:$0xff] %vm742_vm0, %v599_v22  ;;  %v674_v45 = vadd.f32 %v1468_v24, %v673_v12 }
 0x109   : > { %762 = vst.msk [vmem:[%s1475_s30 + $0x98] sm:$0xff] %vm742_vm0, %v679_v37  ;;  %745 = vst.msk [vmem:[%s1475_s30 + $0x10] sm:$0xff] %vm742_vm0, %v594_v11 }
 0x10a   : > { %761 = vst.msk [vmem:[%s1475_s30 + $0x90] sm:$0xff] %vm742_vm0, %v674_v45 }
 0x10b   : > { %v931_v13 = vpop.f32.mrb[4].mxu0 }
 0x10c   : > { %v609_v16 = vadd.f32 %v931_v13, %v1468_v24  ;;  %v955_v17 = vpop.f32.mrb[4].mxu1  ;;  %v603_v18 = vpop.f32.mrb[5].mxu0 }
 0x10d   : > { %v689_v19 = vadd.f32 %v955_v17, %v1468_v24  ;;  %v604_v54 = vadd.f32 %v1468_v24, %v603_v18  ;;  %v683_v27 = vpop.f32.mrb[5].mxu1 }
 0x10e   : > { %748 = vst.msk [vmem:[%s1475_s30 + $0x28] sm:$0xff] %vm742_vm0, %v609_v16  ;;  %v684_v28 = vadd.f32 %v1468_v24, %v683_v27 }
 0x10f   : > { %764 = vst.msk [vmem:[%s1475_s30 + $0xa8] sm:$0xff] %vm742_vm0, %v689_v19  ;;  %747 = vst.msk [vmem:[%s1475_s30 + $0x20] sm:$0xff] %vm742_vm0, %v604_v54 }
 0x110   : > { %763 = vst.msk [vmem:[%s1475_s30 + $0xa0] sm:$0xff] %vm742_vm0, %v684_v28 }
 0x111   : > { %v934_v29 = vpop.f32.mrb[6].mxu0 }
 0x112   : > { %v619_v59 = vadd.f32 %v934_v29, %v1468_v24  ;;  %v613_v34 = vpop.f32.mrb[7].mxu0 }
 0x113   : > { %v614_v35 = vadd.f32 %v1468_v24, %v613_v34 }
 0x114   : > { %750 = vst.msk [vmem:[%s1475_s30 + $0x38] sm:$0xff] %vm742_vm0, %v619_v59  ;;  %v958_v23 = vpop.f32.mrb[6].mxu1 }
 0x115   : > { %v699_v0 = vadd.f32 %v958_v23, %v1468_v24  ;;  %749 = vst.msk [vmem:[%s1475_s30 + $0x30] sm:$0xff] %vm742_vm0, %v614_v35  ;;  %v693_v49 = vpop.f32.mrb[7].mxu1 }
 0x116   : > { %v694_v15 = vadd.f32 %v1468_v24, %v693_v49 }
 0x117   : > { %766 = vst.msk [vmem:[%s1475_s30 + $0xb8] sm:$0xff] %vm742_vm0, %v699_v0 }
 0x118   : > { %765 = vst.msk [vmem:[%s1475_s30 + $0xb0] sm:$0xff] %vm742_vm0, %v694_v15 }
 0x11e   : > { %v937_v39 = vpop.f32.mrb[8].mxu0 }
 0x11f   : > { %v629_v40 = vadd.f32 %v937_v39, %v1468_v24  ;;  %v623_v42 = vpop.f32.mrb[9].mxu0 }
 0x120   : > { %v624_v25 = vadd.f32 %v1468_v24, %v623_v42 }
 0x121   : > { %752 = vst.msk [vmem:[%s1475_s30 + $0x48] sm:$0xff] %vm742_vm0, %v629_v40 }
 0x122   : > { %v961_v1 = vpop.f32.mrb[8].mxu1  ;;  %751 = vst.msk [vmem:[%s1475_s30 + $0x40] sm:$0xff] %vm742_vm0, %v624_v25 }
 0x123   : > { %v709_v46 = vadd.f32 %v961_v1, %v1468_v24  ;;  %v703_v20 = vpop.f32.mrb[9].mxu1 }
 0x124   : > { %v704_v48 = vadd.f32 %v1468_v24, %v703_v20 }
 0x125   : > { %768 = vst.msk [vmem:[%s1475_s30 + $0xc8] sm:$0xff] %vm742_vm0, %v709_v46 }
 0x126   : > { %767 = vst.msk [vmem:[%s1475_s30 + $0xc0] sm:$0xff] %vm742_vm0, %v704_v48 }
 0x128   : > { %v940_v2 = vpop.f32.mrb[10].mxu0 }
 0x129   : > { %v639_v38 = vadd.f32 %v940_v2, %v1468_v24  ;;  %v633_v21 = vpop.f32.mrb[11].mxu0 }
 0x12a   : > { %v964_v14 = vpop.f32.mrb[10].mxu1  ;;  %v634_v50 = vadd.f32 %v1468_v24, %v633_v21 }
 0x12b   : > { %754 = vst.msk [vmem:[%s1475_s30 + $0x58] sm:$0xff] %vm742_vm0, %v639_v38  ;;  %v719_v51 = vadd.f32 %v964_v14, %v1468_v24  ;;  %v713_v52 = vpop.f32.mrb[11].mxu1 }
 0x12c   : > { %753 = vst.msk [vmem:[%s1475_s30 + $0x50] sm:$0xff] %vm742_vm0, %v634_v50  ;;  %v714_v55 = vadd.f32 %v1468_v24, %v713_v52 }
 0x12d   : > { %770 = vst.msk [vmem:[%s1475_s30 + $0xd8] sm:$0xff] %vm742_vm0, %v719_v51 }
 0x12e   : > { %769 = vst.msk [vmem:[%s1475_s30 + $0xd0] sm:$0xff] %vm742_vm0, %v714_v55 }
 0x12f   : > { %v943_v44 = vpop.f32.mrb[12].mxu0 }
 0x130   : > { %v649_v31 = vadd.f32 %v943_v44, %v1468_v24  ;;  %v643_v47 = vpop.f32.mrb[13].mxu0 }
 0x131   : > { %v644_v56 = vadd.f32 %v1468_v24, %v643_v47 }
 0x132   : > { %756 = vst.msk [vmem:[%s1475_s30 + $0x68] sm:$0xff] %vm742_vm0, %v649_v31  ;;  %v967_v57 = vpop.f32.mrb[12].mxu1 }
 0x133   : > { %v729_v60 = vadd.f32 %v967_v57, %v1468_v24  ;;  %755 = vst.msk [vmem:[%s1475_s30 + $0x60] sm:$0xff] %vm742_vm0, %v644_v56  ;;  %v723_v53 = vpop.f32.mrb[13].mxu1 }
 0x134   : > { %v724_v32 = vadd.f32 %v1468_v24, %v723_v53 }
 0x135   : > { %772 = vst.msk [vmem:[%s1475_s30 + $0xe8] sm:$0xff] %vm742_vm0, %v729_v60 }
 0x136   : > { %771 = vst.msk [vmem:[%s1475_s30 + $0xe0] sm:$0xff] %vm742_vm0, %v724_v32 }
 0x139   : > { %v946_v43 = vpop.f32.mrb[14].mxu0 }
 0x13a   : > { %v659_v61 = vadd.f32 %v946_v43, %v1468_v24  ;;  %v970_v4 = vpop.f32.mrb[14].mxu1  ;;  %v653_v62 = vpop.f32.mrb[15].mxu0 }
 0x13b   : > { %v739_v63 = vadd.f32 %v970_v4, %v1468_v24  ;;  %v654_v3 = vadd.f32 %v1468_v24, %v653_v62  ;;  %v733_v10 = vpop.f32.mrb[15].mxu1 }
 0x13c   : > { %758 = vst.msk [vmem:[%s1475_s30 + $0x78] sm:$0xff] %vm742_vm0, %v659_v61  ;;  %v734_v58 = vadd.f32 %v1468_v24, %v733_v10 }
 0x13d   : > { %774 = vst.msk [vmem:[%s1475_s30 + $0xf8] sm:$0xff] %vm742_vm0, %v739_v63  ;;  %757 = vst.msk [vmem:[%s1475_s30 + $0x70] sm:$0xff] %vm742_vm0, %v654_v3 }
 0x13e   : > { %773 = vst.msk [vmem:[%s1475_s30 + $0xf0] sm:$0xff] %vm742_vm0, %v734_v58 }
 0x13f PF: > { %s13_s12 = sadd.s32 1, %s1097_s12  }
 0x140   : > { %p10_p4 = scmp.ge.s32.totalorder %s13_s12, 4  }
 0x142   :  { %12 = sbr.rel (!%p10_p4) target bundleno = 1 (0x1), region = 62 }

</bundles_post_ra>
